<compile_context>
chip_gen: v7x
topology: tpu7x:2x2x1
jax: 0.10.0
libtpu: 0.0.40
codegen_flags: <defaults>
</compile_context>

<pallas_src>
import jax
import jax.numpy as jnp
import numpy as np
from jax import lax
from jax.experimental import pallas as pl
from jax.experimental.pallas import tpu as pltpu

NEG_BIG = -1e30


def dialogue_rnn_kernel(
    u_ref, qmask_ref, onehot_ref,
    wih_g_u_ref, wih_g_q_ref, whh_g_ref, bih_g_ref, bhh_g_ref,
    wih_p_u_ref, wih_p_c_ref, whh_p_ref, bih_p_ref, bhh_p_ref,
    wih_e_ref, whh_e_ref, bih_e_ref, bhh_e_ref,
    watt_ref,
    e_out_ref, alpha_out_ref,
    g_hist_scr, scale_scr,
):
    T, B, _ = u_ref.shape
    P = qmask_ref.shape[2]
    D_g = whh_g_ref.shape[0]
    D_p = whh_p_ref.shape[0]
    D_e = whh_e_ref.shape[0]
    T_pad = alpha_out_ref.shape[2]
    f32 = jnp.float32
    bf16 = jnp.bfloat16

    # History scratch must start clean (the attention masking relies on exact zeros).
    g_hist_scr[...] = jnp.zeros_like(g_hist_scr)
    scale_scr[...] = jnp.zeros_like(scale_scr)

    # Weights loaded once into values (bf16 MXU inputs, f32 accumulation).
    wih_g_u, wih_g_q, whh_g = wih_g_u_ref[...], wih_g_q_ref[...], whh_g_ref[...]
    bih_g, bhh_g = bih_g_ref[...], bhh_g_ref[...]
    wih_p_u, wih_p_c, whh_p = wih_p_u_ref[...], wih_p_c_ref[...], whh_p_ref[...]
    bih_p, bhh_p = bih_p_ref[...], bhh_p_ref[...]
    wih_e, whh_e = wih_e_ref[...], whh_e_ref[...]
    bih_e, bhh_e = bih_e_ref[...], bhh_e_ref[...]
    w_att = watt_ref[...]                                   # (1, D_g), f32

    def dot(a, b):  # bf16-in / f32-accumulate MXU matmul
        return jnp.dot(a.astype(bf16), b, preferred_element_type=f32)

    def gru_gates(gi, gh, h, H):  # PyTorch nn.GRUCell gate math (elementwise in f32)
        r = jax.nn.sigmoid(gi[:, :H] + gh[:, :H])
        z = jax.nn.sigmoid(gi[:, H:2 * H] + gh[:, H:2 * H])
        n = jnp.tanh(gi[:, 2 * H:] + r * gh[:, 2 * H:])
        return (1.0 - z) * n + z * h

    def step(t, carry):
        g_prev, e_prev, q_parts = carry
        u = u_ref[t]                                        # (B, D_m)
        qm = qmask_ref[t]                                   # (B, P)
        oh = onehot_ref[t]                                  # (B, P) one-hot speaker
        oh_p = [oh[:, p:p + 1] for p in range(P)]
        qm_p = [qm[:, p:p + 1] for p in range(P)]

        # ---- speaker-state selection + global GRU (split input matmul, no concat) ----
        q0_sel = oh_p[0] * q_parts[0]
        for p in range(1, P):
            q0_sel = q0_sel + oh_p[p] * q_parts[p]          # (B, D_p)
        gi_g = dot(u, wih_g_u) + dot(q0_sel, wih_g_q) + bih_g
        gh_g = dot(g_prev, whh_g) + bhh_g
        g_ = gru_gates(gi_g, gh_g, g_prev, D_g)             # (B, D_g)

        # ---- SimpleAttention over history (strictly before t); scores are incremental ----
        sc = scale_scr[...]                                 # (T, B, 1)
        hist_pos = lax.broadcasted_iota(jnp.int32, (T, B, 1), 0)
        valid = hist_pos < t
        scm = jnp.where(valid, sc, NEG_BIG)
        m = jnp.max(scm, axis=0, keepdims=True)
        ex = jnp.exp(scm - m)
        den = jnp.sum(ex, axis=0, keepdims=True)
        alpha = jnp.where(valid, ex / den, 0.0)             # (T, B, 1)
        c_ = jnp.sum(alpha * g_hist_scr[...], axis=0)       # (B, D_g); exact zeros at t == 0

        # ---- party GRUs: shared input projection hoisted out of the party loop ----
        gi_p = dot(u, wih_p_u) + dot(c_, wih_p_c) + bih_p   # (B, 3*D_p), same for all parties
        q_new = []
        q_sel = jnp.zeros_like(q_parts[0])
        for p in range(P):
            gh_p = dot(q_parts[p], whh_p) + bhh_p
            qs_p = gru_gates(gi_p, gh_p, q_parts[p], D_p)
            # listener_state=False -> non-speaking parties keep their previous state
            q_p = q_parts[p] * (1.0 - qm_p[p]) + qs_p * qm_p[p]
            q_new.append(q_p)
            q_sel = q_sel + oh_p[p] * q_p                   # new state of the speaking party

        # ---- emotion GRU ----
        gi_e = dot(q_sel, wih_e) + bih_e
        gh_e = dot(e_prev, whh_e) + bhh_e
        e_ = gru_gates(gi_e, gh_e, e_prev, D_e)             # (B, D_e)

        # ---- persist state / outputs ----
        g_hist_scr[t] = g_
        scale_scr[t] = jnp.sum(g_ * w_att, axis=-1, keepdims=True)   # (B, 1) new score
        e_out_ref[t] = e_.astype(e_out_ref.dtype)
        return g_, e_, tuple(q_new)

    carry0 = (jnp.zeros((B, D_g), f32),
              jnp.zeros((B, D_e), f32),
              tuple(jnp.zeros((B, D_p), f32) for _ in range(P)))
    if T <= 32:
        # Short dialogues: static unroll gives the scheduler full visibility and makes
        # all history-ref indices static.
        carry = carry0
        for t in range(T):
            carry = step(t, carry)
    else:
        carry = lax.fori_loop(0, T, step, carry0)

    # ---- lane-dense alpha output, built once from the incremental score history ----
    scores_tb = scale_scr[...][:, :, 0]                     # (T, B)
    scores_bt = scores_tb.T                                 # (B, T): single tiny transpose
    if T_pad > T:
        scores_bt = jnp.concatenate(
            [scores_bt, jnp.full((B, T_pad - T), NEG_BIG, f32)], axis=1)
    logits = jnp.broadcast_to(scores_bt[None, :, :], (T, B, T_pad))
    src = lax.broadcasted_iota(jnp.int32, (T, B, T_pad), 2)     # history position
    qry = lax.broadcasted_iota(jnp.int32, (T, B, T_pad), 0)     # current step
    ok = src < qry                                              # strictly-causal mask
    ml = jnp.where(ok, logits, NEG_BIG)
    mx = jnp.max(ml, axis=2, keepdims=True)
    exl = jnp.exp(ml - mx)
    dnl = jnp.sum(exl, axis=2, keepdims=True)
    alpha_full = jnp.where(ok, exl / dnl, 0.0)              # row 0 is all zeros (alpha=None at t=0)
    alpha_out_ref[...] = alpha_full.astype(alpha_out_ref.dtype)


def dialogue_rnn_pallas(U, qmask, params):
    T, B, D_m = U.shape
    P = qmask.shape[2]
    D_g = params["g"]["w_hh"].shape[1]
    D_p = params["p"]["w_hh"].shape[1]
    D_e = params["e"]["w_hh"].shape[1]
    T_pad = ((T + 127) // 128) * 128            # lane-dense alpha output width

    f32, bf16 = jnp.float32, jnp.bfloat16
    U = U.astype(f32)
    qmask = qmask.astype(f32)
    # Speaker one-hot precomputed here -> no per-step argmax machinery inside the kernel.
    spk = jnp.argmax(qmask, axis=2)
    onehot = jax.nn.one_hot(spk, P, dtype=f32)  # (T, B, P)

    def prep(g):  # transpose once; bf16 weights for the MXU, f32 biases
        return (g["w_ih"].T.astype(bf16), g["w_hh"].T.astype(bf16),
                g["b_ih"].reshape(1, -1).astype(f32), g["b_hh"].reshape(1, -1).astype(f32))

    wih_g_t, whh_g, bih_g, bhh_g = prep(params["g"])
    wih_p_t, whh_p, bih_p, bhh_p = prep(params["p"])
    wih_e, whh_e, bih_e, bhh_e = prep(params["e"])
    # Split input-side weights so the kernel never concatenates along the lane dim.
    wih_g_u, wih_g_q = wih_g_t[:D_m], wih_g_t[D_m:]
    wih_p_u, wih_p_c = wih_p_t[:D_m], wih_p_t[D_m:]
    w_att = params["w_att"].astype(f32)         # (1, D_g)

    args = [U, qmask, onehot,
            wih_g_u, wih_g_q, whh_g, bih_g, bhh_g,
            wih_p_u, wih_p_c, whh_p, bih_p, bhh_p,
            wih_e, whh_e, bih_e, bhh_e, w_att]

    def whole(a):
        nd = a.ndim
        return pl.BlockSpec(a.shape, lambda i, _nd=nd: (0,) * _nd)

    out_shape = (
        jax.ShapeDtypeStruct((T, B, D_e), f32),
        jax.ShapeDtypeStruct((T, B, T_pad), f32),
    )
    out_specs = (
        pl.BlockSpec((T, B, D_e), lambda i: (0, 0, 0)),
        pl.BlockSpec((T, B, T_pad), lambda i: (0, 0, 0)),
    )
    scratch_shapes = [
        pltpu.VMEM((T, B, D_g), f32),           # g history
        pltpu.VMEM((T, B, 1), f32),             # incremental attention scores <g_t, w_att>
    ]
    e_out, alpha_pad = pl.pallas_call(
        dialogue_rnn_kernel,
        out_shape=out_shape,
        grid_spec=pltpu.PrefetchScalarGridSpec(
            num_scalar_prefetch=0,
            grid=(1,),                          # whole recurrence inside one grid step
            in_specs=[whole(a) for a in args],
            out_specs=out_specs,
            scratch_shapes=scratch_shapes,
        ),
        compiler_params=pltpu.CompilerParams(
            dimension_semantics=("arbitrary",),
            vmem_limit_bytes=32 * 1024 * 1024,
        ),
    )(*args)
    return e_out, alpha_pad[:, :, :T]


# ------------------------- pure-JAX reference (for verification) -------------------------
def dialogue_rnn_ref(U, qmask, params):
    T, B, D_m = U.shape
    P = qmask.shape[2]
    D_g = params["g"]["w_hh"].shape[1]
    D_p = params["p"]["w_hh"].shape[1]
    D_e = params["e"]["w_hh"].shape[1]

    def gru(x, h, pr):
        H = h.shape[1]
        gi = x @ pr["w_ih"].T + pr["b_ih"]
        gh = h @ pr["w_hh"].T + pr["b_hh"]
        r = jax.nn.sigmoid(gi[:, :H] + gh[:, :H])
        z = jax.nn.sigmoid(gi[:, H:2 * H] + gh[:, H:2 * H])
        n = jnp.tanh(gi[:, 2 * H:] + r * gh[:, 2 * H:])
        return (1 - z) * n + z * h

    g_hist = []
    q = jnp.zeros((B, P, D_p), jnp.float32)
    e_prev = jnp.zeros((B, D_e), jnp.float32)
    e_list, alpha_list = [], []
    for t in range(T):
        u, qm = U[t], qmask[t]
        idx = jnp.argmax(qm, axis=1)
        onehot = jax.nn.one_hot(idx, P, dtype=jnp.float32)
        q0_sel = jnp.sum(q * onehot[:, :, None], axis=1)
        g_prev = g_hist[-1] if g_hist else jnp.zeros((B, D_g), jnp.float32)
        g_ = gru(jnp.concatenate([u, q0_sel], 1), g_prev, params["g"])
        if t == 0:
            c_ = jnp.zeros((B, D_g), jnp.float32)
            alpha_list.append(jnp.zeros((B, T), jnp.float32))
        else:
            gh = jnp.stack(g_hist, 0)                              # (t, B, D_g)
            scale = jnp.einsum("tbd,od->tb", gh, params["w_att"])
            a = jax.nn.softmax(scale, axis=0)                      # (t, B)
            c_ = jnp.einsum("tb,tbd->bd", a, gh)
            alpha_list.append(jnp.zeros((B, T), jnp.float32).at[:, :t].set(a.T))
        uc = jnp.concatenate([u, c_], 1)
        x_p = jnp.broadcast_to(uc[:, None, :], (B, P, D_m + D_g)).reshape(B * P, -1)
        qs = gru(x_p, q.reshape(B * P, D_p), params["p"]).reshape(B, P, D_p)
        q = q * (1 - qm[:, :, None]) + qs * qm[:, :, None]
        q_sel = jnp.sum(q * onehot[:, :, None], axis=1)
        e_ = gru(q_sel, e_prev, params["e"])
        e_prev = e_
        g_hist.append(g_)
        e_list.append(e_)
    return jnp.stack(e_list, 0), jnp.stack(alpha_list, 0)


def init_params(key, D_m, D_g, D_p, D_e):
    def gru_params(k, in_dim, hid):
        k1, k2, k3, k4 = jax.random.split(k, 4)
        s = 1.0 / np.sqrt(hid)
        return dict(
            w_ih=jax.random.uniform(k1, (3 * hid, in_dim), jnp.float32, -s, s),
            w_hh=jax.random.uniform(k2, (3 * hid, hid), jnp.float32, -s, s),
            b_ih=jax.random.uniform(k3, (3 * hid,), jnp.float32, -s, s),
            b_hh=jax.random.uniform(k4, (3 * hid,), jnp.float32, -s, s),
        )

    kg, kp, ke, ka = jax.random.split(key, 4)
    return dict(
        g=gru_params(kg, D_m + D_p, D_g),     # g_cell: GRUCell(D_m + D_p, D_g)
        p=gru_params(kp, D_m + D_g, D_p),     # p_cell: GRUCell(D_m + D_g, D_p)
        e=gru_params(ke, D_p, D_e),           # e_cell: GRUCell(D_p, D_e)
        w_att=jax.random.uniform(ka, (1, D_g), jnp.float32, -0.1, 0.1),  # SimpleAttention
    )


if __name__ == "__main__":
    T, B, P = 8, 2, 2
    D_m, D_g, D_p, D_e = 32, 32, 32, 32

    key = jax.random.PRNGKey(0)
    k_u, k_q, k_p = jax.random.split(key, 3)
    U = jax.random.normal(k_u, (T, B, D_m), jnp.float32)
    speaker = jax.random.randint(k_q, (T, B), 0, P)
    qmask = jax.nn.one_hot(speaker, P, dtype=jnp.float32)
    params = init_params(k_p, D_m, D_g, D_p, D_e)

    e_out, alpha_out = dialogue_rnn_pallas(U, qmask, params)
    e_out = jax.block_until_ready(e_out)
    alpha_out = jax.block_until_ready(alpha_out)

    # Reference in full f32 precision (local context, no global config side effect);
    # tolerances account for the kernel's bf16-in / f32-accumulate matmuls.
    with jax.default_matmul_precision("highest"):
        e_ref, alpha_ref = dialogue_rnn_ref(U, qmask, params)
    e_ref = jax.block_until_ready(e_ref)
    alpha_ref = jax.block_until_ready(alpha_ref)

    assert np.allclose(np.asarray(e_out), np.asarray(e_ref), atol=3e-2, rtol=3e-2), "e mismatch"
    assert np.allclose(np.asarray(alpha_out), np.asarray(alpha_ref), atol=3e-2, rtol=3e-2), "alpha mismatch"

    print("KERNEL_OK")
</pallas_src>

<mosaic_0001>
module attributes {stable_mosaic.version = 11 : i64} {
  func.func @dialogue_rnn_kernel(%arg0: i32, %arg1: memref<8x2x32xf32, #tpu.memory_space<vmem>>, %arg2: memref<8x2x2xf32, #tpu.memory_space<vmem>>, %arg3: memref<8x2x2xf32, #tpu.memory_space<vmem>>, %arg4: memref<32x96xbf16, #tpu.memory_space<vmem>>, %arg5: memref<32x96xbf16, #tpu.memory_space<vmem>>, %arg6: memref<32x96xbf16, #tpu.memory_space<vmem>>, %arg7: memref<1x96xf32, #tpu.memory_space<vmem>>, %arg8: memref<1x96xf32, #tpu.memory_space<vmem>>, %arg9: memref<32x96xbf16, #tpu.memory_space<vmem>>, %arg10: memref<32x96xbf16, #tpu.memory_space<vmem>>, %arg11: memref<32x96xbf16, #tpu.memory_space<vmem>>, %arg12: memref<1x96xf32, #tpu.memory_space<vmem>>, %arg13: memref<1x96xf32, #tpu.memory_space<vmem>>, %arg14: memref<32x96xbf16, #tpu.memory_space<vmem>>, %arg15: memref<32x96xbf16, #tpu.memory_space<vmem>>, %arg16: memref<1x96xf32, #tpu.memory_space<vmem>>, %arg17: memref<1x96xf32, #tpu.memory_space<vmem>>, %arg18: memref<1x32xf32, #tpu.memory_space<vmem>>, %arg19: memref<8x2x32xf32, #tpu.memory_space<vmem>>, %arg20: memref<8x2x128xf32, #tpu.memory_space<vmem>>, %arg21: memref<8x2x32xf32, #tpu.memory_space<vmem>>, %arg22: memref<8x2x1xf32, #tpu.memory_space<vmem>>) attributes {dimension_semantics = [#tpu.dimension_semantics<arbitrary>], iteration_bounds = array<i64: 1>, scalar_prefetch = 0 : i64, scratch_operands = 2 : i64, tpu.core_type = #tpu.core_type<tc>, window_params = [{pipeline_mode = #tpu.pipeline_mode<synchronous>, transform_indices = @transform_0, window_bounds = array<i64: 8, 2, 32>}, {pipeline_mode = #tpu.pipeline_mode<synchronous>, transform_indices = @transform_1, window_bounds = array<i64: 8, 2, 2>}, {pipeline_mode = #tpu.pipeline_mode<synchronous>, transform_indices = @transform_2, window_bounds = array<i64: 8, 2, 2>}, {pipeline_mode = #tpu.pipeline_mode<synchronous>, transform_indices = @transform_3, window_bounds = array<i64: 32, 96>}, {pipeline_mode = #tpu.pipeline_mode<synchronous>, transform_indices = @transform_4, window_bounds = array<i64: 32, 96>}, {pipeline_mode = #tpu.pipeline_mode<synchronous>, transform_indices = @transform_5, window_bounds = array<i64: 32, 96>}, {pipeline_mode = #tpu.pipeline_mode<synchronous>, transform_indices = @transform_6, window_bounds = array<i64: 1, 96>}, {pipeline_mode = #tpu.pipeline_mode<synchronous>, transform_indices = @transform_7, window_bounds = array<i64: 1, 96>}, {pipeline_mode = #tpu.pipeline_mode<synchronous>, transform_indices = @transform_8, window_bounds = array<i64: 32, 96>}, {pipeline_mode = #tpu.pipeline_mode<synchronous>, transform_indices = @transform_9, window_bounds = array<i64: 32, 96>}, {pipeline_mode = #tpu.pipeline_mode<synchronous>, transform_indices = @transform_10, window_bounds = array<i64: 32, 96>}, {pipeline_mode = #tpu.pipeline_mode<synchronous>, transform_indices = @transform_11, window_bounds = array<i64: 1, 96>}, {pipeline_mode = #tpu.pipeline_mode<synchronous>, transform_indices = @transform_12, window_bounds = array<i64: 1, 96>}, {pipeline_mode = #tpu.pipeline_mode<synchronous>, transform_indices = @transform_13, window_bounds = array<i64: 32, 96>}, {pipeline_mode = #tpu.pipeline_mode<synchronous>, transform_indices = @transform_14, window_bounds = array<i64: 32, 96>}, {pipeline_mode = #tpu.pipeline_mode<synchronous>, transform_indices = @transform_15, window_bounds = array<i64: 1, 96>}, {pipeline_mode = #tpu.pipeline_mode<synchronous>, transform_indices = @transform_16, window_bounds = array<i64: 1, 96>}, {pipeline_mode = #tpu.pipeline_mode<synchronous>, transform_indices = @transform_17, window_bounds = array<i64: 1, 32>}, {pipeline_mode = #tpu.pipeline_mode<synchronous>, transform_indices = @transform_18, window_bounds = array<i64: 8, 2, 32>}, {pipeline_mode = #tpu.pipeline_mode<synchronous>, transform_indices = @transform_19, window_bounds = array<i64: 8, 2, 128>}]} {
    %cst = arith.constant 0.000000e+00 : f32
    %0 = vector.broadcast %cst : f32 to vector<8x2x32xf32>
    %c0 = arith.constant 0 : index
    %c0_0 = arith.constant 0 : index
    %c0_1 = arith.constant 0 : index
    %1 = vector.load %arg21[%c0, %c0_0, %c0_1] : memref<8x2x32xf32, #tpu.memory_space<vmem>>, vector<8x2x32xf32>
    tpu.vector_store %arg21[%c0, %c0_0, %c0_1], %0 {strides = array<i32>} : memref<8x2x32xf32, #tpu.memory_space<vmem>>, vector<8x2x32xf32>,
    %cst_2 = arith.constant 0.000000e+00 : f32
    %2 = vector.broadcast %cst_2 : f32 to vector<8x2x1xf32>
    %c0_3 = arith.constant 0 : index
    %c0_4 = arith.constant 0 : index
    %c0_5 = arith.constant 0 : index
    %3 = vector.load %arg22[%c0_3, %c0_4, %c0_5] : memref<8x2x1xf32, #tpu.memory_space<vmem>>, vector<8x2x1xf32>
    tpu.vector_store %arg22[%c0_3, %c0_4, %c0_5], %2 {strides = array<i32>} : memref<8x2x1xf32, #tpu.memory_space<vmem>>, vector<8x2x1xf32>,
    %c0_6 = arith.constant 0 : index
    %c0_7 = arith.constant 0 : index
    %4 = vector.load %arg4[%c0_6, %c0_7] : memref<32x96xbf16, #tpu.memory_space<vmem>>, vector<32x96xbf16>
    %c0_8 = arith.constant 0 : index
    %c0_9 = arith.constant 0 : index
    %5 = vector.load %arg5[%c0_8, %c0_9] : memref<32x96xbf16, #tpu.memory_space<vmem>>, vector<32x96xbf16>
    %c0_10 = arith.constant 0 : index
    %c0_11 = arith.constant 0 : index
    %6 = vector.load %arg6[%c0_10, %c0_11] : memref<32x96xbf16, #tpu.memory_space<vmem>>, vector<32x96xbf16>
    %c0_12 = arith.constant 0 : index
    %c0_13 = arith.constant 0 : index
    %7 = vector.load %arg7[%c0_12, %c0_13] : memref<1x96xf32, #tpu.memory_space<vmem>>, vector<1x96xf32>
    %c0_14 = arith.constant 0 : index
    %c0_15 = arith.constant 0 : index
    %8 = vector.load %arg8[%c0_14, %c0_15] : memref<1x96xf32, #tpu.memory_space<vmem>>, vector<1x96xf32>
    %c0_16 = arith.constant 0 : index
    %c0_17 = arith.constant 0 : index
    %9 = vector.load %arg9[%c0_16, %c0_17] : memref<32x96xbf16, #tpu.memory_space<vmem>>, vector<32x96xbf16>
    %c0_18 = arith.constant 0 : index
    %c0_19 = arith.constant 0 : index
    %10 = vector.load %arg10[%c0_18, %c0_19] : memref<32x96xbf16, #tpu.memory_space<vmem>>, vector<32x96xbf16>
    %c0_20 = arith.constant 0 : index
    %c0_21 = arith.constant 0 : index
    %11 = vector.load %arg11[%c0_20, %c0_21] : memref<32x96xbf16, #tpu.memory_space<vmem>>, vector<32x96xbf16>
    %c0_22 = arith.constant 0 : index
    %c0_23 = arith.constant 0 : index
    %12 = vector.load %arg12[%c0_22, %c0_23] : memref<1x96xf32, #tpu.memory_space<vmem>>, vector<1x96xf32>
    %c0_24 = arith.constant 0 : index
    %c0_25 = arith.constant 0 : index
    %13 = vector.load %arg13[%c0_24, %c0_25] : memref<1x96xf32, #tpu.memory_space<vmem>>, vector<1x96xf32>
    %c0_26 = arith.constant 0 : index
    %c0_27 = arith.constant 0 : index
    %14 = vector.load %arg14[%c0_26, %c0_27] : memref<32x96xbf16, #tpu.memory_space<vmem>>, vector<32x96xbf16>
    %c0_28 = arith.constant 0 : index
    %c0_29 = arith.constant 0 : index
    %15 = vector.load %arg15[%c0_28, %c0_29] : memref<32x96xbf16, #tpu.memory_space<vmem>>, vector<32x96xbf16>
    %c0_30 = arith.constant 0 : index
    %c0_31 = arith.constant 0 : index
    %16 = vector.load %arg16[%c0_30, %c0_31] : memref<1x96xf32, #tpu.memory_space<vmem>>, vector<1x96xf32>
    %c0_32 = arith.constant 0 : index
    %c0_33 = arith.constant 0 : index
    %17 = vector.load %arg17[%c0_32, %c0_33] : memref<1x96xf32, #tpu.memory_space<vmem>>, vector<1x96xf32>
    %c0_34 = arith.constant 0 : index
    %c0_35 = arith.constant 0 : index
    %18 = vector.load %arg18[%c0_34, %c0_35] : memref<1x32xf32, #tpu.memory_space<vmem>>, vector<1x32xf32>
    %cst_36 = arith.constant 0.000000e+00 : f32
    %19 = vector.broadcast %cst_36 : f32 to vector<2x32xf32>
    %cst_37 = arith.constant 0.000000e+00 : f32
    %20 = vector.broadcast %cst_37 : f32 to vector<2x32xf32>
    %cst_38 = arith.constant 0.000000e+00 : f32
    %21 = vector.broadcast %cst_38 : f32 to vector<2x32xf32>
    %cst_39 = arith.constant 0.000000e+00 : f32
    %22 = vector.broadcast %cst_39 : f32 to vector<2x32xf32>
    %c0_40 = arith.constant 0 : index
    %c0_41 = arith.constant 0 : index
    %c0_42 = arith.constant 0 : index
    %23 = vector.load %arg1[%c0_40, %c0_41, %c0_42] : memref<8x2x32xf32, #tpu.memory_space<vmem>>, vector<1x2x32xf32>
    %24 = vector.shape_cast %23 : vector<1x2x32xf32> to vector<2x32xf32>
    %c0_43 = arith.constant 0 : index
    %c0_44 = arith.constant 0 : index
    %c0_45 = arith.constant 0 : index
    %25 = vector.load %arg2[%c0_43, %c0_44, %c0_45] : memref<8x2x2xf32, #tpu.memory_space<vmem>>, vector<1x2x2xf32>
    %26 = vector.shape_cast %25 : vector<1x2x2xf32> to vector<2x2xf32>
    %c0_46 = arith.constant 0 : index
    %c0_47 = arith.constant 0 : index
    %c0_48 = arith.constant 0 : index
    %27 = vector.load %arg3[%c0_46, %c0_47, %c0_48] : memref<8x2x2xf32, #tpu.memory_space<vmem>>, vector<1x2x2xf32>
    %28 = vector.shape_cast %27 : vector<1x2x2xf32> to vector<2x2xf32>
    %29 = vector.extract_strided_slice %28 {offsets = [0, 0], sizes = [2, 1], strides = [1, 1]} : vector<2x2xf32> to vector<2x1xf32>
    %30 = vector.extract_strided_slice %28 {offsets = [0, 1], sizes = [2, 1], strides = [1, 1]} : vector<2x2xf32> to vector<2x1xf32>
    %31 = vector.extract_strided_slice %26 {offsets = [0, 0], sizes = [2, 1], strides = [1, 1]} : vector<2x2xf32> to vector<2x1xf32>
    %32 = vector.extract_strided_slice %26 {offsets = [0, 1], sizes = [2, 1], strides = [1, 1]} : vector<2x2xf32> to vector<2x1xf32>
    %33 = vector.broadcast %29 : vector<2x1xf32> to vector<2x32xf32>
    %34 = arith.mulf %33, %21 : vector<2x32xf32>
    %35 = vector.broadcast %30 : vector<2x1xf32> to vector<2x32xf32>
    %36 = arith.mulf %35, %22 : vector<2x32xf32>
    %37 = arith.addf %34, %36 : vector<2x32xf32>
    %38 = arith.truncf %24 : vector<2x32xf32> to vector<2x32xbf16>
    %cst_49 = arith.constant dense<0.000000e+00> : vector<2x96xf32>
    %39 = tpu.matmul %38, %4, %cst_49 {dimension_numbers = #tpu.dot_dimension_numbers<[1], [0], [0], [1], [0, 0, 1, 1], [], []>} : vector<2x32xbf16>, vector<32x96xbf16>, vector<2x96xf32> -> vector<2x96xf32>
    %40 = arith.truncf %37 : vector<2x32xf32> to vector<2x32xbf16>
    %cst_50 = arith.constant dense<0.000000e+00> : vector<2x96xf32>
    %41 = tpu.matmul %40, %5, %cst_50 {dimension_numbers = #tpu.dot_dimension_numbers<[1], [0], [0], [1], [0, 0, 1, 1], [], []>} : vector<2x32xbf16>, vector<32x96xbf16>, vector<2x96xf32> -> vector<2x96xf32>
    %42 = arith.addf %39, %41 : vector<2x96xf32>
    %43 = vector.broadcast %7 : vector<1x96xf32> to vector<2x96xf32>
    %44 = arith.addf %42, %43 : vector<2x96xf32>
    %45 = arith.truncf %19 : vector<2x32xf32> to vector<2x32xbf16>
    %cst_51 = arith.constant dense<0.000000e+00> : vector<2x96xf32>
    %46 = tpu.matmul %45, %6, %cst_51 {dimension_numbers = #tpu.dot_dimension_numbers<[1], [0], [0], [1], [0, 0, 1, 1], [], []>} : vector<2x32xbf16>, vector<32x96xbf16>, vector<2x96xf32> -> vector<2x96xf32>
    %47 = vector.broadcast %8 : vector<1x96xf32> to vector<2x96xf32>
    %48 = arith.addf %46, %47 : vector<2x96xf32>
    %49 = vector.extract_strided_slice %44 {offsets = [0, 0], sizes = [2, 32], strides = [1, 1]} : vector<2x96xf32> to vector<2x32xf32>
    %50 = vector.extract_strided_slice %48 {offsets = [0, 0], sizes = [2, 32], strides = [1, 1]} : vector<2x96xf32> to vector<2x32xf32>
    %51 = arith.addf %49, %50 : vector<2x32xf32>
    %52 = arith.negf %51 : vector<2x32xf32>
    %53 = math.exp %52 : vector<2x32xf32>
    %cst_52 = arith.constant 1.000000e+00 : f32
    %54 = vector.broadcast %cst_52 : f32 to vector<2x32xf32>
    %55 = arith.addf %54, %53 : vector<2x32xf32>
    %56 = arith.divf %54, %55 : vector<2x32xf32>
    %57 = vector.extract_strided_slice %44 {offsets = [0, 32], sizes = [2, 32], strides = [1, 1]} : vector<2x96xf32> to vector<2x32xf32>
    %58 = vector.extract_strided_slice %48 {offsets = [0, 32], sizes = [2, 32], strides = [1, 1]} : vector<2x96xf32> to vector<2x32xf32>
    %59 = arith.addf %57, %58 : vector<2x32xf32>
    %60 = arith.negf %59 : vector<2x32xf32>
    %61 = math.exp %60 : vector<2x32xf32>
    %cst_53 = arith.constant 1.000000e+00 : f32
    %62 = vector.broadcast %cst_53 : f32 to vector<2x32xf32>
    %63 = arith.addf %62, %61 : vector<2x32xf32>
    %64 = arith.divf %62, %63 : vector<2x32xf32>
    %65 = vector.extract_strided_slice %44 {offsets = [0, 64], sizes = [2, 32], strides = [1, 1]} : vector<2x96xf32> to vector<2x32xf32>
    %66 = vector.extract_strided_slice %48 {offsets = [0, 64], sizes = [2, 32], strides = [1, 1]} : vector<2x96xf32> to vector<2x32xf32>
    %67 = arith.mulf %56, %66 : vector<2x32xf32>
    %68 = arith.addf %65, %67 : vector<2x32xf32>
    %69 = math.tanh %68 : vector<2x32xf32>
    %cst_54 = arith.constant 1.000000e+00 : f32
    %70 = vector.broadcast %cst_54 : f32 to vector<2x32xf32>
    %71 = arith.subf %70, %64 : vector<2x32xf32>
    %72 = arith.mulf %71, %69 : vector<2x32xf32>
    %73 = arith.mulf %64, %19 : vector<2x32xf32>
    %74 = arith.addf %72, %73 : vector<2x32xf32>
    %c0_55 = arith.constant 0 : index
    %c0_56 = arith.constant 0 : index
    %c0_57 = arith.constant 0 : index
    %75 = vector.load %arg22[%c0_55, %c0_56, %c0_57] : memref<8x2x1xf32, #tpu.memory_space<vmem>>, vector<8x2x1xf32>
    %76 = tpu.iota {dimensions = array<i32: 0>} : vector<8x2x1xi32>
    %c0_i32 = arith.constant 0 : i32
    %77 = vector.broadcast %c0_i32 : i32 to vector<8x2x1xi32>
    %78 = arith.cmpi slt, %76, %77 : vector<8x2x1xi32>
    %cst_58 = arith.constant -1.000000e+30 : f32
    %79 = vector.broadcast %cst_58 : f32 to vector<8x2x1xf32>
    %80 = arith.select %78, %75, %79 : vector<8x2x1xi1>, vector<8x2x1xf32>
    %cst_59 = arith.constant dense<0xFF800000> : vector<2x1xf32>
    %81 = vector.multi_reduction <maximumf>, %80, %cst_59 [0] : vector<8x2x1xf32> to vector<2x1xf32>
    %82 = vector.shape_cast %81 : vector<2x1xf32> to vector<1x2x1xf32>
    %83 = vector.broadcast %82 : vector<1x2x1xf32> to vector<8x2x1xf32>
    %84 = arith.subf %80, %83 : vector<8x2x1xf32>
    %85 = math.exp %84 : vector<8x2x1xf32>
    %cst_60 = arith.constant dense<0.000000e+00> : vector<2x1xf32>
    %86 = vector.multi_reduction <add>, %85, %cst_60 [0] : vector<8x2x1xf32> to vector<2x1xf32>
    %87 = vector.shape_cast %86 : vector<2x1xf32> to vector<1x2x1xf32>
    %88 = vector.broadcast %87 : vector<1x2x1xf32> to vector<8x2x1xf32>
    %89 = arith.divf %85, %88 : vector<8x2x1xf32>
    %cst_61 = arith.constant 0.000000e+00 : f32
    %90 = vector.broadcast %cst_61 : f32 to vector<8x2x1xf32>
    %91 = arith.select %78, %89, %90 : vector<8x2x1xi1>, vector<8x2x1xf32>
    %c0_62 = arith.constant 0 : index
    %c0_63 = arith.constant 0 : index
    %c0_64 = arith.constant 0 : index
    %92 = vector.load %arg21[%c0_62, %c0_63, %c0_64] : memref<8x2x32xf32, #tpu.memory_space<vmem>>, vector<8x2x32xf32>
    %93 = vector.broadcast %91 : vector<8x2x1xf32> to vector<8x2x32xf32>
    %94 = arith.mulf %93, %92 : vector<8x2x32xf32>
    %cst_65 = arith.constant dense<0.000000e+00> : vector<2x32xf32>
    %95 = vector.multi_reduction <add>, %94, %cst_65 [0] : vector<8x2x32xf32> to vector<2x32xf32>
    %96 = arith.truncf %24 : vector<2x32xf32> to vector<2x32xbf16>
    %cst_66 = arith.constant dense<0.000000e+00> : vector<2x96xf32>
    %97 = tpu.matmul %96, %9, %cst_66 {dimension_numbers = #tpu.dot_dimension_numbers<[1], [0], [0], [1], [0, 0, 1, 1], [], []>} : vector<2x32xbf16>, vector<32x96xbf16>, vector<2x96xf32> -> vector<2x96xf32>
    %98 = arith.truncf %95 : vector<2x32xf32> to vector<2x32xbf16>
    %cst_67 = arith.constant dense<0.000000e+00> : vector<2x96xf32>
    %99 = tpu.matmul %98, %10, %cst_67 {dimension_numbers = #tpu.dot_dimension_numbers<[1], [0], [0], [1], [0, 0, 1, 1], [], []>} : vector<2x32xbf16>, vector<32x96xbf16>, vector<2x96xf32> -> vector<2x96xf32>
    %100 = arith.addf %97, %99 : vector<2x96xf32>
    %101 = vector.broadcast %12 : vector<1x96xf32> to vector<2x96xf32>
    %102 = arith.addf %100, %101 : vector<2x96xf32>
    %cst_68 = arith.constant 0.000000e+00 : f32
    %103 = vector.broadcast %cst_68 : f32 to vector<2x32xf32>
    %104 = arith.truncf %21 : vector<2x32xf32> to vector<2x32xbf16>
    %cst_69 = arith.constant dense<0.000000e+00> : vector<2x96xf32>
    %105 = tpu.matmul %104, %11, %cst_69 {dimension_numbers = #tpu.dot_dimension_numbers<[1], [0], [0], [1], [0, 0, 1, 1], [], []>} : vector<2x32xbf16>, vector<32x96xbf16>, vector<2x96xf32> -> vector<2x96xf32>
    %106 = vector.broadcast %13 : vector<1x96xf32> to vector<2x96xf32>
    %107 = arith.addf %105, %106 : vector<2x96xf32>
    %108 = vector.extract_strided_slice %102 {offsets = [0, 0], sizes = [2, 32], strides = [1, 1]} : vector<2x96xf32> to vector<2x32xf32>
    %109 = vector.extract_strided_slice %107 {offsets = [0, 0], sizes = [2, 32], strides = [1, 1]} : vector<2x96xf32> to vector<2x32xf32>
    %110 = arith.addf %108, %109 : vector<2x32xf32>
    %111 = arith.negf %110 : vector<2x32xf32>
    %112 = math.exp %111 : vector<2x32xf32>
    %cst_70 = arith.constant 1.000000e+00 : f32
    %113 = vector.broadcast %cst_70 : f32 to vector<2x32xf32>
    %114 = arith.addf %113, %112 : vector<2x32xf32>
    %115 = arith.divf %113, %114 : vector<2x32xf32>
    %116 = vector.extract_strided_slice %102 {offsets = [0, 32], sizes = [2, 32], strides = [1, 1]} : vector<2x96xf32> to vector<2x32xf32>
    %117 = vector.extract_strided_slice %107 {offsets = [0, 32], sizes = [2, 32], strides = [1, 1]} : vector<2x96xf32> to vector<2x32xf32>
    %118 = arith.addf %116, %117 : vector<2x32xf32>
    %119 = arith.negf %118 : vector<2x32xf32>
    %120 = math.exp %119 : vector<2x32xf32>
    %cst_71 = arith.constant 1.000000e+00 : f32
    %121 = vector.broadcast %cst_71 : f32 to vector<2x32xf32>
    %122 = arith.addf %121, %120 : vector<2x32xf32>
    %123 = arith.divf %121, %122 : vector<2x32xf32>
    %124 = vector.extract_strided_slice %102 {offsets = [0, 64], sizes = [2, 32], strides = [1, 1]} : vector<2x96xf32> to vector<2x32xf32>
    %125 = vector.extract_strided_slice %107 {offsets = [0, 64], sizes = [2, 32], strides = [1, 1]} : vector<2x96xf32> to vector<2x32xf32>
    %126 = arith.mulf %115, %125 : vector<2x32xf32>
    %127 = arith.addf %124, %126 : vector<2x32xf32>
    %128 = math.tanh %127 : vector<2x32xf32>
    %cst_72 = arith.constant 1.000000e+00 : f32
    %129 = vector.broadcast %cst_72 : f32 to vector<2x32xf32>
    %130 = arith.subf %129, %123 : vector<2x32xf32>
    %131 = arith.mulf %130, %128 : vector<2x32xf32>
    %132 = arith.mulf %123, %21 : vector<2x32xf32>
    %133 = arith.addf %131, %132 : vector<2x32xf32>
    %cst_73 = arith.constant 1.000000e+00 : f32
    %134 = vector.broadcast %cst_73 : f32 to vector<2x1xf32>
    %135 = arith.subf %134, %31 : vector<2x1xf32>
    %136 = vector.broadcast %135 : vector<2x1xf32> to vector<2x32xf32>
    %137 = arith.mulf %21, %136 : vector<2x32xf32>
    %138 = vector.broadcast %31 : vector<2x1xf32> to vector<2x32xf32>
    %139 = arith.mulf %133, %138 : vector<2x32xf32>
    %140 = arith.addf %137, %139 : vector<2x32xf32>
    %141 = vector.broadcast %29 : vector<2x1xf32> to vector<2x32xf32>
    %142 = arith.mulf %141, %140 : vector<2x32xf32>
    %143 = arith.addf %103, %142 : vector<2x32xf32>
    %144 = arith.truncf %22 : vector<2x32xf32> to vector<2x32xbf16>
    %cst_74 = arith.constant dense<0.000000e+00> : vector<2x96xf32>
    %145 = tpu.matmul %144, %11, %cst_74 {dimension_numbers = #tpu.dot_dimension_numbers<[1], [0], [0], [1], [0, 0, 1, 1], [], []>} : vector<2x32xbf16>, vector<32x96xbf16>, vector<2x96xf32> -> vector<2x96xf32>
    %146 = vector.broadcast %13 : vector<1x96xf32> to vector<2x96xf32>
    %147 = arith.addf %145, %146 : vector<2x96xf32>
    %148 = vector.extract_strided_slice %102 {offsets = [0, 0], sizes = [2, 32], strides = [1, 1]} : vector<2x96xf32> to vector<2x32xf32>
    %149 = vector.extract_strided_slice %147 {offsets = [0, 0], sizes = [2, 32], strides = [1, 1]} : vector<2x96xf32> to vector<2x32xf32>
    %150 = arith.addf %148, %149 : vector<2x32xf32>
    %151 = arith.negf %150 : vector<2x32xf32>
    %152 = math.exp %151 : vector<2x32xf32>
    %cst_75 = arith.constant 1.000000e+00 : f32
    %153 = vector.broadcast %cst_75 : f32 to vector<2x32xf32>
    %154 = arith.addf %153, %152 : vector<2x32xf32>
    %155 = arith.divf %153, %154 : vector<2x32xf32>
    %156 = vector.extract_strided_slice %102 {offsets = [0, 32], sizes = [2, 32], strides = [1, 1]} : vector<2x96xf32> to vector<2x32xf32>
    %157 = vector.extract_strided_slice %147 {offsets = [0, 32], sizes = [2, 32], strides = [1, 1]} : vector<2x96xf32> to vector<2x32xf32>
    %158 = arith.addf %156, %157 : vector<2x32xf32>
    %159 = arith.negf %158 : vector<2x32xf32>
    %160 = math.exp %159 : vector<2x32xf32>
    %cst_76 = arith.constant 1.000000e+00 : f32
    %161 = vector.broadcast %cst_76 : f32 to vector<2x32xf32>
    %162 = arith.addf %161, %160 : vector<2x32xf32>
    %163 = arith.divf %161, %162 : vector<2x32xf32>
    %164 = vector.extract_strided_slice %102 {offsets = [0, 64], sizes = [2, 32], strides = [1, 1]} : vector<2x96xf32> to vector<2x32xf32>
    %165 = vector.extract_strided_slice %147 {offsets = [0, 64], sizes = [2, 32], strides = [1, 1]} : vector<2x96xf32> to vector<2x32xf32>
    %166 = arith.mulf %155, %165 : vector<2x32xf32>
    %167 = arith.addf %164, %166 : vector<2x32xf32>
    %168 = math.tanh %167 : vector<2x32xf32>
    %cst_77 = arith.constant 1.000000e+00 : f32
    %169 = vector.broadcast %cst_77 : f32 to vector<2x32xf32>
    %170 = arith.subf %169, %163 : vector<2x32xf32>
    %171 = arith.mulf %170, %168 : vector<2x32xf32>
    %172 = arith.mulf %163, %22 : vector<2x32xf32>
    %173 = arith.addf %171, %172 : vector<2x32xf32>
    %cst_78 = arith.constant 1.000000e+00 : f32
    %174 = vector.broadcast %cst_78 : f32 to vector<2x1xf32>
    %175 = arith.subf %174, %32 : vector<2x1xf32>
    %176 = vector.broadcast %175 : vector<2x1xf32> to vector<2x32xf32>
    %177 = arith.mulf %22, %176 : vector<2x32xf32>
    %178 = vector.broadcast %32 : vector<2x1xf32> to vector<2x32xf32>
    %179 = arith.mulf %173, %178 : vector<2x32xf32>
    %180 = arith.addf %177, %179 : vector<2x32xf32>
    %181 = vector.broadcast %30 : vector<2x1xf32> to vector<2x32xf32>
    %182 = arith.mulf %181, %180 : vector<2x32xf32>
    %183 = arith.addf %143, %182 : vector<2x32xf32>
    %184 = arith.truncf %183 : vector<2x32xf32> to vector<2x32xbf16>
    %cst_79 = arith.constant dense<0.000000e+00> : vector<2x96xf32>
    %185 = tpu.matmul %184, %14, %cst_79 {dimension_numbers = #tpu.dot_dimension_numbers<[1], [0], [0], [1], [0, 0, 1, 1], [], []>} : vector<2x32xbf16>, vector<32x96xbf16>, vector<2x96xf32> -> vector<2x96xf32>
    %186 = vector.broadcast %16 : vector<1x96xf32> to vector<2x96xf32>
    %187 = arith.addf %185, %186 : vector<2x96xf32>
    %188 = arith.truncf %20 : vector<2x32xf32> to vector<2x32xbf16>
    %cst_80 = arith.constant dense<0.000000e+00> : vector<2x96xf32>
    %189 = tpu.matmul %188, %15, %cst_80 {dimension_numbers = #tpu.dot_dimension_numbers<[1], [0], [0], [1], [0, 0, 1, 1], [], []>} : vector<2x32xbf16>, vector<32x96xbf16>, vector<2x96xf32> -> vector<2x96xf32>
    %190 = vector.broadcast %17 : vector<1x96xf32> to vector<2x96xf32>
    %191 = arith.addf %189, %190 : vector<2x96xf32>
    %192 = vector.extract_strided_slice %187 {offsets = [0, 0], sizes = [2, 32], strides = [1, 1]} : vector<2x96xf32> to vector<2x32xf32>
    %193 = vector.extract_strided_slice %191 {offsets = [0, 0], sizes = [2, 32], strides = [1, 1]} : vector<2x96xf32> to vector<2x32xf32>
    %194 = arith.addf %192, %193 : vector<2x32xf32>
    %195 = arith.negf %194 : vector<2x32xf32>
    %196 = math.exp %195 : vector<2x32xf32>
    %cst_81 = arith.constant 1.000000e+00 : f32
    %197 = vector.broadcast %cst_81 : f32 to vector<2x32xf32>
    %198 = arith.addf %197, %196 : vector<2x32xf32>
    %199 = arith.divf %197, %198 : vector<2x32xf32>
    %200 = vector.extract_strided_slice %187 {offsets = [0, 32], sizes = [2, 32], strides = [1, 1]} : vector<2x96xf32> to vector<2x32xf32>
    %201 = vector.extract_strided_slice %191 {offsets = [0, 32], sizes = [2, 32], strides = [1, 1]} : vector<2x96xf32> to vector<2x32xf32>
    %202 = arith.addf %200, %201 : vector<2x32xf32>
    %203 = arith.negf %202 : vector<2x32xf32>
    %204 = math.exp %203 : vector<2x32xf32>
    %cst_82 = arith.constant 1.000000e+00 : f32
    %205 = vector.broadcast %cst_82 : f32 to vector<2x32xf32>
    %206 = arith.addf %205, %204 : vector<2x32xf32>
    %207 = arith.divf %205, %206 : vector<2x32xf32>
    %208 = vector.extract_strided_slice %187 {offsets = [0, 64], sizes = [2, 32], strides = [1, 1]} : vector<2x96xf32> to vector<2x32xf32>
    %209 = vector.extract_strided_slice %191 {offsets = [0, 64], sizes = [2, 32], strides = [1, 1]} : vector<2x96xf32> to vector<2x32xf32>
    %210 = arith.mulf %199, %209 : vector<2x32xf32>
    %211 = arith.addf %208, %210 : vector<2x32xf32>
    %212 = math.tanh %211 : vector<2x32xf32>
    %cst_83 = arith.constant 1.000000e+00 : f32
    %213 = vector.broadcast %cst_83 : f32 to vector<2x32xf32>
    %214 = arith.subf %213, %207 : vector<2x32xf32>
    %215 = arith.mulf %214, %212 : vector<2x32xf32>
    %216 = arith.mulf %207, %20 : vector<2x32xf32>
    %217 = arith.addf %215, %216 : vector<2x32xf32>
    %c0_84 = arith.constant 0 : index
    %c0_85 = arith.constant 0 : index
    %c0_86 = arith.constant 0 : index
    %218 = vector.load %arg21[%c0_84, %c0_85, %c0_86] : memref<8x2x32xf32, #tpu.memory_space<vmem>>, vector<1x2x32xf32>
    %219 = vector.shape_cast %218 : vector<1x2x32xf32> to vector<2x32xf32>
    %220 = vector.shape_cast %74 : vector<2x32xf32> to vector<1x2x32xf32>
    tpu.vector_store %arg21[%c0_84, %c0_85, %c0_86], %220 {strides = array<i32>} : memref<8x2x32xf32, #tpu.memory_space<vmem>>, vector<1x2x32xf32>,
    %221 = vector.broadcast %18 : vector<1x32xf32> to vector<2x32xf32>
    %222 = arith.mulf %74, %221 : vector<2x32xf32>
    %cst_87 = arith.constant dense<0.000000e+00> : vector<2xf32>
    %223 = vector.multi_reduction <add>, %222, %cst_87 [1] : vector<2x32xf32> to vector<2xf32>
    %224 = vector.shape_cast %223 : vector<2xf32> to vector<2x1xf32>
    %c0_88 = arith.constant 0 : index
    %c0_89 = arith.constant 0 : index
    %c0_90 = arith.constant 0 : index
    %225 = vector.load %arg22[%c0_88, %c0_89, %c0_90] : memref<8x2x1xf32, #tpu.memory_space<vmem>>, vector<1x2x1xf32>
    %226 = vector.shape_cast %225 : vector<1x2x1xf32> to vector<2x1xf32>
    %227 = vector.shape_cast %224 : vector<2x1xf32> to vector<1x2x1xf32>
    tpu.vector_store %arg22[%c0_88, %c0_89, %c0_90], %227 {strides = array<i32>} : memref<8x2x1xf32, #tpu.memory_space<vmem>>, vector<1x2x1xf32>,
    %c0_91 = arith.constant 0 : index
    %c0_92 = arith.constant 0 : index
    %c0_93 = arith.constant 0 : index
    %228 = vector.load %arg19[%c0_91, %c0_92, %c0_93] : memref<8x2x32xf32, #tpu.memory_space<vmem>>, vector<1x2x32xf32>
    %229 = vector.shape_cast %228 : vector<1x2x32xf32> to vector<2x32xf32>
    %230 = vector.shape_cast %217 : vector<2x32xf32> to vector<1x2x32xf32>
    tpu.vector_store %arg19[%c0_91, %c0_92, %c0_93], %230 {strides = array<i32>} : memref<8x2x32xf32, #tpu.memory_space<vmem>>, vector<1x2x32xf32>,
    %c1 = arith.constant 1 : index
    %c0_94 = arith.constant 0 : index
    %c0_95 = arith.constant 0 : index
    %231 = vector.load %arg1[%c1, %c0_94, %c0_95] : memref<8x2x32xf32, #tpu.memory_space<vmem>>, vector<1x2x32xf32>
    %232 = vector.shape_cast %231 : vector<1x2x32xf32> to vector<2x32xf32>
    %c1_96 = arith.constant 1 : index
    %c0_97 = arith.constant 0 : index
    %c0_98 = arith.constant 0 : index
    %233 = vector.load %arg2[%c1_96, %c0_97, %c0_98] : memref<8x2x2xf32, #tpu.memory_space<vmem>>, vector<1x2x2xf32>
    %234 = vector.shape_cast %233 : vector<1x2x2xf32> to vector<2x2xf32>
    %c1_99 = arith.constant 1 : index
    %c0_100 = arith.constant 0 : index
    %c0_101 = arith.constant 0 : index
    %235 = vector.load %arg3[%c1_99, %c0_100, %c0_101] : memref<8x2x2xf32, #tpu.memory_space<vmem>>, vector<1x2x2xf32>
    %236 = vector.shape_cast %235 : vector<1x2x2xf32> to vector<2x2xf32>
    %237 = vector.extract_strided_slice %236 {offsets = [0, 0], sizes = [2, 1], strides = [1, 1]} : vector<2x2xf32> to vector<2x1xf32>
    %238 = vector.extract_strided_slice %236 {offsets = [0, 1], sizes = [2, 1], strides = [1, 1]} : vector<2x2xf32> to vector<2x1xf32>
    %239 = vector.extract_strided_slice %234 {offsets = [0, 0], sizes = [2, 1], strides = [1, 1]} : vector<2x2xf32> to vector<2x1xf32>
    %240 = vector.extract_strided_slice %234 {offsets = [0, 1], sizes = [2, 1], strides = [1, 1]} : vector<2x2xf32> to vector<2x1xf32>
    %241 = vector.broadcast %237 : vector<2x1xf32> to vector<2x32xf32>
    %242 = arith.mulf %241, %140 : vector<2x32xf32>
    %243 = vector.broadcast %238 : vector<2x1xf32> to vector<2x32xf32>
    %244 = arith.mulf %243, %180 : vector<2x32xf32>
    %245 = arith.addf %242, %244 : vector<2x32xf32>
    %246 = arith.truncf %232 : vector<2x32xf32> to vector<2x32xbf16>
    %cst_102 = arith.constant dense<0.000000e+00> : vector<2x96xf32>
    %247 = tpu.matmul %246, %4, %cst_102 {dimension_numbers = #tpu.dot_dimension_numbers<[1], [0], [0], [1], [0, 0, 1, 1], [], []>} : vector<2x32xbf16>, vector<32x96xbf16>, vector<2x96xf32> -> vector<2x96xf32>
    %248 = arith.truncf %245 : vector<2x32xf32> to vector<2x32xbf16>
    %cst_103 = arith.constant dense<0.000000e+00> : vector<2x96xf32>
    %249 = tpu.matmul %248, %5, %cst_103 {dimension_numbers = #tpu.dot_dimension_numbers<[1], [0], [0], [1], [0, 0, 1, 1], [], []>} : vector<2x32xbf16>, vector<32x96xbf16>, vector<2x96xf32> -> vector<2x96xf32>
    %250 = arith.addf %247, %249 : vector<2x96xf32>
    %251 = vector.broadcast %7 : vector<1x96xf32> to vector<2x96xf32>
    %252 = arith.addf %250, %251 : vector<2x96xf32>
    %253 = arith.truncf %74 : vector<2x32xf32> to vector<2x32xbf16>
    %cst_104 = arith.constant dense<0.000000e+00> : vector<2x96xf32>
    %254 = tpu.matmul %253, %6, %cst_104 {dimension_numbers = #tpu.dot_dimension_numbers<[1], [0], [0], [1], [0, 0, 1, 1], [], []>} : vector<2x32xbf16>, vector<32x96xbf16>, vector<2x96xf32> -> vector<2x96xf32>
    %255 = vector.broadcast %8 : vector<1x96xf32> to vector<2x96xf32>
    %256 = arith.addf %254, %255 : vector<2x96xf32>
    %257 = vector.extract_strided_slice %252 {offsets = [0, 0], sizes = [2, 32], strides = [1, 1]} : vector<2x96xf32> to vector<2x32xf32>
    %258 = vector.extract_strided_slice %256 {offsets = [0, 0], sizes = [2, 32], strides = [1, 1]} : vector<2x96xf32> to vector<2x32xf32>
    %259 = arith.addf %257, %258 : vector<2x32xf32>
    %260 = arith.negf %259 : vector<2x32xf32>
    %261 = math.exp %260 : vector<2x32xf32>
    %cst_105 = arith.constant 1.000000e+00 : f32
    %262 = vector.broadcast %cst_105 : f32 to vector<2x32xf32>
    %263 = arith.addf %262, %261 : vector<2x32xf32>
    %264 = arith.divf %262, %263 : vector<2x32xf32>
    %265 = vector.extract_strided_slice %252 {offsets = [0, 32], sizes = [2, 32], strides = [1, 1]} : vector<2x96xf32> to vector<2x32xf32>
    %266 = vector.extract_strided_slice %256 {offsets = [0, 32], sizes = [2, 32], strides = [1, 1]} : vector<2x96xf32> to vector<2x32xf32>
    %267 = arith.addf %265, %266 : vector<2x32xf32>
    %268 = arith.negf %267 : vector<2x32xf32>
    %269 = math.exp %268 : vector<2x32xf32>
    %cst_106 = arith.constant 1.000000e+00 : f32
    %270 = vector.broadcast %cst_106 : f32 to vector<2x32xf32>
    %271 = arith.addf %270, %269 : vector<2x32xf32>
    %272 = arith.divf %270, %271 : vector<2x32xf32>
    %273 = vector.extract_strided_slice %252 {offsets = [0, 64], sizes = [2, 32], strides = [1, 1]} : vector<2x96xf32> to vector<2x32xf32>
    %274 = vector.extract_strided_slice %256 {offsets = [0, 64], sizes = [2, 32], strides = [1, 1]} : vector<2x96xf32> to vector<2x32xf32>
    %275 = arith.mulf %264, %274 : vector<2x32xf32>
    %276 = arith.addf %273, %275 : vector<2x32xf32>
    %277 = math.tanh %276 : vector<2x32xf32>
    %cst_107 = arith.constant 1.000000e+00 : f32
    %278 = vector.broadcast %cst_107 : f32 to vector<2x32xf32>
    %279 = arith.subf %278, %272 : vector<2x32xf32>
    %280 = arith.mulf %279, %277 : vector<2x32xf32>
    %281 = arith.mulf %272, %74 : vector<2x32xf32>
    %282 = arith.addf %280, %281 : vector<2x32xf32>
    %c0_108 = arith.constant 0 : index
    %c0_109 = arith.constant 0 : index
    %c0_110 = arith.constant 0 : index
    %283 = vector.load %arg22[%c0_108, %c0_109, %c0_110] : memref<8x2x1xf32, #tpu.memory_space<vmem>>, vector<8x2x1xf32>
    %284 = tpu.iota {dimensions = array<i32: 0>} : vector<8x2x1xi32>
    %c1_i32 = arith.constant 1 : i32
    %285 = vector.broadcast %c1_i32 : i32 to vector<8x2x1xi32>
    %286 = arith.cmpi slt, %284, %285 : vector<8x2x1xi32>
    %cst_111 = arith.constant -1.000000e+30 : f32
    %287 = vector.broadcast %cst_111 : f32 to vector<8x2x1xf32>
    %288 = arith.select %286, %283, %287 : vector<8x2x1xi1>, vector<8x2x1xf32>
    %cst_112 = arith.constant dense<0xFF800000> : vector<2x1xf32>
    %289 = vector.multi_reduction <maximumf>, %288, %cst_112 [0] : vector<8x2x1xf32> to vector<2x1xf32>
    %290 = vector.shape_cast %289 : vector<2x1xf32> to vector<1x2x1xf32>
    %291 = vector.broadcast %290 : vector<1x2x1xf32> to vector<8x2x1xf32>
    %292 = arith.subf %288, %291 : vector<8x2x1xf32>
    %293 = math.exp %292 : vector<8x2x1xf32>
    %cst_113 = arith.constant dense<0.000000e+00> : vector<2x1xf32>
    %294 = vector.multi_reduction <add>, %293, %cst_113 [0] : vector<8x2x1xf32> to vector<2x1xf32>
    %295 = vector.shape_cast %294 : vector<2x1xf32> to vector<1x2x1xf32>
    %296 = vector.broadcast %295 : vector<1x2x1xf32> to vector<8x2x1xf32>
    %297 = arith.divf %293, %296 : vector<8x2x1xf32>
    %cst_114 = arith.constant 0.000000e+00 : f32
    %298 = vector.broadcast %cst_114 : f32 to vector<8x2x1xf32>
    %299 = arith.select %286, %297, %298 : vector<8x2x1xi1>, vector<8x2x1xf32>
    %c0_115 = arith.constant 0 : index
    %c0_116 = arith.constant 0 : index
    %c0_117 = arith.constant 0 : index
    %300 = vector.load %arg21[%c0_115, %c0_116, %c0_117] : memref<8x2x32xf32, #tpu.memory_space<vmem>>, vector<8x2x32xf32>
    %301 = vector.broadcast %299 : vector<8x2x1xf32> to vector<8x2x32xf32>
    %302 = arith.mulf %301, %300 : vector<8x2x32xf32>
    %cst_118 = arith.constant dense<0.000000e+00> : vector<2x32xf32>
    %303 = vector.multi_reduction <add>, %302, %cst_118 [0] : vector<8x2x32xf32> to vector<2x32xf32>
    %304 = arith.truncf %232 : vector<2x32xf32> to vector<2x32xbf16>
    %cst_119 = arith.constant dense<0.000000e+00> : vector<2x96xf32>
    %305 = tpu.matmul %304, %9, %cst_119 {dimension_numbers = #tpu.dot_dimension_numbers<[1], [0], [0], [1], [0, 0, 1, 1], [], []>} : vector<2x32xbf16>, vector<32x96xbf16>, vector<2x96xf32> -> vector<2x96xf32>
    %306 = arith.truncf %303 : vector<2x32xf32> to vector<2x32xbf16>
    %cst_120 = arith.constant dense<0.000000e+00> : vector<2x96xf32>
    %307 = tpu.matmul %306, %10, %cst_120 {dimension_numbers = #tpu.dot_dimension_numbers<[1], [0], [0], [1], [0, 0, 1, 1], [], []>} : vector<2x32xbf16>, vector<32x96xbf16>, vector<2x96xf32> -> vector<2x96xf32>
    %308 = arith.addf %305, %307 : vector<2x96xf32>
    %309 = vector.broadcast %12 : vector<1x96xf32> to vector<2x96xf32>
    %310 = arith.addf %308, %309 : vector<2x96xf32>
    %cst_121 = arith.constant 0.000000e+00 : f32
    %311 = vector.broadcast %cst_121 : f32 to vector<2x32xf32>
    %312 = arith.truncf %140 : vector<2x32xf32> to vector<2x32xbf16>
    %cst_122 = arith.constant dense<0.000000e+00> : vector<2x96xf32>
    %313 = tpu.matmul %312, %11, %cst_122 {dimension_numbers = #tpu.dot_dimension_numbers<[1], [0], [0], [1], [0, 0, 1, 1], [], []>} : vector<2x32xbf16>, vector<32x96xbf16>, vector<2x96xf32> -> vector<2x96xf32>
    %314 = vector.broadcast %13 : vector<1x96xf32> to vector<2x96xf32>
    %315 = arith.addf %313, %314 : vector<2x96xf32>
    %316 = vector.extract_strided_slice %310 {offsets = [0, 0], sizes = [2, 32], strides = [1, 1]} : vector<2x96xf32> to vector<2x32xf32>
    %317 = vector.extract_strided_slice %315 {offsets = [0, 0], sizes = [2, 32], strides = [1, 1]} : vector<2x96xf32> to vector<2x32xf32>
    %318 = arith.addf %316, %317 : vector<2x32xf32>
    %319 = arith.negf %318 : vector<2x32xf32>
    %320 = math.exp %319 : vector<2x32xf32>
    %cst_123 = arith.constant 1.000000e+00 : f32
    %321 = vector.broadcast %cst_123 : f32 to vector<2x32xf32>
    %322 = arith.addf %321, %320 : vector<2x32xf32>
    %323 = arith.divf %321, %322 : vector<2x32xf32>
    %324 = vector.extract_strided_slice %310 {offsets = [0, 32], sizes = [2, 32], strides = [1, 1]} : vector<2x96xf32> to vector<2x32xf32>
    %325 = vector.extract_strided_slice %315 {offsets = [0, 32], sizes = [2, 32], strides = [1, 1]} : vector<2x96xf32> to vector<2x32xf32>
    %326 = arith.addf %324, %325 : vector<2x32xf32>
    %327 = arith.negf %326 : vector<2x32xf32>
    %328 = math.exp %327 : vector<2x32xf32>
    %cst_124 = arith.constant 1.000000e+00 : f32
    %329 = vector.broadcast %cst_124 : f32 to vector<2x32xf32>
    %330 = arith.addf %329, %328 : vector<2x32xf32>
    %331 = arith.divf %329, %330 : vector<2x32xf32>
    %332 = vector.extract_strided_slice %310 {offsets = [0, 64], sizes = [2, 32], strides = [1, 1]} : vector<2x96xf32> to vector<2x32xf32>
    %333 = vector.extract_strided_slice %315 {offsets = [0, 64], sizes = [2, 32], strides = [1, 1]} : vector<2x96xf32> to vector<2x32xf32>
    %334 = arith.mulf %323, %333 : vector<2x32xf32>
    %335 = arith.addf %332, %334 : vector<2x32xf32>
    %336 = math.tanh %335 : vector<2x32xf32>
    %cst_125 = arith.constant 1.000000e+00 : f32
    %337 = vector.broadcast %cst_125 : f32 to vector<2x32xf32>
    %338 = arith.subf %337, %331 : vector<2x32xf32>
    %339 = arith.mulf %338, %336 : vector<2x32xf32>
    %340 = arith.mulf %331, %140 : vector<2x32xf32>
    %341 = arith.addf %339, %340 : vector<2x32xf32>
    %cst_126 = arith.constant 1.000000e+00 : f32
    %342 = vector.broadcast %cst_126 : f32 to vector<2x1xf32>
    %343 = arith.subf %342, %239 : vector<2x1xf32>
    %344 = vector.broadcast %343 : vector<2x1xf32> to vector<2x32xf32>
    %345 = arith.mulf %140, %344 : vector<2x32xf32>
    %346 = vector.broadcast %239 : vector<2x1xf32> to vector<2x32xf32>
    %347 = arith.mulf %341, %346 : vector<2x32xf32>
    %348 = arith.addf %345, %347 : vector<2x32xf32>
    %349 = vector.broadcast %237 : vector<2x1xf32> to vector<2x32xf32>
    %350 = arith.mulf %349, %348 : vector<2x32xf32>
    %351 = arith.addf %311, %350 : vector<2x32xf32>
    %352 = arith.truncf %180 : vector<2x32xf32> to vector<2x32xbf16>
    %cst_127 = arith.constant dense<0.000000e+00> : vector<2x96xf32>
    %353 = tpu.matmul %352, %11, %cst_127 {dimension_numbers = #tpu.dot_dimension_numbers<[1], [0], [0], [1], [0, 0, 1, 1], [], []>} : vector<2x32xbf16>, vector<32x96xbf16>, vector<2x96xf32> -> vector<2x96xf32>
    %354 = vector.broadcast %13 : vector<1x96xf32> to vector<2x96xf32>
    %355 = arith.addf %353, %354 : vector<2x96xf32>
    %356 = vector.extract_strided_slice %310 {offsets = [0, 0], sizes = [2, 32], strides = [1, 1]} : vector<2x96xf32> to vector<2x32xf32>
    %357 = vector.extract_strided_slice %355 {offsets = [0, 0], sizes = [2, 32], strides = [1, 1]} : vector<2x96xf32> to vector<2x32xf32>
    %358 = arith.addf %356, %357 : vector<2x32xf32>
    %359 = arith.negf %358 : vector<2x32xf32>
    %360 = math.exp %359 : vector<2x32xf32>
    %cst_128 = arith.constant 1.000000e+00 : f32
    %361 = vector.broadcast %cst_128 : f32 to vector<2x32xf32>
    %362 = arith.addf %361, %360 : vector<2x32xf32>
    %363 = arith.divf %361, %362 : vector<2x32xf32>
    %364 = vector.extract_strided_slice %310 {offsets = [0, 32], sizes = [2, 32], strides = [1, 1]} : vector<2x96xf32> to vector<2x32xf32>
    %365 = vector.extract_strided_slice %355 {offsets = [0, 32], sizes = [2, 32], strides = [1, 1]} : vector<2x96xf32> to vector<2x32xf32>
    %366 = arith.addf %364, %365 : vector<2x32xf32>
    %367 = arith.negf %366 : vector<2x32xf32>
    %368 = math.exp %367 : vector<2x32xf32>
    %cst_129 = arith.constant 1.000000e+00 : f32
    %369 = vector.broadcast %cst_129 : f32 to vector<2x32xf32>
    %370 = arith.addf %369, %368 : vector<2x32xf32>
    %371 = arith.divf %369, %370 : vector<2x32xf32>
    %372 = vector.extract_strided_slice %310 {offsets = [0, 64], sizes = [2, 32], strides = [1, 1]} : vector<2x96xf32> to vector<2x32xf32>
    %373 = vector.extract_strided_slice %355 {offsets = [0, 64], sizes = [2, 32], strides = [1, 1]} : vector<2x96xf32> to vector<2x32xf32>
    %374 = arith.mulf %363, %373 : vector<2x32xf32>
    %375 = arith.addf %372, %374 : vector<2x32xf32>
    %376 = math.tanh %375 : vector<2x32xf32>
    %cst_130 = arith.constant 1.000000e+00 : f32
    %377 = vector.broadcast %cst_130 : f32 to vector<2x32xf32>
    %378 = arith.subf %377, %371 : vector<2x32xf32>
    %379 = arith.mulf %378, %376 : vector<2x32xf32>
    %380 = arith.mulf %371, %180 : vector<2x32xf32>
    %381 = arith.addf %379, %380 : vector<2x32xf32>
    %cst_131 = arith.constant 1.000000e+00 : f32
    %382 = vector.broadcast %cst_131 : f32 to vector<2x1xf32>
    %383 = arith.subf %382, %240 : vector<2x1xf32>
    %384 = vector.broadcast %383 : vector<2x1xf32> to vector<2x32xf32>
    %385 = arith.mulf %180, %384 : vector<2x32xf32>
    %386 = vector.broadcast %240 : vector<2x1xf32> to vector<2x32xf32>
    %387 = arith.mulf %381, %386 : vector<2x32xf32>
    %388 = arith.addf %385, %387 : vector<2x32xf32>
    %389 = vector.broadcast %238 : vector<2x1xf32> to vector<2x32xf32>
    %390 = arith.mulf %389, %388 : vector<2x32xf32>
    %391 = arith.addf %351, %390 : vector<2x32xf32>
    %392 = arith.truncf %391 : vector<2x32xf32> to vector<2x32xbf16>
    %cst_132 = arith.constant dense<0.000000e+00> : vector<2x96xf32>
    %393 = tpu.matmul %392, %14, %cst_132 {dimension_numbers = #tpu.dot_dimension_numbers<[1], [0], [0], [1], [0, 0, 1, 1], [], []>} : vector<2x32xbf16>, vector<32x96xbf16>, vector<2x96xf32> -> vector<2x96xf32>
    %394 = vector.broadcast %16 : vector<1x96xf32> to vector<2x96xf32>
    %395 = arith.addf %393, %394 : vector<2x96xf32>
    %396 = arith.truncf %217 : vector<2x32xf32> to vector<2x32xbf16>
    %cst_133 = arith.constant dense<0.000000e+00> : vector<2x96xf32>
    %397 = tpu.matmul %396, %15, %cst_133 {dimension_numbers = #tpu.dot_dimension_numbers<[1], [0], [0], [1], [0, 0, 1, 1], [], []>} : vector<2x32xbf16>, vector<32x96xbf16>, vector<2x96xf32> -> vector<2x96xf32>
    %398 = vector.broadcast %17 : vector<1x96xf32> to vector<2x96xf32>
    %399 = arith.addf %397, %398 : vector<2x96xf32>
    %400 = vector.extract_strided_slice %395 {offsets = [0, 0], sizes = [2, 32], strides = [1, 1]} : vector<2x96xf32> to vector<2x32xf32>
    %401 = vector.extract_strided_slice %399 {offsets = [0, 0], sizes = [2, 32], strides = [1, 1]} : vector<2x96xf32> to vector<2x32xf32>
    %402 = arith.addf %400, %401 : vector<2x32xf32>
    %403 = arith.negf %402 : vector<2x32xf32>
    %404 = math.exp %403 : vector<2x32xf32>
    %cst_134 = arith.constant 1.000000e+00 : f32
    %405 = vector.broadcast %cst_134 : f32 to vector<2x32xf32>
    %406 = arith.addf %405, %404 : vector<2x32xf32>
    %407 = arith.divf %405, %406 : vector<2x32xf32>
    %408 = vector.extract_strided_slice %395 {offsets = [0, 32], sizes = [2, 32], strides = [1, 1]} : vector<2x96xf32> to vector<2x32xf32>
    %409 = vector.extract_strided_slice %399 {offsets = [0, 32], sizes = [2, 32], strides = [1, 1]} : vector<2x96xf32> to vector<2x32xf32>
    %410 = arith.addf %408, %409 : vector<2x32xf32>
    %411 = arith.negf %410 : vector<2x32xf32>
    %412 = math.exp %411 : vector<2x32xf32>
    %cst_135 = arith.constant 1.000000e+00 : f32
    %413 = vector.broadcast %cst_135 : f32 to vector<2x32xf32>
    %414 = arith.addf %413, %412 : vector<2x32xf32>
    %415 = arith.divf %413, %414 : vector<2x32xf32>
    %416 = vector.extract_strided_slice %395 {offsets = [0, 64], sizes = [2, 32], strides = [1, 1]} : vector<2x96xf32> to vector<2x32xf32>
    %417 = vector.extract_strided_slice %399 {offsets = [0, 64], sizes = [2, 32], strides = [1, 1]} : vector<2x96xf32> to vector<2x32xf32>
    %418 = arith.mulf %407, %417 : vector<2x32xf32>
    %419 = arith.addf %416, %418 : vector<2x32xf32>
    %420 = math.tanh %419 : vector<2x32xf32>
    %cst_136 = arith.constant 1.000000e+00 : f32
    %421 = vector.broadcast %cst_136 : f32 to vector<2x32xf32>
    %422 = arith.subf %421, %415 : vector<2x32xf32>
    %423 = arith.mulf %422, %420 : vector<2x32xf32>
    %424 = arith.mulf %415, %217 : vector<2x32xf32>
    %425 = arith.addf %423, %424 : vector<2x32xf32>
    %c1_137 = arith.constant 1 : index
    %c0_138 = arith.constant 0 : index
    %c0_139 = arith.constant 0 : index
    %426 = vector.load %arg21[%c1_137, %c0_138, %c0_139] : memref<8x2x32xf32, #tpu.memory_space<vmem>>, vector<1x2x32xf32>
    %427 = vector.shape_cast %426 : vector<1x2x32xf32> to vector<2x32xf32>
    %428 = vector.shape_cast %282 : vector<2x32xf32> to vector<1x2x32xf32>
    tpu.vector_store %arg21[%c1_137, %c0_138, %c0_139], %428 {strides = array<i32>} : memref<8x2x32xf32, #tpu.memory_space<vmem>>, vector<1x2x32xf32>,
    %429 = vector.broadcast %18 : vector<1x32xf32> to vector<2x32xf32>
    %430 = arith.mulf %282, %429 : vector<2x32xf32>
    %cst_140 = arith.constant dense<0.000000e+00> : vector<2xf32>
    %431 = vector.multi_reduction <add>, %430, %cst_140 [1] : vector<2x32xf32> to vector<2xf32>
    %432 = vector.shape_cast %431 : vector<2xf32> to vector<2x1xf32>
    %c1_141 = arith.constant 1 : index
    %c0_142 = arith.constant 0 : index
    %c0_143 = arith.constant 0 : index
    %433 = vector.load %arg22[%c1_141, %c0_142, %c0_143] : memref<8x2x1xf32, #tpu.memory_space<vmem>>, vector<1x2x1xf32>
    %434 = vector.shape_cast %433 : vector<1x2x1xf32> to vector<2x1xf32>
    %435 = vector.shape_cast %432 : vector<2x1xf32> to vector<1x2x1xf32>
    tpu.vector_store %arg22[%c1_141, %c0_142, %c0_143], %435 {strides = array<i32>} : memref<8x2x1xf32, #tpu.memory_space<vmem>>, vector<1x2x1xf32>,
    %c1_144 = arith.constant 1 : index
    %c0_145 = arith.constant 0 : index
    %c0_146 = arith.constant 0 : index
    %436 = vector.load %arg19[%c1_144, %c0_145, %c0_146] : memref<8x2x32xf32, #tpu.memory_space<vmem>>, vector<1x2x32xf32>
    %437 = vector.shape_cast %436 : vector<1x2x32xf32> to vector<2x32xf32>
    %438 = vector.shape_cast %425 : vector<2x32xf32> to vector<1x2x32xf32>
    tpu.vector_store %arg19[%c1_144, %c0_145, %c0_146], %438 {strides = array<i32>} : memref<8x2x32xf32, #tpu.memory_space<vmem>>, vector<1x2x32xf32>,
    %c2 = arith.constant 2 : index
    %c0_147 = arith.constant 0 : index
    %c0_148 = arith.constant 0 : index
    %439 = vector.load %arg1[%c2, %c0_147, %c0_148] : memref<8x2x32xf32, #tpu.memory_space<vmem>>, vector<1x2x32xf32>
    %440 = vector.shape_cast %439 : vector<1x2x32xf32> to vector<2x32xf32>
    %c2_149 = arith.constant 2 : index
    %c0_150 = arith.constant 0 : index
    %c0_151 = arith.constant 0 : index
    %441 = vector.load %arg2[%c2_149, %c0_150, %c0_151] : memref<8x2x2xf32, #tpu.memory_space<vmem>>, vector<1x2x2xf32>
    %442 = vector.shape_cast %441 : vector<1x2x2xf32> to vector<2x2xf32>
    %c2_152 = arith.constant 2 : index
    %c0_153 = arith.constant 0 : index
    %c0_154 = arith.constant 0 : index
    %443 = vector.load %arg3[%c2_152, %c0_153, %c0_154] : memref<8x2x2xf32, #tpu.memory_space<vmem>>, vector<1x2x2xf32>
    %444 = vector.shape_cast %443 : vector<1x2x2xf32> to vector<2x2xf32>
    %445 = vector.extract_strided_slice %444 {offsets = [0, 0], sizes = [2, 1], strides = [1, 1]} : vector<2x2xf32> to vector<2x1xf32>
    %446 = vector.extract_strided_slice %444 {offsets = [0, 1], sizes = [2, 1], strides = [1, 1]} : vector<2x2xf32> to vector<2x1xf32>
    %447 = vector.extract_strided_slice %442 {offsets = [0, 0], sizes = [2, 1], strides = [1, 1]} : vector<2x2xf32> to vector<2x1xf32>
    %448 = vector.extract_strided_slice %442 {offsets = [0, 1], sizes = [2, 1], strides = [1, 1]} : vector<2x2xf32> to vector<2x1xf32>
    %449 = vector.broadcast %445 : vector<2x1xf32> to vector<2x32xf32>
    %450 = arith.mulf %449, %348 : vector<2x32xf32>
    %451 = vector.broadcast %446 : vector<2x1xf32> to vector<2x32xf32>
    %452 = arith.mulf %451, %388 : vector<2x32xf32>
    %453 = arith.addf %450, %452 : vector<2x32xf32>
    %454 = arith.truncf %440 : vector<2x32xf32> to vector<2x32xbf16>
    %cst_155 = arith.constant dense<0.000000e+00> : vector<2x96xf32>
    %455 = tpu.matmul %454, %4, %cst_155 {dimension_numbers = #tpu.dot_dimension_numbers<[1], [0], [0], [1], [0, 0, 1, 1], [], []>} : vector<2x32xbf16>, vector<32x96xbf16>, vector<2x96xf32> -> vector<2x96xf32>
    %456 = arith.truncf %453 : vector<2x32xf32> to vector<2x32xbf16>
    %cst_156 = arith.constant dense<0.000000e+00> : vector<2x96xf32>
    %457 = tpu.matmul %456, %5, %cst_156 {dimension_numbers = #tpu.dot_dimension_numbers<[1], [0], [0], [1], [0, 0, 1, 1], [], []>} : vector<2x32xbf16>, vector<32x96xbf16>, vector<2x96xf32> -> vector<2x96xf32>
    %458 = arith.addf %455, %457 : vector<2x96xf32>
    %459 = vector.broadcast %7 : vector<1x96xf32> to vector<2x96xf32>
    %460 = arith.addf %458, %459 : vector<2x96xf32>
    %461 = arith.truncf %282 : vector<2x32xf32> to vector<2x32xbf16>
    %cst_157 = arith.constant dense<0.000000e+00> : vector<2x96xf32>
    %462 = tpu.matmul %461, %6, %cst_157 {dimension_numbers = #tpu.dot_dimension_numbers<[1], [0], [0], [1], [0, 0, 1, 1], [], []>} : vector<2x32xbf16>, vector<32x96xbf16>, vector<2x96xf32> -> vector<2x96xf32>
    %463 = vector.broadcast %8 : vector<1x96xf32> to vector<2x96xf32>
    %464 = arith.addf %462, %463 : vector<2x96xf32>
    %465 = vector.extract_strided_slice %460 {offsets = [0, 0], sizes = [2, 32], strides = [1, 1]} : vector<2x96xf32> to vector<2x32xf32>
    %466 = vector.extract_strided_slice %464 {offsets = [0, 0], sizes = [2, 32], strides = [1, 1]} : vector<2x96xf32> to vector<2x32xf32>
    %467 = arith.addf %465, %466 : vector<2x32xf32>
    %468 = arith.negf %467 : vector<2x32xf32>
    %469 = math.exp %468 : vector<2x32xf32>
    %cst_158 = arith.constant 1.000000e+00 : f32
    %470 = vector.broadcast %cst_158 : f32 to vector<2x32xf32>
    %471 = arith.addf %470, %469 : vector<2x32xf32>
    %472 = arith.divf %470, %471 : vector<2x32xf32>
    %473 = vector.extract_strided_slice %460 {offsets = [0, 32], sizes = [2, 32], strides = [1, 1]} : vector<2x96xf32> to vector<2x32xf32>
    %474 = vector.extract_strided_slice %464 {offsets = [0, 32], sizes = [2, 32], strides = [1, 1]} : vector<2x96xf32> to vector<2x32xf32>
    %475 = arith.addf %473, %474 : vector<2x32xf32>
    %476 = arith.negf %475 : vector<2x32xf32>
    %477 = math.exp %476 : vector<2x32xf32>
    %cst_159 = arith.constant 1.000000e+00 : f32
    %478 = vector.broadcast %cst_159 : f32 to vector<2x32xf32>
    %479 = arith.addf %478, %477 : vector<2x32xf32>
    %480 = arith.divf %478, %479 : vector<2x32xf32>
    %481 = vector.extract_strided_slice %460 {offsets = [0, 64], sizes = [2, 32], strides = [1, 1]} : vector<2x96xf32> to vector<2x32xf32>
    %482 = vector.extract_strided_slice %464 {offsets = [0, 64], sizes = [2, 32], strides = [1, 1]} : vector<2x96xf32> to vector<2x32xf32>
    %483 = arith.mulf %472, %482 : vector<2x32xf32>
    %484 = arith.addf %481, %483 : vector<2x32xf32>
    %485 = math.tanh %484 : vector<2x32xf32>
    %cst_160 = arith.constant 1.000000e+00 : f32
    %486 = vector.broadcast %cst_160 : f32 to vector<2x32xf32>
    %487 = arith.subf %486, %480 : vector<2x32xf32>
    %488 = arith.mulf %487, %485 : vector<2x32xf32>
    %489 = arith.mulf %480, %282 : vector<2x32xf32>
    %490 = arith.addf %488, %489 : vector<2x32xf32>
    %c0_161 = arith.constant 0 : index
    %c0_162 = arith.constant 0 : index
    %c0_163 = arith.constant 0 : index
    %491 = vector.load %arg22[%c0_161, %c0_162, %c0_163] : memref<8x2x1xf32, #tpu.memory_space<vmem>>, vector<8x2x1xf32>
    %492 = tpu.iota {dimensions = array<i32: 0>} : vector<8x2x1xi32>
    %c2_i32 = arith.constant 2 : i32
    %493 = vector.broadcast %c2_i32 : i32 to vector<8x2x1xi32>
    %494 = arith.cmpi slt, %492, %493 : vector<8x2x1xi32>
    %cst_164 = arith.constant -1.000000e+30 : f32
    %495 = vector.broadcast %cst_164 : f32 to vector<8x2x1xf32>
    %496 = arith.select %494, %491, %495 : vector<8x2x1xi1>, vector<8x2x1xf32>
    %cst_165 = arith.constant dense<0xFF800000> : vector<2x1xf32>
    %497 = vector.multi_reduction <maximumf>, %496, %cst_165 [0] : vector<8x2x1xf32> to vector<2x1xf32>
    %498 = vector.shape_cast %497 : vector<2x1xf32> to vector<1x2x1xf32>
    %499 = vector.broadcast %498 : vector<1x2x1xf32> to vector<8x2x1xf32>
    %500 = arith.subf %496, %499 : vector<8x2x1xf32>
    %501 = math.exp %500 : vector<8x2x1xf32>
    %cst_166 = arith.constant dense<0.000000e+00> : vector<2x1xf32>
    %502 = vector.multi_reduction <add>, %501, %cst_166 [0] : vector<8x2x1xf32> to vector<2x1xf32>
    %503 = vector.shape_cast %502 : vector<2x1xf32> to vector<1x2x1xf32>
    %504 = vector.broadcast %503 : vector<1x2x1xf32> to vector<8x2x1xf32>
    %505 = arith.divf %501, %504 : vector<8x2x1xf32>
    %cst_167 = arith.constant 0.000000e+00 : f32
    %506 = vector.broadcast %cst_167 : f32 to vector<8x2x1xf32>
    %507 = arith.select %494, %505, %506 : vector<8x2x1xi1>, vector<8x2x1xf32>
    %c0_168 = arith.constant 0 : index
    %c0_169 = arith.constant 0 : index
    %c0_170 = arith.constant 0 : index
    %508 = vector.load %arg21[%c0_168, %c0_169, %c0_170] : memref<8x2x32xf32, #tpu.memory_space<vmem>>, vector<8x2x32xf32>
    %509 = vector.broadcast %507 : vector<8x2x1xf32> to vector<8x2x32xf32>
    %510 = arith.mulf %509, %508 : vector<8x2x32xf32>
    %cst_171 = arith.constant dense<0.000000e+00> : vector<2x32xf32>
    %511 = vector.multi_reduction <add>, %510, %cst_171 [0] : vector<8x2x32xf32> to vector<2x32xf32>
    %512 = arith.truncf %440 : vector<2x32xf32> to vector<2x32xbf16>
    %cst_172 = arith.constant dense<0.000000e+00> : vector<2x96xf32>
    %513 = tpu.matmul %512, %9, %cst_172 {dimension_numbers = #tpu.dot_dimension_numbers<[1], [0], [0], [1], [0, 0, 1, 1], [], []>} : vector<2x32xbf16>, vector<32x96xbf16>, vector<2x96xf32> -> vector<2x96xf32>
    %514 = arith.truncf %511 : vector<2x32xf32> to vector<2x32xbf16>
    %cst_173 = arith.constant dense<0.000000e+00> : vector<2x96xf32>
    %515 = tpu.matmul %514, %10, %cst_173 {dimension_numbers = #tpu.dot_dimension_numbers<[1], [0], [0], [1], [0, 0, 1, 1], [], []>} : vector<2x32xbf16>, vector<32x96xbf16>, vector<2x96xf32> -> vector<2x96xf32>
    %516 = arith.addf %513, %515 : vector<2x96xf32>
    %517 = vector.broadcast %12 : vector<1x96xf32> to vector<2x96xf32>
    %518 = arith.addf %516, %517 : vector<2x96xf32>
    %cst_174 = arith.constant 0.000000e+00 : f32
    %519 = vector.broadcast %cst_174 : f32 to vector<2x32xf32>
    %520 = arith.truncf %348 : vector<2x32xf32> to vector<2x32xbf16>
    %cst_175 = arith.constant dense<0.000000e+00> : vector<2x96xf32>
    %521 = tpu.matmul %520, %11, %cst_175 {dimension_numbers = #tpu.dot_dimension_numbers<[1], [0], [0], [1], [0, 0, 1, 1], [], []>} : vector<2x32xbf16>, vector<32x96xbf16>, vector<2x96xf32> -> vector<2x96xf32>
    %522 = vector.broadcast %13 : vector<1x96xf32> to vector<2x96xf32>
    %523 = arith.addf %521, %522 : vector<2x96xf32>
    %524 = vector.extract_strided_slice %518 {offsets = [0, 0], sizes = [2, 32], strides = [1, 1]} : vector<2x96xf32> to vector<2x32xf32>
    %525 = vector.extract_strided_slice %523 {offsets = [0, 0], sizes = [2, 32], strides = [1, 1]} : vector<2x96xf32> to vector<2x32xf32>
    %526 = arith.addf %524, %525 : vector<2x32xf32>
    %527 = arith.negf %526 : vector<2x32xf32>
    %528 = math.exp %527 : vector<2x32xf32>
    %cst_176 = arith.constant 1.000000e+00 : f32
    %529 = vector.broadcast %cst_176 : f32 to vector<2x32xf32>
    %530 = arith.addf %529, %528 : vector<2x32xf32>
    %531 = arith.divf %529, %530 : vector<2x32xf32>
    %532 = vector.extract_strided_slice %518 {offsets = [0, 32], sizes = [2, 32], strides = [1, 1]} : vector<2x96xf32> to vector<2x32xf32>
    %533 = vector.extract_strided_slice %523 {offsets = [0, 32], sizes = [2, 32], strides = [1, 1]} : vector<2x96xf32> to vector<2x32xf32>
    %534 = arith.addf %532, %533 : vector<2x32xf32>
    %535 = arith.negf %534 : vector<2x32xf32>
    %536 = math.exp %535 : vector<2x32xf32>
    %cst_177 = arith.constant 1.000000e+00 : f32
    %537 = vector.broadcast %cst_177 : f32 to vector<2x32xf32>
    %538 = arith.addf %537, %536 : vector<2x32xf32>
    %539 = arith.divf %537, %538 : vector<2x32xf32>
    %540 = vector.extract_strided_slice %518 {offsets = [0, 64], sizes = [2, 32], strides = [1, 1]} : vector<2x96xf32> to vector<2x32xf32>
    %541 = vector.extract_strided_slice %523 {offsets = [0, 64], sizes = [2, 32], strides = [1, 1]} : vector<2x96xf32> to vector<2x32xf32>
    %542 = arith.mulf %531, %541 : vector<2x32xf32>
    %543 = arith.addf %540, %542 : vector<2x32xf32>
    %544 = math.tanh %543 : vector<2x32xf32>
    %cst_178 = arith.constant 1.000000e+00 : f32
    %545 = vector.broadcast %cst_178 : f32 to vector<2x32xf32>
    %546 = arith.subf %545, %539 : vector<2x32xf32>
    %547 = arith.mulf %546, %544 : vector<2x32xf32>
    %548 = arith.mulf %539, %348 : vector<2x32xf32>
    %549 = arith.addf %547, %548 : vector<2x32xf32>
    %cst_179 = arith.constant 1.000000e+00 : f32
    %550 = vector.broadcast %cst_179 : f32 to vector<2x1xf32>
    %551 = arith.subf %550, %447 : vector<2x1xf32>
    %552 = vector.broadcast %551 : vector<2x1xf32> to vector<2x32xf32>
    %553 = arith.mulf %348, %552 : vector<2x32xf32>
    %554 = vector.broadcast %447 : vector<2x1xf32> to vector<2x32xf32>
    %555 = arith.mulf %549, %554 : vector<2x32xf32>
    %556 = arith.addf %553, %555 : vector<2x32xf32>
    %557 = vector.broadcast %445 : vector<2x1xf32> to vector<2x32xf32>
    %558 = arith.mulf %557, %556 : vector<2x32xf32>
    %559 = arith.addf %519, %558 : vector<2x32xf32>
    %560 = arith.truncf %388 : vector<2x32xf32> to vector<2x32xbf16>
    %cst_180 = arith.constant dense<0.000000e+00> : vector<2x96xf32>
    %561 = tpu.matmul %560, %11, %cst_180 {dimension_numbers = #tpu.dot_dimension_numbers<[1], [0], [0], [1], [0, 0, 1, 1], [], []>} : vector<2x32xbf16>, vector<32x96xbf16>, vector<2x96xf32> -> vector<2x96xf32>
    %562 = vector.broadcast %13 : vector<1x96xf32> to vector<2x96xf32>
    %563 = arith.addf %561, %562 : vector<2x96xf32>
    %564 = vector.extract_strided_slice %518 {offsets = [0, 0], sizes = [2, 32], strides = [1, 1]} : vector<2x96xf32> to vector<2x32xf32>
    %565 = vector.extract_strided_slice %563 {offsets = [0, 0], sizes = [2, 32], strides = [1, 1]} : vector<2x96xf32> to vector<2x32xf32>
    %566 = arith.addf %564, %565 : vector<2x32xf32>
    %567 = arith.negf %566 : vector<2x32xf32>
    %568 = math.exp %567 : vector<2x32xf32>
    %cst_181 = arith.constant 1.000000e+00 : f32
    %569 = vector.broadcast %cst_181 : f32 to vector<2x32xf32>
    %570 = arith.addf %569, %568 : vector<2x32xf32>
    %571 = arith.divf %569, %570 : vector<2x32xf32>
    %572 = vector.extract_strided_slice %518 {offsets = [0, 32], sizes = [2, 32], strides = [1, 1]} : vector<2x96xf32> to vector<2x32xf32>
    %573 = vector.extract_strided_slice %563 {offsets = [0, 32], sizes = [2, 32], strides = [1, 1]} : vector<2x96xf32> to vector<2x32xf32>
    %574 = arith.addf %572, %573 : vector<2x32xf32>
    %575 = arith.negf %574 : vector<2x32xf32>
    %576 = math.exp %575 : vector<2x32xf32>
    %cst_182 = arith.constant 1.000000e+00 : f32
    %577 = vector.broadcast %cst_182 : f32 to vector<2x32xf32>
    %578 = arith.addf %577, %576 : vector<2x32xf32>
    %579 = arith.divf %577, %578 : vector<2x32xf32>
    %580 = vector.extract_strided_slice %518 {offsets = [0, 64], sizes = [2, 32], strides = [1, 1]} : vector<2x96xf32> to vector<2x32xf32>
    %581 = vector.extract_strided_slice %563 {offsets = [0, 64], sizes = [2, 32], strides = [1, 1]} : vector<2x96xf32> to vector<2x32xf32>
    %582 = arith.mulf %571, %581 : vector<2x32xf32>
    %583 = arith.addf %580, %582 : vector<2x32xf32>
    %584 = math.tanh %583 : vector<2x32xf32>
    %cst_183 = arith.constant 1.000000e+00 : f32
    %585 = vector.broadcast %cst_183 : f32 to vector<2x32xf32>
    %586 = arith.subf %585, %579 : vector<2x32xf32>
    %587 = arith.mulf %586, %584 : vector<2x32xf32>
    %588 = arith.mulf %579, %388 : vector<2x32xf32>
    %589 = arith.addf %587, %588 : vector<2x32xf32>
    %cst_184 = arith.constant 1.000000e+00 : f32
    %590 = vector.broadcast %cst_184 : f32 to vector<2x1xf32>
    %591 = arith.subf %590, %448 : vector<2x1xf32>
    %592 = vector.broadcast %591 : vector<2x1xf32> to vector<2x32xf32>
    %593 = arith.mulf %388, %592 : vector<2x32xf32>
    %594 = vector.broadcast %448 : vector<2x1xf32> to vector<2x32xf32>
    %595 = arith.mulf %589, %594 : vector<2x32xf32>
    %596 = arith.addf %593, %595 : vector<2x32xf32>
    %597 = vector.broadcast %446 : vector<2x1xf32> to vector<2x32xf32>
    %598 = arith.mulf %597, %596 : vector<2x32xf32>
    %599 = arith.addf %559, %598 : vector<2x32xf32>
    %600 = arith.truncf %599 : vector<2x32xf32> to vector<2x32xbf16>
    %cst_185 = arith.constant dense<0.000000e+00> : vector<2x96xf32>
    %601 = tpu.matmul %600, %14, %cst_185 {dimension_numbers = #tpu.dot_dimension_numbers<[1], [0], [0], [1], [0, 0, 1, 1], [], []>} : vector<2x32xbf16>, vector<32x96xbf16>, vector<2x96xf32> -> vector<2x96xf32>
    %602 = vector.broadcast %16 : vector<1x96xf32> to vector<2x96xf32>
    %603 = arith.addf %601, %602 : vector<2x96xf32>
    %604 = arith.truncf %425 : vector<2x32xf32> to vector<2x32xbf16>
    %cst_186 = arith.constant dense<0.000000e+00> : vector<2x96xf32>
    %605 = tpu.matmul %604, %15, %cst_186 {dimension_numbers = #tpu.dot_dimension_numbers<[1], [0], [0], [1], [0, 0, 1, 1], [], []>} : vector<2x32xbf16>, vector<32x96xbf16>, vector<2x96xf32> -> vector<2x96xf32>
    %606 = vector.broadcast %17 : vector<1x96xf32> to vector<2x96xf32>
    %607 = arith.addf %605, %606 : vector<2x96xf32>
    %608 = vector.extract_strided_slice %603 {offsets = [0, 0], sizes = [2, 32], strides = [1, 1]} : vector<2x96xf32> to vector<2x32xf32>
    %609 = vector.extract_strided_slice %607 {offsets = [0, 0], sizes = [2, 32], strides = [1, 1]} : vector<2x96xf32> to vector<2x32xf32>
    %610 = arith.addf %608, %609 : vector<2x32xf32>
    %611 = arith.negf %610 : vector<2x32xf32>
    %612 = math.exp %611 : vector<2x32xf32>
    %cst_187 = arith.constant 1.000000e+00 : f32
    %613 = vector.broadcast %cst_187 : f32 to vector<2x32xf32>
    %614 = arith.addf %613, %612 : vector<2x32xf32>
    %615 = arith.divf %613, %614 : vector<2x32xf32>
    %616 = vector.extract_strided_slice %603 {offsets = [0, 32], sizes = [2, 32], strides = [1, 1]} : vector<2x96xf32> to vector<2x32xf32>
    %617 = vector.extract_strided_slice %607 {offsets = [0, 32], sizes = [2, 32], strides = [1, 1]} : vector<2x96xf32> to vector<2x32xf32>
    %618 = arith.addf %616, %617 : vector<2x32xf32>
    %619 = arith.negf %618 : vector<2x32xf32>
    %620 = math.exp %619 : vector<2x32xf32>
    %cst_188 = arith.constant 1.000000e+00 : f32
    %621 = vector.broadcast %cst_188 : f32 to vector<2x32xf32>
    %622 = arith.addf %621, %620 : vector<2x32xf32>
    %623 = arith.divf %621, %622 : vector<2x32xf32>
    %624 = vector.extract_strided_slice %603 {offsets = [0, 64], sizes = [2, 32], strides = [1, 1]} : vector<2x96xf32> to vector<2x32xf32>
    %625 = vector.extract_strided_slice %607 {offsets = [0, 64], sizes = [2, 32], strides = [1, 1]} : vector<2x96xf32> to vector<2x32xf32>
    %626 = arith.mulf %615, %625 : vector<2x32xf32>
    %627 = arith.addf %624, %626 : vector<2x32xf32>
    %628 = math.tanh %627 : vector<2x32xf32>
    %cst_189 = arith.constant 1.000000e+00 : f32
    %629 = vector.broadcast %cst_189 : f32 to vector<2x32xf32>
    %630 = arith.subf %629, %623 : vector<2x32xf32>
    %631 = arith.mulf %630, %628 : vector<2x32xf32>
    %632 = arith.mulf %623, %425 : vector<2x32xf32>
    %633 = arith.addf %631, %632 : vector<2x32xf32>
    %c2_190 = arith.constant 2 : index
    %c0_191 = arith.constant 0 : index
    %c0_192 = arith.constant 0 : index
    %634 = vector.load %arg21[%c2_190, %c0_191, %c0_192] : memref<8x2x32xf32, #tpu.memory_space<vmem>>, vector<1x2x32xf32>
    %635 = vector.shape_cast %634 : vector<1x2x32xf32> to vector<2x32xf32>
    %636 = vector.shape_cast %490 : vector<2x32xf32> to vector<1x2x32xf32>
    tpu.vector_store %arg21[%c2_190, %c0_191, %c0_192], %636 {strides = array<i32>} : memref<8x2x32xf32, #tpu.memory_space<vmem>>, vector<1x2x32xf32>,
    %637 = vector.broadcast %18 : vector<1x32xf32> to vector<2x32xf32>
    %638 = arith.mulf %490, %637 : vector<2x32xf32>
    %cst_193 = arith.constant dense<0.000000e+00> : vector<2xf32>
    %639 = vector.multi_reduction <add>, %638, %cst_193 [1] : vector<2x32xf32> to vector<2xf32>
    %640 = vector.shape_cast %639 : vector<2xf32> to vector<2x1xf32>
    %c2_194 = arith.constant 2 : index
    %c0_195 = arith.constant 0 : index
    %c0_196 = arith.constant 0 : index
    %641 = vector.load %arg22[%c2_194, %c0_195, %c0_196] : memref<8x2x1xf32, #tpu.memory_space<vmem>>, vector<1x2x1xf32>
    %642 = vector.shape_cast %641 : vector<1x2x1xf32> to vector<2x1xf32>
    %643 = vector.shape_cast %640 : vector<2x1xf32> to vector<1x2x1xf32>
    tpu.vector_store %arg22[%c2_194, %c0_195, %c0_196], %643 {strides = array<i32>} : memref<8x2x1xf32, #tpu.memory_space<vmem>>, vector<1x2x1xf32>,
    %c2_197 = arith.constant 2 : index
    %c0_198 = arith.constant 0 : index
    %c0_199 = arith.constant 0 : index
    %644 = vector.load %arg19[%c2_197, %c0_198, %c0_199] : memref<8x2x32xf32, #tpu.memory_space<vmem>>, vector<1x2x32xf32>
    %645 = vector.shape_cast %644 : vector<1x2x32xf32> to vector<2x32xf32>
    %646 = vector.shape_cast %633 : vector<2x32xf32> to vector<1x2x32xf32>
    tpu.vector_store %arg19[%c2_197, %c0_198, %c0_199], %646 {strides = array<i32>} : memref<8x2x32xf32, #tpu.memory_space<vmem>>, vector<1x2x32xf32>,
    %c3 = arith.constant 3 : index
    %c0_200 = arith.constant 0 : index
    %c0_201 = arith.constant 0 : index
    %647 = vector.load %arg1[%c3, %c0_200, %c0_201] : memref<8x2x32xf32, #tpu.memory_space<vmem>>, vector<1x2x32xf32>
    %648 = vector.shape_cast %647 : vector<1x2x32xf32> to vector<2x32xf32>
    %c3_202 = arith.constant 3 : index
    %c0_203 = arith.constant 0 : index
    %c0_204 = arith.constant 0 : index
    %649 = vector.load %arg2[%c3_202, %c0_203, %c0_204] : memref<8x2x2xf32, #tpu.memory_space<vmem>>, vector<1x2x2xf32>
    %650 = vector.shape_cast %649 : vector<1x2x2xf32> to vector<2x2xf32>
    %c3_205 = arith.constant 3 : index
    %c0_206 = arith.constant 0 : index
    %c0_207 = arith.constant 0 : index
    %651 = vector.load %arg3[%c3_205, %c0_206, %c0_207] : memref<8x2x2xf32, #tpu.memory_space<vmem>>, vector<1x2x2xf32>
    %652 = vector.shape_cast %651 : vector<1x2x2xf32> to vector<2x2xf32>
    %653 = vector.extract_strided_slice %652 {offsets = [0, 0], sizes = [2, 1], strides = [1, 1]} : vector<2x2xf32> to vector<2x1xf32>
    %654 = vector.extract_strided_slice %652 {offsets = [0, 1], sizes = [2, 1], strides = [1, 1]} : vector<2x2xf32> to vector<2x1xf32>
    %655 = vector.extract_strided_slice %650 {offsets = [0, 0], sizes = [2, 1], strides = [1, 1]} : vector<2x2xf32> to vector<2x1xf32>
    %656 = vector.extract_strided_slice %650 {offsets = [0, 1], sizes = [2, 1], strides = [1, 1]} : vector<2x2xf32> to vector<2x1xf32>
    %657 = vector.broadcast %653 : vector<2x1xf32> to vector<2x32xf32>
    %658 = arith.mulf %657, %556 : vector<2x32xf32>
    %659 = vector.broadcast %654 : vector<2x1xf32> to vector<2x32xf32>
    %660 = arith.mulf %659, %596 : vector<2x32xf32>
    %661 = arith.addf %658, %660 : vector<2x32xf32>
    %662 = arith.truncf %648 : vector<2x32xf32> to vector<2x32xbf16>
    %cst_208 = arith.constant dense<0.000000e+00> : vector<2x96xf32>
    %663 = tpu.matmul %662, %4, %cst_208 {dimension_numbers = #tpu.dot_dimension_numbers<[1], [0], [0], [1], [0, 0, 1, 1], [], []>} : vector<2x32xbf16>, vector<32x96xbf16>, vector<2x96xf32> -> vector<2x96xf32>
    %664 = arith.truncf %661 : vector<2x32xf32> to vector<2x32xbf16>
    %cst_209 = arith.constant dense<0.000000e+00> : vector<2x96xf32>
    %665 = tpu.matmul %664, %5, %cst_209 {dimension_numbers = #tpu.dot_dimension_numbers<[1], [0], [0], [1], [0, 0, 1, 1], [], []>} : vector<2x32xbf16>, vector<32x96xbf16>, vector<2x96xf32> -> vector<2x96xf32>
    %666 = arith.addf %663, %665 : vector<2x96xf32>
    %667 = vector.broadcast %7 : vector<1x96xf32> to vector<2x96xf32>
    %668 = arith.addf %666, %667 : vector<2x96xf32>
    %669 = arith.truncf %490 : vector<2x32xf32> to vector<2x32xbf16>
    %cst_210 = arith.constant dense<0.000000e+00> : vector<2x96xf32>
    %670 = tpu.matmul %669, %6, %cst_210 {dimension_numbers = #tpu.dot_dimension_numbers<[1], [0], [0], [1], [0, 0, 1, 1], [], []>} : vector<2x32xbf16>, vector<32x96xbf16>, vector<2x96xf32> -> vector<2x96xf32>
    %671 = vector.broadcast %8 : vector<1x96xf32> to vector<2x96xf32>
    %672 = arith.addf %670, %671 : vector<2x96xf32>
    %673 = vector.extract_strided_slice %668 {offsets = [0, 0], sizes = [2, 32], strides = [1, 1]} : vector<2x96xf32> to vector<2x32xf32>
    %674 = vector.extract_strided_slice %672 {offsets = [0, 0], sizes = [2, 32], strides = [1, 1]} : vector<2x96xf32> to vector<2x32xf32>
    %675 = arith.addf %673, %674 : vector<2x32xf32>
    %676 = arith.negf %675 : vector<2x32xf32>
    %677 = math.exp %676 : vector<2x32xf32>
    %cst_211 = arith.constant 1.000000e+00 : f32
    %678 = vector.broadcast %cst_211 : f32 to vector<2x32xf32>
    %679 = arith.addf %678, %677 : vector<2x32xf32>
    %680 = arith.divf %678, %679 : vector<2x32xf32>
    %681 = vector.extract_strided_slice %668 {offsets = [0, 32], sizes = [2, 32], strides = [1, 1]} : vector<2x96xf32> to vector<2x32xf32>
    %682 = vector.extract_strided_slice %672 {offsets = [0, 32], sizes = [2, 32], strides = [1, 1]} : vector<2x96xf32> to vector<2x32xf32>
    %683 = arith.addf %681, %682 : vector<2x32xf32>
    %684 = arith.negf %683 : vector<2x32xf32>
    %685 = math.exp %684 : vector<2x32xf32>
    %cst_212 = arith.constant 1.000000e+00 : f32
    %686 = vector.broadcast %cst_212 : f32 to vector<2x32xf32>
    %687 = arith.addf %686, %685 : vector<2x32xf32>
    %688 = arith.divf %686, %687 : vector<2x32xf32>
    %689 = vector.extract_strided_slice %668 {offsets = [0, 64], sizes = [2, 32], strides = [1, 1]} : vector<2x96xf32> to vector<2x32xf32>
    %690 = vector.extract_strided_slice %672 {offsets = [0, 64], sizes = [2, 32], strides = [1, 1]} : vector<2x96xf32> to vector<2x32xf32>
    %691 = arith.mulf %680, %690 : vector<2x32xf32>
    %692 = arith.addf %689, %691 : vector<2x32xf32>
    %693 = math.tanh %692 : vector<2x32xf32>
    %cst_213 = arith.constant 1.000000e+00 : f32
    %694 = vector.broadcast %cst_213 : f32 to vector<2x32xf32>
    %695 = arith.subf %694, %688 : vector<2x32xf32>
    %696 = arith.mulf %695, %693 : vector<2x32xf32>
    %697 = arith.mulf %688, %490 : vector<2x32xf32>
    %698 = arith.addf %696, %697 : vector<2x32xf32>
    %c0_214 = arith.constant 0 : index
    %c0_215 = arith.constant 0 : index
    %c0_216 = arith.constant 0 : index
    %699 = vector.load %arg22[%c0_214, %c0_215, %c0_216] : memref<8x2x1xf32, #tpu.memory_space<vmem>>, vector<8x2x1xf32>
    %700 = tpu.iota {dimensions = array<i32: 0>} : vector<8x2x1xi32>
    %c3_i32 = arith.constant 3 : i32
    %701 = vector.broadcast %c3_i32 : i32 to vector<8x2x1xi32>
    %702 = arith.cmpi slt, %700, %701 : vector<8x2x1xi32>
    %cst_217 = arith.constant -1.000000e+30 : f32
    %703 = vector.broadcast %cst_217 : f32 to vector<8x2x1xf32>
    %704 = arith.select %702, %699, %703 : vector<8x2x1xi1>, vector<8x2x1xf32>
    %cst_218 = arith.constant dense<0xFF800000> : vector<2x1xf32>
    %705 = vector.multi_reduction <maximumf>, %704, %cst_218 [0] : vector<8x2x1xf32> to vector<2x1xf32>
    %706 = vector.shape_cast %705 : vector<2x1xf32> to vector<1x2x1xf32>
    %707 = vector.broadcast %706 : vector<1x2x1xf32> to vector<8x2x1xf32>
    %708 = arith.subf %704, %707 : vector<8x2x1xf32>
    %709 = math.exp %708 : vector<8x2x1xf32>
    %cst_219 = arith.constant dense<0.000000e+00> : vector<2x1xf32>
    %710 = vector.multi_reduction <add>, %709, %cst_219 [0] : vector<8x2x1xf32> to vector<2x1xf32>
    %711 = vector.shape_cast %710 : vector<2x1xf32> to vector<1x2x1xf32>
    %712 = vector.broadcast %711 : vector<1x2x1xf32> to vector<8x2x1xf32>
    %713 = arith.divf %709, %712 : vector<8x2x1xf32>
    %cst_220 = arith.constant 0.000000e+00 : f32
    %714 = vector.broadcast %cst_220 : f32 to vector<8x2x1xf32>
    %715 = arith.select %702, %713, %714 : vector<8x2x1xi1>, vector<8x2x1xf32>
    %c0_221 = arith.constant 0 : index
    %c0_222 = arith.constant 0 : index
    %c0_223 = arith.constant 0 : index
    %716 = vector.load %arg21[%c0_221, %c0_222, %c0_223] : memref<8x2x32xf32, #tpu.memory_space<vmem>>, vector<8x2x32xf32>
    %717 = vector.broadcast %715 : vector<8x2x1xf32> to vector<8x2x32xf32>
    %718 = arith.mulf %717, %716 : vector<8x2x32xf32>
    %cst_224 = arith.constant dense<0.000000e+00> : vector<2x32xf32>
    %719 = vector.multi_reduction <add>, %718, %cst_224 [0] : vector<8x2x32xf32> to vector<2x32xf32>
    %720 = arith.truncf %648 : vector<2x32xf32> to vector<2x32xbf16>
    %cst_225 = arith.constant dense<0.000000e+00> : vector<2x96xf32>
    %721 = tpu.matmul %720, %9, %cst_225 {dimension_numbers = #tpu.dot_dimension_numbers<[1], [0], [0], [1], [0, 0, 1, 1], [], []>} : vector<2x32xbf16>, vector<32x96xbf16>, vector<2x96xf32> -> vector<2x96xf32>
    %722 = arith.truncf %719 : vector<2x32xf32> to vector<2x32xbf16>
    %cst_226 = arith.constant dense<0.000000e+00> : vector<2x96xf32>
    %723 = tpu.matmul %722, %10, %cst_226 {dimension_numbers = #tpu.dot_dimension_numbers<[1], [0], [0], [1], [0, 0, 1, 1], [], []>} : vector<2x32xbf16>, vector<32x96xbf16>, vector<2x96xf32> -> vector<2x96xf32>
    %724 = arith.addf %721, %723 : vector<2x96xf32>
    %725 = vector.broadcast %12 : vector<1x96xf32> to vector<2x96xf32>
    %726 = arith.addf %724, %725 : vector<2x96xf32>
    %cst_227 = arith.constant 0.000000e+00 : f32
    %727 = vector.broadcast %cst_227 : f32 to vector<2x32xf32>
    %728 = arith.truncf %556 : vector<2x32xf32> to vector<2x32xbf16>
    %cst_228 = arith.constant dense<0.000000e+00> : vector<2x96xf32>
    %729 = tpu.matmul %728, %11, %cst_228 {dimension_numbers = #tpu.dot_dimension_numbers<[1], [0], [0], [1], [0, 0, 1, 1], [], []>} : vector<2x32xbf16>, vector<32x96xbf16>, vector<2x96xf32> -> vector<2x96xf32>
    %730 = vector.broadcast %13 : vector<1x96xf32> to vector<2x96xf32>
    %731 = arith.addf %729, %730 : vector<2x96xf32>
    %732 = vector.extract_strided_slice %726 {offsets = [0, 0], sizes = [2, 32], strides = [1, 1]} : vector<2x96xf32> to vector<2x32xf32>
    %733 = vector.extract_strided_slice %731 {offsets = [0, 0], sizes = [2, 32], strides = [1, 1]} : vector<2x96xf32> to vector<2x32xf32>
    %734 = arith.addf %732, %733 : vector<2x32xf32>
    %735 = arith.negf %734 : vector<2x32xf32>
    %736 = math.exp %735 : vector<2x32xf32>
    %cst_229 = arith.constant 1.000000e+00 : f32
    %737 = vector.broadcast %cst_229 : f32 to vector<2x32xf32>
    %738 = arith.addf %737, %736 : vector<2x32xf32>
    %739 = arith.divf %737, %738 : vector<2x32xf32>
    %740 = vector.extract_strided_slice %726 {offsets = [0, 32], sizes = [2, 32], strides = [1, 1]} : vector<2x96xf32> to vector<2x32xf32>
    %741 = vector.extract_strided_slice %731 {offsets = [0, 32], sizes = [2, 32], strides = [1, 1]} : vector<2x96xf32> to vector<2x32xf32>
    %742 = arith.addf %740, %741 : vector<2x32xf32>
    %743 = arith.negf %742 : vector<2x32xf32>
    %744 = math.exp %743 : vector<2x32xf32>
    %cst_230 = arith.constant 1.000000e+00 : f32
    %745 = vector.broadcast %cst_230 : f32 to vector<2x32xf32>
    %746 = arith.addf %745, %744 : vector<2x32xf32>
    %747 = arith.divf %745, %746 : vector<2x32xf32>
    %748 = vector.extract_strided_slice %726 {offsets = [0, 64], sizes = [2, 32], strides = [1, 1]} : vector<2x96xf32> to vector<2x32xf32>
    %749 = vector.extract_strided_slice %731 {offsets = [0, 64], sizes = [2, 32], strides = [1, 1]} : vector<2x96xf32> to vector<2x32xf32>
    %750 = arith.mulf %739, %749 : vector<2x32xf32>
    %751 = arith.addf %748, %750 : vector<2x32xf32>
    %752 = math.tanh %751 : vector<2x32xf32>
    %cst_231 = arith.constant 1.000000e+00 : f32
    %753 = vector.broadcast %cst_231 : f32 to vector<2x32xf32>
    %754 = arith.subf %753, %747 : vector<2x32xf32>
    %755 = arith.mulf %754, %752 : vector<2x32xf32>
    %756 = arith.mulf %747, %556 : vector<2x32xf32>
    %757 = arith.addf %755, %756 : vector<2x32xf32>
    %cst_232 = arith.constant 1.000000e+00 : f32
    %758 = vector.broadcast %cst_232 : f32 to vector<2x1xf32>
    %759 = arith.subf %758, %655 : vector<2x1xf32>
    %760 = vector.broadcast %759 : vector<2x1xf32> to vector<2x32xf32>
    %761 = arith.mulf %556, %760 : vector<2x32xf32>
    %762 = vector.broadcast %655 : vector<2x1xf32> to vector<2x32xf32>
    %763 = arith.mulf %757, %762 : vector<2x32xf32>
    %764 = arith.addf %761, %763 : vector<2x32xf32>
    %765 = vector.broadcast %653 : vector<2x1xf32> to vector<2x32xf32>
    %766 = arith.mulf %765, %764 : vector<2x32xf32>
    %767 = arith.addf %727, %766 : vector<2x32xf32>
    %768 = arith.truncf %596 : vector<2x32xf32> to vector<2x32xbf16>
    %cst_233 = arith.constant dense<0.000000e+00> : vector<2x96xf32>
    %769 = tpu.matmul %768, %11, %cst_233 {dimension_numbers = #tpu.dot_dimension_numbers<[1], [0], [0], [1], [0, 0, 1, 1], [], []>} : vector<2x32xbf16>, vector<32x96xbf16>, vector<2x96xf32> -> vector<2x96xf32>
    %770 = vector.broadcast %13 : vector<1x96xf32> to vector<2x96xf32>
    %771 = arith.addf %769, %770 : vector<2x96xf32>
    %772 = vector.extract_strided_slice %726 {offsets = [0, 0], sizes = [2, 32], strides = [1, 1]} : vector<2x96xf32> to vector<2x32xf32>
    %773 = vector.extract_strided_slice %771 {offsets = [0, 0], sizes = [2, 32], strides = [1, 1]} : vector<2x96xf32> to vector<2x32xf32>
    %774 = arith.addf %772, %773 : vector<2x32xf32>
    %775 = arith.negf %774 : vector<2x32xf32>
    %776 = math.exp %775 : vector<2x32xf32>
    %cst_234 = arith.constant 1.000000e+00 : f32
    %777 = vector.broadcast %cst_234 : f32 to vector<2x32xf32>
    %778 = arith.addf %777, %776 : vector<2x32xf32>
    %779 = arith.divf %777, %778 : vector<2x32xf32>
    %780 = vector.extract_strided_slice %726 {offsets = [0, 32], sizes = [2, 32], strides = [1, 1]} : vector<2x96xf32> to vector<2x32xf32>
    %781 = vector.extract_strided_slice %771 {offsets = [0, 32], sizes = [2, 32], strides = [1, 1]} : vector<2x96xf32> to vector<2x32xf32>
    %782 = arith.addf %780, %781 : vector<2x32xf32>
    %783 = arith.negf %782 : vector<2x32xf32>
    %784 = math.exp %783 : vector<2x32xf32>
    %cst_235 = arith.constant 1.000000e+00 : f32
    %785 = vector.broadcast %cst_235 : f32 to vector<2x32xf32>
    %786 = arith.addf %785, %784 : vector<2x32xf32>
    %787 = arith.divf %785, %786 : vector<2x32xf32>
    %788 = vector.extract_strided_slice %726 {offsets = [0, 64], sizes = [2, 32], strides = [1, 1]} : vector<2x96xf32> to vector<2x32xf32>
    %789 = vector.extract_strided_slice %771 {offsets = [0, 64], sizes = [2, 32], strides = [1, 1]} : vector<2x96xf32> to vector<2x32xf32>
    %790 = arith.mulf %779, %789 : vector<2x32xf32>
    %791 = arith.addf %788, %790 : vector<2x32xf32>
    %792 = math.tanh %791 : vector<2x32xf32>
    %cst_236 = arith.constant 1.000000e+00 : f32
    %793 = vector.broadcast %cst_236 : f32 to vector<2x32xf32>
    %794 = arith.subf %793, %787 : vector<2x32xf32>
    %795 = arith.mulf %794, %792 : vector<2x32xf32>
    %796 = arith.mulf %787, %596 : vector<2x32xf32>
    %797 = arith.addf %795, %796 : vector<2x32xf32>
    %cst_237 = arith.constant 1.000000e+00 : f32
    %798 = vector.broadcast %cst_237 : f32 to vector<2x1xf32>
    %799 = arith.subf %798, %656 : vector<2x1xf32>
    %800 = vector.broadcast %799 : vector<2x1xf32> to vector<2x32xf32>
    %801 = arith.mulf %596, %800 : vector<2x32xf32>
    %802 = vector.broadcast %656 : vector<2x1xf32> to vector<2x32xf32>
    %803 = arith.mulf %797, %802 : vector<2x32xf32>
    %804 = arith.addf %801, %803 : vector<2x32xf32>
    %805 = vector.broadcast %654 : vector<2x1xf32> to vector<2x32xf32>
    %806 = arith.mulf %805, %804 : vector<2x32xf32>
    %807 = arith.addf %767, %806 : vector<2x32xf32>
    %808 = arith.truncf %807 : vector<2x32xf32> to vector<2x32xbf16>
    %cst_238 = arith.constant dense<0.000000e+00> : vector<2x96xf32>
    %809 = tpu.matmul %808, %14, %cst_238 {dimension_numbers = #tpu.dot_dimension_numbers<[1], [0], [0], [1], [0, 0, 1, 1], [], []>} : vector<2x32xbf16>, vector<32x96xbf16>, vector<2x96xf32> -> vector<2x96xf32>
    %810 = vector.broadcast %16 : vector<1x96xf32> to vector<2x96xf32>
    %811 = arith.addf %809, %810 : vector<2x96xf32>
    %812 = arith.truncf %633 : vector<2x32xf32> to vector<2x32xbf16>
    %cst_239 = arith.constant dense<0.000000e+00> : vector<2x96xf32>
    %813 = tpu.matmul %812, %15, %cst_239 {dimension_numbers = #tpu.dot_dimension_numbers<[1], [0], [0], [1], [0, 0, 1, 1], [], []>} : vector<2x32xbf16>, vector<32x96xbf16>, vector<2x96xf32> -> vector<2x96xf32>
    %814 = vector.broadcast %17 : vector<1x96xf32> to vector<2x96xf32>
    %815 = arith.addf %813, %814 : vector<2x96xf32>
    %816 = vector.extract_strided_slice %811 {offsets = [0, 0], sizes = [2, 32], strides = [1, 1]} : vector<2x96xf32> to vector<2x32xf32>
    %817 = vector.extract_strided_slice %815 {offsets = [0, 0], sizes = [2, 32], strides = [1, 1]} : vector<2x96xf32> to vector<2x32xf32>
    %818 = arith.addf %816, %817 : vector<2x32xf32>
    %819 = arith.negf %818 : vector<2x32xf32>
    %820 = math.exp %819 : vector<2x32xf32>
    %cst_240 = arith.constant 1.000000e+00 : f32
    %821 = vector.broadcast %cst_240 : f32 to vector<2x32xf32>
    %822 = arith.addf %821, %820 : vector<2x32xf32>
    %823 = arith.divf %821, %822 : vector<2x32xf32>
    %824 = vector.extract_strided_slice %811 {offsets = [0, 32], sizes = [2, 32], strides = [1, 1]} : vector<2x96xf32> to vector<2x32xf32>
    %825 = vector.extract_strided_slice %815 {offsets = [0, 32], sizes = [2, 32], strides = [1, 1]} : vector<2x96xf32> to vector<2x32xf32>
    %826 = arith.addf %824, %825 : vector<2x32xf32>
    %827 = arith.negf %826 : vector<2x32xf32>
    %828 = math.exp %827 : vector<2x32xf32>
    %cst_241 = arith.constant 1.000000e+00 : f32
    %829 = vector.broadcast %cst_241 : f32 to vector<2x32xf32>
    %830 = arith.addf %829, %828 : vector<2x32xf32>
    %831 = arith.divf %829, %830 : vector<2x32xf32>
    %832 = vector.extract_strided_slice %811 {offsets = [0, 64], sizes = [2, 32], strides = [1, 1]} : vector<2x96xf32> to vector<2x32xf32>
    %833 = vector.extract_strided_slice %815 {offsets = [0, 64], sizes = [2, 32], strides = [1, 1]} : vector<2x96xf32> to vector<2x32xf32>
    %834 = arith.mulf %823, %833 : vector<2x32xf32>
    %835 = arith.addf %832, %834 : vector<2x32xf32>
    %836 = math.tanh %835 : vector<2x32xf32>
    %cst_242 = arith.constant 1.000000e+00 : f32
    %837 = vector.broadcast %cst_242 : f32 to vector<2x32xf32>
    %838 = arith.subf %837, %831 : vector<2x32xf32>
    %839 = arith.mulf %838, %836 : vector<2x32xf32>
    %840 = arith.mulf %831, %633 : vector<2x32xf32>
    %841 = arith.addf %839, %840 : vector<2x32xf32>
    %c3_243 = arith.constant 3 : index
    %c0_244 = arith.constant 0 : index
    %c0_245 = arith.constant 0 : index
    %842 = vector.load %arg21[%c3_243, %c0_244, %c0_245] : memref<8x2x32xf32, #tpu.memory_space<vmem>>, vector<1x2x32xf32>
    %843 = vector.shape_cast %842 : vector<1x2x32xf32> to vector<2x32xf32>
    %844 = vector.shape_cast %698 : vector<2x32xf32> to vector<1x2x32xf32>
    tpu.vector_store %arg21[%c3_243, %c0_244, %c0_245], %844 {strides = array<i32>} : memref<8x2x32xf32, #tpu.memory_space<vmem>>, vector<1x2x32xf32>,
    %845 = vector.broadcast %18 : vector<1x32xf32> to vector<2x32xf32>
    %846 = arith.mulf %698, %845 : vector<2x32xf32>
    %cst_246 = arith.constant dense<0.000000e+00> : vector<2xf32>
    %847 = vector.multi_reduction <add>, %846, %cst_246 [1] : vector<2x32xf32> to vector<2xf32>
    %848 = vector.shape_cast %847 : vector<2xf32> to vector<2x1xf32>
    %c3_247 = arith.constant 3 : index
    %c0_248 = arith.constant 0 : index
    %c0_249 = arith.constant 0 : index
    %849 = vector.load %arg22[%c3_247, %c0_248, %c0_249] : memref<8x2x1xf32, #tpu.memory_space<vmem>>, vector<1x2x1xf32>
    %850 = vector.shape_cast %849 : vector<1x2x1xf32> to vector<2x1xf32>
    %851 = vector.shape_cast %848 : vector<2x1xf32> to vector<1x2x1xf32>
    tpu.vector_store %arg22[%c3_247, %c0_248, %c0_249], %851 {strides = array<i32>} : memref<8x2x1xf32, #tpu.memory_space<vmem>>, vector<1x2x1xf32>,
    %c3_250 = arith.constant 3 : index
    %c0_251 = arith.constant 0 : index
    %c0_252 = arith.constant 0 : index
    %852 = vector.load %arg19[%c3_250, %c0_251, %c0_252] : memref<8x2x32xf32, #tpu.memory_space<vmem>>, vector<1x2x32xf32>
    %853 = vector.shape_cast %852 : vector<1x2x32xf32> to vector<2x32xf32>
    %854 = vector.shape_cast %841 : vector<2x32xf32> to vector<1x2x32xf32>
    tpu.vector_store %arg19[%c3_250, %c0_251, %c0_252], %854 {strides = array<i32>} : memref<8x2x32xf32, #tpu.memory_space<vmem>>, vector<1x2x32xf32>,
    %c4 = arith.constant 4 : index
    %c0_253 = arith.constant 0 : index
    %c0_254 = arith.constant 0 : index
    %855 = vector.load %arg1[%c4, %c0_253, %c0_254] : memref<8x2x32xf32, #tpu.memory_space<vmem>>, vector<1x2x32xf32>
    %856 = vector.shape_cast %855 : vector<1x2x32xf32> to vector<2x32xf32>
    %c4_255 = arith.constant 4 : index
    %c0_256 = arith.constant 0 : index
    %c0_257 = arith.constant 0 : index
    %857 = vector.load %arg2[%c4_255, %c0_256, %c0_257] : memref<8x2x2xf32, #tpu.memory_space<vmem>>, vector<1x2x2xf32>
    %858 = vector.shape_cast %857 : vector<1x2x2xf32> to vector<2x2xf32>
    %c4_258 = arith.constant 4 : index
    %c0_259 = arith.constant 0 : index
    %c0_260 = arith.constant 0 : index
    %859 = vector.load %arg3[%c4_258, %c0_259, %c0_260] : memref<8x2x2xf32, #tpu.memory_space<vmem>>, vector<1x2x2xf32>
    %860 = vector.shape_cast %859 : vector<1x2x2xf32> to vector<2x2xf32>
    %861 = vector.extract_strided_slice %860 {offsets = [0, 0], sizes = [2, 1], strides = [1, 1]} : vector<2x2xf32> to vector<2x1xf32>
    %862 = vector.extract_strided_slice %860 {offsets = [0, 1], sizes = [2, 1], strides = [1, 1]} : vector<2x2xf32> to vector<2x1xf32>
    %863 = vector.extract_strided_slice %858 {offsets = [0, 0], sizes = [2, 1], strides = [1, 1]} : vector<2x2xf32> to vector<2x1xf32>
    %864 = vector.extract_strided_slice %858 {offsets = [0, 1], sizes = [2, 1], strides = [1, 1]} : vector<2x2xf32> to vector<2x1xf32>
    %865 = vector.broadcast %861 : vector<2x1xf32> to vector<2x32xf32>
    %866 = arith.mulf %865, %764 : vector<2x32xf32>
    %867 = vector.broadcast %862 : vector<2x1xf32> to vector<2x32xf32>
    %868 = arith.mulf %867, %804 : vector<2x32xf32>
    %869 = arith.addf %866, %868 : vector<2x32xf32>
    %870 = arith.truncf %856 : vector<2x32xf32> to vector<2x32xbf16>
    %cst_261 = arith.constant dense<0.000000e+00> : vector<2x96xf32>
    %871 = tpu.matmul %870, %4, %cst_261 {dimension_numbers = #tpu.dot_dimension_numbers<[1], [0], [0], [1], [0, 0, 1, 1], [], []>} : vector<2x32xbf16>, vector<32x96xbf16>, vector<2x96xf32> -> vector<2x96xf32>
    %872 = arith.truncf %869 : vector<2x32xf32> to vector<2x32xbf16>
    %cst_262 = arith.constant dense<0.000000e+00> : vector<2x96xf32>
    %873 = tpu.matmul %872, %5, %cst_262 {dimension_numbers = #tpu.dot_dimension_numbers<[1], [0], [0], [1], [0, 0, 1, 1], [], []>} : vector<2x32xbf16>, vector<32x96xbf16>, vector<2x96xf32> -> vector<2x96xf32>
    %874 = arith.addf %871, %873 : vector<2x96xf32>
    %875 = vector.broadcast %7 : vector<1x96xf32> to vector<2x96xf32>
    %876 = arith.addf %874, %875 : vector<2x96xf32>
    %877 = arith.truncf %698 : vector<2x32xf32> to vector<2x32xbf16>
    %cst_263 = arith.constant dense<0.000000e+00> : vector<2x96xf32>
    %878 = tpu.matmul %877, %6, %cst_263 {dimension_numbers = #tpu.dot_dimension_numbers<[1], [0], [0], [1], [0, 0, 1, 1], [], []>} : vector<2x32xbf16>, vector<32x96xbf16>, vector<2x96xf32> -> vector<2x96xf32>
    %879 = vector.broadcast %8 : vector<1x96xf32> to vector<2x96xf32>
    %880 = arith.addf %878, %879 : vector<2x96xf32>
    %881 = vector.extract_strided_slice %876 {offsets = [0, 0], sizes = [2, 32], strides = [1, 1]} : vector<2x96xf32> to vector<2x32xf32>
    %882 = vector.extract_strided_slice %880 {offsets = [0, 0], sizes = [2, 32], strides = [1, 1]} : vector<2x96xf32> to vector<2x32xf32>
    %883 = arith.addf %881, %882 : vector<2x32xf32>
    %884 = arith.negf %883 : vector<2x32xf32>
    %885 = math.exp %884 : vector<2x32xf32>
    %cst_264 = arith.constant 1.000000e+00 : f32
    %886 = vector.broadcast %cst_264 : f32 to vector<2x32xf32>
    %887 = arith.addf %886, %885 : vector<2x32xf32>
    %888 = arith.divf %886, %887 : vector<2x32xf32>
    %889 = vector.extract_strided_slice %876 {offsets = [0, 32], sizes = [2, 32], strides = [1, 1]} : vector<2x96xf32> to vector<2x32xf32>
    %890 = vector.extract_strided_slice %880 {offsets = [0, 32], sizes = [2, 32], strides = [1, 1]} : vector<2x96xf32> to vector<2x32xf32>
    %891 = arith.addf %889, %890 : vector<2x32xf32>
    %892 = arith.negf %891 : vector<2x32xf32>
    %893 = math.exp %892 : vector<2x32xf32>
    %cst_265 = arith.constant 1.000000e+00 : f32
    %894 = vector.broadcast %cst_265 : f32 to vector<2x32xf32>
    %895 = arith.addf %894, %893 : vector<2x32xf32>
    %896 = arith.divf %894, %895 : vector<2x32xf32>
    %897 = vector.extract_strided_slice %876 {offsets = [0, 64], sizes = [2, 32], strides = [1, 1]} : vector<2x96xf32> to vector<2x32xf32>
    %898 = vector.extract_strided_slice %880 {offsets = [0, 64], sizes = [2, 32], strides = [1, 1]} : vector<2x96xf32> to vector<2x32xf32>
    %899 = arith.mulf %888, %898 : vector<2x32xf32>
    %900 = arith.addf %897, %899 : vector<2x32xf32>
    %901 = math.tanh %900 : vector<2x32xf32>
    %cst_266 = arith.constant 1.000000e+00 : f32
    %902 = vector.broadcast %cst_266 : f32 to vector<2x32xf32>
    %903 = arith.subf %902, %896 : vector<2x32xf32>
    %904 = arith.mulf %903, %901 : vector<2x32xf32>
    %905 = arith.mulf %896, %698 : vector<2x32xf32>
    %906 = arith.addf %904, %905 : vector<2x32xf32>
    %c0_267 = arith.constant 0 : index
    %c0_268 = arith.constant 0 : index
    %c0_269 = arith.constant 0 : index
    %907 = vector.load %arg22[%c0_267, %c0_268, %c0_269] : memref<8x2x1xf32, #tpu.memory_space<vmem>>, vector<8x2x1xf32>
    %908 = tpu.iota {dimensions = array<i32: 0>} : vector<8x2x1xi32>
    %c4_i32 = arith.constant 4 : i32
    %909 = vector.broadcast %c4_i32 : i32 to vector<8x2x1xi32>
    %910 = arith.cmpi slt, %908, %909 : vector<8x2x1xi32>
    %cst_270 = arith.constant -1.000000e+30 : f32
    %911 = vector.broadcast %cst_270 : f32 to vector<8x2x1xf32>
    %912 = arith.select %910, %907, %911 : vector<8x2x1xi1>, vector<8x2x1xf32>
    %cst_271 = arith.constant dense<0xFF800000> : vector<2x1xf32>
    %913 = vector.multi_reduction <maximumf>, %912, %cst_271 [0] : vector<8x2x1xf32> to vector<2x1xf32>
    %914 = vector.shape_cast %913 : vector<2x1xf32> to vector<1x2x1xf32>
    %915 = vector.broadcast %914 : vector<1x2x1xf32> to vector<8x2x1xf32>
    %916 = arith.subf %912, %915 : vector<8x2x1xf32>
    %917 = math.exp %916 : vector<8x2x1xf32>
    %cst_272 = arith.constant dense<0.000000e+00> : vector<2x1xf32>
    %918 = vector.multi_reduction <add>, %917, %cst_272 [0] : vector<8x2x1xf32> to vector<2x1xf32>
    %919 = vector.shape_cast %918 : vector<2x1xf32> to vector<1x2x1xf32>
    %920 = vector.broadcast %919 : vector<1x2x1xf32> to vector<8x2x1xf32>
    %921 = arith.divf %917, %920 : vector<8x2x1xf32>
    %cst_273 = arith.constant 0.000000e+00 : f32
    %922 = vector.broadcast %cst_273 : f32 to vector<8x2x1xf32>
    %923 = arith.select %910, %921, %922 : vector<8x2x1xi1>, vector<8x2x1xf32>
    %c0_274 = arith.constant 0 : index
    %c0_275 = arith.constant 0 : index
    %c0_276 = arith.constant 0 : index
    %924 = vector.load %arg21[%c0_274, %c0_275, %c0_276] : memref<8x2x32xf32, #tpu.memory_space<vmem>>, vector<8x2x32xf32>
    %925 = vector.broadcast %923 : vector<8x2x1xf32> to vector<8x2x32xf32>
    %926 = arith.mulf %925, %924 : vector<8x2x32xf32>
    %cst_277 = arith.constant dense<0.000000e+00> : vector<2x32xf32>
    %927 = vector.multi_reduction <add>, %926, %cst_277 [0] : vector<8x2x32xf32> to vector<2x32xf32>
    %928 = arith.truncf %856 : vector<2x32xf32> to vector<2x32xbf16>
    %cst_278 = arith.constant dense<0.000000e+00> : vector<2x96xf32>
    %929 = tpu.matmul %928, %9, %cst_278 {dimension_numbers = #tpu.dot_dimension_numbers<[1], [0], [0], [1], [0, 0, 1, 1], [], []>} : vector<2x32xbf16>, vector<32x96xbf16>, vector<2x96xf32> -> vector<2x96xf32>
    %930 = arith.truncf %927 : vector<2x32xf32> to vector<2x32xbf16>
    %cst_279 = arith.constant dense<0.000000e+00> : vector<2x96xf32>
    %931 = tpu.matmul %930, %10, %cst_279 {dimension_numbers = #tpu.dot_dimension_numbers<[1], [0], [0], [1], [0, 0, 1, 1], [], []>} : vector<2x32xbf16>, vector<32x96xbf16>, vector<2x96xf32> -> vector<2x96xf32>
    %932 = arith.addf %929, %931 : vector<2x96xf32>
    %933 = vector.broadcast %12 : vector<1x96xf32> to vector<2x96xf32>
    %934 = arith.addf %932, %933 : vector<2x96xf32>
    %cst_280 = arith.constant 0.000000e+00 : f32
    %935 = vector.broadcast %cst_280 : f32 to vector<2x32xf32>
    %936 = arith.truncf %764 : vector<2x32xf32> to vector<2x32xbf16>
    %cst_281 = arith.constant dense<0.000000e+00> : vector<2x96xf32>
    %937 = tpu.matmul %936, %11, %cst_281 {dimension_numbers = #tpu.dot_dimension_numbers<[1], [0], [0], [1], [0, 0, 1, 1], [], []>} : vector<2x32xbf16>, vector<32x96xbf16>, vector<2x96xf32> -> vector<2x96xf32>
    %938 = vector.broadcast %13 : vector<1x96xf32> to vector<2x96xf32>
    %939 = arith.addf %937, %938 : vector<2x96xf32>
    %940 = vector.extract_strided_slice %934 {offsets = [0, 0], sizes = [2, 32], strides = [1, 1]} : vector<2x96xf32> to vector<2x32xf32>
    %941 = vector.extract_strided_slice %939 {offsets = [0, 0], sizes = [2, 32], strides = [1, 1]} : vector<2x96xf32> to vector<2x32xf32>
    %942 = arith.addf %940, %941 : vector<2x32xf32>
    %943 = arith.negf %942 : vector<2x32xf32>
    %944 = math.exp %943 : vector<2x32xf32>
    %cst_282 = arith.constant 1.000000e+00 : f32
    %945 = vector.broadcast %cst_282 : f32 to vector<2x32xf32>
    %946 = arith.addf %945, %944 : vector<2x32xf32>
    %947 = arith.divf %945, %946 : vector<2x32xf32>
    %948 = vector.extract_strided_slice %934 {offsets = [0, 32], sizes = [2, 32], strides = [1, 1]} : vector<2x96xf32> to vector<2x32xf32>
    %949 = vector.extract_strided_slice %939 {offsets = [0, 32], sizes = [2, 32], strides = [1, 1]} : vector<2x96xf32> to vector<2x32xf32>
    %950 = arith.addf %948, %949 : vector<2x32xf32>
    %951 = arith.negf %950 : vector<2x32xf32>
    %952 = math.exp %951 : vector<2x32xf32>
    %cst_283 = arith.constant 1.000000e+00 : f32
    %953 = vector.broadcast %cst_283 : f32 to vector<2x32xf32>
    %954 = arith.addf %953, %952 : vector<2x32xf32>
    %955 = arith.divf %953, %954 : vector<2x32xf32>
    %956 = vector.extract_strided_slice %934 {offsets = [0, 64], sizes = [2, 32], strides = [1, 1]} : vector<2x96xf32> to vector<2x32xf32>
    %957 = vector.extract_strided_slice %939 {offsets = [0, 64], sizes = [2, 32], strides = [1, 1]} : vector<2x96xf32> to vector<2x32xf32>
    %958 = arith.mulf %947, %957 : vector<2x32xf32>
    %959 = arith.addf %956, %958 : vector<2x32xf32>
    %960 = math.tanh %959 : vector<2x32xf32>
    %cst_284 = arith.constant 1.000000e+00 : f32
    %961 = vector.broadcast %cst_284 : f32 to vector<2x32xf32>
    %962 = arith.subf %961, %955 : vector<2x32xf32>
    %963 = arith.mulf %962, %960 : vector<2x32xf32>
    %964 = arith.mulf %955, %764 : vector<2x32xf32>
    %965 = arith.addf %963, %964 : vector<2x32xf32>
    %cst_285 = arith.constant 1.000000e+00 : f32
    %966 = vector.broadcast %cst_285 : f32 to vector<2x1xf32>
    %967 = arith.subf %966, %863 : vector<2x1xf32>
    %968 = vector.broadcast %967 : vector<2x1xf32> to vector<2x32xf32>
    %969 = arith.mulf %764, %968 : vector<2x32xf32>
    %970 = vector.broadcast %863 : vector<2x1xf32> to vector<2x32xf32>
    %971 = arith.mulf %965, %970 : vector<2x32xf32>
    %972 = arith.addf %969, %971 : vector<2x32xf32>
    %973 = vector.broadcast %861 : vector<2x1xf32> to vector<2x32xf32>
    %974 = arith.mulf %973, %972 : vector<2x32xf32>
    %975 = arith.addf %935, %974 : vector<2x32xf32>
    %976 = arith.truncf %804 : vector<2x32xf32> to vector<2x32xbf16>
    %cst_286 = arith.constant dense<0.000000e+00> : vector<2x96xf32>
    %977 = tpu.matmul %976, %11, %cst_286 {dimension_numbers = #tpu.dot_dimension_numbers<[1], [0], [0], [1], [0, 0, 1, 1], [], []>} : vector<2x32xbf16>, vector<32x96xbf16>, vector<2x96xf32> -> vector<2x96xf32>
    %978 = vector.broadcast %13 : vector<1x96xf32> to vector<2x96xf32>
    %979 = arith.addf %977, %978 : vector<2x96xf32>
    %980 = vector.extract_strided_slice %934 {offsets = [0, 0], sizes = [2, 32], strides = [1, 1]} : vector<2x96xf32> to vector<2x32xf32>
    %981 = vector.extract_strided_slice %979 {offsets = [0, 0], sizes = [2, 32], strides = [1, 1]} : vector<2x96xf32> to vector<2x32xf32>
    %982 = arith.addf %980, %981 : vector<2x32xf32>
    %983 = arith.negf %982 : vector<2x32xf32>
    %984 = math.exp %983 : vector<2x32xf32>
    %cst_287 = arith.constant 1.000000e+00 : f32
    %985 = vector.broadcast %cst_287 : f32 to vector<2x32xf32>
    %986 = arith.addf %985, %984 : vector<2x32xf32>
    %987 = arith.divf %985, %986 : vector<2x32xf32>
    %988 = vector.extract_strided_slice %934 {offsets = [0, 32], sizes = [2, 32], strides = [1, 1]} : vector<2x96xf32> to vector<2x32xf32>
    %989 = vector.extract_strided_slice %979 {offsets = [0, 32], sizes = [2, 32], strides = [1, 1]} : vector<2x96xf32> to vector<2x32xf32>
    %990 = arith.addf %988, %989 : vector<2x32xf32>
    %991 = arith.negf %990 : vector<2x32xf32>
    %992 = math.exp %991 : vector<2x32xf32>
    %cst_288 = arith.constant 1.000000e+00 : f32
    %993 = vector.broadcast %cst_288 : f32 to vector<2x32xf32>
    %994 = arith.addf %993, %992 : vector<2x32xf32>
    %995 = arith.divf %993, %994 : vector<2x32xf32>
    %996 = vector.extract_strided_slice %934 {offsets = [0, 64], sizes = [2, 32], strides = [1, 1]} : vector<2x96xf32> to vector<2x32xf32>
    %997 = vector.extract_strided_slice %979 {offsets = [0, 64], sizes = [2, 32], strides = [1, 1]} : vector<2x96xf32> to vector<2x32xf32>
    %998 = arith.mulf %987, %997 : vector<2x32xf32>
    %999 = arith.addf %996, %998 : vector<2x32xf32>
    %1000 = math.tanh %999 : vector<2x32xf32>
    %cst_289 = arith.constant 1.000000e+00 : f32
    %1001 = vector.broadcast %cst_289 : f32 to vector<2x32xf32>
    %1002 = arith.subf %1001, %995 : vector<2x32xf32>
    %1003 = arith.mulf %1002, %1000 : vector<2x32xf32>
    %1004 = arith.mulf %995, %804 : vector<2x32xf32>
    %1005 = arith.addf %1003, %1004 : vector<2x32xf32>
    %cst_290 = arith.constant 1.000000e+00 : f32
    %1006 = vector.broadcast %cst_290 : f32 to vector<2x1xf32>
    %1007 = arith.subf %1006, %864 : vector<2x1xf32>
    %1008 = vector.broadcast %1007 : vector<2x1xf32> to vector<2x32xf32>
    %1009 = arith.mulf %804, %1008 : vector<2x32xf32>
    %1010 = vector.broadcast %864 : vector<2x1xf32> to vector<2x32xf32>
    %1011 = arith.mulf %1005, %1010 : vector<2x32xf32>
    %1012 = arith.addf %1009, %1011 : vector<2x32xf32>
    %1013 = vector.broadcast %862 : vector<2x1xf32> to vector<2x32xf32>
    %1014 = arith.mulf %1013, %1012 : vector<2x32xf32>
    %1015 = arith.addf %975, %1014 : vector<2x32xf32>
    %1016 = arith.truncf %1015 : vector<2x32xf32> to vector<2x32xbf16>
    %cst_291 = arith.constant dense<0.000000e+00> : vector<2x96xf32>
    %1017 = tpu.matmul %1016, %14, %cst_291 {dimension_numbers = #tpu.dot_dimension_numbers<[1], [0], [0], [1], [0, 0, 1, 1], [], []>} : vector<2x32xbf16>, vector<32x96xbf16>, vector<2x96xf32> -> vector<2x96xf32>
    %1018 = vector.broadcast %16 : vector<1x96xf32> to vector<2x96xf32>
    %1019 = arith.addf %1017, %1018 : vector<2x96xf32>
    %1020 = arith.truncf %841 : vector<2x32xf32> to vector<2x32xbf16>
    %cst_292 = arith.constant dense<0.000000e+00> : vector<2x96xf32>
    %1021 = tpu.matmul %1020, %15, %cst_292 {dimension_numbers = #tpu.dot_dimension_numbers<[1], [0], [0], [1], [0, 0, 1, 1], [], []>} : vector<2x32xbf16>, vector<32x96xbf16>, vector<2x96xf32> -> vector<2x96xf32>
    %1022 = vector.broadcast %17 : vector<1x96xf32> to vector<2x96xf32>
    %1023 = arith.addf %1021, %1022 : vector<2x96xf32>
    %1024 = vector.extract_strided_slice %1019 {offsets = [0, 0], sizes = [2, 32], strides = [1, 1]} : vector<2x96xf32> to vector<2x32xf32>
    %1025 = vector.extract_strided_slice %1023 {offsets = [0, 0], sizes = [2, 32], strides = [1, 1]} : vector<2x96xf32> to vector<2x32xf32>
    %1026 = arith.addf %1024, %1025 : vector<2x32xf32>
    %1027 = arith.negf %1026 : vector<2x32xf32>
    %1028 = math.exp %1027 : vector<2x32xf32>
    %cst_293 = arith.constant 1.000000e+00 : f32
    %1029 = vector.broadcast %cst_293 : f32 to vector<2x32xf32>
    %1030 = arith.addf %1029, %1028 : vector<2x32xf32>
    %1031 = arith.divf %1029, %1030 : vector<2x32xf32>
    %1032 = vector.extract_strided_slice %1019 {offsets = [0, 32], sizes = [2, 32], strides = [1, 1]} : vector<2x96xf32> to vector<2x32xf32>
    %1033 = vector.extract_strided_slice %1023 {offsets = [0, 32], sizes = [2, 32], strides = [1, 1]} : vector<2x96xf32> to vector<2x32xf32>
    %1034 = arith.addf %1032, %1033 : vector<2x32xf32>
    %1035 = arith.negf %1034 : vector<2x32xf32>
    %1036 = math.exp %1035 : vector<2x32xf32>
    %cst_294 = arith.constant 1.000000e+00 : f32
    %1037 = vector.broadcast %cst_294 : f32 to vector<2x32xf32>
    %1038 = arith.addf %1037, %1036 : vector<2x32xf32>
    %1039 = arith.divf %1037, %1038 : vector<2x32xf32>
    %1040 = vector.extract_strided_slice %1019 {offsets = [0, 64], sizes = [2, 32], strides = [1, 1]} : vector<2x96xf32> to vector<2x32xf32>
    %1041 = vector.extract_strided_slice %1023 {offsets = [0, 64], sizes = [2, 32], strides = [1, 1]} : vector<2x96xf32> to vector<2x32xf32>
    %1042 = arith.mulf %1031, %1041 : vector<2x32xf32>
    %1043 = arith.addf %1040, %1042 : vector<2x32xf32>
    %1044 = math.tanh %1043 : vector<2x32xf32>
    %cst_295 = arith.constant 1.000000e+00 : f32
    %1045 = vector.broadcast %cst_295 : f32 to vector<2x32xf32>
    %1046 = arith.subf %1045, %1039 : vector<2x32xf32>
    %1047 = arith.mulf %1046, %1044 : vector<2x32xf32>
    %1048 = arith.mulf %1039, %841 : vector<2x32xf32>
    %1049 = arith.addf %1047, %1048 : vector<2x32xf32>
    %c4_296 = arith.constant 4 : index
    %c0_297 = arith.constant 0 : index
    %c0_298 = arith.constant 0 : index
    %1050 = vector.load %arg21[%c4_296, %c0_297, %c0_298] : memref<8x2x32xf32, #tpu.memory_space<vmem>>, vector<1x2x32xf32>
    %1051 = vector.shape_cast %1050 : vector<1x2x32xf32> to vector<2x32xf32>
    %1052 = vector.shape_cast %906 : vector<2x32xf32> to vector<1x2x32xf32>
    tpu.vector_store %arg21[%c4_296, %c0_297, %c0_298], %1052 {strides = array<i32>} : memref<8x2x32xf32, #tpu.memory_space<vmem>>, vector<1x2x32xf32>,
    %1053 = vector.broadcast %18 : vector<1x32xf32> to vector<2x32xf32>
    %1054 = arith.mulf %906, %1053 : vector<2x32xf32>
    %cst_299 = arith.constant dense<0.000000e+00> : vector<2xf32>
    %1055 = vector.multi_reduction <add>, %1054, %cst_299 [1] : vector<2x32xf32> to vector<2xf32>
    %1056 = vector.shape_cast %1055 : vector<2xf32> to vector<2x1xf32>
    %c4_300 = arith.constant 4 : index
    %c0_301 = arith.constant 0 : index
    %c0_302 = arith.constant 0 : index
    %1057 = vector.load %arg22[%c4_300, %c0_301, %c0_302] : memref<8x2x1xf32, #tpu.memory_space<vmem>>, vector<1x2x1xf32>
    %1058 = vector.shape_cast %1057 : vector<1x2x1xf32> to vector<2x1xf32>
    %1059 = vector.shape_cast %1056 : vector<2x1xf32> to vector<1x2x1xf32>
    tpu.vector_store %arg22[%c4_300, %c0_301, %c0_302], %1059 {strides = array<i32>} : memref<8x2x1xf32, #tpu.memory_space<vmem>>, vector<1x2x1xf32>,
    %c4_303 = arith.constant 4 : index
    %c0_304 = arith.constant 0 : index
    %c0_305 = arith.constant 0 : index
    %1060 = vector.load %arg19[%c4_303, %c0_304, %c0_305] : memref<8x2x32xf32, #tpu.memory_space<vmem>>, vector<1x2x32xf32>
    %1061 = vector.shape_cast %1060 : vector<1x2x32xf32> to vector<2x32xf32>
    %1062 = vector.shape_cast %1049 : vector<2x32xf32> to vector<1x2x32xf32>
    tpu.vector_store %arg19[%c4_303, %c0_304, %c0_305], %1062 {strides = array<i32>} : memref<8x2x32xf32, #tpu.memory_space<vmem>>, vector<1x2x32xf32>,
    %c5 = arith.constant 5 : index
    %c0_306 = arith.constant 0 : index
    %c0_307 = arith.constant 0 : index
    %1063 = vector.load %arg1[%c5, %c0_306, %c0_307] : memref<8x2x32xf32, #tpu.memory_space<vmem>>, vector<1x2x32xf32>
    %1064 = vector.shape_cast %1063 : vector<1x2x32xf32> to vector<2x32xf32>
    %c5_308 = arith.constant 5 : index
    %c0_309 = arith.constant 0 : index
    %c0_310 = arith.constant 0 : index
    %1065 = vector.load %arg2[%c5_308, %c0_309, %c0_310] : memref<8x2x2xf32, #tpu.memory_space<vmem>>, vector<1x2x2xf32>
    %1066 = vector.shape_cast %1065 : vector<1x2x2xf32> to vector<2x2xf32>
    %c5_311 = arith.constant 5 : index
    %c0_312 = arith.constant 0 : index
    %c0_313 = arith.constant 0 : index
    %1067 = vector.load %arg3[%c5_311, %c0_312, %c0_313] : memref<8x2x2xf32, #tpu.memory_space<vmem>>, vector<1x2x2xf32>
    %1068 = vector.shape_cast %1067 : vector<1x2x2xf32> to vector<2x2xf32>
    %1069 = vector.extract_strided_slice %1068 {offsets = [0, 0], sizes = [2, 1], strides = [1, 1]} : vector<2x2xf32> to vector<2x1xf32>
    %1070 = vector.extract_strided_slice %1068 {offsets = [0, 1], sizes = [2, 1], strides = [1, 1]} : vector<2x2xf32> to vector<2x1xf32>
    %1071 = vector.extract_strided_slice %1066 {offsets = [0, 0], sizes = [2, 1], strides = [1, 1]} : vector<2x2xf32> to vector<2x1xf32>
    %1072 = vector.extract_strided_slice %1066 {offsets = [0, 1], sizes = [2, 1], strides = [1, 1]} : vector<2x2xf32> to vector<2x1xf32>
    %1073 = vector.broadcast %1069 : vector<2x1xf32> to vector<2x32xf32>
    %1074 = arith.mulf %1073, %972 : vector<2x32xf32>
    %1075 = vector.broadcast %1070 : vector<2x1xf32> to vector<2x32xf32>
    %1076 = arith.mulf %1075, %1012 : vector<2x32xf32>
    %1077 = arith.addf %1074, %1076 : vector<2x32xf32>
    %1078 = arith.truncf %1064 : vector<2x32xf32> to vector<2x32xbf16>
    %cst_314 = arith.constant dense<0.000000e+00> : vector<2x96xf32>
    %1079 = tpu.matmul %1078, %4, %cst_314 {dimension_numbers = #tpu.dot_dimension_numbers<[1], [0], [0], [1], [0, 0, 1, 1], [], []>} : vector<2x32xbf16>, vector<32x96xbf16>, vector<2x96xf32> -> vector<2x96xf32>
    %1080 = arith.truncf %1077 : vector<2x32xf32> to vector<2x32xbf16>
    %cst_315 = arith.constant dense<0.000000e+00> : vector<2x96xf32>
    %1081 = tpu.matmul %1080, %5, %cst_315 {dimension_numbers = #tpu.dot_dimension_numbers<[1], [0], [0], [1], [0, 0, 1, 1], [], []>} : vector<2x32xbf16>, vector<32x96xbf16>, vector<2x96xf32> -> vector<2x96xf32>
    %1082 = arith.addf %1079, %1081 : vector<2x96xf32>
    %1083 = vector.broadcast %7 : vector<1x96xf32> to vector<2x96xf32>
    %1084 = arith.addf %1082, %1083 : vector<2x96xf32>
    %1085 = arith.truncf %906 : vector<2x32xf32> to vector<2x32xbf16>
    %cst_316 = arith.constant dense<0.000000e+00> : vector<2x96xf32>
    %1086 = tpu.matmul %1085, %6, %cst_316 {dimension_numbers = #tpu.dot_dimension_numbers<[1], [0], [0], [1], [0, 0, 1, 1], [], []>} : vector<2x32xbf16>, vector<32x96xbf16>, vector<2x96xf32> -> vector<2x96xf32>
    %1087 = vector.broadcast %8 : vector<1x96xf32> to vector<2x96xf32>
    %1088 = arith.addf %1086, %1087 : vector<2x96xf32>
    %1089 = vector.extract_strided_slice %1084 {offsets = [0, 0], sizes = [2, 32], strides = [1, 1]} : vector<2x96xf32> to vector<2x32xf32>
    %1090 = vector.extract_strided_slice %1088 {offsets = [0, 0], sizes = [2, 32], strides = [1, 1]} : vector<2x96xf32> to vector<2x32xf32>
    %1091 = arith.addf %1089, %1090 : vector<2x32xf32>
    %1092 = arith.negf %1091 : vector<2x32xf32>
    %1093 = math.exp %1092 : vector<2x32xf32>
    %cst_317 = arith.constant 1.000000e+00 : f32
    %1094 = vector.broadcast %cst_317 : f32 to vector<2x32xf32>
    %1095 = arith.addf %1094, %1093 : vector<2x32xf32>
    %1096 = arith.divf %1094, %1095 : vector<2x32xf32>
    %1097 = vector.extract_strided_slice %1084 {offsets = [0, 32], sizes = [2, 32], strides = [1, 1]} : vector<2x96xf32> to vector<2x32xf32>
    %1098 = vector.extract_strided_slice %1088 {offsets = [0, 32], sizes = [2, 32], strides = [1, 1]} : vector<2x96xf32> to vector<2x32xf32>
    %1099 = arith.addf %1097, %1098 : vector<2x32xf32>
    %1100 = arith.negf %1099 : vector<2x32xf32>
    %1101 = math.exp %1100 : vector<2x32xf32>
    %cst_318 = arith.constant 1.000000e+00 : f32
    %1102 = vector.broadcast %cst_318 : f32 to vector<2x32xf32>
    %1103 = arith.addf %1102, %1101 : vector<2x32xf32>
    %1104 = arith.divf %1102, %1103 : vector<2x32xf32>
    %1105 = vector.extract_strided_slice %1084 {offsets = [0, 64], sizes = [2, 32], strides = [1, 1]} : vector<2x96xf32> to vector<2x32xf32>
    %1106 = vector.extract_strided_slice %1088 {offsets = [0, 64], sizes = [2, 32], strides = [1, 1]} : vector<2x96xf32> to vector<2x32xf32>
    %1107 = arith.mulf %1096, %1106 : vector<2x32xf32>
    %1108 = arith.addf %1105, %1107 : vector<2x32xf32>
    %1109 = math.tanh %1108 : vector<2x32xf32>
    %cst_319 = arith.constant 1.000000e+00 : f32
    %1110 = vector.broadcast %cst_319 : f32 to vector<2x32xf32>
    %1111 = arith.subf %1110, %1104 : vector<2x32xf32>
    %1112 = arith.mulf %1111, %1109 : vector<2x32xf32>
    %1113 = arith.mulf %1104, %906 : vector<2x32xf32>
    %1114 = arith.addf %1112, %1113 : vector<2x32xf32>
    %c0_320 = arith.constant 0 : index
    %c0_321 = arith.constant 0 : index
    %c0_322 = arith.constant 0 : index
    %1115 = vector.load %arg22[%c0_320, %c0_321, %c0_322] : memref<8x2x1xf32, #tpu.memory_space<vmem>>, vector<8x2x1xf32>
    %1116 = tpu.iota {dimensions = array<i32: 0>} : vector<8x2x1xi32>
    %c5_i32 = arith.constant 5 : i32
    %1117 = vector.broadcast %c5_i32 : i32 to vector<8x2x1xi32>
    %1118 = arith.cmpi slt, %1116, %1117 : vector<8x2x1xi32>
    %cst_323 = arith.constant -1.000000e+30 : f32
    %1119 = vector.broadcast %cst_323 : f32 to vector<8x2x1xf32>
    %1120 = arith.select %1118, %1115, %1119 : vector<8x2x1xi1>, vector<8x2x1xf32>
    %cst_324 = arith.constant dense<0xFF800000> : vector<2x1xf32>
    %1121 = vector.multi_reduction <maximumf>, %1120, %cst_324 [0] : vector<8x2x1xf32> to vector<2x1xf32>
    %1122 = vector.shape_cast %1121 : vector<2x1xf32> to vector<1x2x1xf32>
    %1123 = vector.broadcast %1122 : vector<1x2x1xf32> to vector<8x2x1xf32>
    %1124 = arith.subf %1120, %1123 : vector<8x2x1xf32>
    %1125 = math.exp %1124 : vector<8x2x1xf32>
    %cst_325 = arith.constant dense<0.000000e+00> : vector<2x1xf32>
    %1126 = vector.multi_reduction <add>, %1125, %cst_325 [0] : vector<8x2x1xf32> to vector<2x1xf32>
    %1127 = vector.shape_cast %1126 : vector<2x1xf32> to vector<1x2x1xf32>
    %1128 = vector.broadcast %1127 : vector<1x2x1xf32> to vector<8x2x1xf32>
    %1129 = arith.divf %1125, %1128 : vector<8x2x1xf32>
    %cst_326 = arith.constant 0.000000e+00 : f32
    %1130 = vector.broadcast %cst_326 : f32 to vector<8x2x1xf32>
    %1131 = arith.select %1118, %1129, %1130 : vector<8x2x1xi1>, vector<8x2x1xf32>
    %c0_327 = arith.constant 0 : index
    %c0_328 = arith.constant 0 : index
    %c0_329 = arith.constant 0 : index
    %1132 = vector.load %arg21[%c0_327, %c0_328, %c0_329] : memref<8x2x32xf32, #tpu.memory_space<vmem>>, vector<8x2x32xf32>
    %1133 = vector.broadcast %1131 : vector<8x2x1xf32> to vector<8x2x32xf32>
    %1134 = arith.mulf %1133, %1132 : vector<8x2x32xf32>
    %cst_330 = arith.constant dense<0.000000e+00> : vector<2x32xf32>
    %1135 = vector.multi_reduction <add>, %1134, %cst_330 [0] : vector<8x2x32xf32> to vector<2x32xf32>
    %1136 = arith.truncf %1064 : vector<2x32xf32> to vector<2x32xbf16>
    %cst_331 = arith.constant dense<0.000000e+00> : vector<2x96xf32>
    %1137 = tpu.matmul %1136, %9, %cst_331 {dimension_numbers = #tpu.dot_dimension_numbers<[1], [0], [0], [1], [0, 0, 1, 1], [], []>} : vector<2x32xbf16>, vector<32x96xbf16>, vector<2x96xf32> -> vector<2x96xf32>
    %1138 = arith.truncf %1135 : vector<2x32xf32> to vector<2x32xbf16>
    %cst_332 = arith.constant dense<0.000000e+00> : vector<2x96xf32>
    %1139 = tpu.matmul %1138, %10, %cst_332 {dimension_numbers = #tpu.dot_dimension_numbers<[1], [0], [0], [1], [0, 0, 1, 1], [], []>} : vector<2x32xbf16>, vector<32x96xbf16>, vector<2x96xf32> -> vector<2x96xf32>
    %1140 = arith.addf %1137, %1139 : vector<2x96xf32>
    %1141 = vector.broadcast %12 : vector<1x96xf32> to vector<2x96xf32>
    %1142 = arith.addf %1140, %1141 : vector<2x96xf32>
    %cst_333 = arith.constant 0.000000e+00 : f32
    %1143 = vector.broadcast %cst_333 : f32 to vector<2x32xf32>
    %1144 = arith.truncf %972 : vector<2x32xf32> to vector<2x32xbf16>
    %cst_334 = arith.constant dense<0.000000e+00> : vector<2x96xf32>
    %1145 = tpu.matmul %1144, %11, %cst_334 {dimension_numbers = #tpu.dot_dimension_numbers<[1], [0], [0], [1], [0, 0, 1, 1], [], []>} : vector<2x32xbf16>, vector<32x96xbf16>, vector<2x96xf32> -> vector<2x96xf32>
    %1146 = vector.broadcast %13 : vector<1x96xf32> to vector<2x96xf32>
    %1147 = arith.addf %1145, %1146 : vector<2x96xf32>
    %1148 = vector.extract_strided_slice %1142 {offsets = [0, 0], sizes = [2, 32], strides = [1, 1]} : vector<2x96xf32> to vector<2x32xf32>
    %1149 = vector.extract_strided_slice %1147 {offsets = [0, 0], sizes = [2, 32], strides = [1, 1]} : vector<2x96xf32> to vector<2x32xf32>
    %1150 = arith.addf %1148, %1149 : vector<2x32xf32>
    %1151 = arith.negf %1150 : vector<2x32xf32>
    %1152 = math.exp %1151 : vector<2x32xf32>
    %cst_335 = arith.constant 1.000000e+00 : f32
    %1153 = vector.broadcast %cst_335 : f32 to vector<2x32xf32>
    %1154 = arith.addf %1153, %1152 : vector<2x32xf32>
    %1155 = arith.divf %1153, %1154 : vector<2x32xf32>
    %1156 = vector.extract_strided_slice %1142 {offsets = [0, 32], sizes = [2, 32], strides = [1, 1]} : vector<2x96xf32> to vector<2x32xf32>
    %1157 = vector.extract_strided_slice %1147 {offsets = [0, 32], sizes = [2, 32], strides = [1, 1]} : vector<2x96xf32> to vector<2x32xf32>
    %1158 = arith.addf %1156, %1157 : vector<2x32xf32>
    %1159 = arith.negf %1158 : vector<2x32xf32>
    %1160 = math.exp %1159 : vector<2x32xf32>
    %cst_336 = arith.constant 1.000000e+00 : f32
    %1161 = vector.broadcast %cst_336 : f32 to vector<2x32xf32>
    %1162 = arith.addf %1161, %1160 : vector<2x32xf32>
    %1163 = arith.divf %1161, %1162 : vector<2x32xf32>
    %1164 = vector.extract_strided_slice %1142 {offsets = [0, 64], sizes = [2, 32], strides = [1, 1]} : vector<2x96xf32> to vector<2x32xf32>
    %1165 = vector.extract_strided_slice %1147 {offsets = [0, 64], sizes = [2, 32], strides = [1, 1]} : vector<2x96xf32> to vector<2x32xf32>
    %1166 = arith.mulf %1155, %1165 : vector<2x32xf32>
    %1167 = arith.addf %1164, %1166 : vector<2x32xf32>
    %1168 = math.tanh %1167 : vector<2x32xf32>
    %cst_337 = arith.constant 1.000000e+00 : f32
    %1169 = vector.broadcast %cst_337 : f32 to vector<2x32xf32>
    %1170 = arith.subf %1169, %1163 : vector<2x32xf32>
    %1171 = arith.mulf %1170, %1168 : vector<2x32xf32>
    %1172 = arith.mulf %1163, %972 : vector<2x32xf32>
    %1173 = arith.addf %1171, %1172 : vector<2x32xf32>
    %cst_338 = arith.constant 1.000000e+00 : f32
    %1174 = vector.broadcast %cst_338 : f32 to vector<2x1xf32>
    %1175 = arith.subf %1174, %1071 : vector<2x1xf32>
    %1176 = vector.broadcast %1175 : vector<2x1xf32> to vector<2x32xf32>
    %1177 = arith.mulf %972, %1176 : vector<2x32xf32>
    %1178 = vector.broadcast %1071 : vector<2x1xf32> to vector<2x32xf32>
    %1179 = arith.mulf %1173, %1178 : vector<2x32xf32>
    %1180 = arith.addf %1177, %1179 : vector<2x32xf32>
    %1181 = vector.broadcast %1069 : vector<2x1xf32> to vector<2x32xf32>
    %1182 = arith.mulf %1181, %1180 : vector<2x32xf32>
    %1183 = arith.addf %1143, %1182 : vector<2x32xf32>
    %1184 = arith.truncf %1012 : vector<2x32xf32> to vector<2x32xbf16>
    %cst_339 = arith.constant dense<0.000000e+00> : vector<2x96xf32>
    %1185 = tpu.matmul %1184, %11, %cst_339 {dimension_numbers = #tpu.dot_dimension_numbers<[1], [0], [0], [1], [0, 0, 1, 1], [], []>} : vector<2x32xbf16>, vector<32x96xbf16>, vector<2x96xf32> -> vector<2x96xf32>
    %1186 = vector.broadcast %13 : vector<1x96xf32> to vector<2x96xf32>
    %1187 = arith.addf %1185, %1186 : vector<2x96xf32>
    %1188 = vector.extract_strided_slice %1142 {offsets = [0, 0], sizes = [2, 32], strides = [1, 1]} : vector<2x96xf32> to vector<2x32xf32>
    %1189 = vector.extract_strided_slice %1187 {offsets = [0, 0], sizes = [2, 32], strides = [1, 1]} : vector<2x96xf32> to vector<2x32xf32>
    %1190 = arith.addf %1188, %1189 : vector<2x32xf32>
    %1191 = arith.negf %1190 : vector<2x32xf32>
    %1192 = math.exp %1191 : vector<2x32xf32>
    %cst_340 = arith.constant 1.000000e+00 : f32
    %1193 = vector.broadcast %cst_340 : f32 to vector<2x32xf32>
    %1194 = arith.addf %1193, %1192 : vector<2x32xf32>
    %1195 = arith.divf %1193, %1194 : vector<2x32xf32>
    %1196 = vector.extract_strided_slice %1142 {offsets = [0, 32], sizes = [2, 32], strides = [1, 1]} : vector<2x96xf32> to vector<2x32xf32>
    %1197 = vector.extract_strided_slice %1187 {offsets = [0, 32], sizes = [2, 32], strides = [1, 1]} : vector<2x96xf32> to vector<2x32xf32>
    %1198 = arith.addf %1196, %1197 : vector<2x32xf32>
    %1199 = arith.negf %1198 : vector<2x32xf32>
    %1200 = math.exp %1199 : vector<2x32xf32>
    %cst_341 = arith.constant 1.000000e+00 : f32
    %1201 = vector.broadcast %cst_341 : f32 to vector<2x32xf32>
    %1202 = arith.addf %1201, %1200 : vector<2x32xf32>
    %1203 = arith.divf %1201, %1202 : vector<2x32xf32>
    %1204 = vector.extract_strided_slice %1142 {offsets = [0, 64], sizes = [2, 32], strides = [1, 1]} : vector<2x96xf32> to vector<2x32xf32>
    %1205 = vector.extract_strided_slice %1187 {offsets = [0, 64], sizes = [2, 32], strides = [1, 1]} : vector<2x96xf32> to vector<2x32xf32>
    %1206 = arith.mulf %1195, %1205 : vector<2x32xf32>
    %1207 = arith.addf %1204, %1206 : vector<2x32xf32>
    %1208 = math.tanh %1207 : vector<2x32xf32>
    %cst_342 = arith.constant 1.000000e+00 : f32
    %1209 = vector.broadcast %cst_342 : f32 to vector<2x32xf32>
    %1210 = arith.subf %1209, %1203 : vector<2x32xf32>
    %1211 = arith.mulf %1210, %1208 : vector<2x32xf32>
    %1212 = arith.mulf %1203, %1012 : vector<2x32xf32>
    %1213 = arith.addf %1211, %1212 : vector<2x32xf32>
    %cst_343 = arith.constant 1.000000e+00 : f32
    %1214 = vector.broadcast %cst_343 : f32 to vector<2x1xf32>
    %1215 = arith.subf %1214, %1072 : vector<2x1xf32>
    %1216 = vector.broadcast %1215 : vector<2x1xf32> to vector<2x32xf32>
    %1217 = arith.mulf %1012, %1216 : vector<2x32xf32>
    %1218 = vector.broadcast %1072 : vector<2x1xf32> to vector<2x32xf32>
    %1219 = arith.mulf %1213, %1218 : vector<2x32xf32>
    %1220 = arith.addf %1217, %1219 : vector<2x32xf32>
    %1221 = vector.broadcast %1070 : vector<2x1xf32> to vector<2x32xf32>
    %1222 = arith.mulf %1221, %1220 : vector<2x32xf32>
    %1223 = arith.addf %1183, %1222 : vector<2x32xf32>
    %1224 = arith.truncf %1223 : vector<2x32xf32> to vector<2x32xbf16>
    %cst_344 = arith.constant dense<0.000000e+00> : vector<2x96xf32>
    %1225 = tpu.matmul %1224, %14, %cst_344 {dimension_numbers = #tpu.dot_dimension_numbers<[1], [0], [0], [1], [0, 0, 1, 1], [], []>} : vector<2x32xbf16>, vector<32x96xbf16>, vector<2x96xf32> -> vector<2x96xf32>
    %1226 = vector.broadcast %16 : vector<1x96xf32> to vector<2x96xf32>
    %1227 = arith.addf %1225, %1226 : vector<2x96xf32>
    %1228 = arith.truncf %1049 : vector<2x32xf32> to vector<2x32xbf16>
    %cst_345 = arith.constant dense<0.000000e+00> : vector<2x96xf32>
    %1229 = tpu.matmul %1228, %15, %cst_345 {dimension_numbers = #tpu.dot_dimension_numbers<[1], [0], [0], [1], [0, 0, 1, 1], [], []>} : vector<2x32xbf16>, vector<32x96xbf16>, vector<2x96xf32> -> vector<2x96xf32>
    %1230 = vector.broadcast %17 : vector<1x96xf32> to vector<2x96xf32>
    %1231 = arith.addf %1229, %1230 : vector<2x96xf32>
    %1232 = vector.extract_strided_slice %1227 {offsets = [0, 0], sizes = [2, 32], strides = [1, 1]} : vector<2x96xf32> to vector<2x32xf32>
    %1233 = vector.extract_strided_slice %1231 {offsets = [0, 0], sizes = [2, 32], strides = [1, 1]} : vector<2x96xf32> to vector<2x32xf32>
    %1234 = arith.addf %1232, %1233 : vector<2x32xf32>
    %1235 = arith.negf %1234 : vector<2x32xf32>
    %1236 = math.exp %1235 : vector<2x32xf32>
    %cst_346 = arith.constant 1.000000e+00 : f32
    %1237 = vector.broadcast %cst_346 : f32 to vector<2x32xf32>
    %1238 = arith.addf %1237, %1236 : vector<2x32xf32>
    %1239 = arith.divf %1237, %1238 : vector<2x32xf32>
    %1240 = vector.extract_strided_slice %1227 {offsets = [0, 32], sizes = [2, 32], strides = [1, 1]} : vector<2x96xf32> to vector<2x32xf32>
    %1241 = vector.extract_strided_slice %1231 {offsets = [0, 32], sizes = [2, 32], strides = [1, 1]} : vector<2x96xf32> to vector<2x32xf32>
    %1242 = arith.addf %1240, %1241 : vector<2x32xf32>
    %1243 = arith.negf %1242 : vector<2x32xf32>
    %1244 = math.exp %1243 : vector<2x32xf32>
    %cst_347 = arith.constant 1.000000e+00 : f32
    %1245 = vector.broadcast %cst_347 : f32 to vector<2x32xf32>
    %1246 = arith.addf %1245, %1244 : vector<2x32xf32>
    %1247 = arith.divf %1245, %1246 : vector<2x32xf32>
    %1248 = vector.extract_strided_slice %1227 {offsets = [0, 64], sizes = [2, 32], strides = [1, 1]} : vector<2x96xf32> to vector<2x32xf32>
    %1249 = vector.extract_strided_slice %1231 {offsets = [0, 64], sizes = [2, 32], strides = [1, 1]} : vector<2x96xf32> to vector<2x32xf32>
    %1250 = arith.mulf %1239, %1249 : vector<2x32xf32>
    %1251 = arith.addf %1248, %1250 : vector<2x32xf32>
    %1252 = math.tanh %1251 : vector<2x32xf32>
    %cst_348 = arith.constant 1.000000e+00 : f32
    %1253 = vector.broadcast %cst_348 : f32 to vector<2x32xf32>
    %1254 = arith.subf %1253, %1247 : vector<2x32xf32>
    %1255 = arith.mulf %1254, %1252 : vector<2x32xf32>
    %1256 = arith.mulf %1247, %1049 : vector<2x32xf32>
    %1257 = arith.addf %1255, %1256 : vector<2x32xf32>
    %c5_349 = arith.constant 5 : index
    %c0_350 = arith.constant 0 : index
    %c0_351 = arith.constant 0 : index
    %1258 = vector.load %arg21[%c5_349, %c0_350, %c0_351] : memref<8x2x32xf32, #tpu.memory_space<vmem>>, vector<1x2x32xf32>
    %1259 = vector.shape_cast %1258 : vector<1x2x32xf32> to vector<2x32xf32>
    %1260 = vector.shape_cast %1114 : vector<2x32xf32> to vector<1x2x32xf32>
    tpu.vector_store %arg21[%c5_349, %c0_350, %c0_351], %1260 {strides = array<i32>} : memref<8x2x32xf32, #tpu.memory_space<vmem>>, vector<1x2x32xf32>,
    %1261 = vector.broadcast %18 : vector<1x32xf32> to vector<2x32xf32>
    %1262 = arith.mulf %1114, %1261 : vector<2x32xf32>
    %cst_352 = arith.constant dense<0.000000e+00> : vector<2xf32>
    %1263 = vector.multi_reduction <add>, %1262, %cst_352 [1] : vector<2x32xf32> to vector<2xf32>
    %1264 = vector.shape_cast %1263 : vector<2xf32> to vector<2x1xf32>
    %c5_353 = arith.constant 5 : index
    %c0_354 = arith.constant 0 : index
    %c0_355 = arith.constant 0 : index
    %1265 = vector.load %arg22[%c5_353, %c0_354, %c0_355] : memref<8x2x1xf32, #tpu.memory_space<vmem>>, vector<1x2x1xf32>
    %1266 = vector.shape_cast %1265 : vector<1x2x1xf32> to vector<2x1xf32>
    %1267 = vector.shape_cast %1264 : vector<2x1xf32> to vector<1x2x1xf32>
    tpu.vector_store %arg22[%c5_353, %c0_354, %c0_355], %1267 {strides = array<i32>} : memref<8x2x1xf32, #tpu.memory_space<vmem>>, vector<1x2x1xf32>,
    %c5_356 = arith.constant 5 : index
    %c0_357 = arith.constant 0 : index
    %c0_358 = arith.constant 0 : index
    %1268 = vector.load %arg19[%c5_356, %c0_357, %c0_358] : memref<8x2x32xf32, #tpu.memory_space<vmem>>, vector<1x2x32xf32>
    %1269 = vector.shape_cast %1268 : vector<1x2x32xf32> to vector<2x32xf32>
    %1270 = vector.shape_cast %1257 : vector<2x32xf32> to vector<1x2x32xf32>
    tpu.vector_store %arg19[%c5_356, %c0_357, %c0_358], %1270 {strides = array<i32>} : memref<8x2x32xf32, #tpu.memory_space<vmem>>, vector<1x2x32xf32>,
    %c6 = arith.constant 6 : index
    %c0_359 = arith.constant 0 : index
    %c0_360 = arith.constant 0 : index
    %1271 = vector.load %arg1[%c6, %c0_359, %c0_360] : memref<8x2x32xf32, #tpu.memory_space<vmem>>, vector<1x2x32xf32>
    %1272 = vector.shape_cast %1271 : vector<1x2x32xf32> to vector<2x32xf32>
    %c6_361 = arith.constant 6 : index
    %c0_362 = arith.constant 0 : index
    %c0_363 = arith.constant 0 : index
    %1273 = vector.load %arg2[%c6_361, %c0_362, %c0_363] : memref<8x2x2xf32, #tpu.memory_space<vmem>>, vector<1x2x2xf32>
    %1274 = vector.shape_cast %1273 : vector<1x2x2xf32> to vector<2x2xf32>
    %c6_364 = arith.constant 6 : index
    %c0_365 = arith.constant 0 : index
    %c0_366 = arith.constant 0 : index
    %1275 = vector.load %arg3[%c6_364, %c0_365, %c0_366] : memref<8x2x2xf32, #tpu.memory_space<vmem>>, vector<1x2x2xf32>
    %1276 = vector.shape_cast %1275 : vector<1x2x2xf32> to vector<2x2xf32>
    %1277 = vector.extract_strided_slice %1276 {offsets = [0, 0], sizes = [2, 1], strides = [1, 1]} : vector<2x2xf32> to vector<2x1xf32>
    %1278 = vector.extract_strided_slice %1276 {offsets = [0, 1], sizes = [2, 1], strides = [1, 1]} : vector<2x2xf32> to vector<2x1xf32>
    %1279 = vector.extract_strided_slice %1274 {offsets = [0, 0], sizes = [2, 1], strides = [1, 1]} : vector<2x2xf32> to vector<2x1xf32>
    %1280 = vector.extract_strided_slice %1274 {offsets = [0, 1], sizes = [2, 1], strides = [1, 1]} : vector<2x2xf32> to vector<2x1xf32>
    %1281 = vector.broadcast %1277 : vector<2x1xf32> to vector<2x32xf32>
    %1282 = arith.mulf %1281, %1180 : vector<2x32xf32>
    %1283 = vector.broadcast %1278 : vector<2x1xf32> to vector<2x32xf32>
    %1284 = arith.mulf %1283, %1220 : vector<2x32xf32>
    %1285 = arith.addf %1282, %1284 : vector<2x32xf32>
    %1286 = arith.truncf %1272 : vector<2x32xf32> to vector<2x32xbf16>
    %cst_367 = arith.constant dense<0.000000e+00> : vector<2x96xf32>
    %1287 = tpu.matmul %1286, %4, %cst_367 {dimension_numbers = #tpu.dot_dimension_numbers<[1], [0], [0], [1], [0, 0, 1, 1], [], []>} : vector<2x32xbf16>, vector<32x96xbf16>, vector<2x96xf32> -> vector<2x96xf32>
    %1288 = arith.truncf %1285 : vector<2x32xf32> to vector<2x32xbf16>
    %cst_368 = arith.constant dense<0.000000e+00> : vector<2x96xf32>
    %1289 = tpu.matmul %1288, %5, %cst_368 {dimension_numbers = #tpu.dot_dimension_numbers<[1], [0], [0], [1], [0, 0, 1, 1], [], []>} : vector<2x32xbf16>, vector<32x96xbf16>, vector<2x96xf32> -> vector<2x96xf32>
    %1290 = arith.addf %1287, %1289 : vector<2x96xf32>
    %1291 = vector.broadcast %7 : vector<1x96xf32> to vector<2x96xf32>
    %1292 = arith.addf %1290, %1291 : vector<2x96xf32>
    %1293 = arith.truncf %1114 : vector<2x32xf32> to vector<2x32xbf16>
    %cst_369 = arith.constant dense<0.000000e+00> : vector<2x96xf32>
    %1294 = tpu.matmul %1293, %6, %cst_369 {dimension_numbers = #tpu.dot_dimension_numbers<[1], [0], [0], [1], [0, 0, 1, 1], [], []>} : vector<2x32xbf16>, vector<32x96xbf16>, vector<2x96xf32> -> vector<2x96xf32>
    %1295 = vector.broadcast %8 : vector<1x96xf32> to vector<2x96xf32>
    %1296 = arith.addf %1294, %1295 : vector<2x96xf32>
    %1297 = vector.extract_strided_slice %1292 {offsets = [0, 0], sizes = [2, 32], strides = [1, 1]} : vector<2x96xf32> to vector<2x32xf32>
    %1298 = vector.extract_strided_slice %1296 {offsets = [0, 0], sizes = [2, 32], strides = [1, 1]} : vector<2x96xf32> to vector<2x32xf32>
    %1299 = arith.addf %1297, %1298 : vector<2x32xf32>
    %1300 = arith.negf %1299 : vector<2x32xf32>
    %1301 = math.exp %1300 : vector<2x32xf32>
    %cst_370 = arith.constant 1.000000e+00 : f32
    %1302 = vector.broadcast %cst_370 : f32 to vector<2x32xf32>
    %1303 = arith.addf %1302, %1301 : vector<2x32xf32>
    %1304 = arith.divf %1302, %1303 : vector<2x32xf32>
    %1305 = vector.extract_strided_slice %1292 {offsets = [0, 32], sizes = [2, 32], strides = [1, 1]} : vector<2x96xf32> to vector<2x32xf32>
    %1306 = vector.extract_strided_slice %1296 {offsets = [0, 32], sizes = [2, 32], strides = [1, 1]} : vector<2x96xf32> to vector<2x32xf32>
    %1307 = arith.addf %1305, %1306 : vector<2x32xf32>
    %1308 = arith.negf %1307 : vector<2x32xf32>
    %1309 = math.exp %1308 : vector<2x32xf32>
    %cst_371 = arith.constant 1.000000e+00 : f32
    %1310 = vector.broadcast %cst_371 : f32 to vector<2x32xf32>
    %1311 = arith.addf %1310, %1309 : vector<2x32xf32>
    %1312 = arith.divf %1310, %1311 : vector<2x32xf32>
    %1313 = vector.extract_strided_slice %1292 {offsets = [0, 64], sizes = [2, 32], strides = [1, 1]} : vector<2x96xf32> to vector<2x32xf32>
    %1314 = vector.extract_strided_slice %1296 {offsets = [0, 64], sizes = [2, 32], strides = [1, 1]} : vector<2x96xf32> to vector<2x32xf32>
    %1315 = arith.mulf %1304, %1314 : vector<2x32xf32>
    %1316 = arith.addf %1313, %1315 : vector<2x32xf32>
    %1317 = math.tanh %1316 : vector<2x32xf32>
    %cst_372 = arith.constant 1.000000e+00 : f32
    %1318 = vector.broadcast %cst_372 : f32 to vector<2x32xf32>
    %1319 = arith.subf %1318, %1312 : vector<2x32xf32>
    %1320 = arith.mulf %1319, %1317 : vector<2x32xf32>
    %1321 = arith.mulf %1312, %1114 : vector<2x32xf32>
    %1322 = arith.addf %1320, %1321 : vector<2x32xf32>
    %c0_373 = arith.constant 0 : index
    %c0_374 = arith.constant 0 : index
    %c0_375 = arith.constant 0 : index
    %1323 = vector.load %arg22[%c0_373, %c0_374, %c0_375] : memref<8x2x1xf32, #tpu.memory_space<vmem>>, vector<8x2x1xf32>
    %1324 = tpu.iota {dimensions = array<i32: 0>} : vector<8x2x1xi32>
    %c6_i32 = arith.constant 6 : i32
    %1325 = vector.broadcast %c6_i32 : i32 to vector<8x2x1xi32>
    %1326 = arith.cmpi slt, %1324, %1325 : vector<8x2x1xi32>
    %cst_376 = arith.constant -1.000000e+30 : f32
    %1327 = vector.broadcast %cst_376 : f32 to vector<8x2x1xf32>
    %1328 = arith.select %1326, %1323, %1327 : vector<8x2x1xi1>, vector<8x2x1xf32>
    %cst_377 = arith.constant dense<0xFF800000> : vector<2x1xf32>
    %1329 = vector.multi_reduction <maximumf>, %1328, %cst_377 [0] : vector<8x2x1xf32> to vector<2x1xf32>
    %1330 = vector.shape_cast %1329 : vector<2x1xf32> to vector<1x2x1xf32>
    %1331 = vector.broadcast %1330 : vector<1x2x1xf32> to vector<8x2x1xf32>
    %1332 = arith.subf %1328, %1331 : vector<8x2x1xf32>
    %1333 = math.exp %1332 : vector<8x2x1xf32>
    %cst_378 = arith.constant dense<0.000000e+00> : vector<2x1xf32>
    %1334 = vector.multi_reduction <add>, %1333, %cst_378 [0] : vector<8x2x1xf32> to vector<2x1xf32>
    %1335 = vector.shape_cast %1334 : vector<2x1xf32> to vector<1x2x1xf32>
    %1336 = vector.broadcast %1335 : vector<1x2x1xf32> to vector<8x2x1xf32>
    %1337 = arith.divf %1333, %1336 : vector<8x2x1xf32>
    %cst_379 = arith.constant 0.000000e+00 : f32
    %1338 = vector.broadcast %cst_379 : f32 to vector<8x2x1xf32>
    %1339 = arith.select %1326, %1337, %1338 : vector<8x2x1xi1>, vector<8x2x1xf32>
    %c0_380 = arith.constant 0 : index
    %c0_381 = arith.constant 0 : index
    %c0_382 = arith.constant 0 : index
    %1340 = vector.load %arg21[%c0_380, %c0_381, %c0_382] : memref<8x2x32xf32, #tpu.memory_space<vmem>>, vector<8x2x32xf32>
    %1341 = vector.broadcast %1339 : vector<8x2x1xf32> to vector<8x2x32xf32>
    %1342 = arith.mulf %1341, %1340 : vector<8x2x32xf32>
    %cst_383 = arith.constant dense<0.000000e+00> : vector<2x32xf32>
    %1343 = vector.multi_reduction <add>, %1342, %cst_383 [0] : vector<8x2x32xf32> to vector<2x32xf32>
    %1344 = arith.truncf %1272 : vector<2x32xf32> to vector<2x32xbf16>
    %cst_384 = arith.constant dense<0.000000e+00> : vector<2x96xf32>
    %1345 = tpu.matmul %1344, %9, %cst_384 {dimension_numbers = #tpu.dot_dimension_numbers<[1], [0], [0], [1], [0, 0, 1, 1], [], []>} : vector<2x32xbf16>, vector<32x96xbf16>, vector<2x96xf32> -> vector<2x96xf32>
    %1346 = arith.truncf %1343 : vector<2x32xf32> to vector<2x32xbf16>
    %cst_385 = arith.constant dense<0.000000e+00> : vector<2x96xf32>
    %1347 = tpu.matmul %1346, %10, %cst_385 {dimension_numbers = #tpu.dot_dimension_numbers<[1], [0], [0], [1], [0, 0, 1, 1], [], []>} : vector<2x32xbf16>, vector<32x96xbf16>, vector<2x96xf32> -> vector<2x96xf32>
    %1348 = arith.addf %1345, %1347 : vector<2x96xf32>
    %1349 = vector.broadcast %12 : vector<1x96xf32> to vector<2x96xf32>
    %1350 = arith.addf %1348, %1349 : vector<2x96xf32>
    %cst_386 = arith.constant 0.000000e+00 : f32
    %1351 = vector.broadcast %cst_386 : f32 to vector<2x32xf32>
    %1352 = arith.truncf %1180 : vector<2x32xf32> to vector<2x32xbf16>
    %cst_387 = arith.constant dense<0.000000e+00> : vector<2x96xf32>
    %1353 = tpu.matmul %1352, %11, %cst_387 {dimension_numbers = #tpu.dot_dimension_numbers<[1], [0], [0], [1], [0, 0, 1, 1], [], []>} : vector<2x32xbf16>, vector<32x96xbf16>, vector<2x96xf32> -> vector<2x96xf32>
    %1354 = vector.broadcast %13 : vector<1x96xf32> to vector<2x96xf32>
    %1355 = arith.addf %1353, %1354 : vector<2x96xf32>
    %1356 = vector.extract_strided_slice %1350 {offsets = [0, 0], sizes = [2, 32], strides = [1, 1]} : vector<2x96xf32> to vector<2x32xf32>
    %1357 = vector.extract_strided_slice %1355 {offsets = [0, 0], sizes = [2, 32], strides = [1, 1]} : vector<2x96xf32> to vector<2x32xf32>
    %1358 = arith.addf %1356, %1357 : vector<2x32xf32>
    %1359 = arith.negf %1358 : vector<2x32xf32>
    %1360 = math.exp %1359 : vector<2x32xf32>
    %cst_388 = arith.constant 1.000000e+00 : f32
    %1361 = vector.broadcast %cst_388 : f32 to vector<2x32xf32>
    %1362 = arith.addf %1361, %1360 : vector<2x32xf32>
    %1363 = arith.divf %1361, %1362 : vector<2x32xf32>
    %1364 = vector.extract_strided_slice %1350 {offsets = [0, 32], sizes = [2, 32], strides = [1, 1]} : vector<2x96xf32> to vector<2x32xf32>
    %1365 = vector.extract_strided_slice %1355 {offsets = [0, 32], sizes = [2, 32], strides = [1, 1]} : vector<2x96xf32> to vector<2x32xf32>
    %1366 = arith.addf %1364, %1365 : vector<2x32xf32>
    %1367 = arith.negf %1366 : vector<2x32xf32>
    %1368 = math.exp %1367 : vector<2x32xf32>
    %cst_389 = arith.constant 1.000000e+00 : f32
    %1369 = vector.broadcast %cst_389 : f32 to vector<2x32xf32>
    %1370 = arith.addf %1369, %1368 : vector<2x32xf32>
    %1371 = arith.divf %1369, %1370 : vector<2x32xf32>
    %1372 = vector.extract_strided_slice %1350 {offsets = [0, 64], sizes = [2, 32], strides = [1, 1]} : vector<2x96xf32> to vector<2x32xf32>
    %1373 = vector.extract_strided_slice %1355 {offsets = [0, 64], sizes = [2, 32], strides = [1, 1]} : vector<2x96xf32> to vector<2x32xf32>
    %1374 = arith.mulf %1363, %1373 : vector<2x32xf32>
    %1375 = arith.addf %1372, %1374 : vector<2x32xf32>
    %1376 = math.tanh %1375 : vector<2x32xf32>
    %cst_390 = arith.constant 1.000000e+00 : f32
    %1377 = vector.broadcast %cst_390 : f32 to vector<2x32xf32>
    %1378 = arith.subf %1377, %1371 : vector<2x32xf32>
    %1379 = arith.mulf %1378, %1376 : vector<2x32xf32>
    %1380 = arith.mulf %1371, %1180 : vector<2x32xf32>
    %1381 = arith.addf %1379, %1380 : vector<2x32xf32>
    %cst_391 = arith.constant 1.000000e+00 : f32
    %1382 = vector.broadcast %cst_391 : f32 to vector<2x1xf32>
    %1383 = arith.subf %1382, %1279 : vector<2x1xf32>
    %1384 = vector.broadcast %1383 : vector<2x1xf32> to vector<2x32xf32>
    %1385 = arith.mulf %1180, %1384 : vector<2x32xf32>
    %1386 = vector.broadcast %1279 : vector<2x1xf32> to vector<2x32xf32>
    %1387 = arith.mulf %1381, %1386 : vector<2x32xf32>
    %1388 = arith.addf %1385, %1387 : vector<2x32xf32>
    %1389 = vector.broadcast %1277 : vector<2x1xf32> to vector<2x32xf32>
    %1390 = arith.mulf %1389, %1388 : vector<2x32xf32>
    %1391 = arith.addf %1351, %1390 : vector<2x32xf32>
    %1392 = arith.truncf %1220 : vector<2x32xf32> to vector<2x32xbf16>
    %cst_392 = arith.constant dense<0.000000e+00> : vector<2x96xf32>
    %1393 = tpu.matmul %1392, %11, %cst_392 {dimension_numbers = #tpu.dot_dimension_numbers<[1], [0], [0], [1], [0, 0, 1, 1], [], []>} : vector<2x32xbf16>, vector<32x96xbf16>, vector<2x96xf32> -> vector<2x96xf32>
    %1394 = vector.broadcast %13 : vector<1x96xf32> to vector<2x96xf32>
    %1395 = arith.addf %1393, %1394 : vector<2x96xf32>
    %1396 = vector.extract_strided_slice %1350 {offsets = [0, 0], sizes = [2, 32], strides = [1, 1]} : vector<2x96xf32> to vector<2x32xf32>
    %1397 = vector.extract_strided_slice %1395 {offsets = [0, 0], sizes = [2, 32], strides = [1, 1]} : vector<2x96xf32> to vector<2x32xf32>
    %1398 = arith.addf %1396, %1397 : vector<2x32xf32>
    %1399 = arith.negf %1398 : vector<2x32xf32>
    %1400 = math.exp %1399 : vector<2x32xf32>
    %cst_393 = arith.constant 1.000000e+00 : f32
    %1401 = vector.broadcast %cst_393 : f32 to vector<2x32xf32>
    %1402 = arith.addf %1401, %1400 : vector<2x32xf32>
    %1403 = arith.divf %1401, %1402 : vector<2x32xf32>
    %1404 = vector.extract_strided_slice %1350 {offsets = [0, 32], sizes = [2, 32], strides = [1, 1]} : vector<2x96xf32> to vector<2x32xf32>
    %1405 = vector.extract_strided_slice %1395 {offsets = [0, 32], sizes = [2, 32], strides = [1, 1]} : vector<2x96xf32> to vector<2x32xf32>
    %1406 = arith.addf %1404, %1405 : vector<2x32xf32>
    %1407 = arith.negf %1406 : vector<2x32xf32>
    %1408 = math.exp %1407 : vector<2x32xf32>
    %cst_394 = arith.constant 1.000000e+00 : f32
    %1409 = vector.broadcast %cst_394 : f32 to vector<2x32xf32>
    %1410 = arith.addf %1409, %1408 : vector<2x32xf32>
    %1411 = arith.divf %1409, %1410 : vector<2x32xf32>
    %1412 = vector.extract_strided_slice %1350 {offsets = [0, 64], sizes = [2, 32], strides = [1, 1]} : vector<2x96xf32> to vector<2x32xf32>
    %1413 = vector.extract_strided_slice %1395 {offsets = [0, 64], sizes = [2, 32], strides = [1, 1]} : vector<2x96xf32> to vector<2x32xf32>
    %1414 = arith.mulf %1403, %1413 : vector<2x32xf32>
    %1415 = arith.addf %1412, %1414 : vector<2x32xf32>
    %1416 = math.tanh %1415 : vector<2x32xf32>
    %cst_395 = arith.constant 1.000000e+00 : f32
    %1417 = vector.broadcast %cst_395 : f32 to vector<2x32xf32>
    %1418 = arith.subf %1417, %1411 : vector<2x32xf32>
    %1419 = arith.mulf %1418, %1416 : vector<2x32xf32>
    %1420 = arith.mulf %1411, %1220 : vector<2x32xf32>
    %1421 = arith.addf %1419, %1420 : vector<2x32xf32>
    %cst_396 = arith.constant 1.000000e+00 : f32
    %1422 = vector.broadcast %cst_396 : f32 to vector<2x1xf32>
    %1423 = arith.subf %1422, %1280 : vector<2x1xf32>
    %1424 = vector.broadcast %1423 : vector<2x1xf32> to vector<2x32xf32>
    %1425 = arith.mulf %1220, %1424 : vector<2x32xf32>
    %1426 = vector.broadcast %1280 : vector<2x1xf32> to vector<2x32xf32>
    %1427 = arith.mulf %1421, %1426 : vector<2x32xf32>
    %1428 = arith.addf %1425, %1427 : vector<2x32xf32>
    %1429 = vector.broadcast %1278 : vector<2x1xf32> to vector<2x32xf32>
    %1430 = arith.mulf %1429, %1428 : vector<2x32xf32>
    %1431 = arith.addf %1391, %1430 : vector<2x32xf32>
    %1432 = arith.truncf %1431 : vector<2x32xf32> to vector<2x32xbf16>
    %cst_397 = arith.constant dense<0.000000e+00> : vector<2x96xf32>
    %1433 = tpu.matmul %1432, %14, %cst_397 {dimension_numbers = #tpu.dot_dimension_numbers<[1], [0], [0], [1], [0, 0, 1, 1], [], []>} : vector<2x32xbf16>, vector<32x96xbf16>, vector<2x96xf32> -> vector<2x96xf32>
    %1434 = vector.broadcast %16 : vector<1x96xf32> to vector<2x96xf32>
    %1435 = arith.addf %1433, %1434 : vector<2x96xf32>
    %1436 = arith.truncf %1257 : vector<2x32xf32> to vector<2x32xbf16>
    %cst_398 = arith.constant dense<0.000000e+00> : vector<2x96xf32>
    %1437 = tpu.matmul %1436, %15, %cst_398 {dimension_numbers = #tpu.dot_dimension_numbers<[1], [0], [0], [1], [0, 0, 1, 1], [], []>} : vector<2x32xbf16>, vector<32x96xbf16>, vector<2x96xf32> -> vector<2x96xf32>
    %1438 = vector.broadcast %17 : vector<1x96xf32> to vector<2x96xf32>
    %1439 = arith.addf %1437, %1438 : vector<2x96xf32>
    %1440 = vector.extract_strided_slice %1435 {offsets = [0, 0], sizes = [2, 32], strides = [1, 1]} : vector<2x96xf32> to vector<2x32xf32>
    %1441 = vector.extract_strided_slice %1439 {offsets = [0, 0], sizes = [2, 32], strides = [1, 1]} : vector<2x96xf32> to vector<2x32xf32>
    %1442 = arith.addf %1440, %1441 : vector<2x32xf32>
    %1443 = arith.negf %1442 : vector<2x32xf32>
    %1444 = math.exp %1443 : vector<2x32xf32>
    %cst_399 = arith.constant 1.000000e+00 : f32
    %1445 = vector.broadcast %cst_399 : f32 to vector<2x32xf32>
    %1446 = arith.addf %1445, %1444 : vector<2x32xf32>
    %1447 = arith.divf %1445, %1446 : vector<2x32xf32>
    %1448 = vector.extract_strided_slice %1435 {offsets = [0, 32], sizes = [2, 32], strides = [1, 1]} : vector<2x96xf32> to vector<2x32xf32>
    %1449 = vector.extract_strided_slice %1439 {offsets = [0, 32], sizes = [2, 32], strides = [1, 1]} : vector<2x96xf32> to vector<2x32xf32>
    %1450 = arith.addf %1448, %1449 : vector<2x32xf32>
    %1451 = arith.negf %1450 : vector<2x32xf32>
    %1452 = math.exp %1451 : vector<2x32xf32>
    %cst_400 = arith.constant 1.000000e+00 : f32
    %1453 = vector.broadcast %cst_400 : f32 to vector<2x32xf32>
    %1454 = arith.addf %1453, %1452 : vector<2x32xf32>
    %1455 = arith.divf %1453, %1454 : vector<2x32xf32>
    %1456 = vector.extract_strided_slice %1435 {offsets = [0, 64], sizes = [2, 32], strides = [1, 1]} : vector<2x96xf32> to vector<2x32xf32>
    %1457 = vector.extract_strided_slice %1439 {offsets = [0, 64], sizes = [2, 32], strides = [1, 1]} : vector<2x96xf32> to vector<2x32xf32>
    %1458 = arith.mulf %1447, %1457 : vector<2x32xf32>
    %1459 = arith.addf %1456, %1458 : vector<2x32xf32>
    %1460 = math.tanh %1459 : vector<2x32xf32>
    %cst_401 = arith.constant 1.000000e+00 : f32
    %1461 = vector.broadcast %cst_401 : f32 to vector<2x32xf32>
    %1462 = arith.subf %1461, %1455 : vector<2x32xf32>
    %1463 = arith.mulf %1462, %1460 : vector<2x32xf32>
    %1464 = arith.mulf %1455, %1257 : vector<2x32xf32>
    %1465 = arith.addf %1463, %1464 : vector<2x32xf32>
    %c6_402 = arith.constant 6 : index
    %c0_403 = arith.constant 0 : index
    %c0_404 = arith.constant 0 : index
    %1466 = vector.load %arg21[%c6_402, %c0_403, %c0_404] : memref<8x2x32xf32, #tpu.memory_space<vmem>>, vector<1x2x32xf32>
    %1467 = vector.shape_cast %1466 : vector<1x2x32xf32> to vector<2x32xf32>
    %1468 = vector.shape_cast %1322 : vector<2x32xf32> to vector<1x2x32xf32>
    tpu.vector_store %arg21[%c6_402, %c0_403, %c0_404], %1468 {strides = array<i32>} : memref<8x2x32xf32, #tpu.memory_space<vmem>>, vector<1x2x32xf32>,
    %1469 = vector.broadcast %18 : vector<1x32xf32> to vector<2x32xf32>
    %1470 = arith.mulf %1322, %1469 : vector<2x32xf32>
    %cst_405 = arith.constant dense<0.000000e+00> : vector<2xf32>
    %1471 = vector.multi_reduction <add>, %1470, %cst_405 [1] : vector<2x32xf32> to vector<2xf32>
    %1472 = vector.shape_cast %1471 : vector<2xf32> to vector<2x1xf32>
    %c6_406 = arith.constant 6 : index
    %c0_407 = arith.constant 0 : index
    %c0_408 = arith.constant 0 : index
    %1473 = vector.load %arg22[%c6_406, %c0_407, %c0_408] : memref<8x2x1xf32, #tpu.memory_space<vmem>>, vector<1x2x1xf32>
    %1474 = vector.shape_cast %1473 : vector<1x2x1xf32> to vector<2x1xf32>
    %1475 = vector.shape_cast %1472 : vector<2x1xf32> to vector<1x2x1xf32>
    tpu.vector_store %arg22[%c6_406, %c0_407, %c0_408], %1475 {strides = array<i32>} : memref<8x2x1xf32, #tpu.memory_space<vmem>>, vector<1x2x1xf32>,
    %c6_409 = arith.constant 6 : index
    %c0_410 = arith.constant 0 : index
    %c0_411 = arith.constant 0 : index
    %1476 = vector.load %arg19[%c6_409, %c0_410, %c0_411] : memref<8x2x32xf32, #tpu.memory_space<vmem>>, vector<1x2x32xf32>
    %1477 = vector.shape_cast %1476 : vector<1x2x32xf32> to vector<2x32xf32>
    %1478 = vector.shape_cast %1465 : vector<2x32xf32> to vector<1x2x32xf32>
    tpu.vector_store %arg19[%c6_409, %c0_410, %c0_411], %1478 {strides = array<i32>} : memref<8x2x32xf32, #tpu.memory_space<vmem>>, vector<1x2x32xf32>,
    %c7 = arith.constant 7 : index
    %c0_412 = arith.constant 0 : index
    %c0_413 = arith.constant 0 : index
    %1479 = vector.load %arg1[%c7, %c0_412, %c0_413] : memref<8x2x32xf32, #tpu.memory_space<vmem>>, vector<1x2x32xf32>
    %1480 = vector.shape_cast %1479 : vector<1x2x32xf32> to vector<2x32xf32>
    %c7_414 = arith.constant 7 : index
    %c0_415 = arith.constant 0 : index
    %c0_416 = arith.constant 0 : index
    %1481 = vector.load %arg2[%c7_414, %c0_415, %c0_416] : memref<8x2x2xf32, #tpu.memory_space<vmem>>, vector<1x2x2xf32>
    %1482 = vector.shape_cast %1481 : vector<1x2x2xf32> to vector<2x2xf32>
    %c7_417 = arith.constant 7 : index
    %c0_418 = arith.constant 0 : index
    %c0_419 = arith.constant 0 : index
    %1483 = vector.load %arg3[%c7_417, %c0_418, %c0_419] : memref<8x2x2xf32, #tpu.memory_space<vmem>>, vector<1x2x2xf32>
    %1484 = vector.shape_cast %1483 : vector<1x2x2xf32> to vector<2x2xf32>
    %1485 = vector.extract_strided_slice %1484 {offsets = [0, 0], sizes = [2, 1], strides = [1, 1]} : vector<2x2xf32> to vector<2x1xf32>
    %1486 = vector.extract_strided_slice %1484 {offsets = [0, 1], sizes = [2, 1], strides = [1, 1]} : vector<2x2xf32> to vector<2x1xf32>
    %1487 = vector.extract_strided_slice %1482 {offsets = [0, 0], sizes = [2, 1], strides = [1, 1]} : vector<2x2xf32> to vector<2x1xf32>
    %1488 = vector.extract_strided_slice %1482 {offsets = [0, 1], sizes = [2, 1], strides = [1, 1]} : vector<2x2xf32> to vector<2x1xf32>
    %1489 = vector.broadcast %1485 : vector<2x1xf32> to vector<2x32xf32>
    %1490 = arith.mulf %1489, %1388 : vector<2x32xf32>
    %1491 = vector.broadcast %1486 : vector<2x1xf32> to vector<2x32xf32>
    %1492 = arith.mulf %1491, %1428 : vector<2x32xf32>
    %1493 = arith.addf %1490, %1492 : vector<2x32xf32>
    %1494 = arith.truncf %1480 : vector<2x32xf32> to vector<2x32xbf16>
    %cst_420 = arith.constant dense<0.000000e+00> : vector<2x96xf32>
    %1495 = tpu.matmul %1494, %4, %cst_420 {dimension_numbers = #tpu.dot_dimension_numbers<[1], [0], [0], [1], [0, 0, 1, 1], [], []>} : vector<2x32xbf16>, vector<32x96xbf16>, vector<2x96xf32> -> vector<2x96xf32>
    %1496 = arith.truncf %1493 : vector<2x32xf32> to vector<2x32xbf16>
    %cst_421 = arith.constant dense<0.000000e+00> : vector<2x96xf32>
    %1497 = tpu.matmul %1496, %5, %cst_421 {dimension_numbers = #tpu.dot_dimension_numbers<[1], [0], [0], [1], [0, 0, 1, 1], [], []>} : vector<2x32xbf16>, vector<32x96xbf16>, vector<2x96xf32> -> vector<2x96xf32>
    %1498 = arith.addf %1495, %1497 : vector<2x96xf32>
    %1499 = vector.broadcast %7 : vector<1x96xf32> to vector<2x96xf32>
    %1500 = arith.addf %1498, %1499 : vector<2x96xf32>
    %1501 = arith.truncf %1322 : vector<2x32xf32> to vector<2x32xbf16>
    %cst_422 = arith.constant dense<0.000000e+00> : vector<2x96xf32>
    %1502 = tpu.matmul %1501, %6, %cst_422 {dimension_numbers = #tpu.dot_dimension_numbers<[1], [0], [0], [1], [0, 0, 1, 1], [], []>} : vector<2x32xbf16>, vector<32x96xbf16>, vector<2x96xf32> -> vector<2x96xf32>
    %1503 = vector.broadcast %8 : vector<1x96xf32> to vector<2x96xf32>
    %1504 = arith.addf %1502, %1503 : vector<2x96xf32>
    %1505 = vector.extract_strided_slice %1500 {offsets = [0, 0], sizes = [2, 32], strides = [1, 1]} : vector<2x96xf32> to vector<2x32xf32>
    %1506 = vector.extract_strided_slice %1504 {offsets = [0, 0], sizes = [2, 32], strides = [1, 1]} : vector<2x96xf32> to vector<2x32xf32>
    %1507 = arith.addf %1505, %1506 : vector<2x32xf32>
    %1508 = arith.negf %1507 : vector<2x32xf32>
    %1509 = math.exp %1508 : vector<2x32xf32>
    %cst_423 = arith.constant 1.000000e+00 : f32
    %1510 = vector.broadcast %cst_423 : f32 to vector<2x32xf32>
    %1511 = arith.addf %1510, %1509 : vector<2x32xf32>
    %1512 = arith.divf %1510, %1511 : vector<2x32xf32>
    %1513 = vector.extract_strided_slice %1500 {offsets = [0, 32], sizes = [2, 32], strides = [1, 1]} : vector<2x96xf32> to vector<2x32xf32>
    %1514 = vector.extract_strided_slice %1504 {offsets = [0, 32], sizes = [2, 32], strides = [1, 1]} : vector<2x96xf32> to vector<2x32xf32>
    %1515 = arith.addf %1513, %1514 : vector<2x32xf32>
    %1516 = arith.negf %1515 : vector<2x32xf32>
    %1517 = math.exp %1516 : vector<2x32xf32>
    %cst_424 = arith.constant 1.000000e+00 : f32
    %1518 = vector.broadcast %cst_424 : f32 to vector<2x32xf32>
    %1519 = arith.addf %1518, %1517 : vector<2x32xf32>
    %1520 = arith.divf %1518, %1519 : vector<2x32xf32>
    %1521 = vector.extract_strided_slice %1500 {offsets = [0, 64], sizes = [2, 32], strides = [1, 1]} : vector<2x96xf32> to vector<2x32xf32>
    %1522 = vector.extract_strided_slice %1504 {offsets = [0, 64], sizes = [2, 32], strides = [1, 1]} : vector<2x96xf32> to vector<2x32xf32>
    %1523 = arith.mulf %1512, %1522 : vector<2x32xf32>
    %1524 = arith.addf %1521, %1523 : vector<2x32xf32>
    %1525 = math.tanh %1524 : vector<2x32xf32>
    %cst_425 = arith.constant 1.000000e+00 : f32
    %1526 = vector.broadcast %cst_425 : f32 to vector<2x32xf32>
    %1527 = arith.subf %1526, %1520 : vector<2x32xf32>
    %1528 = arith.mulf %1527, %1525 : vector<2x32xf32>
    %1529 = arith.mulf %1520, %1322 : vector<2x32xf32>
    %1530 = arith.addf %1528, %1529 : vector<2x32xf32>
    %c0_426 = arith.constant 0 : index
    %c0_427 = arith.constant 0 : index
    %c0_428 = arith.constant 0 : index
    %1531 = vector.load %arg22[%c0_426, %c0_427, %c0_428] : memref<8x2x1xf32, #tpu.memory_space<vmem>>, vector<8x2x1xf32>
    %1532 = tpu.iota {dimensions = array<i32: 0>} : vector<8x2x1xi32>
    %c7_i32 = arith.constant 7 : i32
    %1533 = vector.broadcast %c7_i32 : i32 to vector<8x2x1xi32>
    %1534 = arith.cmpi slt, %1532, %1533 : vector<8x2x1xi32>
    %cst_429 = arith.constant -1.000000e+30 : f32
    %1535 = vector.broadcast %cst_429 : f32 to vector<8x2x1xf32>
    %1536 = arith.select %1534, %1531, %1535 : vector<8x2x1xi1>, vector<8x2x1xf32>
    %cst_430 = arith.constant dense<0xFF800000> : vector<2x1xf32>
    %1537 = vector.multi_reduction <maximumf>, %1536, %cst_430 [0] : vector<8x2x1xf32> to vector<2x1xf32>
    %1538 = vector.shape_cast %1537 : vector<2x1xf32> to vector<1x2x1xf32>
    %1539 = vector.broadcast %1538 : vector<1x2x1xf32> to vector<8x2x1xf32>
    %1540 = arith.subf %1536, %1539 : vector<8x2x1xf32>
    %1541 = math.exp %1540 : vector<8x2x1xf32>
    %cst_431 = arith.constant dense<0.000000e+00> : vector<2x1xf32>
    %1542 = vector.multi_reduction <add>, %1541, %cst_431 [0] : vector<8x2x1xf32> to vector<2x1xf32>
    %1543 = vector.shape_cast %1542 : vector<2x1xf32> to vector<1x2x1xf32>
    %1544 = vector.broadcast %1543 : vector<1x2x1xf32> to vector<8x2x1xf32>
    %1545 = arith.divf %1541, %1544 : vector<8x2x1xf32>
    %cst_432 = arith.constant 0.000000e+00 : f32
    %1546 = vector.broadcast %cst_432 : f32 to vector<8x2x1xf32>
    %1547 = arith.select %1534, %1545, %1546 : vector<8x2x1xi1>, vector<8x2x1xf32>
    %c0_433 = arith.constant 0 : index
    %c0_434 = arith.constant 0 : index
    %c0_435 = arith.constant 0 : index
    %1548 = vector.load %arg21[%c0_433, %c0_434, %c0_435] : memref<8x2x32xf32, #tpu.memory_space<vmem>>, vector<8x2x32xf32>
    %1549 = vector.broadcast %1547 : vector<8x2x1xf32> to vector<8x2x32xf32>
    %1550 = arith.mulf %1549, %1548 : vector<8x2x32xf32>
    %cst_436 = arith.constant dense<0.000000e+00> : vector<2x32xf32>
    %1551 = vector.multi_reduction <add>, %1550, %cst_436 [0] : vector<8x2x32xf32> to vector<2x32xf32>
    %1552 = arith.truncf %1480 : vector<2x32xf32> to vector<2x32xbf16>
    %cst_437 = arith.constant dense<0.000000e+00> : vector<2x96xf32>
    %1553 = tpu.matmul %1552, %9, %cst_437 {dimension_numbers = #tpu.dot_dimension_numbers<[1], [0], [0], [1], [0, 0, 1, 1], [], []>} : vector<2x32xbf16>, vector<32x96xbf16>, vector<2x96xf32> -> vector<2x96xf32>
    %1554 = arith.truncf %1551 : vector<2x32xf32> to vector<2x32xbf16>
    %cst_438 = arith.constant dense<0.000000e+00> : vector<2x96xf32>
    %1555 = tpu.matmul %1554, %10, %cst_438 {dimension_numbers = #tpu.dot_dimension_numbers<[1], [0], [0], [1], [0, 0, 1, 1], [], []>} : vector<2x32xbf16>, vector<32x96xbf16>, vector<2x96xf32> -> vector<2x96xf32>
    %1556 = arith.addf %1553, %1555 : vector<2x96xf32>
    %1557 = vector.broadcast %12 : vector<1x96xf32> to vector<2x96xf32>
    %1558 = arith.addf %1556, %1557 : vector<2x96xf32>
    %cst_439 = arith.constant 0.000000e+00 : f32
    %1559 = vector.broadcast %cst_439 : f32 to vector<2x32xf32>
    %1560 = arith.truncf %1388 : vector<2x32xf32> to vector<2x32xbf16>
    %cst_440 = arith.constant dense<0.000000e+00> : vector<2x96xf32>
    %1561 = tpu.matmul %1560, %11, %cst_440 {dimension_numbers = #tpu.dot_dimension_numbers<[1], [0], [0], [1], [0, 0, 1, 1], [], []>} : vector<2x32xbf16>, vector<32x96xbf16>, vector<2x96xf32> -> vector<2x96xf32>
    %1562 = vector.broadcast %13 : vector<1x96xf32> to vector<2x96xf32>
    %1563 = arith.addf %1561, %1562 : vector<2x96xf32>
    %1564 = vector.extract_strided_slice %1558 {offsets = [0, 0], sizes = [2, 32], strides = [1, 1]} : vector<2x96xf32> to vector<2x32xf32>
    %1565 = vector.extract_strided_slice %1563 {offsets = [0, 0], sizes = [2, 32], strides = [1, 1]} : vector<2x96xf32> to vector<2x32xf32>
    %1566 = arith.addf %1564, %1565 : vector<2x32xf32>
    %1567 = arith.negf %1566 : vector<2x32xf32>
    %1568 = math.exp %1567 : vector<2x32xf32>
    %cst_441 = arith.constant 1.000000e+00 : f32
    %1569 = vector.broadcast %cst_441 : f32 to vector<2x32xf32>
    %1570 = arith.addf %1569, %1568 : vector<2x32xf32>
    %1571 = arith.divf %1569, %1570 : vector<2x32xf32>
    %1572 = vector.extract_strided_slice %1558 {offsets = [0, 32], sizes = [2, 32], strides = [1, 1]} : vector<2x96xf32> to vector<2x32xf32>
    %1573 = vector.extract_strided_slice %1563 {offsets = [0, 32], sizes = [2, 32], strides = [1, 1]} : vector<2x96xf32> to vector<2x32xf32>
    %1574 = arith.addf %1572, %1573 : vector<2x32xf32>
    %1575 = arith.negf %1574 : vector<2x32xf32>
    %1576 = math.exp %1575 : vector<2x32xf32>
    %cst_442 = arith.constant 1.000000e+00 : f32
    %1577 = vector.broadcast %cst_442 : f32 to vector<2x32xf32>
    %1578 = arith.addf %1577, %1576 : vector<2x32xf32>
    %1579 = arith.divf %1577, %1578 : vector<2x32xf32>
    %1580 = vector.extract_strided_slice %1558 {offsets = [0, 64], sizes = [2, 32], strides = [1, 1]} : vector<2x96xf32> to vector<2x32xf32>
    %1581 = vector.extract_strided_slice %1563 {offsets = [0, 64], sizes = [2, 32], strides = [1, 1]} : vector<2x96xf32> to vector<2x32xf32>
    %1582 = arith.mulf %1571, %1581 : vector<2x32xf32>
    %1583 = arith.addf %1580, %1582 : vector<2x32xf32>
    %1584 = math.tanh %1583 : vector<2x32xf32>
    %cst_443 = arith.constant 1.000000e+00 : f32
    %1585 = vector.broadcast %cst_443 : f32 to vector<2x32xf32>
    %1586 = arith.subf %1585, %1579 : vector<2x32xf32>
    %1587 = arith.mulf %1586, %1584 : vector<2x32xf32>
    %1588 = arith.mulf %1579, %1388 : vector<2x32xf32>
    %1589 = arith.addf %1587, %1588 : vector<2x32xf32>
    %cst_444 = arith.constant 1.000000e+00 : f32
    %1590 = vector.broadcast %cst_444 : f32 to vector<2x1xf32>
    %1591 = arith.subf %1590, %1487 : vector<2x1xf32>
    %1592 = vector.broadcast %1591 : vector<2x1xf32> to vector<2x32xf32>
    %1593 = arith.mulf %1388, %1592 : vector<2x32xf32>
    %1594 = vector.broadcast %1487 : vector<2x1xf32> to vector<2x32xf32>
    %1595 = arith.mulf %1589, %1594 : vector<2x32xf32>
    %1596 = arith.addf %1593, %1595 : vector<2x32xf32>
    %1597 = vector.broadcast %1485 : vector<2x1xf32> to vector<2x32xf32>
    %1598 = arith.mulf %1597, %1596 : vector<2x32xf32>
    %1599 = arith.addf %1559, %1598 : vector<2x32xf32>
    %1600 = arith.truncf %1428 : vector<2x32xf32> to vector<2x32xbf16>
    %cst_445 = arith.constant dense<0.000000e+00> : vector<2x96xf32>
    %1601 = tpu.matmul %1600, %11, %cst_445 {dimension_numbers = #tpu.dot_dimension_numbers<[1], [0], [0], [1], [0, 0, 1, 1], [], []>} : vector<2x32xbf16>, vector<32x96xbf16>, vector<2x96xf32> -> vector<2x96xf32>
    %1602 = vector.broadcast %13 : vector<1x96xf32> to vector<2x96xf32>
    %1603 = arith.addf %1601, %1602 : vector<2x96xf32>
    %1604 = vector.extract_strided_slice %1558 {offsets = [0, 0], sizes = [2, 32], strides = [1, 1]} : vector<2x96xf32> to vector<2x32xf32>
    %1605 = vector.extract_strided_slice %1603 {offsets = [0, 0], sizes = [2, 32], strides = [1, 1]} : vector<2x96xf32> to vector<2x32xf32>
    %1606 = arith.addf %1604, %1605 : vector<2x32xf32>
    %1607 = arith.negf %1606 : vector<2x32xf32>
    %1608 = math.exp %1607 : vector<2x32xf32>
    %cst_446 = arith.constant 1.000000e+00 : f32
    %1609 = vector.broadcast %cst_446 : f32 to vector<2x32xf32>
    %1610 = arith.addf %1609, %1608 : vector<2x32xf32>
    %1611 = arith.divf %1609, %1610 : vector<2x32xf32>
    %1612 = vector.extract_strided_slice %1558 {offsets = [0, 32], sizes = [2, 32], strides = [1, 1]} : vector<2x96xf32> to vector<2x32xf32>
    %1613 = vector.extract_strided_slice %1603 {offsets = [0, 32], sizes = [2, 32], strides = [1, 1]} : vector<2x96xf32> to vector<2x32xf32>
    %1614 = arith.addf %1612, %1613 : vector<2x32xf32>
    %1615 = arith.negf %1614 : vector<2x32xf32>
    %1616 = math.exp %1615 : vector<2x32xf32>
    %cst_447 = arith.constant 1.000000e+00 : f32
    %1617 = vector.broadcast %cst_447 : f32 to vector<2x32xf32>
    %1618 = arith.addf %1617, %1616 : vector<2x32xf32>
    %1619 = arith.divf %1617, %1618 : vector<2x32xf32>
    %1620 = vector.extract_strided_slice %1558 {offsets = [0, 64], sizes = [2, 32], strides = [1, 1]} : vector<2x96xf32> to vector<2x32xf32>
    %1621 = vector.extract_strided_slice %1603 {offsets = [0, 64], sizes = [2, 32], strides = [1, 1]} : vector<2x96xf32> to vector<2x32xf32>
    %1622 = arith.mulf %1611, %1621 : vector<2x32xf32>
    %1623 = arith.addf %1620, %1622 : vector<2x32xf32>
    %1624 = math.tanh %1623 : vector<2x32xf32>
    %cst_448 = arith.constant 1.000000e+00 : f32
    %1625 = vector.broadcast %cst_448 : f32 to vector<2x32xf32>
    %1626 = arith.subf %1625, %1619 : vector<2x32xf32>
    %1627 = arith.mulf %1626, %1624 : vector<2x32xf32>
    %1628 = arith.mulf %1619, %1428 : vector<2x32xf32>
    %1629 = arith.addf %1627, %1628 : vector<2x32xf32>
    %cst_449 = arith.constant 1.000000e+00 : f32
    %1630 = vector.broadcast %cst_449 : f32 to vector<2x1xf32>
    %1631 = arith.subf %1630, %1488 : vector<2x1xf32>
    %1632 = vector.broadcast %1631 : vector<2x1xf32> to vector<2x32xf32>
    %1633 = arith.mulf %1428, %1632 : vector<2x32xf32>
    %1634 = vector.broadcast %1488 : vector<2x1xf32> to vector<2x32xf32>
    %1635 = arith.mulf %1629, %1634 : vector<2x32xf32>
    %1636 = arith.addf %1633, %1635 : vector<2x32xf32>
    %1637 = vector.broadcast %1486 : vector<2x1xf32> to vector<2x32xf32>
    %1638 = arith.mulf %1637, %1636 : vector<2x32xf32>
    %1639 = arith.addf %1599, %1638 : vector<2x32xf32>
    %1640 = arith.truncf %1639 : vector<2x32xf32> to vector<2x32xbf16>
    %cst_450 = arith.constant dense<0.000000e+00> : vector<2x96xf32>
    %1641 = tpu.matmul %1640, %14, %cst_450 {dimension_numbers = #tpu.dot_dimension_numbers<[1], [0], [0], [1], [0, 0, 1, 1], [], []>} : vector<2x32xbf16>, vector<32x96xbf16>, vector<2x96xf32> -> vector<2x96xf32>
    %1642 = vector.broadcast %16 : vector<1x96xf32> to vector<2x96xf32>
    %1643 = arith.addf %1641, %1642 : vector<2x96xf32>
    %1644 = arith.truncf %1465 : vector<2x32xf32> to vector<2x32xbf16>
    %cst_451 = arith.constant dense<0.000000e+00> : vector<2x96xf32>
    %1645 = tpu.matmul %1644, %15, %cst_451 {dimension_numbers = #tpu.dot_dimension_numbers<[1], [0], [0], [1], [0, 0, 1, 1], [], []>} : vector<2x32xbf16>, vector<32x96xbf16>, vector<2x96xf32> -> vector<2x96xf32>
    %1646 = vector.broadcast %17 : vector<1x96xf32> to vector<2x96xf32>
    %1647 = arith.addf %1645, %1646 : vector<2x96xf32>
    %1648 = vector.extract_strided_slice %1643 {offsets = [0, 0], sizes = [2, 32], strides = [1, 1]} : vector<2x96xf32> to vector<2x32xf32>
    %1649 = vector.extract_strided_slice %1647 {offsets = [0, 0], sizes = [2, 32], strides = [1, 1]} : vector<2x96xf32> to vector<2x32xf32>
    %1650 = arith.addf %1648, %1649 : vector<2x32xf32>
    %1651 = arith.negf %1650 : vector<2x32xf32>
    %1652 = math.exp %1651 : vector<2x32xf32>
    %cst_452 = arith.constant 1.000000e+00 : f32
    %1653 = vector.broadcast %cst_452 : f32 to vector<2x32xf32>
    %1654 = arith.addf %1653, %1652 : vector<2x32xf32>
    %1655 = arith.divf %1653, %1654 : vector<2x32xf32>
    %1656 = vector.extract_strided_slice %1643 {offsets = [0, 32], sizes = [2, 32], strides = [1, 1]} : vector<2x96xf32> to vector<2x32xf32>
    %1657 = vector.extract_strided_slice %1647 {offsets = [0, 32], sizes = [2, 32], strides = [1, 1]} : vector<2x96xf32> to vector<2x32xf32>
    %1658 = arith.addf %1656, %1657 : vector<2x32xf32>
    %1659 = arith.negf %1658 : vector<2x32xf32>
    %1660 = math.exp %1659 : vector<2x32xf32>
    %cst_453 = arith.constant 1.000000e+00 : f32
    %1661 = vector.broadcast %cst_453 : f32 to vector<2x32xf32>
    %1662 = arith.addf %1661, %1660 : vector<2x32xf32>
    %1663 = arith.divf %1661, %1662 : vector<2x32xf32>
    %1664 = vector.extract_strided_slice %1643 {offsets = [0, 64], sizes = [2, 32], strides = [1, 1]} : vector<2x96xf32> to vector<2x32xf32>
    %1665 = vector.extract_strided_slice %1647 {offsets = [0, 64], sizes = [2, 32], strides = [1, 1]} : vector<2x96xf32> to vector<2x32xf32>
    %1666 = arith.mulf %1655, %1665 : vector<2x32xf32>
    %1667 = arith.addf %1664, %1666 : vector<2x32xf32>
    %1668 = math.tanh %1667 : vector<2x32xf32>
    %cst_454 = arith.constant 1.000000e+00 : f32
    %1669 = vector.broadcast %cst_454 : f32 to vector<2x32xf32>
    %1670 = arith.subf %1669, %1663 : vector<2x32xf32>
    %1671 = arith.mulf %1670, %1668 : vector<2x32xf32>
    %1672 = arith.mulf %1663, %1465 : vector<2x32xf32>
    %1673 = arith.addf %1671, %1672 : vector<2x32xf32>
    %c7_455 = arith.constant 7 : index
    %c0_456 = arith.constant 0 : index
    %c0_457 = arith.constant 0 : index
    %1674 = vector.load %arg21[%c7_455, %c0_456, %c0_457] : memref<8x2x32xf32, #tpu.memory_space<vmem>>, vector<1x2x32xf32>
    %1675 = vector.shape_cast %1674 : vector<1x2x32xf32> to vector<2x32xf32>
    %1676 = vector.shape_cast %1530 : vector<2x32xf32> to vector<1x2x32xf32>
    tpu.vector_store %arg21[%c7_455, %c0_456, %c0_457], %1676 {strides = array<i32>} : memref<8x2x32xf32, #tpu.memory_space<vmem>>, vector<1x2x32xf32>,
    %1677 = vector.broadcast %18 : vector<1x32xf32> to vector<2x32xf32>
    %1678 = arith.mulf %1530, %1677 : vector<2x32xf32>
    %cst_458 = arith.constant dense<0.000000e+00> : vector<2xf32>
    %1679 = vector.multi_reduction <add>, %1678, %cst_458 [1] : vector<2x32xf32> to vector<2xf32>
    %1680 = vector.shape_cast %1679 : vector<2xf32> to vector<2x1xf32>
    %c7_459 = arith.constant 7 : index
    %c0_460 = arith.constant 0 : index
    %c0_461 = arith.constant 0 : index
    %1681 = vector.load %arg22[%c7_459, %c0_460, %c0_461] : memref<8x2x1xf32, #tpu.memory_space<vmem>>, vector<1x2x1xf32>
    %1682 = vector.shape_cast %1681 : vector<1x2x1xf32> to vector<2x1xf32>
    %1683 = vector.shape_cast %1680 : vector<2x1xf32> to vector<1x2x1xf32>
    tpu.vector_store %arg22[%c7_459, %c0_460, %c0_461], %1683 {strides = array<i32>} : memref<8x2x1xf32, #tpu.memory_space<vmem>>, vector<1x2x1xf32>,
    %c7_462 = arith.constant 7 : index
    %c0_463 = arith.constant 0 : index
    %c0_464 = arith.constant 0 : index
    %1684 = vector.load %arg19[%c7_462, %c0_463, %c0_464] : memref<8x2x32xf32, #tpu.memory_space<vmem>>, vector<1x2x32xf32>
    %1685 = vector.shape_cast %1684 : vector<1x2x32xf32> to vector<2x32xf32>
    %1686 = vector.shape_cast %1673 : vector<2x32xf32> to vector<1x2x32xf32>
    tpu.vector_store %arg19[%c7_462, %c0_463, %c0_464], %1686 {strides = array<i32>} : memref<8x2x32xf32, #tpu.memory_space<vmem>>, vector<1x2x32xf32>,
    %c0_465 = arith.constant 0 : index
    %c0_466 = arith.constant 0 : index
    %c0_467 = arith.constant 0 : index
    %1687 = vector.load %arg22[%c0_465, %c0_466, %c0_467] : memref<8x2x1xf32, #tpu.memory_space<vmem>>, vector<8x2x1xf32>
    %1688 = vector.shape_cast %1687 : vector<8x2x1xf32> to vector<8x2xf32>
    %1689 = tpu.transpose %1688, [1, 0] : vector<8x2xf32> -> vector<2x8xf32>
    %cst_468 = arith.constant -1.000000e+30 : f32
    %1690 = vector.broadcast %cst_468 : f32 to vector<2x120xf32>
    %1691 = tpu.concatenate %1689, %1690 in 1 : vector<2x8xf32>, vector<2x120xf32> -> vector<2x128xf32>
    %1692 = vector.shape_cast %1691 : vector<2x128xf32> to vector<1x2x128xf32>
    %1693 = vector.shape_cast %1692 : vector<1x2x128xf32> to vector<1x2x128xf32>
    %1694 = vector.broadcast %1693 : vector<1x2x128xf32> to vector<8x2x128xf32>
    %1695 = tpu.iota {dimensions = array<i32: 2>} : vector<8x2x128xi32>
    %1696 = tpu.iota {dimensions = array<i32: 0>} : vector<8x2x128xi32>
    %1697 = arith.cmpi slt, %1695, %1696 : vector<8x2x128xi32>
    %cst_469 = arith.constant -1.000000e+30 : f32
    %1698 = vector.broadcast %cst_469 : f32 to vector<8x2x128xf32>
    %1699 = arith.select %1697, %1694, %1698 : vector<8x2x128xi1>, vector<8x2x128xf32>
    %cst_470 = arith.constant dense<0xFF800000> : vector<8x2xf32>
    %1700 = vector.multi_reduction <maximumf>, %1699, %cst_470 [2] : vector<8x2x128xf32> to vector<8x2xf32>
    %1701 = vector.shape_cast %1700 : vector<8x2xf32> to vector<8x2x1xf32>
    %1702 = vector.broadcast %1701 : vector<8x2x1xf32> to vector<8x2x128xf32>
    %1703 = arith.subf %1699, %1702 : vector<8x2x128xf32>
    %1704 = math.exp %1703 : vector<8x2x128xf32>
    %cst_471 = arith.constant dense<0.000000e+00> : vector<8x2xf32>
    %1705 = vector.multi_reduction <add>, %1704, %cst_471 [2] : vector<8x2x128xf32> to vector<8x2xf32>
    %1706 = vector.shape_cast %1705 : vector<8x2xf32> to vector<8x2x1xf32>
    %1707 = vector.broadcast %1706 : vector<8x2x1xf32> to vector<8x2x128xf32>
    %1708 = arith.divf %1704, %1707 : vector<8x2x128xf32>
    %cst_472 = arith.constant 0.000000e+00 : f32
    %1709 = vector.broadcast %cst_472 : f32 to vector<8x2x128xf32>
    %1710 = arith.select %1697, %1708, %1709 : vector<8x2x128xi1>, vector<8x2x128xf32>
    %c0_473 = arith.constant 0 : index
    %c0_474 = arith.constant 0 : index
    %c0_475 = arith.constant 0 : index
    %1711 = vector.load %arg20[%c0_473, %c0_474, %c0_475] : memref<8x2x128xf32, #tpu.memory_space<vmem>>, vector<8x2x128xf32>
    tpu.vector_store %arg20[%c0_473, %c0_474, %c0_475], %1710 {strides = array<i32>} : memref<8x2x128xf32, #tpu.memory_space<vmem>>, vector<8x2x128xf32>,
    return
  }
  func.func @transform_0(%arg0: i32) -> (i32, i32, i32) {
    %c0_i32 = arith.constant 0 : i32
    %c0_i32_0 = arith.constant 0 : i32
    %c0_i32_1 = arith.constant 0 : i32
    %c0_i32_2 = arith.constant 0 : i32
    return %c0_i32, %c0_i32_0, %c0_i32_1 : i32, i32, i32
  }
  func.func @transform_1(%arg0: i32) -> (i32, i32, i32) {
    %c0_i32 = arith.constant 0 : i32
    %c0_i32_0 = arith.constant 0 : i32
    %c0_i32_1 = arith.constant 0 : i32
    %c0_i32_2 = arith.constant 0 : i32
    return %c0_i32, %c0_i32_0, %c0_i32_1 : i32, i32, i32
  }
  func.func @transform_2(%arg0: i32) -> (i32, i32, i32) {
    %c0_i32 = arith.constant 0 : i32
    %c0_i32_0 = arith.constant 0 : i32
    %c0_i32_1 = arith.constant 0 : i32
    %c0_i32_2 = arith.constant 0 : i32
    return %c0_i32, %c0_i32_0, %c0_i32_1 : i32, i32, i32
  }
  func.func @transform_3(%arg0: i32) -> (i32, i32) {
    %c0_i32 = arith.constant 0 : i32
    %c0_i32_0 = arith.constant 0 : i32
    %c0_i32_1 = arith.constant 0 : i32
    return %c0_i32, %c0_i32_0 : i32, i32
  }
  func.func @transform_4(%arg0: i32) -> (i32, i32) {
    %c0_i32 = arith.constant 0 : i32
    %c0_i32_0 = arith.constant 0 : i32
    %c0_i32_1 = arith.constant 0 : i32
    return %c0_i32, %c0_i32_0 : i32, i32
  }
  func.func @transform_5(%arg0: i32) -> (i32, i32) {
    %c0_i32 = arith.constant 0 : i32
    %c0_i32_0 = arith.constant 0 : i32
    %c0_i32_1 = arith.constant 0 : i32
    return %c0_i32, %c0_i32_0 : i32, i32
  }
  func.func @transform_6(%arg0: i32) -> (i32, i32) {
    %c0_i32 = arith.constant 0 : i32
    %c0_i32_0 = arith.constant 0 : i32
    %c0_i32_1 = arith.constant 0 : i32
    return %c0_i32, %c0_i32_0 : i32, i32
  }
  func.func @transform_7(%arg0: i32) -> (i32, i32) {
    %c0_i32 = arith.constant 0 : i32
    %c0_i32_0 = arith.constant 0 : i32
    %c0_i32_1 = arith.constant 0 : i32
    return %c0_i32, %c0_i32_0 : i32, i32
  }
  func.func @transform_8(%arg0: i32) -> (i32, i32) {
    %c0_i32 = arith.constant 0 : i32
    %c0_i32_0 = arith.constant 0 : i32
    %c0_i32_1 = arith.constant 0 : i32
    return %c0_i32, %c0_i32_0 : i32, i32
  }
  func.func @transform_9(%arg0: i32) -> (i32, i32) {
    %c0_i32 = arith.constant 0 : i32
    %c0_i32_0 = arith.constant 0 : i32
    %c0_i32_1 = arith.constant 0 : i32
    return %c0_i32, %c0_i32_0 : i32, i32
  }
  func.func @transform_10(%arg0: i32) -> (i32, i32) {
    %c0_i32 = arith.constant 0 : i32
    %c0_i32_0 = arith.constant 0 : i32
    %c0_i32_1 = arith.constant 0 : i32
    return %c0_i32, %c0_i32_0 : i32, i32
  }
  func.func @transform_11(%arg0: i32) -> (i32, i32) {
    %c0_i32 = arith.constant 0 : i32
    %c0_i32_0 = arith.constant 0 : i32
    %c0_i32_1 = arith.constant 0 : i32
    return %c0_i32, %c0_i32_0 : i32, i32
  }
  func.func @transform_12(%arg0: i32) -> (i32, i32) {
    %c0_i32 = arith.constant 0 : i32
    %c0_i32_0 = arith.constant 0 : i32
    %c0_i32_1 = arith.constant 0 : i32
    return %c0_i32, %c0_i32_0 : i32, i32
  }
  func.func @transform_13(%arg0: i32) -> (i32, i32) {
    %c0_i32 = arith.constant 0 : i32
    %c0_i32_0 = arith.constant 0 : i32
    %c0_i32_1 = arith.constant 0 : i32
    return %c0_i32, %c0_i32_0 : i32, i32
  }
  func.func @transform_14(%arg0: i32) -> (i32, i32) {
    %c0_i32 = arith.constant 0 : i32
    %c0_i32_0 = arith.constant 0 : i32
    %c0_i32_1 = arith.constant 0 : i32
    return %c0_i32, %c0_i32_0 : i32, i32
  }
  func.func @transform_15(%arg0: i32) -> (i32, i32) {
    %c0_i32 = arith.constant 0 : i32
    %c0_i32_0 = arith.constant 0 : i32
    %c0_i32_1 = arith.constant 0 : i32
    return %c0_i32, %c0_i32_0 : i32, i32
  }
  func.func @transform_16(%arg0: i32) -> (i32, i32) {
    %c0_i32 = arith.constant 0 : i32
    %c0_i32_0 = arith.constant 0 : i32
    %c0_i32_1 = arith.constant 0 : i32
    return %c0_i32, %c0_i32_0 : i32, i32
  }
  func.func @transform_17(%arg0: i32) -> (i32, i32) {
    %c0_i32 = arith.constant 0 : i32
    %c0_i32_0 = arith.constant 0 : i32
    %c0_i32_1 = arith.constant 0 : i32
    return %c0_i32, %c0_i32_0 : i32, i32
  }
  func.func @transform_18(%arg0: i32) -> (i32, i32, i32) {
    %c0_i32 = arith.constant 0 : i32
    %c0_i32_0 = arith.constant 0 : i32
    %c0_i32_1 = arith.constant 0 : i32
    %c0_i32_2 = arith.constant 0 : i32
    return %c0_i32, %c0_i32_0, %c0_i32_1 : i32, i32, i32
  }
  func.func @transform_19(%arg0: i32) -> (i32, i32, i32) {
    %c0_i32 = arith.constant 0 : i32
    %c0_i32_0 = arith.constant 0 : i32
    %c0_i32_1 = arith.constant 0 : i32
    %c0_i32_2 = arith.constant 0 : i32
    return %c0_i32, %c0_i32_0, %c0_i32_1 : i32, i32, i32
  }
}

</mosaic_0001>

<bundles_post_ra>
// kernel: tpu_custom_call.1
= control target key start
LH: loop header
LB: loop body
LE: loop exit
PB: predicated region body
PF: predicated region fallthrough
CT: control target
= control target key end

     0   :  { %s10059_s0 = inlined_call_operand.vmem [shape: f32[8,2,32], index: 0, kind: input, shape index: {}]   ;;  %s10060_s1 = inlined_call_operand.vmem [shape: f32[8,2,2], index: 1, kind: input, shape index: {}]   ;;  %s10061_s2 = inlined_call_operand.vmem [shape: f32[8,2,2], index: 2, kind: input, shape index: {}]   ;;  %s10062_s3 = inlined_call_operand.vmem [shape: bf16[32,96], index: 3, kind: input, shape index: {}]   ;;  %s10063_s4 = inlined_call_operand.vmem [shape: bf16[32,96], index: 4, kind: input, shape index: {}]   ;;  %s10064_s5 = inlined_call_operand.hbm [shape: bf16[32,96], index: 5, kind: input, shape index: {}]   ;;  %s10065_s6 = inlined_call_operand.vmem [shape: f32[1,96], index: 6, kind: input, shape index: {}]   ;;  %s10066_s7 = inlined_call_operand.hbm [shape: f32[1,96], index: 7, kind: input, shape index: {}]   ;;  %s10067_s8 = inlined_call_operand.vmem [shape: bf16[32,96], index: 8, kind: input, shape index: {}]   ;;  %s10068_s9 = inlined_call_operand.hbm [shape: bf16[32,96], index: 9, kind: input, shape index: {}]   ;;  %s10069_s10 = inlined_call_operand.hbm [shape: bf16[32,96], index: 10, kind: input, shape index: {}]   ;;  %s10070_s11 = inlined_call_operand.hbm [shape: f32[1,96], index: 11, kind: input, shape index: {}]   ;;  %s10071_s12 = inlined_call_operand.vmem [shape: f32[1,96], index: 12, kind: input, shape index: {}]   ;;  %s10072_s13 = inlined_call_operand.vmem [shape: bf16[32,96], index: 13, kind: input, shape index: {}]   ;;  %s10073_s14 = inlined_call_operand.hbm [shape: bf16[32,96], index: 14, kind: input, shape index: {}]   ;;  %s10074_s15 = inlined_call_operand.vmem [shape: f32[1,96], index: 15, kind: input, shape index: {}]   ;;  %s10075_s16 = inlined_call_operand.vmem [shape: f32[1,96], index: 16, kind: input, shape index: {}]   ;;  %s10076_s17 = inlined_call_operand.vmem [shape: f32[1,32], index: 17, kind: input, shape index: {}]   ;;  %s10077_s18 = inlined_call_operand.hbm [shape: f32[8,2,32], index: 18, kind: output, shape index: {0}]   ;;  %s10078_s19 = inlined_call_operand.hbm [shape: f32[8,2,128], index: 19, kind: output, shape index: {1}]  }
   0x1   :  { %10083 = sst [smem:[#allocation24_spill]] %s10059_s0 }
   0x2   :  { %10084 = sst [smem:[#allocation25_spill]] %s10060_s1 }
   0x3   :  { %10085 = sst [smem:[#allocation26_spill]] %s10061_s2 }
   0x4   :  { %10086 = sst [smem:[#allocation27_spill]] %s10062_s3 }
   0x5   :  { %25 = vsyncpa [#allocation5], 0 }
   0x6   :  { %26 = vsyncpa [#allocation8], 0 }
   0x7   :  { %27 = vsyncpa [#allocation11], 0 }
   0x8   :  { %28 = vsyncpa [#allocation14], 0 }
   0x9   :  { %29 = vsyncpa [#allocation6], 0 }
   0xa   :  { %30 = vsyncpa [#allocation17], 0  ;;  %s8007_s0 = smov [#allocation7]   ;;  %s7819_s1 = scalar_lea.hbm %s10066_s7, 16 }
   0xb   :  { %s61_s30 = sshll.u32 %s8007_s0, 4  ;;  %p7820_p0 = scmp.ne.s32.totalorder %s10066_s7, %s7819_s1  ;;  %s62_s30 = int_to_ptr.vmem [resolvable:$true] %s61_s30 }
   0xc   :  { %p7823_p1 = scmp.lt.u32.totalorder %s7819_s1, %s10066_s7 }
   0xe   :  { %p7825_p2 = pnand %p7823_p1, %p7820_p0 }
  0x10   :  { %7828 = shalt.err (!%p7825_p2)
}
  0x11   :  { %s7829_s25 = scalar_lea.vmem %s62_s30, 16  ;;  %s7833_s3 = scalar_lea.vmem %s62_s30, 32 }
  0x12   :  { %p7830_p3 = scmp.ne.s32.totalorder %s62_s30, %s7829_s25  ;;  %p7834_p4 = scmp.lt.s32.totalorder %s62_s30, %s62_s30 }
  0x13   :  { %p7835_p5 = scmp.lt.s32.totalorder %s7833_s3, %s7829_s25 }
  0x15   :  { %p7836_p6 = por %p7835_p5, %p7834_p4 }
  0x17   :  { %p7837_p7 = pnand %p7836_p6, %p7830_p3 }
  0x19   :  { %7840 = shalt.err (!%p7837_p7)
}
  0x1a   :  { %64 = dma.hbm_to_vmem [thread:$0]  %s10066_s7, 16, %s62_s30, [#allocation8]  }
  0x1b   :  { %s8008_s28 = smov [#allocation10]   ;;  %s8009_s0 = smov [#allocation4]  }
  0x1c   :  { %s84_s29 = sshll.u32 %s8008_s28, 4  ;;  %s46_s20 = sshll.u32 %s8009_s0, 4  ;;  %s85_s29 = int_to_ptr.vmem [resolvable:$true] %s84_s29  ;;  %s47_s20 = int_to_ptr.vmem [resolvable:$true] %s46_s20 }
  0x1d   :  { %s7841_s22 = scalar_lea.hbm %s10069_s10, 256 }
  0x1e   :  { %p7842_p8 = scmp.ne.s32.totalorder %s10069_s10, %s7841_s22  ;;  %p7845_p9 = scmp.lt.u32.totalorder %s7841_s22, %s10069_s10 }
  0x20   :  { %p7847_p10 = pnand %p7845_p9, %p7842_p8 }
  0x22   :  { %7850 = shalt.err (!%p7847_p10)
}
  0x23   :  { %s7851_s7 = scalar_lea.vmem %s85_s29, 256  ;;  %p7856_p12 = scmp.lt.s32.totalorder %s85_s29, %s85_s29 }
  0x24   :  { %p7852_p11 = scmp.ne.s32.totalorder %s85_s29, %s7851_s7  ;;  %p7857_p13 = scmp.lt.s32.totalorder %s7851_s7, %s7851_s7 }
  0x26   :  { %p7858_p0 = por %p7857_p13, %p7856_p12 }
  0x28   :  { %p7859_p1 = pnand %p7858_p0, %p7852_p11 }
  0x2a   :  { %7862 = shalt.err (!%p7859_p1)
}
  0x2b   :  { %s8010_s30 = smov 64   ;;  %s8011_s3 = smov 4  }
  0x2c   :  { %90 = dma.hbm_to_vmem [thread:$0]  %s10069_s10, 256, %s85_s29, [#allocation11], %s8010_s30, %s8010_s30, %s8011_s3  }
  0x2d   :  { %s7863_s21 = scalar_lea.hbm %s10064_s5, 256 }
  0x2e   :  { %p7864_p2 = scmp.ne.s32.totalorder %s10064_s5, %s7863_s21  ;;  %p7867_p3 = scmp.lt.u32.totalorder %s7863_s21, %s10064_s5 }
  0x30   :  { %p7869_p4 = pnand %p7867_p3, %p7864_p2 }
  0x32   :  { %7872 = shalt.err (!%p7869_p4)
}
  0x33   :  { %s7873_s24 = scalar_lea.vmem %s47_s20, 256  ;;  %p7878_p6 = scmp.lt.s32.totalorder %s47_s20, %s47_s20 }
  0x34   :  { %p7874_p5 = scmp.ne.s32.totalorder %s47_s20, %s7873_s24  ;;  %p7879_p7 = scmp.lt.s32.totalorder %s7873_s24, %s7873_s24 }
  0x36   :  { %p7880_p8 = por %p7879_p7, %p7878_p6 }
  0x38   :  { %p7881_p9 = pnand %p7880_p8, %p7874_p5 }
  0x3a   :  { %7884 = shalt.err (!%p7881_p9)
}
  0x3b   :  { %52 = dma.hbm_to_vmem [thread:$0]  %s10064_s5, 256, %s47_s20, [#allocation5], %s8010_s30, %s8010_s30, %s8011_s3  }
  0x3c   :  { %s8012_s25 = smov [#allocation9]   ;;  %s8013_s26 = smov [#allocation12]  }
  0x3d   :  { %s72_s7 = sshll.u32 %s8012_s25, 4  ;;  %s97_s27 = sshll.u32 %s8013_s26, 4  ;;  %s73_s7 = int_to_ptr.vmem [resolvable:$true] %s72_s7  ;;  %s98_s27 = int_to_ptr.vmem [resolvable:$true] %s97_s27 }
  0x3e   :  { %s7885_s21 = scalar_lea.hbm %s10068_s9, 256 }
  0x3f   :  { %p7886_p10 = scmp.ne.s32.totalorder %s10068_s9, %s7885_s21  ;;  %p7889_p11 = scmp.lt.u32.totalorder %s7885_s21, %s10068_s9 }
  0x41   :  { %p7891_p12 = pnand %p7889_p11, %p7886_p10 }
  0x43   :  { %7894 = shalt.err (!%p7891_p12)
}
  0x44   :  { %s7895_s5 = scalar_lea.vmem %s73_s7, 256  ;;  %p7900_p0 = scmp.lt.s32.totalorder %s73_s7, %s73_s7 }
  0x45   :  { %p7896_p13 = scmp.ne.s32.totalorder %s73_s7, %s7895_s5  ;;  %p7901_p1 = scmp.lt.s32.totalorder %s7895_s5, %s7895_s5 }
  0x47   :  { %p7902_p2 = por %p7901_p1, %p7900_p0 }
  0x49   :  { %p7903_p3 = pnand %p7902_p2, %p7896_p13 }
  0x4b   :  { %7906 = shalt.err (!%p7903_p3)
}
  0x4c   :  { %78 = dma.hbm_to_vmem [thread:$0]  %s10068_s9, 256, %s73_s7, [#allocation8], %s8010_s30, %s8010_s30, %s8011_s3  }
  0x4d   :  { %s7907_s25 = scalar_lea.hbm %s10070_s11, 16 }
  0x4e   :  { %p7908_p4 = scmp.ne.s32.totalorder %s10070_s11, %s7907_s25  ;;  %p7911_p5 = scmp.lt.u32.totalorder %s7907_s25, %s10070_s11 }
  0x50   :  { %p7913_p6 = pnand %p7911_p5, %p7908_p4 }
  0x52   :  { %7916 = shalt.err (!%p7913_p6)
}
  0x53   :  { %s7917_s1 = scalar_lea.vmem %s98_s27, 16  ;;  %s7921_s22 = scalar_lea.vmem %s98_s27, 32 }
  0x54   :  { %p7918_p7 = scmp.ne.s32.totalorder %s98_s27, %s7917_s1  ;;  %p7922_p8 = scmp.lt.s32.totalorder %s98_s27, %s98_s27 }
  0x55   :  { %p7923_p9 = scmp.lt.s32.totalorder %s7921_s22, %s7917_s1 }
  0x57   :  { %p7924_p10 = por %p7923_p9, %p7922_p8 }
  0x59   :  { %p7925_p11 = pnand %p7924_p10, %p7918_p7 }
  0x5b   :  { %7928 = shalt.err (!%p7925_p11)
}
  0x5c   :  { %100 = dma.hbm_to_vmem [thread:$0]  %s10070_s11, 16, %s98_s27, [#allocation11]  }
  0x5d   :  { %s8014_s2 = smov [#allocation13]   ;;  %s7929_s24 = scalar_lea.hbm %s10073_s14, 256 }
  0x5e   :  { %s110_s23 = sshll.u32 %s8014_s2, 4  ;;  %p7930_p12 = scmp.ne.s32.totalorder %s10073_s14, %s7929_s24  ;;  %s111_s23 = int_to_ptr.vmem [resolvable:$true] %s110_s23 }
  0x5f   :  { %p7933_p13 = scmp.lt.u32.totalorder %s7929_s24, %s10073_s14 }
  0x61   :  { %p7935_p0 = pnand %p7933_p13, %p7930_p12 }
  0x63   :  { %7938 = shalt.err (!%p7935_p0)
}
  0x64   :  { %s7939_s28 = scalar_lea.vmem %s111_s23, 256  ;;  %p7944_p2 = scmp.lt.s32.totalorder %s111_s23, %s111_s23 }
  0x65   :  { %p7940_p1 = scmp.ne.s32.totalorder %s111_s23, %s7939_s28  ;;  %p7945_p3 = scmp.lt.s32.totalorder %s7939_s28, %s7939_s28 }
  0x67   :  { %p7946_p4 = por %p7945_p3, %p7944_p2 }
  0x69   :  { %p7947_p5 = pnand %p7946_p4, %p7940_p1 }
  0x6b   :  { %7950 = shalt.err (!%p7947_p5)
}
  0x6c   :  { %116 = dma.hbm_to_vmem [thread:$0]  %s10073_s14, 256, %s111_s23, [#allocation14], %s8010_s30, %s8010_s30, %s8011_s3  }
  0x6d   :  { %7995 = dma.done.wait [#allocation5], 256  }
  0x6e   :  { %7996 = vsyncadd [#allocation5], 4294967040 }
  0x6f   :  { %7997 = dma.done.wait [#allocation8], 272  }
  0x70   :  { %7998 = vsyncadd [#allocation8], 4294967024 }
  0x71   :  { %7999 = dma.done.wait [#allocation11], 272  }
  0x72   :  { %8000 = vsyncadd [#allocation11], 4294967024 }
  0x73   :  { %8001 = dma.done.wait [#allocation14], 256  }
  0x74   :  { %8002 = vsyncadd [#allocation14], 4294967040  ;;  %v8015_v0 = vmov 0   ;;  %s10087_s1 = sld [smem:[#allocation26_spill]]  ;;  %v8217_v2 = vld [vmem:[%s10063_s4] sm:$0xff]   ;;  %v8016_v3 = vmov 0.0  }
  0x75   :  { %7406 = vset.pattern.permute.xlu0 %v8015_v0  ;;  %7408 = vset.pattern.permute.xlu1 %v8015_v0  ;;  %6420 = vst [vmem:[#allocation16] sm:$0x3] %v8016_v3  ;;  %s10088_s7 = sld [smem:[#allocation27_spill]]  ;;  %v8017_v5 = vmov 1   ;;  %v8235_v6 = vld [vmem:[%s10063_s4 + $0x8] sm:$0xff]   ;;  %s10089_s29 = sld [smem:[#allocation24_spill]] }
  0x76   :  { %6820 = vmatprep.subr.bf16.mxu0 %v8016_v3  ;;  %6828 = vmatprep.subr.bf16.mxu1 %v8016_v3  ;;  %vm228_vm0 = vcmask 261120   ;;  %vm8018_vm1 = vmmov 0   ;;  %v8266_v15 = vld [vmem:[#allocation4] sm:$0xff]   ;;  %v8270_v17 = vld [vmem:[#allocation4 + $0x8] sm:$0xff]   ;;  %vm142_vm2 = vcmask 254976   ;;  %v8303_v42 = vld [vmem:[#allocation9] sm:$0xff]  }
  0x77   :  { %6821 = vmatpush3.bf16.msra.mxu0 %v8217_v2  ;;  %6824 = vmatprep.mubr.msk.bf16.mxu0 %vm8018_vm1, %v8016_v3  ;;  %143 = vst.msk [vmem:[#allocation2] sm:$0x3] %vm142_vm2, %v8016_v3  ;;  %144 = vst.msk [vmem:[#allocation2 + $0x2] sm:$0x3] %vm142_vm2, %v8016_v3  ;;  %v8307_v48 = vld [vmem:[#allocation9 + $0x8] sm:$0xff]   ;;  %v8321_v55 = vld [vmem:[%s10067_s8 + $0x8] sm:$0xff]  }
  0x78   :  { %6822 = vmatprep.subr.bf16.mxu0 %v8016_v3  ;;  %6832 = vmatprep.mubr.msk.bf16.mxu1 %vm8018_vm1, %v8016_v3  ;;  %145 = vst.msk [vmem:[#allocation2 + $0x4] sm:$0x3] %vm142_vm2, %v8016_v3  ;;  %146 = vst.msk [vmem:[#allocation2 + $0x6] sm:$0x3] %vm142_vm2, %v8016_v3  ;;  %v8312_v51 = vld [vmem:[%s10067_s8] sm:$0xff]   ;;  %v8332_v59 = vld [vmem:[#allocation10 + $0x8] sm:$0xff]  }
  0x79   :  { %147 = vst.msk [vmem:[#allocation2 + $0x8] sm:$0x3] %vm142_vm2, %v8016_v3  ;;  %148 = vst.msk [vmem:[#allocation2 + $0xa] sm:$0x3] %vm142_vm2, %v8016_v3  ;;  %v8326_v57 = vld [vmem:[#allocation10] sm:$0xff]   ;;  %s8019_s14 = smov 32  }
  0x7a   :  { %v201_v1 = vld [vmem:[%s10087_s1] sm:$0x3]  ;;  %149 = vst.msk [vmem:[#allocation2 + $0xc] sm:$0x3] %vm142_vm2, %v8016_v3  ;;  %150 = vst.msk [vmem:[#allocation2 + $0xe] sm:$0x3] %vm142_vm2, %v8016_v3 }
  0x7b   :  { %204 = vperm.xlu0 %7406, %v201_v1   ;;  %v8226_v4 = vld [vmem:[%s10088_s7] sm:$0xff]   ;;  %v8240_v7 = vld [vmem:[%s10088_s7 + $0x8] sm:$0xff]   ;;  %6823 = vmatpush3.bf16.msra.mxu0 %v8235_v6  ;;  %s10090_s5 = sld [smem:[#allocation25_spill]]  ;;  %vm151_vm3 = vcmask 1024   ;;  %vm6258_vm4 = vcmask 1041409   ;;  %vm6260_vm5 = vcmask 1042434  }
  0x7c   :  { %6829 = vmatpush3.bf16.msra.mxu1 %v8226_v4  ;;  %v199_v8 = vld [vmem:[%s10089_s29] sm:$0x3]  ;;  %6836 = vmatprep.subr.bf16.mxu0 %v8016_v3  ;;  %152 = vst.msk [vmem:[#allocation3] sm:$0x3] %vm151_vm3, %v8016_v3  ;;  %153 = vst.msk [vmem:[#allocation3 + $0x2] sm:$0x3] %vm151_vm3, %v8016_v3 }
  0x7d   :  { %6830 = vmatprep.subr.bf16.mxu1 %v8016_v3  ;;  %v8248_v9 = vpack.c.bf16 %v199_v8, %v199_v8  ;;  %v8347_v8 = vld [vmem:[#allocation7] ss:$0 sm:$0xff]  ;;  %154 = vst.msk [vmem:[#allocation3 + $0x4] sm:$0x3] %vm151_vm3, %v8016_v3  ;;  %155 = vst.msk [vmem:[#allocation3 + $0x6] sm:$0x3] %vm151_vm3, %v8016_v3 }
  0x7e   :  { %v508_v22 = vld [vmem:[#allocation2] sm:$0x3]  ;;  %v509_v23 = vld [vmem:[#allocation2 + $0x2] sm:$0x3]  ;;  %156 = vst.msk [vmem:[#allocation3 + $0x8] sm:$0x3] %vm151_vm3, %v8016_v3 }
  0x7f   :  { %7407 = vset.pattern.permute.xlu0 %v8017_v5  ;;  %v556_v24 = vmul.f32 0.0, %v508_v22  ;;  %v557_v25 = vmul.f32 0.0, %v509_v23  ;;  %v510_v26 = vld [vmem:[#allocation2 + $0x4] sm:$0x3]  ;;  %v511_v30 = vld [vmem:[#allocation2 + $0x6] sm:$0x3] }
  0x80   :  { %209 = vperm.xlu0 %7407, %v201_v1   ;;  %6831 = vmatpush3.bf16.msra.mxu1 %v8240_v7  ;;  %v558_v27 = vmul.f32 0.0, %v510_v26  ;;  %v559_v32 = vmul.f32 0.0, %v511_v30  ;;  %v512_v34 = vld [vmem:[#allocation2 + $0x8] sm:$0x3]  ;;  %v513_v38 = vld [vmem:[#allocation2 + $0xa] sm:$0x3] }
  0x81   :  { %6844 = vmatprep.subr.bf16.mxu1 %v8016_v3  ;;  %v564_v28 = vsel %vm142_vm2, %v556_v24, 0.0  ;;  %v565_v29 = vsel %vm142_vm2, %v557_v25, 0.0  ;;  %v560_v36 = vmul.f32 0.0, %v512_v34  ;;  %v561_v40 = vmul.f32 0.0, %v513_v38  ;;  %v514_v43 = vld [vmem:[#allocation2 + $0xc] sm:$0x3] }
  0x82   :  { %v566_v31 = vadd.f32 %v565_v29, %v564_v28  ;;  %v567_v33 = vsel %vm142_vm2, %v558_v27, 0.0  ;;  %v569_v37 = vsel %vm142_vm2, %v559_v32, 0.0  ;;  %v515_v45 = vld [vmem:[#allocation2 + $0xe] sm:$0x3]  ;;  %v562_v46 = vmul.f32 0.0, %v514_v43 }
  0x83   :  { %6833 = vmatmul.mubr.msk.bf16.vlgmr.msra.gmra.mrb[0].mxu1 %vm228_vm0, %v8248_v9  ;;  %v571_v41 = vsel %vm142_vm2, %v560_v36, 0.0  ;;  %v573_v47 = vsel %vm142_vm2, %v561_v40, 0.0  ;;  %v563_v49 = vmul.f32 0.0, %v515_v45  ;;  %157 = vst.msk [vmem:[#allocation3 + $0xa] sm:$0x3] %vm151_vm3, %v8016_v3  ;;  %vm6262_vm6 = vcmask 1043459  }
  0x84   :  { %7412 = vset.pattern.permute.xlu0 %v8015_v0  ;;  %6848 = vmatprep.mubr.msk.bf16.mxu1 %vm8018_vm1, %v8016_v3  ;;  %v568_v35 = vadd.f32 %v567_v33, %v566_v31  ;;  %v575_v52 = vsel %vm142_vm2, %v562_v46, 0.0  ;;  %v6494_v31 = vld [vmem:[%s10076_s17] ss:$0 sm:$0xff]  ;;  %s8020_s17 = smov 96   ;;  %158 = vst.msk [vmem:[#allocation3 + $0xc] sm:$0x3] %vm151_vm3, %v8016_v3 }
  0x85   :  { %6845 = vmatpush3.bf16.msra.mxu1 %v8303_v42  ;;  %v577_v54 = vsel %vm142_vm2, %v563_v49, 0.0  ;;  %966 = vrot.lane.b32.xlu0 %v6494_v31, %s8019_s14  ;;  %159 = vst.msk [vmem:[#allocation3 + $0xe] sm:$0x3] %vm151_vm3, %v8016_v3  ;;  %vm6264_vm7 = vcmask 1044484   ;;  %vm6266_vm8 = vcmask 1045509   ;;  %vm6268_vm9 = vcmask 1046534  }
  0x86   :  { %v570_v39 = vadd.f32 %v569_v37, %v568_v35  ;;  %6846 = vmatprep.subr.bf16.mxu1 %v8016_v3  ;;  %vm6270_vm10 = vcmask 1047559   ;;  %vm6305_vm11 = vcmask 64512   ;;  %vm6323_vm14 = vcmask 1041408  }
  0x88   :  { %v572_v44 = vadd.f32 %v571_v41, %v570_v39 }
  0x89   :  { %6847 = vmatpush3.bf16.msra.mxu1 %v8307_v48 }
  0x8a   :  { %v574_v50 = vadd.f32 %v573_v47, %v572_v44  ;;  %6860 = vmatprep.subr.bf16.mxu1 %v8016_v3  ;;  %v8365_v44 = vld [vmem:[%s10071_s12] ss:$0 sm:$0xff]  ;;  %v8370_v47 = vld [vmem:[#allocation12] ss:$0 sm:$0xff] }
  0x8c   :  { %v576_v53 = vadd.f32 %v575_v52, %v574_v50 }
  0x8e   :  { %v578_v56 = vadd.f32 %v577_v54, %v576_v53 }
  0x90   :  { %v579_v58 = vpack.c.bf16 %v578_v56, %v578_v56 }
  0x92   :  { %6849 = vmatmul.mubr.msk.bf16.vlgmr.msra.gmra.mrb[4].mxu1 %vm228_vm0, %v579_v58 }
  0x93   :  { %6861 = vmatpush3.bf16.msra.mxu1 %v8326_v57  ;;  %6864 = vmatprep.mubr.msk.bf16.mxu1 %vm8018_vm1, %v8016_v3 }
  0x94   :  { %6862 = vmatprep.subr.bf16.mxu1 %v8016_v3 }
  0x97   :  { %6863 = vmatpush3.bf16.msra.mxu1 %v8332_v59 }
  0x98   :  { %6876 = vmatprep.subr.bf16.mxu1 %v8016_v3 }
  0x9a   :  { %6865 = vmatmul.mubr.bf16.vlgmr.msra.gmra.mrb[8].mxu1 %v8015_v0 }
  0x9b   :  { %6880 = vmatprep.mubr.msk.bf16.mxu1 %vm8018_vm1, %v8016_v3 }
  0xfa   :  { %v8260_v10 = vpop.permute.xlu0 %204 }
  0xfb   :  { %v207_v12 = vmul.f32 0.0, %v8260_v10 }
  0xff   :  { %v8262_v11 = vpop.permute.xlu0 %209 }
 0x100   :  { %v212_v13 = vmul.f32 0.0, %v8262_v11 }
 0x102   :  { %v213_v14 = vadd.f32 %v212_v13, %v207_v12 }
 0x104   :  { %v215_v16 = vpack.c.bf16 %v213_v14, %v213_v14 }
 0x106   :  { %6825 = vmatmul.mubr.msk.bf16.vlgmr.msra.gmra.mrb[0].mxu0 %vm228_vm0, %v215_v16 }
 0x107   :  { %6837 = vmatpush3.bf16.msra.mxu0 %v8266_v15  ;;  %6840 = vmatprep.mubr.msk.bf16.mxu0 %vm8018_vm1, %v8016_v3 }
 0x108   :  { %6838 = vmatprep.subr.bf16.mxu0 %v8016_v3 }
 0x10b   :  { %6839 = vmatpush3.bf16.msra.mxu0 %v8270_v17 }
 0x10c   :  { %6852 = vmatprep.subr.bf16.mxu0 %v8016_v3 }
 0x10e   :  { %6841 = vmatmul.mubr.bf16.vlgmr.msra.gmra.mrb[4].mxu0 %v8015_v0 }
 0x10f   :  { %6856 = vmatprep.mubr.msk.bf16.mxu0 %vm8018_vm1, %v8016_v3  ;;  %6853 = vmatpush3.bf16.msra.mxu0 %v8312_v51 }
 0x110   :  { %6854 = vmatprep.subr.bf16.mxu0 %v8016_v3 }
 0x113   :  { %6855 = vmatpush3.bf16.msra.mxu0 %v8321_v55 }
 0x114   :  { %6868 = vmatprep.subr.bf16.mxu0 %v8016_v3 }
 0x116   :  { %6857 = vmatmul.mubr.msk.bf16.vlgmr.msra.gmra.mrb[8].mxu0 %vm228_vm0, %v8248_v9 }
 0x117   :  { %6872 = vmatprep.mubr.msk.bf16.mxu0 %vm8018_vm1, %v8016_v3 }
 0x156   :  { %v8280_v18 = vpop.f32.mrb[0].mxu1 }
 0x157   :  { %v6834_v19 = vpop.f32.mrb[1].mxu1 }
 0x158   :  { %v324_v20 = vpop.f32.mrb[2].mxu1  ;;  %v8354_v19 = vld [vmem:[%s10065_s6] ss:$0 sm:$0xff] }
 0x159   :  { %v6835_v21 = vpop.f32.mrb[3].mxu1 }
 0x165   :  { %v629_v24 = vpop.f32.mrb[4].mxu1 }
 0x166   :  { %v6850_v25 = vpop.f32.mrb[5].mxu1 }
 0x167   :  { %v632_v26 = vpop.f32.mrb[6].mxu1  ;;  %v8417_v25 = vld [vmem:[%s10072_s13] sm:$0xff]  }
 0x168   :  { %v6851_v27 = vpop.f32.mrb[7].mxu1  ;;  %v8419_v26 = vld [vmem:[#allocation13] sm:$0xff]   ;;  %6869 = vmatpush3.bf16.msra.mxu0 %v8417_v25 }
 0x169   :  { %6877 = vmatpush3.bf16.msra.mxu1 %v8419_v26  ;;  %v8426_v27 = vld [vmem:[%s10072_s13 + $0x8] sm:$0xff]   ;;  %6870 = vmatprep.subr.bf16.mxu0 %v8016_v3 }
 0x16a   :  { %6878 = vmatprep.subr.bf16.mxu1 %v8016_v3 }
 0x16c   :  { %6871 = vmatpush3.bf16.msra.mxu0 %v8426_v27 }
 0x16d   :  { %v746_v32 = vpop.f32.mrb[8].mxu1  ;;  %6884 = vmatprep.subr.bf16.mxu0 %v8016_v3 }
 0x16e   :  { %v6866_v33 = vpop.f32.mrb[9].mxu1  ;;  %v747_v46 = vadd.f32 %v8365_v44, %v746_v32 }
 0x16f   :  { %v749_v34 = vpop.f32.mrb[10].mxu1 }
 0x170   :  { %v6867_v36 = vpop.f32.mrb[11].mxu1 }
 0x1d9   :  { %v266_v60 = vpop.f32.mrb[0].mxu0 }
 0x1da   :  { %v322_v61 = vadd.f32 %v8280_v18, %v266_v60  ;;  %v6826_v62 = vpop.f32.mrb[1].mxu0 }
 0x1db   :  { %v269_v63 = vpop.f32.mrb[2].mxu0  ;;  %v8373_v62 = vpop.permute.xlu0 %966 }
 0x1dc   :  { %v6827_v1 = vpop.f32.mrb[3].mxu0  ;;  %v333_v18 = vadd.f32 %v8354_v19, %v322_v61 }
 0x1e1   :  { %v389_v9 = vpop.f32.mrb[4].mxu0 }
 0x1e2   :  { %v390_v12 = vadd.f32 %v8347_v8, %v389_v9  ;;  %v6842_v13 = vpop.f32.mrb[5].mxu0 }
 0x1e3   :  { %v392_v14 = vpop.f32.mrb[6].mxu0 }
 0x1e4   :  { %403 = vrot.lane.b32.xlu1 %v390_v12, %s8010_s30  ;;  %v6843_v16 = vpop.f32.mrb[7].mxu0  ;;  %v395_v20 = vadd.f32 %v390_v12, %v333_v18  ;;  %v200_v12 = vld [vmem:[%s10090_s5] sm:$0x3] }
 0x1e5   :  { %v778_v16 = vsub.f32 1.0, %v200_v12 }
 0x1e6   :  { %v6474_v21 = vmul.f32 -1.442695, %v395_v20 }
 0x1e8   :  { %7455 = vpow2.f32 %v6474_v21 }
 0x1e9   :  { %v681_v35 = vpop.f32.mrb[8].mxu0 }
 0x1ea   :  { %v682_v37 = vadd.f32 %v681_v35, %v629_v24  ;;  %v6858_v38 = vpop.f32.mrb[9].mxu0  ;;  %v6497_v24 = vld [vmem:[%s10087_s1 + $0x2] sm:$0x3] }
 0x1eb   :  { %v684_v39 = vpop.f32.mrb[10].mxu0 }
 0x1ec   :  { %v6859_v40 = vpop.f32.mrb[11].mxu0  ;;  %v693_v49 = vadd.f32 %v8370_v47, %v682_v37 }
 0x1ee   :  { %v752_v50 = vadd.f32 %v747_v46, %v693_v49 }
 0x1f0   :  { %v6485_v52 = vmul.f32 -1.442695, %v752_v50  ;;  %v6495_v50 = vld [vmem:[%s10089_s29 + $0x2] sm:$0x3] }
 0x1f2   :  { %v7456_v22 = vpop.eup %7455 }
 0x1f3   :  { %v399_v23 = vadd.f32 1.0, %v7456_v22 }
 0x1f5   :  { %7457 = vrcp.f32 %v399_v23 }
 0x1ff   :  { %v7458_v28 = vpop.eup %7457 }
 0x200   :  { %v413_v56 = vsub.f32 1.0, %v7458_v28  ;;  %v419_v60 = vmul.f32 0.0, %v7458_v28 }
 0x256   :  { %v404_v29 = vpop.permute.xlu1 %403 }
 0x257   :  { %v406_v30 = vmul.f32 %v7458_v28, %v404_v29  ;;  %v8428_v28 = vld [vmem:[#allocation13 + $0x8] sm:$0xff]  }
 0x258   :  { %6879 = vmatpush3.bf16.msra.mxu1 %v8428_v28 }
 0x259   :  { %408 = vrot.lane.b32.xlu1 %v406_v30, %s8010_s30  ;;  %6892 = vmatprep.subr.bf16.mxu1 %v8016_v3 }
 0x25b   :  { %6881 = vmatmul.mubr.bf16.vlgmr.msra.gmra.mrb[12].mxu1 %v8015_v0 }
 0x25c   :  { %6893 = vmatpush3.bf16.msra.mxu1 %v8226_v4  ;;  %6896 = vmatprep.mubr.msk.bf16.mxu1 %vm8018_vm1, %v8016_v3 }
 0x25d   :  { %6894 = vmatprep.subr.bf16.mxu1 %v8016_v3 }
 0x260   :  { %6895 = vmatpush3.bf16.msra.mxu1 %v8240_v7 }
 0x261   :  { %6908 = vmatprep.subr.bf16.mxu1 %v8016_v3 }
 0x2cb   :  { %v409_v41 = vpop.permute.xlu1 %408 }
 0x2cc   :  { %v411_v43 = vadd.f32 %v409_v41, %v333_v18 }
 0x2ce   :  { %7459 = vtanh.f32 %v411_v43 }
 0x2cf   :  { %7461 = vpow2.f32 %v6485_v52 }
 0x2d8   :  { %v7460_v45 = vpop.eup %7459 }
 0x2d9   :  { %415 = vrot.lane.b32.xlu1 %v7460_v45, %s8020_s17  ;;  %v7462_v53 = vpop.eup %7461 }
 0x2da   :  { %v756_v54 = vadd.f32 1.0, %v7462_v53  ;;  %v8457_v53 = vpack.c.bf16 %v6495_v50, %v6495_v50  ;;  %v1256_v50 = vld [vmem:[#allocation2 + $0x6] sm:$0x3] }
 0x2dc   :  { %7463 = vrcp.f32 %v756_v54  ;;  %6897 = vmatmul.mubr.msk.bf16.vlgmr.msra.gmra.mrb[16].mxu1 %vm228_vm0, %v8457_v53 }
 0x2dd   :  { %760 = vrot.lane.b32.xlu1 %v747_v46, %s8010_s30  ;;  %6909 = vmatpush3.bf16.msra.mxu1 %v8303_v42 }
 0x2de   :  { %6912 = vmatprep.mubr.msk.bf16.mxu1 %vm8018_vm1, %v8016_v3  ;;  %6910 = vmatprep.subr.bf16.mxu1 %v8016_v3 }
 0x2e1   :  { %6911 = vmatpush3.bf16.msra.mxu1 %v8307_v48 }
 0x2e2   :  { %6924 = vmatprep.subr.bf16.mxu1 %v8016_v3 }
 0x2e6   :  { %v8377_v1 = vpop.eup %7463 }
 0x2e7   :  { %v770_v33 = vsub.f32 1.0, %v8377_v1  ;;  %v776_v35 = vmul.f32 0.0, %v8377_v1 }
 0x34b   :  { %v416_v58 = vpop.permute.xlu1 %415 }
 0x34c   :  { %v418_v61 = vmul.f32 %v416_v58, %v413_v56 }
 0x34e   :  { %v8375_v63 = vadd.f32 %v419_v60, %v418_v61 }
 0x34f   :  { %v761_v9 = vpop.permute.xlu1 %760 }
 0x350   :  { %v969_v13 = vmul.f32 %v8373_v62, %v8375_v63  ;;  %v763_v14 = vmul.f32 %v8377_v1, %v761_v9 }
 0x352   :  { %971 = vrot.lane.b32.xlu0 %v969_v13, %s8020_s17  ;;  %765 = vrot.lane.b32.xlu1 %v763_v14, %s8010_s30 }
 0x356   :  { %781 = vperm.xlu1 %7408, %v778_v16  }
 0x35a   :  { %787 = vperm.xlu1 %7408, %v200_v12  }
 0x35e   :  { %7409 = vset.pattern.permute.xlu1 %v8017_v5 }
 0x35f   :  { %795 = vperm.xlu1 %7409, %v778_v16   ;;  %v1093_v16 = vpack.c.bf16 %v8375_v63, %v8375_v63 }
 0x363   :  { %800 = vperm.xlu1 %7409, %v200_v12  }
 0x367   :  { %7410 = vset.pattern.permute.xlu1 %v8015_v0 }
 0x3c4   :  { %v972_v18 = vpop.permute.xlu0 %971  ;;  %v766_v20 = vpop.permute.xlu1 %765 }
 0x3c5   :  { %v768_v21 = vadd.f32 %v766_v20, %v693_v49  ;;  %v974_v22 = vsel %vm142_vm2, %v972_v18, 0.0 }
 0x3c6   :  { %975 = vadd.xlane.f32.xlu0 %v974_v22 }
 0x3c7   :  { %7465 = vtanh.f32 %v768_v21 }
 0x3d1   :  { %v7466_v23 = vpop.eup %7465 }
 0x3d2   :  { %772 = vrot.lane.b32.xlu1 %v7466_v23, %s8020_s17 }
 0x3d5   :  { %v782_v29 = vpop.permute.xlu1 %781 }
 0x3d6   :  { %991 = vperm.xlu1 %7410, %v6497_v24   ;;  %v784_v4 = vmul.f32 0.0, %v782_v29 }
 0x3d9   :  { %v788_v30 = vpop.permute.xlu1 %787 }
 0x3da   :  { %7411 = vset.pattern.permute.xlu1 %v8017_v5 }
 0x3db   :  { %996 = vperm.xlu1 %7411, %v6497_v24  }
 0x3de   :  { %v796_v31 = vpop.permute.xlu1 %795 }
 0x3df   :  { %957 = vrot.lane.b32.xlu1 %v8375_v63, %s8020_s17  ;;  %v798_v37 = vmul.f32 0.0, %v796_v31 }
 0x3e0   :  { %7413 = vset.pattern.permute.xlu1 %v8015_v0 }
 0x3e2   :  { %v801_v32 = vpop.permute.xlu1 %800 }
 0x444   :  { %v773_v34 = vpop.permute.xlu1 %772 }
 0x445   :  { %v775_v36 = vmul.f32 %v773_v34, %v770_v33 }
 0x447   :  { %v777_v38 = vadd.f32 %v776_v35, %v775_v36 }
 0x449   :  { %v790_v39 = vmul.f32 %v788_v30, %v777_v38  ;;  %v803_v40 = vmul.f32 %v801_v32, %v777_v38 }
 0x44b   :  { %v8445_v41 = vadd.f32 %v790_v39, %v784_v4  ;;  %v8447_v7 = vadd.f32 %v803_v40, %v798_v37 }
 0x44d   :  { %v792_v43 = vmul.f32 %v8445_v41, %v8260_v10  ;;  %v805_v45 = vmul.f32 %v8447_v7, %v8262_v11  ;;  %v8021_v11 = vmov -inf   ;;  %v1409_v23 = vpack.c.bf16 %v8445_v41, %v8445_v41 }
 0x44e   :  { %v8471_v56 = vsel %vm151_vm3, -1e+30, %v8021_v11  ;;  %v1498_v24 = vpack.c.bf16 %v8447_v7, %v8447_v7 }
 0x44f   :  { %v806_v46 = vadd.f32 %v805_v45, %v792_v43 }
 0x451   :  { %v807_v49 = vpack.c.bf16 %v806_v46, %v806_v46  ;;  %v1255_v46 = vld [vmem:[#allocation2 + $0x4] sm:$0x3] }
 0x453   :  { %v976_v52 = vpop.xlane.xlu0 %975  ;;  %815 = vrot.lane.b32.xlu1 %v807_v49, %s8020_s17 }
 0x454   :  { %977 = vst.msk [vmem:[#allocation3] sm:$0x3] %vm151_vm3, %v976_v52  ;;  %v1303_v52 = vmul.f32 0.0, %v1255_v46 }
 0x455   :  { %v8460_v54 = vpop.permute.xlu1 %991 }
 0x456   :  { %v994_v58 = vmul.f32 %v8460_v54, %v8445_v41 }
 0x45a   :  { %v8468_v10 = vpop.permute.xlu1 %996 }
 0x45b   :  { %v999_v60 = vmul.f32 %v8468_v10, %v8447_v7  ;;  %v1166_v42 = vld [vmem:[#allocation3] sm:$0x3] }
 0x45c   :  { %v1182_v61 = vsel %vm151_vm3, %v1166_v42, -inf }
 0x45d   :  { %v1000_v1 = vadd.f32 %v999_v60, %v994_v58  ;;  %v1187_v9 = vmax.f32 %v1182_v61, %v8471_v56  ;;  %v1257_v58 = vld [vmem:[#allocation2 + $0x8] sm:$0x3] }
 0x45e   :  { %v958_v12 = vpop.permute.xlu1 %957 }
 0x45f   :  { %960 = vst.msk [vmem:[#allocation2] sm:$0x3] %vm142_vm2, %v958_v12  ;;  %v1002_v13 = vpack.c.bf16 %v1000_v1, %v1000_v1  ;;  %v1194_v48 = vmax.f32 %v1187_v9, %v8471_v56  ;;  %v1258_v1 = vld [vmem:[#allocation2 + $0xa] sm:$0x3]  ;;  %v1305_v9 = vmul.f32 0.0, %v1257_v58 }
 0x461   :  { %1004 = vrot.lane.b32.xlu1 %v1002_v13, %s8020_s17  ;;  %v1196_v14 = vmax.f32 %v1194_v48, %v8471_v56  ;;  %v1312_v13 = vsel %vm142_vm2, %v1303_v52, 0.0 }
 0x463   :  { %v1197_v18 = vsub.f32 %v1166_v42, %v1196_v14  ;;  %v1198_v20 = vsub.f32 -1e+30, %v1196_v14  ;;  %v1304_v42 = vmul.f32 0.0, %v1256_v50  ;;  %v1259_v14 = vld [vmem:[#allocation2 + $0xc] sm:$0x3] }
 0x465   :  { %1095 = vrot.lane.b32.xlu1 %v1093_v16, %s8020_s17  ;;  %v1205_v21 = vmul.f32 1.442695, %v1197_v18  ;;  %v1207_v22 = vmul.f32 1.442695, %v1198_v20  ;;  %v1306_v16 = vmul.f32 0.0, %v1258_v1  ;;  %v1314_v18 = vsel %vm142_vm2, %v1304_v42, 0.0 }
 0x466   :  { %v1253_v11 = vld [vmem:[#allocation2] sm:$0x3] }
 0x467   :  { %7467 = vpow2.f32 %v1205_v21  ;;  %v1260_v21 = vld [vmem:[#allocation2 + $0xe] sm:$0x3] }
 0x468   :  { %7469 = vpow2.f32 %v1207_v22  ;;  %v1316_v22 = vsel %vm142_vm2, %v1305_v9, 0.0 }
 0x469   :  { %1411 = vrot.lane.b32.xlu1 %v1409_v23, %s8020_s17  ;;  %v1307_v23 = vmul.f32 0.0, %v1259_v14 }
 0x46d   :  { %1500 = vrot.lane.b32.xlu1 %v1498_v24, %s8020_s17 }
 0x471   :  { %v7468_v29 = vpop.eup %7467 }
 0x472   :  { %v7470_v30 = vpop.eup %7469  ;;  %v1221_v31 = vsel %vm151_vm3, %v7468_v29, 0.0 }
 0x473   :  { %v1222_v32 = vsel %vm151_vm3, %v7470_v30, 0.0  ;;  %v1308_v30 = vmul.f32 0.0, %v1260_v21 }
 0x474   :  { %v1223_v33 = vadd.f32 %v1222_v32, %v1221_v31 }
 0x476   :  { %v1225_v34 = vadd.f32 %v1223_v33, %v1222_v32 }
 0x478   :  { %v1227_v35 = vadd.f32 %v1225_v34, %v1222_v32  ;;  %v8539_v34 = vpop.f32.mrb[12].mxu1 }
 0x47a   :  { %v1229_v36 = vadd.f32 %v1227_v35, %v1222_v32  ;;  %v1322_v35 = vsel %vm142_vm2, %v1308_v30, 0.0 }
 0x47c   :  { %v1231_v4 = vadd.f32 %v1229_v36, %v1222_v32  ;;  %v6882_v36 = vpop.f32.mrb[13].mxu1 }
 0x47e   :  { %v1233_v37 = vadd.f32 %v1231_v4, %v1222_v32 }
 0x480   :  { %v1235_v38 = vadd.f32 %v1233_v37, %v1222_v32  ;;  %v1320_v32 = vsel %vm142_vm2, %v1307_v23, 0.0  ;;  %v927_v37 = vpop.f32.mrb[14].mxu1 }
 0x482   :  { %7471 = vrcp.f32 %v1235_v38  ;;  %v6883_v38 = vpop.f32.mrb[15].mxu1 }
 0x483   :  { %v8565_v38 = vld [vmem:[%s10075_s16] ss:$0 sm:$0xff] }
 0x48c   :  { %v7472_v39 = vpop.eup %7471 }
 0x48d   :  { %v1237_v40 = vmul.f32 %v7472_v39, %v7468_v29  ;;  %v1318_v29 = vsel %vm142_vm2, %v1306_v16, 0.0 }
 0x48f   :  { %1263 = vperm.xlu0 %7412, %v1237_v40  }
 0x4c5   :  { %v816_v43 = vpop.permute.xlu1 %815 }
 0x4c6   :  { %6873 = vmatmul.mubr.msk.bf16.vlgmr.msra.gmra.mrb[12].mxu0 %vm228_vm0, %v816_v43  ;;  %v1086_v43 = vpop.f32.mrb[16].mxu1 }
 0x4c7   :  { %6885 = vmatpush3.bf16.msra.mxu0 %v8217_v2  ;;  %6888 = vmatprep.mubr.msk.bf16.mxu0 %vm8018_vm1, %v8016_v3 }
 0x4c8   :  { %6886 = vmatprep.subr.bf16.mxu0 %v8016_v3 }
 0x4cb   :  { %6887 = vmatpush3.bf16.msra.mxu0 %v8235_v6 }
 0x4cc   :  { %6900 = vmatprep.subr.bf16.mxu0 %v8016_v3 }
 0x4d3   :  { %v1005_v45 = vpop.permute.xlu1 %1004 }
 0x4d4   :  { %6889 = vmatmul.mubr.msk.bf16.vlgmr.msra.gmra.mrb[16].mxu0 %vm228_vm0, %v1005_v45  ;;  %v6898_v45 = vpop.f32.mrb[17].mxu1 }
 0x4d5   :  { %6901 = vmatpush3.bf16.msra.mxu0 %v8266_v15  ;;  %6904 = vmatprep.mubr.msk.bf16.mxu0 %vm8018_vm1, %v8016_v3 }
 0x4d6   :  { %6902 = vmatprep.subr.bf16.mxu0 %v8016_v3 }
 0x4d7   :  { %v1096_v2 = vpop.permute.xlu1 %1095 }
 0x4d9   :  { %6903 = vmatpush3.bf16.msra.mxu0 %v8270_v17  ;;  %v1254_v17 = vld [vmem:[#allocation2 + $0x2] sm:$0x3] }
 0x4da   :  { %6916 = vmatprep.subr.bf16.mxu0 %v8016_v3  ;;  %v1302_v49 = vmul.f32 0.0, %v1254_v17 }
 0x4db   :  { %v1412_v6 = vpop.permute.xlu1 %1411 }
 0x4dc   :  { %6905 = vmatmul.mubr.msk.bf16.vlgmr.msra.gmra.mrb[20].mxu0 %vm228_vm0, %v1096_v2  ;;  %v1310_v61 = vsel %vm142_vm2, %v1302_v49, 0.0  ;;  %v1089_v2 = vpop.f32.mrb[18].mxu1 }
 0x4dd   :  { %6917 = vmatpush3.bf16.msra.mxu0 %v8312_v51  ;;  %6920 = vmatprep.mubr.msk.bf16.mxu0 %vm8018_vm1, %v8016_v3 }
 0x4de   :  { %6918 = vmatprep.subr.bf16.mxu0 %v8016_v3 }
 0x4df   :  { %v1501_v15 = vpop.permute.xlu1 %1500 }
 0x4e1   :  { %6919 = vmatpush3.bf16.msra.mxu0 %v8321_v55 }
 0x4e2   :  { %6932 = vmatprep.subr.bf16.mxu0 %v8016_v3 }
 0x4e4   :  { %6921 = vmatmul.mubr.msk.bf16.vlgmr.msra.gmra.mrb[24].mxu0 %vm228_vm0, %v8457_v53 }
 0x4e5   :  { %6933 = vmatpush3.bf16.msra.mxu0 %v8326_v57  ;;  %6936 = vmatprep.mubr.msk.bf16.mxu0 %vm8018_vm1, %v8016_v3 }
 0x4e6   :  { %6934 = vmatprep.subr.bf16.mxu0 %v8016_v3 }
 0x4e9   :  { %6935 = vmatpush3.bf16.msra.mxu0 %v8332_v59 }
 0x4ea   :  { %6948 = vmatprep.subr.bf16.mxu0 %v8016_v3 }
 0x4ec   :  { %6937 = vmatmul.mubr.msk.bf16.vlgmr.msra.gmra.mrb[28].mxu0 %vm228_vm0, %v1501_v15  ;;  %v6899_v15 = vpop.f32.mrb[19].mxu1 }
 0x4ed   :  { %6949 = vmatpush3.bf16.msra.mxu0 %v8419_v26  ;;  %6952 = vmatprep.mubr.msk.bf16.mxu0 %vm8018_vm1, %v8016_v3 }
 0x4ee   :  { %6950 = vmatprep.subr.bf16.mxu0 %v8016_v3 }
 0x4f1   :  { %6951 = vmatpush3.bf16.msra.mxu0 %v8428_v28 }
 0x4f2   :  { %6964 = vmatprep.subr.bf16.mxu0 %v8016_v3 }
 0x50e   :  { %v1264_v53 = vpop.permute.xlu0 %1263 }
 0x50f   :  { %v1301_v60 = vmul.f32 %v1264_v53, %v1253_v11 }
 0x511   :  { %v1309_v12 = vsel %vm142_vm2, %v1301_v60, 0.0 }
 0x512   :  { %v1311_v48 = vadd.f32 %v1310_v61, %v1309_v12 }
 0x514   :  { %v1313_v20 = vadd.f32 %v1312_v13, %v1311_v48 }
 0x516   :  { %v1315_v24 = vadd.f32 %v1314_v18, %v1313_v20 }
 0x518   :  { %v1317_v31 = vadd.f32 %v1316_v22, %v1315_v24 }
 0x51a   :  { %v1319_v33 = vadd.f32 %v1318_v29, %v1317_v31 }
 0x51c   :  { %v1321_v4 = vadd.f32 %v1320_v32, %v1319_v33 }
 0x51e   :  { %v1323_v39 = vadd.f32 %v1322_v35, %v1321_v4 }
 0x520   :  { %v1324_v40 = vpack.c.bf16 %v1323_v39, %v1323_v39 }
 0x522   :  { %6913 = vmatmul.mubr.msk.bf16.vlgmr.msra.gmra.mrb[20].mxu1 %vm228_vm0, %v1324_v40  ;;  %v925_v40 = vadd.f32 %v8565_v38, %v8539_v34  ;;  %v8579_v34 = vld [vmem:[%s10074_s15] ss:$0 sm:$0xff] }
 0x523   :  { %6925 = vmatpush3.bf16.msra.mxu1 %v8326_v57  ;;  %6928 = vmatprep.mubr.msk.bf16.mxu1 %vm8018_vm1, %v8016_v3 }
 0x524   :  { %6926 = vmatprep.subr.bf16.mxu1 %v8016_v3 }
 0x527   :  { %6927 = vmatpush3.bf16.msra.mxu1 %v8332_v59 }
 0x528   :  { %6940 = vmatprep.subr.bf16.mxu1 %v8016_v3 }
 0x52a   :  { %6929 = vmatmul.mubr.msk.bf16.vlgmr.msra.gmra.mrb[24].mxu1 %vm228_vm0, %v1412_v6 }
 0x52b   :  { %6941 = vmatpush3.bf16.msra.mxu1 %v8417_v25  ;;  %6944 = vmatprep.mubr.msk.bf16.mxu1 %vm8018_vm1, %v8016_v3 }
 0x52c   :  { %6942 = vmatprep.subr.bf16.mxu1 %v8016_v3 }
 0x52f   :  { %6943 = vmatpush3.bf16.msra.mxu1 %v8426_v27 }
 0x530   :  { %6956 = vmatprep.subr.bf16.mxu1 %v8016_v3 }
 0x599   :  { %v866_v17 = vpop.f32.mrb[12].mxu0 }
 0x59a   :  { %v6874_v46 = vpop.f32.mrb[13].mxu0 }
 0x59b   :  { %v869_v49 = vpop.f32.mrb[14].mxu0 }
 0x59c   :  { %v6875_v50 = vpop.f32.mrb[15].mxu0  ;;  %v867_v49 = vadd.f32 %v8579_v34, %v866_v17 }
 0x5a7   :  { %v1043_v52 = vpop.f32.mrb[16].mxu0 }
 0x5a8   :  { %v1087_v53 = vadd.f32 %v1086_v43, %v1043_v52  ;;  %v6890_v6 = vpop.f32.mrb[17].mxu0 }
 0x5a9   :  { %v1046_v11 = vpop.f32.mrb[18].mxu0 }
 0x5aa   :  { %v6891_v58 = vpop.f32.mrb[19].mxu0  ;;  %v1092_v33 = vadd.f32 %v8354_v19, %v1087_v53  ;;  %v930_v53 = vadd.f32 %v925_v40, %v867_v49 }
 0x5ac   :  { %v6493_v11 = vmul.f32 -1.442695, %v930_v53 }
 0x5af   :  { %v1134_v60 = vpop.f32.mrb[20].mxu0 }
 0x5b0   :  { %v1135_v42 = vadd.f32 %v8347_v8, %v1134_v60  ;;  %v6906_v61 = vpop.f32.mrb[21].mxu0 }
 0x5b1   :  { %v1137_v1 = vpop.f32.mrb[22].mxu0 }
 0x5b2   :  { %1148 = vrot.lane.b32.xlu1 %v1135_v42, %s8010_s30  ;;  %v6907_v9 = vpop.f32.mrb[23].mxu0  ;;  %v1140_v4 = vadd.f32 %v1135_v42, %v1092_v33 }
 0x5b4   :  { %v6501_v39 = vmul.f32 -1.442695, %v1140_v4 }
 0x5b6   :  { %7473 = vpow2.f32 %v6501_v39 }
 0x5b7   :  { %v1402_v12 = vpop.f32.mrb[24].mxu0 }
 0x5b8   :  { %v6922_v13 = vpop.f32.mrb[25].mxu0 }
 0x5b9   :  { %v1405_v48 = vpop.f32.mrb[26].mxu0 }
 0x5ba   :  { %v6923_v14 = vpop.f32.mrb[27].mxu0 }
 0x5bf   :  { %v1539_v16 = vpop.f32.mrb[28].mxu0 }
 0x5c0   :  { %v6938_v18 = vpop.f32.mrb[29].mxu0  ;;  %v1540_v37 = vadd.f32 %v8365_v44, %v1539_v16  ;;  %v7474_v19 = vpop.eup %7473 }
 0x5c1   :  { %v1542_v20 = vpop.f32.mrb[30].mxu0  ;;  %v1144_v43 = vadd.f32 1.0, %v7474_v19 }
 0x5c2   :  { %v6939_v21 = vpop.f32.mrb[31].mxu0  ;;  %v6496_v20 = vld [vmem:[%s10090_s5 + $0x2] sm:$0x3] }
 0x5c3   :  { %7475 = vrcp.f32 %v1144_v43 }
 0x5cd   :  { %v8571_v45 = vpop.eup %7475 }
 0x5ce   :  { %v1164_v43 = vmul.f32 %v8571_v45, %v8375_v63 }
 0x5f5   :  { %v1362_v22 = vpop.f32.mrb[20].mxu1 }
 0x5f6   :  { %v1403_v23 = vadd.f32 %v1402_v12, %v1362_v22  ;;  %v6914_v24 = vpop.f32.mrb[21].mxu1  ;;  %v1482_v22 = vsub.f32 1.0, %v6496_v20 }
 0x5f7   :  { %v1365_v29 = vpop.f32.mrb[22].mxu1 }
 0x5f8   :  { %v6915_v30 = vpop.f32.mrb[23].mxu1  ;;  %v1408_v15 = vadd.f32 %v8370_v47, %v1403_v23 }
 0x5f9   :  { %v6513_v30 = vld [vmem:[%s10087_s1 + $0x4] sm:$0x3] }
 0x5fa   :  { %v1545_v50 = vadd.f32 %v1540_v37, %v1408_v15 }
 0x5fc   :  { %v6507_v6 = vmul.f32 -1.442695, %v1545_v50 }
 0x5fd   :  { %v1450_v31 = vpop.f32.mrb[24].mxu1 }
 0x5fe   :  { %v1451_v8 = vadd.f32 %v8365_v44, %v1450_v31  ;;  %v6930_v32 = vpop.f32.mrb[25].mxu1 }
 0x5ff   :  { %v1453_v35 = vpop.f32.mrb[26].mxu1 }
 0x600   :  { %1464 = vrot.lane.b32.xlu1 %v1451_v8, %s8010_s30  ;;  %v6931_v36 = vpop.f32.mrb[27].mxu1  ;;  %v1456_v46 = vadd.f32 %v1451_v8, %v1408_v15 }
 0x602   :  { %v6505_v52 = vmul.f32 -1.442695, %v1456_v46 }
 0x604   :  { %1553 = vrot.lane.b32.xlu1 %v1540_v37, %s8010_s30  ;;  %7477 = vpow2.f32 %v6505_v52 }
 0x605   :  { %7479 = vpow2.f32 %v6507_v6 }
 0x606   :  { %7481 = vpow2.f32 %v6493_v11 }
 0x608   :  { %938 = vrot.lane.b32.xlu1 %v925_v40, %s8010_s30  ;;  %v1158_v40 = vsub.f32 1.0, %v8571_v45 }
 0x60e   :  { %v7478_v58 = vpop.eup %7477 }
 0x60f   :  { %v1460_v60 = vadd.f32 1.0, %v7478_v58  ;;  %v7480_v42 = vpop.eup %7479 }
 0x610   :  { %v1549_v47 = vadd.f32 1.0, %v7480_v42  ;;  %v7482_v61 = vpop.eup %7481 }
 0x611   :  { %7483 = vrcp.f32 %v1460_v60  ;;  %v934_v1 = vadd.f32 1.0, %v7482_v61 }
 0x612   :  { %7485 = vrcp.f32 %v1549_v47 }
 0x613   :  { %7487 = vrcp.f32 %v934_v1 }
 0x61b   :  { %v7484_v9 = vpop.eup %7483 }
 0x61c   :  { %v7486_v13 = vpop.eup %7485  ;;  %v1474_v50 = vsub.f32 1.0, %v7484_v9  ;;  %v1480_v53 = vmul.f32 %v7484_v9, %v8445_v41 }
 0x61d   :  { %v8584_v16 = vpop.eup %7487  ;;  %v1563_v58 = vsub.f32 1.0, %v7486_v13 }
 0x624   :  { %v1149_v44 = vpop.permute.xlu1 %1148 }
 0x625   :  { %v1151_v2 = vmul.f32 %v8571_v45, %v1149_v44  ;;  %v1569_v45 = vmul.f32 %v7486_v13, %v8447_v7 }
 0x627   :  { %1153 = vrot.lane.b32.xlu1 %v1151_v2, %s8010_s30 }
 0x672   :  { %v1465_v12 = vpop.permute.xlu1 %1464 }
 0x673   :  { %v1467_v17 = vmul.f32 %v7484_v9, %v1465_v12 }
 0x675   :  { %1469 = vrot.lane.b32.xlu1 %v1467_v17, %s8010_s30 }
 0x676   :  { %v1554_v48 = vpop.permute.xlu1 %1553 }
 0x677   :  { %v1556_v14 = vmul.f32 %v7486_v13, %v1554_v48 }
 0x679   :  { %1558 = vrot.lane.b32.xlu0 %v1556_v14, %s8010_s30 }
 0x67a   :  { %v939_v18 = vpop.permute.xlu1 %938 }
 0x67b   :  { %v941_v21 = vmul.f32 %v8584_v16, %v939_v18 }
 0x67d   :  { %943 = vrot.lane.b32.xlu1 %v941_v21, %s8010_s30 }
 0x681   :  { %1485 = vperm.xlu1 %7413, %v1482_v22  }
 0x685   :  { %7414 = vset.pattern.permute.xlu1 %v8017_v5 }
 0x686   :  { %1572 = vperm.xlu1 %7414, %v1482_v22  }
 0x699   :  { %v1154_v23 = vpop.permute.xlu1 %1153 }
 0x69a   :  { %v1156_v24 = vadd.f32 %v1154_v23, %v1092_v33 }
 0x69c   :  { %7489 = vtanh.f32 %v1156_v24 }
 0x6a6   :  { %v7490_v29 = vpop.eup %7489 }
 0x6a7   :  { %1160 = vrot.lane.b32.xlu0 %v7490_v29, %s8020_s17 }
 0x6ab   :  { %1491 = vperm.xlu0 %7412, %v6496_v20  }
 0x6af   :  { %7415 = vset.pattern.permute.xlu0 %v8017_v5 }
 0x6b0   :  { %1577 = vperm.xlu0 %7415, %v6496_v20  }
 0x6b4   :  { %7416 = vset.pattern.permute.xlu0 %v8015_v0 }
 0x6b5   :  { %1734 = vperm.xlu0 %7416, %v6513_v30  }
 0x6b9   :  { %7418 = vset.pattern.permute.xlu0 %v8017_v5 }
 0x6e7   :  { %v1470_v31 = vpop.permute.xlu1 %1469 }
 0x6e8   :  { %v1472_v8 = vadd.f32 %v1470_v31, %v1408_v15 }
 0x6ea   :  { %7491 = vtanh.f32 %v1472_v8 }
 0x6eb   :  { %v1559_v32 = vpop.permute.xlu0 %1558 }
 0x6ec   :  { %v1561_v33 = vadd.f32 %v1559_v32, %v1408_v15 }
 0x6ee   :  { %7493 = vtanh.f32 %v1561_v33 }
 0x6ef   :  { %v944_v35 = vpop.permute.xlu1 %943 }
 0x6f0   :  { %v946_v36 = vadd.f32 %v944_v35, %v867_v49 }
 0x6f2   :  { %7495 = vtanh.f32 %v946_v36 }
 0x6f4   :  { %v7492_v4 = vpop.eup %7491 }
 0x6f5   :  { %1476 = vrot.lane.b32.xlu1 %v7492_v4, %s8020_s17 }
 0x6f8   :  { %v7494_v37 = vpop.eup %7493 }
 0x6f9   :  { %1565 = vrot.lane.b32.xlu1 %v7494_v37, %s8020_s17  ;;  %v8659_v37 = vld [vmem:[%s10063_s4 + $0x8] sm:$0xff]  }
 0x6fc   :  { %v7496_v39 = vpop.eup %7495 }
 0x6fd   :  { %1739 = vperm.xlu1 %7414, %v6513_v30   ;;  %v954_v30 = vmul.f32 0.0, %v8584_v16 }
 0x700   :  { %v1486_v46 = vpop.permute.xlu1 %1485 }
 0x701   :  { %950 = vrot.lane.b32.xlu1 %v7496_v39, %s8020_s17  ;;  %v1488_v61 = vmul.f32 %v1486_v46, %v8445_v41  ;;  %v6511_v46 = vld [vmem:[%s10089_s29 + $0x4] sm:$0x3] }
 0x702   :  { %7417 = vset.pattern.permute.xlu1 %v8015_v0 }
 0x705   :  { %v1573_v49 = vpop.permute.xlu1 %1572 }
 0x706   :  { %v1575_v17 = vmul.f32 %v1573_v49, %v8447_v7 }
 0x719   :  { %v1161_v19 = vpop.permute.xlu0 %1160 }
 0x71a   :  { %v1163_v44 = vmul.f32 %v1161_v19, %v1158_v40  ;;  %v8664_v19 = vld [vmem:[#allocation4] sm:$0xff]  }
 0x71c   :  { %v8606_v2 = vadd.f32 %v1164_v43, %v1163_v44  ;;  %v8671_v44 = vld [vmem:[#allocation4 + $0x8] sm:$0xff]  }
 0x71e   :  { %v1710_v15 = vmul.f32 %v8606_v2, %v8373_v62  ;;  %v1836_v7 = vpack.c.bf16 %v8606_v2, %v8606_v2 }
 0x720   :  { %1712 = vrot.lane.b32.xlu0 %v1710_v15, %s8020_s17  ;;  %v8677_v15 = vld [vmem:[%s10088_s7] sm:$0xff]  }
 0x72a   :  { %v1492_v60 = vpop.permute.xlu0 %1491 }
 0x72f   :  { %v1578_v12 = vpop.permute.xlu0 %1577 }
 0x734   :  { %v8623_v22 = vpop.permute.xlu0 %1734 }
 0x767   :  { %v1477_v52 = vpop.permute.xlu1 %1476 }
 0x768   :  { %v1479_v6 = vmul.f32 %v1477_v52, %v1474_v50  ;;  %v1744_v50 = vpack.c.bf16 %v6511_v46, %v6511_v46  ;;  %v8692_v52 = vld [vmem:[%s10088_s7 + $0x8] sm:$0xff]  }
 0x76a   :  { %v1481_v11 = vadd.f32 %v1480_v53, %v1479_v6  ;;  %v8702_v53 = vld [vmem:[#allocation9] sm:$0xff]   ;;  %v1909_v6 = vld [vmem:[#allocation3] sm:$0x3] }
 0x76b   :  { %v1566_v42 = vpop.permute.xlu1 %1565 }
 0x76c   :  { %v1494_v63 = vmul.f32 %v1492_v60, %v1481_v11  ;;  %v1568_v47 = vmul.f32 %v1566_v42, %v1563_v58 }
 0x76e   :  { %v1570_v1 = vadd.f32 %v1569_v45, %v1568_v47  ;;  %v8615_v48 = vadd.f32 %v1494_v63, %v1488_v61 }
 0x770   :  { %v1580_v14 = vmul.f32 %v1578_v12, %v1570_v1  ;;  %v1496_v9 = vmul.f32 %v8615_v48, %v8460_v54  ;;  %v1737_v23 = vmul.f32 %v8623_v22, %v8615_v48 }
 0x772   :  { %v8617_v18 = vadd.f32 %v1580_v14, %v1575_v17 }
 0x774   :  { %v1582_v20 = vmul.f32 %v8617_v18, %v8468_v10  ;;  %v948_v10 = vsub.f32 1.0, %v8584_v16  ;;  %v8650_v16 = vld [vmem:[%s10063_s4] sm:$0xff]  }
 0x776   :  { %v1583_v21 = vadd.f32 %v1582_v20, %v1496_v9 }
 0x778   :  { %v1584_v13 = vpack.c.bf16 %v1583_v21, %v1583_v21 }
 0x77a   :  { %1586 = vrot.lane.b32.xlu1 %v1584_v13, %s8020_s17 }
 0x77c   :  { %v8626_v41 = vpop.permute.xlu1 %1739 }
 0x77d   :  { %v1742_v54 = vmul.f32 %v8626_v41, %v8617_v18 }
 0x77e   :  { %1838 = vrot.lane.b32.xlu1 %v1836_v7, %s8020_s17 }
 0x77f   :  { %v1743_v24 = vadd.f32 %v1742_v54, %v1737_v23 }
 0x780   :  { %v951_v29 = vpop.permute.xlu1 %950 }
 0x781   :  { %v953_v31 = vmul.f32 %v951_v29, %v948_v10  ;;  %v1745_v8 = vpack.c.bf16 %v1743_v24, %v1743_v24 }
 0x783   :  { %v8637_v32 = vadd.f32 %v954_v30, %v953_v31  ;;  %1747 = vrot.lane.b32.xlu0 %v1745_v8, %s8020_s17 }
 0x785   :  { %v1631_v33 = vpack.c.bf16 %v8637_v32, %v8637_v32 }
 0x787   :  { %1633 = vrot.lane.b32.xlu1 %v1631_v33, %s8020_s17 }
 0x78b   :  { %1705 = vrot.lane.b32.xlu1 %v8606_v2, %s8020_s17 }
 0x792   :  { %v1713_v35 = vpop.permute.xlu0 %1712 }
 0x793   :  { %v1715_v36 = vsel %vm142_vm2, %v1713_v35, 0.0 }
 0x7a2   :  { %1716 = vadd.xlane.f32.xlu0 %v1715_v36  ;;  %v2152_v36 = vpack.c.bf16 %v8615_v48, %v8615_v48 }
 0x7ec   :  { %v1587_v4 = vpop.permute.xlu1 %1586 }
 0x7ed   :  { %6945 = vmatmul.mubr.msk.bf16.vlgmr.msra.gmra.mrb[28].mxu1 %vm228_vm0, %v1587_v4  ;;  %v2241_v4 = vpack.c.bf16 %v8617_v18, %v8617_v18 }
 0x7ee   :  { %6957 = vmatpush3.bf16.msra.mxu1 %v8650_v16  ;;  %6960 = vmatprep.mubr.msk.bf16.mxu1 %vm8018_vm1, %v8016_v3 }
 0x7ef   :  { %6958 = vmatprep.subr.bf16.mxu1 %v8016_v3 }
 0x7f0   :  { %v1839_v39 = vpop.permute.xlu1 %1838 }
 0x7f2   :  { %6959 = vmatpush3.bf16.msra.mxu1 %v8659_v37 }
 0x7f3   :  { %6972 = vmatprep.subr.bf16.mxu1 %v8016_v3 }
 0x7f5   :  { %v1748_v40 = vpop.permute.xlu0 %1747 }
 0x7f6   :  { %6961 = vmatmul.mubr.msk.bf16.vlgmr.msra.gmra.mrb[32].mxu1 %vm228_vm0, %v1748_v40 }
 0x7f7   :  { %6973 = vmatpush3.bf16.msra.mxu1 %v8664_v19  ;;  %6976 = vmatprep.mubr.msk.bf16.mxu1 %vm8018_vm1, %v8016_v3 }
 0x7f8   :  { %6974 = vmatprep.subr.bf16.mxu1 %v8016_v3 }
 0x7f9   :  { %v1634_v43 = vpop.permute.xlu1 %1633 }
 0x7fa   :  { %6953 = vmatmul.mubr.msk.bf16.vlgmr.msra.gmra.mrb[32].mxu0 %vm228_vm0, %v1634_v43 }
 0x7fb   :  { %6975 = vmatpush3.bf16.msra.mxu1 %v8671_v44  ;;  %6965 = vmatpush3.bf16.msra.mxu0 %v8677_v15 }
 0x7fc   :  { %6966 = vmatprep.subr.bf16.mxu0 %v8016_v3  ;;  %6968 = vmatprep.mubr.msk.bf16.mxu0 %vm8018_vm1, %v8016_v3 }
 0x7fd   :  { %v1706_v49 = vpop.permute.xlu1 %1705  ;;  %6988 = vmatprep.subr.bf16.mxu1 %v8016_v3 }
 0x7fe   :  { %1709 = vst.msk [vmem:[#allocation2 + $0x2] sm:$0x3] %vm142_vm2, %v1706_v49  ;;  %6977 = vmatmul.mubr.msk.bf16.vlgmr.msra.gmra.mrb[36].mxu1 %vm228_vm0, %v1839_v39 }
 0x7ff   :  { %6967 = vmatpush3.bf16.msra.mxu0 %v8692_v52  ;;  %6989 = vmatpush3.bf16.msra.mxu1 %v8312_v51  ;;  %v8714_v51 = vld [vmem:[#allocation9 + $0x8] sm:$0xff]  }
 0x800   :  { %6990 = vmatprep.subr.bf16.mxu1 %v8016_v3  ;;  %6992 = vmatprep.mubr.msk.bf16.mxu1 %vm8018_vm1, %v8016_v3 }
 0x801   :  { %6980 = vmatprep.subr.bf16.mxu0 %v8016_v3 }
 0x802   :  { %6969 = vmatmul.mubr.msk.bf16.vlgmr.msra.gmra.mrb[36].mxu0 %vm228_vm0, %v1744_v50 }
 0x803   :  { %6991 = vmatpush3.bf16.msra.mxu1 %v8321_v55  ;;  %6981 = vmatpush3.bf16.msra.mxu0 %v8702_v53 }
 0x804   :  { %7004 = vmatprep.subr.bf16.mxu1 %v8016_v3  ;;  %6982 = vmatprep.subr.bf16.mxu0 %v8016_v3 }
 0x805   :  { %6984 = vmatprep.mubr.msk.bf16.mxu0 %vm8018_vm1, %v8016_v3 }
 0x806   :  { %6993 = vmatmul.mubr.msk.bf16.vlgmr.msra.gmra.mrb[40].mxu1 %vm228_vm0, %v1744_v50 }
 0x807   :  { %7005 = vmatpush3.bf16.msra.mxu1 %v8326_v57  ;;  %7008 = vmatprep.mubr.msk.bf16.mxu1 %vm8018_vm1, %v8016_v3  ;;  %v1925_v57 = vsel %vm151_vm3, %v1909_v6, -inf }
 0x808   :  { %7006 = vmatprep.subr.bf16.mxu1 %v8016_v3  ;;  %6983 = vmatpush3.bf16.msra.mxu0 %v8714_v51  ;;  %v1930_v60 = vmax.f32 %v1925_v57, %v8471_v56 }
 0x809   :  { %6996 = vmatprep.subr.bf16.mxu0 %v8016_v3 }
 0x80b   :  { %7007 = vmatpush3.bf16.msra.mxu1 %v8332_v59 }
 0x80c   :  { %7020 = vmatprep.subr.bf16.mxu1 %v8016_v3 }
 0x82f   :  { %v1717_v55 = vpop.xlane.xlu0 %1716 }
 0x830   :  { %1719 = vst.msk [vmem:[#allocation3 + $0x2] sm:$0x3] %vm151_vm3, %v1717_v55 }
 0x837   :  { %v1910_v11 = vld [vmem:[#allocation3 + $0x2] sm:$0x3] }
 0x838   :  { %v1926_v58 = vsel %vm151_vm3, %v1910_v11, -inf }
 0x839   :  { %v1932_v42 = vmax.f32 %v1926_v58, %v8471_v56 }
 0x83b   :  { %v1937_v63 = vmax.f32 %v1930_v60, %v1932_v42 }
 0x83d   :  { %v1939_v45 = vmax.f32 %v1937_v63, %v8471_v56  ;;  %v8740_v63 = vld [vmem:[#allocation7] ss:$0 sm:$0xff] }
 0x83f   :  { %v1940_v47 = vsub.f32 %v1909_v6, %v1939_v45  ;;  %v1941_v59 = vsub.f32 %v1910_v11, %v1939_v45  ;;  %v1942_v61 = vsub.f32 -1e+30, %v1939_v45 }
 0x841   :  { %v1948_v1 = vmul.f32 1.442695, %v1940_v47  ;;  %v1950_v12 = vmul.f32 1.442695, %v1941_v59  ;;  %v1952_v17 = vmul.f32 1.442695, %v1942_v61 }
 0x843   :  { %7497 = vpow2.f32 %v1948_v1 }
 0x844   :  { %7499 = vpow2.f32 %v1950_v12 }
 0x845   :  { %7501 = vpow2.f32 %v1952_v17 }
 0x84d   :  { %v7498_v14 = vpop.eup %7497 }
 0x84e   :  { %v7500_v9 = vpop.eup %7499  ;;  %v1964_v20 = vsel %vm151_vm3, %v7498_v14, 0.0 }
 0x84f   :  { %v7502_v21 = vpop.eup %7501  ;;  %v1965_v13 = vsel %vm151_vm3, %v7500_v9, 0.0 }
 0x850   :  { %v1966_v7 = vadd.f32 %v1965_v13, %v1964_v20  ;;  %v1967_v23 = vsel %vm151_vm3, %v7502_v21, 0.0  ;;  %v1998_v21 = vld [vmem:[#allocation2 + $0x4] sm:$0x3]  ;;  %v1996_v13 = vld [vmem:[#allocation2] sm:$0x3] }
 0x852   :  { %v1968_v54 = vadd.f32 %v1967_v23, %v1966_v7  ;;  %v1999_v7 = vld [vmem:[#allocation2 + $0x6] sm:$0x3] }
 0x854   :  { %v1970_v10 = vadd.f32 %v1968_v54, %v1967_v23  ;;  %v2046_v54 = vmul.f32 0.0, %v1998_v21 }
 0x856   :  { %v1972_v24 = vadd.f32 %v1970_v10, %v1967_v23  ;;  %v1997_v10 = vld [vmem:[#allocation2 + $0x2] sm:$0x3] }
 0x858   :  { %v1974_v29 = vadd.f32 %v1972_v24, %v1967_v23  ;;  %v2000_v24 = vld [vmem:[#allocation2 + $0x8] sm:$0x3] }
 0x85a   :  { %v1976_v30 = vadd.f32 %v1974_v29, %v1967_v23 }
 0x85c   :  { %v1978_v31 = vadd.f32 %v1976_v30, %v1967_v23  ;;  %v2047_v30 = vmul.f32 0.0, %v1999_v7 }
 0x85e   :  { %7503 = vrcp.f32 %v1978_v31 }
 0x868   :  { %v7504_v8 = vpop.eup %7503 }
 0x869   :  { %v1980_v33 = vmul.f32 %v7504_v8, %v7498_v14  ;;  %v1981_v35 = vmul.f32 %v7504_v8, %v7500_v9  ;;  %v2001_v8 = vld [vmem:[#allocation2 + $0xa] sm:$0x3] }
 0x86b   :  { %2006 = vperm.xlu1 %7417, %v1980_v33  }
 0x86f   :  { %2011 = vperm.xlu1 %7417, %v1981_v35   ;;  %v2048_v35 = vmul.f32 0.0, %v2000_v24 }
 0x873   :  { %2154 = vrot.lane.b32.xlu1 %v2152_v36, %s8020_s17  ;;  %v2055_v36 = vsel %vm142_vm2, %v2046_v54, 0.0 }
 0x874   :  { %7420 = vset.pattern.permute.xlu1 %v8017_v5 }
 0x877   :  { %2243 = vrot.lane.b32.xlu1 %v2241_v4, %s8020_s17 }
 0x8c0   :  { %v8736_v39 = vpop.f32.mrb[28].mxu1 }
 0x8c1   :  { %v6946_v40 = vpop.f32.mrb[29].mxu1 }
 0x8c2   :  { %v1628_v43 = vpop.f32.mrb[30].mxu1 }
 0x8c3   :  { %v6947_v46 = vpop.f32.mrb[31].mxu1 }
 0x8c4   :  { %v2002_v46 = vld [vmem:[#allocation2 + $0xc] sm:$0x3] }
 0x8c9   :  { %v1786_v49 = vpop.f32.mrb[32].mxu1 }
 0x8ca   :  { %v6962_v50 = vpop.f32.mrb[33].mxu1 }
 0x8cb   :  { %v1789_v55 = vpop.f32.mrb[34].mxu1  ;;  %v2057_v50 = vsel %vm142_vm2, %v2047_v30, 0.0 }
 0x8cc   :  { %v6963_v6 = vpop.f32.mrb[35].mxu1 }
 0x8cd   :  { %v8738_v57 = vpop.f32.mrb[32].mxu0  ;;  %v2003_v6 = vld [vmem:[#allocation2 + $0xe] sm:$0x3] }
 0x8ce   :  { %v6954_v11 = vpop.f32.mrb[33].mxu0 }
 0x8cf   :  { %v1675_v58 = vpop.f32.mrb[34].mxu0  ;;  %v2059_v11 = vsel %vm142_vm2, %v2048_v35, 0.0 }
 0x8d0   :  { %v6955_v60 = vpop.f32.mrb[35].mxu0  ;;  %v2050_v58 = vmul.f32 0.0, %v2002_v46 }
 0x8d1   :  { %v1877_v42 = vpop.f32.mrb[36].mxu1 }
 0x8d2   :  { %v8743_v45 = vadd.f32 %v8740_v63, %v1877_v42  ;;  %v6978_v47 = vpop.f32.mrb[37].mxu1 }
 0x8d3   :  { %v1880_v59 = vpop.f32.mrb[38].mxu1 }
 0x8d4   :  { %1891 = vrot.lane.b32.xlu1 %v8743_v45, %s8010_s30  ;;  %v6979_v61 = vpop.f32.mrb[39].mxu1  ;;  %v2051_v59 = vmul.f32 0.0, %v2003_v6 }
 0x8d5   :  { %v1829_v1 = vpop.f32.mrb[36].mxu0 }
 0x8d6   :  { %v1830_v12 = vadd.f32 %v1829_v1, %v1786_v49  ;;  %v6970_v17 = vpop.f32.mrb[37].mxu0  ;;  %v2049_v49 = vmul.f32 0.0, %v2001_v8  ;;  %v2063_v1 = vsel %vm142_vm2, %v2050_v58, 0.0  ;;  %v8792_v58 = vld [vmem:[%s10071_s12] ss:$0 sm:$0xff] }
 0x8d7   :  { %v1832_v14 = vpop.f32.mrb[38].mxu0 }
 0x8d8   :  { %v6971_v9 = vpop.f32.mrb[39].mxu0  ;;  %v2061_v47 = vsel %vm142_vm2, %v2049_v49, 0.0  ;;  %v2065_v14 = vsel %vm142_vm2, %v2051_v59, 0.0 }
 0x8d9   :  { %v2145_v24 = vpop.f32.mrb[40].mxu1 }
 0x8ea   :  { %v2007_v20 = vpop.permute.xlu1 %2006 }
 0x8eb   :  { %v2044_v23 = vmul.f32 %v2007_v20, %v1996_v13  ;;  %v8769_v13 = vld [vmem:[#allocation10 + $0x8] sm:$0xff]  }
 0x8ed   :  { %v2052_v33 = vsel %vm142_vm2, %v2044_v23, 0.0 }
 0x8ee   :  { %v2012_v29 = vpop.permute.xlu1 %2011 }
 0x8ef   :  { %v2045_v31 = vmul.f32 %v2012_v29, %v1997_v10  ;;  %v6994_v29 = vpop.f32.mrb[41].mxu1 }
 0x8f0   :  { %v2148_v30 = vpop.f32.mrb[42].mxu1 }
 0x8f1   :  { %v2053_v4 = vsel %vm142_vm2, %v2045_v31, 0.0  ;;  %v1673_v30 = vadd.f32 %v8565_v38, %v8738_v57  ;;  %v1626_v38 = vadd.f32 %v8579_v34, %v8736_v39  ;;  %v6529_v39 = vld [vmem:[%s10087_s1 + $0x6] sm:$0x3] }
 0x8f2   :  { %v2054_v40 = vadd.f32 %v2053_v4, %v2052_v33  ;;  %v2155_v43 = vpop.permute.xlu1 %2154 }
 0x8f3   :  { %v1678_v57 = vadd.f32 %v1673_v30, %v1626_v38 }
 0x8f4   :  { %v2056_v55 = vadd.f32 %v2055_v36, %v2054_v40 }
 0x8f6   :  { %v2058_v60 = vadd.f32 %v2057_v50, %v2056_v55  ;;  %v2244_v42 = vpop.permute.xlu1 %2243 }
 0x8f7   :  { %7009 = vmatmul.mubr.msk.bf16.vlgmr.msra.gmra.mrb[44].mxu1 %vm228_vm0, %v2244_v42 }
 0x8f8   :  { %v2060_v61 = vadd.f32 %v2059_v11, %v2058_v60  ;;  %7021 = vmatpush3.bf16.msra.mxu1 %v8419_v26  ;;  %7024 = vmatprep.mubr.msk.bf16.mxu1 %vm8018_vm1, %v8016_v3  ;;  %v8763_v26 = vld [vmem:[#allocation10] sm:$0xff]  }
 0x8f9   :  { %7022 = vmatprep.subr.bf16.mxu1 %v8016_v3 }
 0x8fa   :  { %v2062_v17 = vadd.f32 %v2061_v47, %v2060_v61 }
 0x8fc   :  { %v2064_v9 = vadd.f32 %v2063_v1, %v2062_v17  ;;  %7023 = vmatpush3.bf16.msra.mxu1 %v8428_v28  ;;  %v8783_v28 = vld [vmem:[%s10065_s6] ss:$0 sm:$0xff]  ;;  %v8798_v1 = vld [vmem:[#allocation12] ss:$0 sm:$0xff] }
 0x8fd   :  { %7036 = vmatprep.subr.bf16.mxu1 %v8016_v3  ;;  %v1835_v7 = vadd.f32 %v8783_v28, %v1830_v12 }
 0x8fe   :  { %v2066_v20 = vadd.f32 %v2065_v14, %v2064_v9 }
 0x8ff   :  { %v1883_v23 = vadd.f32 %v8743_v45, %v1835_v7 }
 0x900   :  { %v2067_v21 = vpack.c.bf16 %v2066_v20, %v2066_v20 }
 0x901   :  { %v6517_v54 = vmul.f32 -1.442695, %v1883_v23 }
 0x902   :  { %6985 = vmatmul.mubr.msk.bf16.vlgmr.msra.gmra.mrb[40].mxu0 %vm228_vm0, %v2067_v21 }
 0x903   :  { %6997 = vmatpush3.bf16.msra.mxu0 %v8763_v26  ;;  %7000 = vmatprep.mubr.msk.bf16.mxu0 %vm8018_vm1, %v8016_v3  ;;  %7505 = vpow2.f32 %v6517_v54 }
 0x904   :  { %6998 = vmatprep.subr.bf16.mxu0 %v8016_v3 }
 0x907   :  { %6999 = vmatpush3.bf16.msra.mxu0 %v8769_v13 }
 0x908   :  { %7012 = vmatprep.subr.bf16.mxu0 %v8016_v3 }
 0x90a   :  { %7001 = vmatmul.mubr.msk.bf16.vlgmr.msra.gmra.mrb[44].mxu0 %vm228_vm0, %v2155_v43 }
 0x90b   :  { %7013 = vmatpush3.bf16.msra.mxu0 %v8417_v25  ;;  %7016 = vmatprep.mubr.msk.bf16.mxu0 %vm8018_vm1, %v8016_v3 }
 0x90c   :  { %7014 = vmatprep.subr.bf16.mxu0 %v8016_v3 }
 0x90d   :  { %v7506_v25 = vpop.eup %7505 }
 0x90e   :  { %v1887_v10 = vadd.f32 1.0, %v7506_v25 }
 0x90f   :  { %7015 = vmatpush3.bf16.msra.mxu0 %v8426_v27  ;;  %v6995_v27 = vpop.f32.mrb[43].mxu1 }
 0x910   :  { %7028 = vmatprep.subr.bf16.mxu0 %v8016_v3  ;;  %7507 = vrcp.f32 %v1887_v10 }
 0x91a   :  { %v7508_v31 = vpop.eup %7507 }
 0x91b   :  { %v1907_v54 = vmul.f32 %v7508_v31, %v8606_v2 }
 0x946   :  { %v1892_v8 = vpop.permute.xlu1 %1891 }
 0x947   :  { %v1894_v33 = vmul.f32 %v7508_v31, %v1892_v8 }
 0x949   :  { %1896 = vrot.lane.b32.xlu1 %v1894_v33, %s8010_s30 }
 0x9bb   :  { %v1897_v35 = vpop.permute.xlu1 %1896 }
 0x9bc   :  { %v1899_v36 = vadd.f32 %v1897_v35, %v1835_v7  ;;  %v1901_v7 = vsub.f32 1.0, %v7508_v31 }
 0x9be   :  { %7509 = vtanh.f32 %v1899_v36 }
 0x9c8   :  { %v7510_v12 = vpop.eup %7509 }
 0x9c9   :  { %1903 = vrot.lane.b32.xlu0 %v7510_v12, %s8020_s17 }
 0x9ca   :  { %v2282_v45 = vpop.f32.mrb[44].mxu1 }
 0x9cb   :  { %v7010_v4 = vpop.f32.mrb[45].mxu1  ;;  %v2283_v61 = vadd.f32 %v8792_v58, %v2282_v45 }
 0x9cc   :  { %v2285_v40 = vpop.f32.mrb[46].mxu1  ;;  %v6510_v4 = vmul.f32 -1.442695, %v1678_v57 }
 0x9cd   :  { %v7011_v43 = vpop.f32.mrb[47].mxu1 }
 0x9d5   :  { %v2105_v46 = vpop.f32.mrb[40].mxu0 }
 0x9d6   :  { %v2146_v49 = vadd.f32 %v2145_v24, %v2105_v46  ;;  %v6986_v50 = vpop.f32.mrb[41].mxu0 }
 0x9d7   :  { %v2108_v55 = vpop.f32.mrb[42].mxu0 }
 0x9d8   :  { %v6987_v6 = vpop.f32.mrb[43].mxu0  ;;  %v2151_v17 = vadd.f32 %v8798_v1, %v2146_v49 }
 0x9d9   :  { %v6512_v6 = vld [vmem:[%s10090_s5 + $0x4] sm:$0x3] }
 0x9da   :  { %v2288_v9 = vadd.f32 %v2283_v61, %v2151_v17  ;;  %v2225_v34 = vsub.f32 1.0, %v6512_v6 }
 0x9dc   :  { %v6523_v21 = vmul.f32 -1.442695, %v2288_v9 }
 0x9dd   :  { %v2193_v11 = vpop.f32.mrb[44].mxu0 }
 0x9de   :  { %v2194_v60 = vadd.f32 %v8792_v58, %v2193_v11  ;;  %v7002_v42 = vpop.f32.mrb[45].mxu0 }
 0x9df   :  { %v2196_v47 = vpop.f32.mrb[46].mxu0 }
 0x9e0   :  { %v7003_v59 = vpop.f32.mrb[47].mxu0  ;;  %2207 = vrot.lane.b32.xlu1 %v2194_v60, %s8010_s30  ;;  %v2199_v14 = vadd.f32 %v2194_v60, %v2151_v17 }
 0x9e2   :  { %v6521_v20 = vmul.f32 -1.442695, %v2199_v14 }
 0x9e4   :  { %2296 = vrot.lane.b32.xlu1 %v2283_v61, %s8010_s30  ;;  %7511 = vpow2.f32 %v6521_v20 }
 0x9e5   :  { %7513 = vpow2.f32 %v6523_v21 }
 0x9ee   :  { %v7512_v29 = vpop.eup %7511 }
 0x9ef   :  { %v2203_v27 = vadd.f32 1.0, %v7512_v29  ;;  %v7514_v8 = vpop.eup %7513 }
 0x9f0   :  { %v2292_v33 = vadd.f32 1.0, %v7514_v8 }
 0x9f1   :  { %7515 = vrcp.f32 %v2203_v27 }
 0x9f2   :  { %7517 = vrcp.f32 %v2292_v33 }
 0x9f3   :  { %7519 = vpow2.f32 %v6510_v4 }
 0x9fb   :  { %v8810_v2 = vpop.eup %7515 }
 0x9fc   :  { %v8814_v36 = vpop.eup %7517 }
 0x9fd   :  { %v7520_v40 = vpop.eup %7519 }
 0x9fe   :  { %v1682_v43 = vadd.f32 1.0, %v7520_v40 }
 0xa00   :  { %7521 = vrcp.f32 %v1682_v43 }
 0xa0a   :  { %v8821_v50 = vpop.eup %7521 }
 0xa3b   :  { %v1904_v23 = vpop.permute.xlu0 %1903 }
 0xa3c   :  { %v1906_v25 = vmul.f32 %v1904_v23, %v1901_v7 }
 0xa3e   :  { %v8802_v10 = vadd.f32 %v1907_v54, %v1906_v25  ;;  %v2652_v54 = vld [vmem:[#allocation3] sm:$0x3] }
 0xa3f   :  { %v2668_v29 = vsel %vm151_vm3, %v2652_v54, -inf }
 0xa40   :  { %v2453_v24 = vmul.f32 %v8802_v10, %v8373_v62 }
 0xa42   :  { %2455 = vrot.lane.b32.xlu1 %v2453_v24, %s8020_s17 }
 0xa46   :  { %1686 = vrot.lane.b32.xlu1 %v1673_v30, %s8010_s30 }
 0xa52   :  { %v2208_v31 = vpop.permute.xlu1 %2207 }
 0xa53   :  { %v2210_v35 = vmul.f32 %v8810_v2, %v2208_v31  ;;  %v2673_v31 = vmax.f32 %v2668_v29, %v8471_v56 }
 0xa55   :  { %2212 = vrot.lane.b32.xlu1 %v2210_v35, %s8010_s30 }
 0xa56   :  { %v2297_v12 = vpop.permute.xlu1 %2296 }
 0xa57   :  { %v2299_v45 = vmul.f32 %v8814_v36, %v2297_v12 }
 0xa59   :  { %2301 = vrot.lane.b32.xlu0 %v2299_v45, %s8010_s30 }
 0xab4   :  { %v2456_v46 = vpop.permute.xlu1 %2455 }
 0xab5   :  { %v2458_v49 = vsel %vm142_vm2, %v2456_v46, 0.0 }
 0xab6   :  { %2459 = vadd.xlane.f32.xlu1 %v2458_v49 }
 0xab8   :  { %v1687_v55 = vpop.permute.xlu1 %1686 }
 0xab9   :  { %v1689_v11 = vmul.f32 %v8821_v50, %v1687_v55 }
 0xabb   :  { %1691 = vrot.lane.b32.xlu0 %v1689_v11, %s8010_s30 }
 0xabf   :  { %2315 = vperm.xlu0 %7418, %v2225_v34  }
 0xac3   :  { %2320 = vperm.xlu0 %7418, %v6512_v6  }
 0xac7   :  { %v2213_v60 = vpop.permute.xlu1 %2212  ;;  %2482 = vperm.xlu1 %7420, %v6529_v39   ;;  %7419 = vset.pattern.permute.xlu0 %v8015_v0 }
 0xac8   :  { %v2215_v42 = vadd.f32 %v2213_v60, %v2151_v17  ;;  %2228 = vperm.xlu0 %7419, %v2225_v34  }
 0xaca   :  { %7523 = vtanh.f32 %v2215_v42 }
 0xacb   :  { %v2302_v47 = vpop.permute.xlu0 %2301  ;;  %2448 = vrot.lane.b32.xlu1 %v8802_v10, %s8020_s17 }
 0xacc   :  { %v2304_v59 = vadd.f32 %v2302_v47, %v2151_v17  ;;  %2234 = vperm.xlu0 %7419, %v6512_v6   ;;  %7421 = vset.pattern.permute.xlu1 %v8015_v0  ;;  %v2653_v17 = vld [vmem:[#allocation3 + $0x2] sm:$0x3] }
 0xacd   :  { %v2669_v24 = vsel %vm151_vm3, %v2653_v17, -inf }
 0xace   :  { %7525 = vtanh.f32 %v2304_v59  ;;  %v2675_v8 = vmax.f32 %v2669_v24, %v8471_v56 }
 0xad0   :  { %v2680_v45 = vmax.f32 %v2673_v31, %v2675_v8  ;;  %v2312_v31 = vmul.f32 %v8814_v36, %v8617_v18 }
 0xad4   :  { %v7524_v61 = vpop.eup %7523 }
 0xad5   :  { %2219 = vrot.lane.b32.xlu0 %v7524_v61, %s8020_s17 }
 0xad8   :  { %v7526_v14 = vpop.eup %7525 }
 0xad9   :  { %2308 = vrot.lane.b32.xlu0 %v7526_v14, %s8020_s17 }
 0xadd   :  { %2477 = vperm.xlu0 %7419, %v6529_v39  }
 0xb2d   :  { %v1692_v9 = vpop.permute.xlu0 %1691 }
 0xb2e   :  { %v1694_v20 = vadd.f32 %v1692_v9, %v1626_v38 }
 0xb30   :  { %7527 = vtanh.f32 %v1694_v20 }
 0xb3a   :  { %v7528_v21 = vpop.eup %7527 }
 0xb3b   :  { %1698 = vrot.lane.b32.xlu0 %v7528_v21, %s8020_s17 }
 0xb3e   :  { %v2316_v25 = vpop.permute.xlu0 %2315 }
 0xb42   :  { %v2321_v12 = vpop.permute.xlu0 %2320 }
 0xb43   :  { %v2460_v7 = vpop.xlane.xlu1 %2459 }
 0xb44   :  { %2462 = vst.msk [vmem:[#allocation3 + $0x4] sm:$0x3] %vm151_vm3, %v2460_v7 }
 0xb47   :  { %v8839_v23 = vpop.permute.xlu1 %2482  ;;  %v2229_v49 = vpop.permute.xlu0 %2228 }
 0xb4b   :  { %v2449_v30 = vpop.permute.xlu1 %2448  ;;  %v2654_v27 = vld [vmem:[#allocation3 + $0x4] sm:$0x3]  ;;  %v2235_v39 = vpop.permute.xlu0 %2234 }
 0xb4c   :  { %2452 = vst.msk [vmem:[#allocation2 + $0x4] sm:$0x3] %vm142_vm2, %v2449_v30  ;;  %v2670_v33 = vsel %vm151_vm3, %v2654_v27, -inf  ;;  %v2217_v30 = vsub.f32 1.0, %v8810_v2 }
 0xb4d   :  { %v2677_v35 = vmax.f32 %v2670_v33, %v8471_v56 }
 0xb4f   :  { %v2681_v38 = vmax.f32 %v2677_v35, %v8471_v56  ;;  %v2220_v60 = vpop.permute.xlu0 %2219 }
 0xb50   :  { %v2222_v33 = vmul.f32 %v2220_v60, %v2217_v30 }
 0xb51   :  { %v2682_v57 = vmax.f32 %v2680_v45, %v2681_v38  ;;  %v2223_v45 = vmul.f32 %v8810_v2, %v8615_v48 }
 0xb53   :  { %v2683_v4 = vsub.f32 %v2652_v54, %v2682_v57  ;;  %v2684_v40 = vsub.f32 %v2653_v17, %v2682_v57  ;;  %v2685_v43 = vsub.f32 %v2654_v27, %v2682_v57  ;;  %v2686_v46 = vsub.f32 -1e+30, %v2682_v57  ;;  %v2309_v7 = vpop.permute.xlu0 %2308 }
 0xb54   :  { %v2306_v54 = vsub.f32 1.0, %v8814_v36 }
 0xb55   :  { %v2691_v55 = vmul.f32 1.442695, %v2683_v4  ;;  %v2693_v6 = vmul.f32 1.442695, %v2684_v40  ;;  %v2695_v11 = vmul.f32 1.442695, %v2685_v43  ;;  %v2224_v4 = vadd.f32 %v2223_v45, %v2222_v33 }
 0xb56   :  { %v2697_v34 = vmul.f32 1.442695, %v2686_v46  ;;  %v2311_v27 = vmul.f32 %v2309_v7, %v2306_v54  ;;  %v2318_v46 = vmul.f32 %v2316_v25, %v8617_v18  ;;  %v2739_v33 = vld [vmem:[#allocation2] sm:$0x3]  ;;  %v2742_v45 = vld [vmem:[#allocation2 + $0x6] sm:$0x3] }
 0xb57   :  { %7529 = vpow2.f32 %v2691_v55  ;;  %v2237_v55 = vmul.f32 %v2235_v39, %v2224_v4  ;;  %v2790_v4 = vmul.f32 0.0, %v2742_v45 }
 0xb58   :  { %7531 = vpow2.f32 %v2693_v6  ;;  %v2313_v38 = vadd.f32 %v2312_v31, %v2311_v27  ;;  %v2231_v6 = vmul.f32 %v2229_v49, %v8615_v48 }
 0xb59   :  { %7533 = vpow2.f32 %v2695_v11 }
 0xb5a   :  { %7535 = vpow2.f32 %v2697_v34  ;;  %v2323_v43 = vmul.f32 %v2321_v12, %v2313_v38  ;;  %v8865_v36 = vadd.f32 %v2237_v55, %v2231_v6  ;;  %v2800_v6 = vsel %vm142_vm2, %v2790_v4, 0.0 }
 0xb5c   :  { %v8861_v11 = vadd.f32 %v2323_v43, %v2318_v46  ;;  %v8863_v34 = vpop.permute.xlu0 %2477  ;;  %v2239_v48 = vmul.f32 %v8865_v36, %v8623_v22  ;;  %v1702_v22 = vmul.f32 %v8821_v50, %v8637_v32 }
 0xb5d   :  { %v2480_v60 = vmul.f32 %v8863_v34, %v8865_v36 }
 0xb5e   :  { %v2485_v2 = vmul.f32 %v8839_v23, %v8861_v11  ;;  %v2325_v18 = vmul.f32 %v8861_v11, %v8626_v41  ;;  %v1696_v41 = vsub.f32 1.0, %v8821_v50  ;;  %v2984_v54 = vpack.c.bf16 %v8861_v11, %v8861_v11 }
 0xb60   :  { %v2486_v12 = vadd.f32 %v2485_v2, %v2480_v60  ;;  %v2326_v39 = vadd.f32 %v2325_v18, %v2239_v48  ;;  %v2744_v2 = vld [vmem:[#allocation2 + $0xa] sm:$0x3] }
 0xb61   :  { %v7530_v42 = vpop.eup %7529  ;;  %v2792_v60 = vmul.f32 0.0, %v2744_v2 }
 0xb62   :  { %v7532_v47 = vpop.eup %7531  ;;  %v2707_v59 = vsel %vm151_vm3, %v7530_v42, 0.0  ;;  %v2488_v25 = vpack.c.bf16 %v2486_v12, %v2486_v12  ;;  %v2745_v12 = vld [vmem:[#allocation2 + $0xc] sm:$0x3] }
 0xb63   :  { %v7534_v61 = vpop.eup %7533  ;;  %v2708_v14 = vsel %vm151_vm3, %v7532_v47, 0.0  ;;  %v2793_v48 = vmul.f32 0.0, %v2745_v12 }
 0xb64   :  { %v7536_v9 = vpop.eup %7535  ;;  %v2709_v20 = vadd.f32 %v2708_v14, %v2707_v59  ;;  %v2710_v21 = vsel %vm151_vm3, %v7534_v61, 0.0 }
 0xb65   :  { %v2712_v24 = vsel %vm151_vm3, %v7536_v9, 0.0 }
 0xb66   :  { %v2711_v17 = vadd.f32 %v2710_v21, %v2709_v20  ;;  %v2327_v20 = vpack.c.bf16 %v2326_v39, %v2326_v39  ;;  %v2895_v21 = vpack.c.bf16 %v8865_v36, %v8865_v36 }
 0xb68   :  { %v2713_v29 = vadd.f32 %v2712_v24, %v2711_v17  ;;  %v2579_v17 = vpack.c.bf16 %v8802_v10, %v8802_v10 }
 0xb6a   :  { %v2715_v8 = vadd.f32 %v2713_v29, %v2712_v24 }
 0xb6c   :  { %v2717_v35 = vadd.f32 %v2715_v8, %v2712_v24  ;;  %v2740_v8 = vld [vmem:[#allocation2 + $0x2] sm:$0x3] }
 0xb6e   :  { %v2719_v57 = vadd.f32 %v2717_v35, %v2712_v24  ;;  %v2741_v35 = vld [vmem:[#allocation2 + $0x4] sm:$0x3] }
 0xb70   :  { %v2721_v40 = vadd.f32 %v2719_v57, %v2712_v24 }
 0xb72   :  { %7537 = vrcp.f32 %v2721_v40  ;;  %v2743_v40 = vld [vmem:[#allocation2 + $0x8] sm:$0x3] }
 0xb73   :  { %v2791_v55 = vmul.f32 0.0, %v2743_v40 }
 0xb7c   :  { %v7538_v59 = vpop.eup %7537 }
 0xb7d   :  { %v2725_v14 = vmul.f32 %v7538_v59, %v7534_v61  ;;  %v2723_v9 = vmul.f32 %v7538_v59, %v7530_v42  ;;  %v2724_v49 = vmul.f32 %v7538_v59, %v7532_v47  ;;  %v2802_v59 = vsel %vm142_vm2, %v2791_v55, 0.0 }
 0xb7f   :  { %2759 = vperm.xlu1 %7421, %v2725_v14   ;;  %2749 = vperm.xlu0 %7419, %v2723_v9   ;;  %v2804_v9 = vsel %vm142_vm2, %v2792_v60, 0.0 }
 0xb83   :  { %2754 = vperm.xlu0 %7419, %v2724_v49   ;;  %2490 = vrot.lane.b32.xlu1 %v2488_v25, %s8020_s17  ;;  %v2746_v25 = vld [vmem:[#allocation2 + $0xe] sm:$0x3]  ;;  %v6527_v49 = vld [vmem:[%s10089_s29 + $0x6] sm:$0x3] }
 0xb87   :  { %2329 = vrot.lane.b32.xlu0 %v2327_v20, %s8020_s17  ;;  %2897 = vrot.lane.b32.xlu1 %v2895_v21, %s8020_s17  ;;  %v2794_v21 = vmul.f32 0.0, %v2746_v25 }
 0xbad   :  { %v1699_v42 = vpop.permute.xlu0 %1698 }
 0xbae   :  { %v1701_v61 = vmul.f32 %v1699_v42, %v1696_v41  ;;  %v2806_v41 = vsel %vm142_vm2, %v2793_v48, 0.0  ;;  %v2487_v42 = vpack.c.bf16 %v6527_v49, %v6527_v49 }
 0xbb0   :  { %v8883_v47 = vadd.f32 %v1702_v22, %v1701_v61  ;;  %v2808_v61 = vsel %vm142_vm2, %v2794_v21, 0.0 }
 0xbb2   :  { %v2374_v7 = vpack.c.bf16 %v8883_v47, %v8883_v47 }
 0xbb4   :  { %2376 = vrot.lane.b32.xlu0 %v2374_v7, %s8020_s17 }
 0xbb8   :  { %2581 = vrot.lane.b32.xlu0 %v2579_v17, %s8020_s17  ;;  %v8964_v17 = vld [vmem:[#allocation13] sm:$0xff]  }
 0xbbc   :  { %2986 = vrot.lane.b32.xlu0 %v2984_v54, %s8020_s17  ;;  %v8975_v54 = vld [vmem:[%s10072_s13] sm:$0xff]  }
 0xbfe   :  { %v2750_v24 = vpop.permute.xlu0 %2749  ;;  %v2760_v30 = vpop.permute.xlu1 %2759 }
 0xbff   :  { %v2787_v31 = vmul.f32 %v2750_v24, %v2739_v33  ;;  %v2789_v38 = vmul.f32 %v2760_v30, %v2741_v35  ;;  %v8988_v24 = vld [vmem:[%s10072_s13 + $0x8] sm:$0xff]  }
 0xc01   :  { %v2798_v43 = vsel %vm142_vm2, %v2789_v38, 0.0 }
 0xc02   :  { %v2755_v50 = vpop.permute.xlu0 %2754  ;;  %v2491_v27 = vpop.permute.xlu1 %2490 }
 0xc06   :  { %v2330_v29 = vpop.permute.xlu0 %2329 }
 0xc07   :  { %7017 = vmatmul.mubr.msk.bf16.vlgmr.msra.gmra.mrb[48].mxu0 %vm228_vm0, %v2330_v29 }
 0xc08   :  { %7029 = vmatpush3.bf16.msra.mxu0 %v8650_v16  ;;  %7032 = vmatprep.mubr.msk.bf16.mxu0 %vm8018_vm1, %v8016_v3  ;;  %v2788_v16 = vmul.f32 %v2755_v50, %v2740_v8 }
 0xc09   :  { %7030 = vmatprep.subr.bf16.mxu0 %v8016_v3 }
 0xc0c   :  { %7031 = vmatpush3.bf16.msra.mxu0 %v8659_v37  ;;  %v2796_v37 = vsel %vm142_vm2, %v2788_v16, 0.0 }
 0xc0d   :  { %7044 = vmatprep.subr.bf16.mxu0 %v8016_v3 }
 0xc0f   :  { %7033 = vmatmul.mubr.msk.bf16.vlgmr.msra.gmra.mrb[52].mxu0 %vm228_vm0, %v2491_v27 }
 0xc10   :  { %7045 = vmatpush3.bf16.msra.mxu0 %v8664_v19  ;;  %7048 = vmatprep.mubr.msk.bf16.mxu0 %vm8018_vm1, %v8016_v3  ;;  %v2795_v19 = vsel %vm142_vm2, %v2787_v31, 0.0 }
 0xc11   :  { %7046 = vmatprep.subr.bf16.mxu0 %v8016_v3  ;;  %v2797_v57 = vadd.f32 %v2796_v37, %v2795_v19 }
 0xc13   :  { %v2799_v46 = vadd.f32 %v2798_v43, %v2797_v57 }
 0xc14   :  { %7047 = vmatpush3.bf16.msra.mxu0 %v8671_v44 }
 0xc15   :  { %7060 = vmatprep.subr.bf16.mxu0 %v8016_v3  ;;  %v2801_v44 = vadd.f32 %v2800_v6, %v2799_v46 }
 0xc17   :  { %v2803_v14 = vadd.f32 %v2802_v59, %v2801_v44 }
 0xc19   :  { %v2805_v39 = vadd.f32 %v2804_v9, %v2803_v14 }
 0xc1b   :  { %v2807_v22 = vadd.f32 %v2806_v41, %v2805_v39 }
 0xc1d   :  { %v2809_v7 = vadd.f32 %v2808_v61, %v2807_v22 }
 0xc26   :  { %v2377_v18 = vpop.permute.xlu0 %2376 }
 0xc27   :  { %7025 = vmatmul.mubr.msk.bf16.vlgmr.msra.gmra.mrb[48].mxu1 %vm228_vm0, %v2377_v18 }
 0xc28   :  { %7037 = vmatpush3.bf16.msra.mxu1 %v8677_v15  ;;  %7040 = vmatprep.mubr.msk.bf16.mxu1 %vm8018_vm1, %v8016_v3  ;;  %v8928_v15 = vld [vmem:[%s10067_s8] sm:$0xff]  }
 0xc29   :  { %7038 = vmatprep.subr.bf16.mxu1 %v8016_v3 }
 0xc2a   :  { %v2582_v20 = vpop.permute.xlu0 %2581 }
 0xc2b   :  { %7049 = vmatmul.mubr.msk.bf16.vlgmr.msra.gmra.mrb[56].mxu0 %vm228_vm0, %v2582_v20 }
 0xc2c   :  { %7039 = vmatpush3.bf16.msra.mxu1 %v8692_v52  ;;  %7061 = vmatpush3.bf16.msra.mxu0 %v8928_v15  ;;  %v8941_v52 = vld [vmem:[%s10067_s8 + $0x8] sm:$0xff]  }
 0xc2d   :  { %7052 = vmatprep.subr.bf16.mxu1 %v8016_v3  ;;  %7062 = vmatprep.subr.bf16.mxu0 %v8016_v3 }
 0xc2e   :  { %7064 = vmatprep.mubr.msk.bf16.mxu0 %vm8018_vm1, %v8016_v3 }
 0xc2f   :  { %7041 = vmatmul.mubr.msk.bf16.vlgmr.msra.gmra.mrb[52].mxu1 %vm228_vm0, %v2487_v42 }
 0xc30   :  { %7053 = vmatpush3.bf16.msra.mxu1 %v8702_v53  ;;  %7063 = vmatpush3.bf16.msra.mxu0 %v8941_v52  ;;  %v2810_v53 = vpack.c.bf16 %v2809_v7, %v2809_v7 }
 0xc31   :  { %7054 = vmatprep.subr.bf16.mxu1 %v8016_v3  ;;  %7076 = vmatprep.subr.bf16.mxu0 %v8016_v3 }
 0xc32   :  { %7056 = vmatprep.mubr.msk.bf16.mxu1 %vm8018_vm1, %v8016_v3 }
 0xc33   :  { %7065 = vmatmul.mubr.msk.bf16.vlgmr.msra.gmra.mrb[60].mxu0 %vm228_vm0, %v2487_v42 }
 0xc34   :  { %7055 = vmatpush3.bf16.msra.mxu1 %v8714_v51  ;;  %7077 = vmatpush3.bf16.msra.mxu0 %v8763_v26  ;;  %v2987_v51 = vpop.permute.xlu0 %2986 }
 0xc35   :  { %7068 = vmatprep.subr.bf16.mxu1 %v8016_v3  ;;  %7078 = vmatprep.subr.bf16.mxu0 %v8016_v3 }
 0xc36   :  { %7080 = vmatprep.mubr.msk.bf16.mxu0 %vm8018_vm1, %v8016_v3 }
 0xc37   :  { %7057 = vmatmul.mubr.msk.bf16.vlgmr.msra.gmra.mrb[56].mxu1 %vm228_vm0, %v2810_v53 }
 0xc38   :  { %7069 = vmatpush3.bf16.msra.mxu1 %v8763_v26  ;;  %7079 = vmatpush3.bf16.msra.mxu0 %v8769_v13  ;;  %v2898_v26 = vpop.permute.xlu1 %2897 }
 0xc39   :  { %7070 = vmatprep.subr.bf16.mxu1 %v8016_v3  ;;  %7072 = vmatprep.mubr.msk.bf16.mxu1 %vm8018_vm1, %v8016_v3 }
 0xc3a   :  { %7092 = vmatprep.subr.bf16.mxu0 %v8016_v3 }
 0xc3b   :  { %7081 = vmatmul.mubr.msk.bf16.vlgmr.msra.gmra.mrb[64].mxu0 %vm228_vm0, %v2987_v51  ;;  %v9001_v51 = vld [vmem:[%s10075_s16] ss:$0 sm:$0xff] }
 0xc3c   :  { %7071 = vmatpush3.bf16.msra.mxu1 %v8769_v13  ;;  %7093 = vmatpush3.bf16.msra.mxu0 %v8964_v17  ;;  %v8981_v13 = vld [vmem:[#allocation13 + $0x8] sm:$0xff]  }
 0xc3d   :  { %7084 = vmatprep.subr.bf16.mxu1 %v8016_v3  ;;  %7094 = vmatprep.subr.bf16.mxu0 %v8016_v3 }
 0xc3e   :  { %7096 = vmatprep.mubr.msk.bf16.mxu0 %vm8018_vm1, %v8016_v3 }
 0xc3f   :  { %7073 = vmatmul.mubr.msk.bf16.vlgmr.msra.gmra.mrb[60].mxu1 %vm228_vm0, %v2898_v26 }
 0xc40   :  { %7085 = vmatpush3.bf16.msra.mxu1 %v8975_v54  ;;  %7088 = vmatprep.mubr.msk.bf16.mxu1 %vm8018_vm1, %v8016_v3 }
 0xc41   :  { %7086 = vmatprep.subr.bf16.mxu1 %v8016_v3  ;;  %7095 = vmatpush3.bf16.msra.mxu0 %v8981_v13 }
 0xc42   :  { %7108 = vmatprep.subr.bf16.mxu0 %v8016_v3 }
 0xc44   :  { %7087 = vmatpush3.bf16.msra.mxu1 %v8988_v24 }
 0xc45   :  { %7100 = vmatprep.subr.bf16.mxu1 %v8016_v3 }
 0xcda   :  { %v2368_v50 = vpop.f32.mrb[48].mxu0 }
 0xcdb   :  { %v7018_v29 = vpop.f32.mrb[49].mxu0 }
 0xcdc   :  { %v2371_v30 = vpop.f32.mrb[50].mxu0 }
 0xcdd   :  { %v7019_v27 = vpop.f32.mrb[51].mxu0 }
 0xce2   :  { %v2529_v8 = vpop.f32.mrb[52].mxu0 }
 0xce3   :  { %v7034_v16 = vpop.f32.mrb[53].mxu0 }
 0xce4   :  { %v2532_v33 = vpop.f32.mrb[54].mxu0 }
 0xce5   :  { %v7035_v31 = vpop.f32.mrb[55].mxu0 }
 0xcfa   :  { %v2415_v37 = vpop.f32.mrb[48].mxu1 }
 0xcfb   :  { %v7026_v35 = vpop.f32.mrb[49].mxu1  ;;  %v2416_v26 = vadd.f32 %v9001_v51, %v2415_v37 }
 0xcfc   :  { %v2418_v45 = vpop.f32.mrb[50].mxu1 }
 0xcfd   :  { %v7027_v38 = vpop.f32.mrb[51].mxu1  ;;  %v9010_v45 = vld [vmem:[%s10074_s15] ss:$0 sm:$0xff] }
 0xcfe   :  { %v2620_v19 = vpop.f32.mrb[56].mxu0  ;;  %v2369_v37 = vadd.f32 %v9010_v45, %v2368_v50 }
 0xcff   :  { %v2621_v57 = vadd.f32 %v8740_v63, %v2620_v19  ;;  %v7050_v4 = vpop.f32.mrb[57].mxu0 }
 0xd00   :  { %v2623_v40 = vpop.f32.mrb[58].mxu0  ;;  %v2421_v38 = vadd.f32 %v2416_v26, %v2369_v37 }
 0xd01   :  { %2634 = vrot.lane.b32.xlu1 %v2621_v57, %s8010_s30  ;;  %v7051_v43 = vpop.f32.mrb[59].mxu0 }
 0xd02   :  { %v2572_v46 = vpop.f32.mrb[52].mxu1  ;;  %v6526_v19 = vmul.f32 -1.442695, %v2421_v38 }
 0xd03   :  { %v2573_v55 = vadd.f32 %v2572_v46, %v2529_v8  ;;  %v7042_v6 = vpop.f32.mrb[53].mxu1 }
 0xd04   :  { %v2575_v2 = vpop.f32.mrb[54].mxu1 }
 0xd05   :  { %v7043_v44 = vpop.f32.mrb[55].mxu1  ;;  %v2578_v29 = vadd.f32 %v8783_v28, %v2573_v55 }
 0xd06   :  { %v2888_v60 = vpop.f32.mrb[60].mxu0 }
 0xd07   :  { %v7066_v59 = vpop.f32.mrb[61].mxu0  ;;  %v2626_v30 = vadd.f32 %v2621_v57, %v2578_v29 }
 0xd08   :  { %v2891_v12 = vpop.f32.mrb[62].mxu0 }
 0xd09   :  { %v7067_v14 = vpop.f32.mrb[63].mxu0  ;;  %v6533_v27 = vmul.f32 -1.442695, %v2626_v30 }
 0xd0a   :  { %v2848_v9 = vpop.f32.mrb[56].mxu1 }
 0xd0b   :  { %v2889_v18 = vadd.f32 %v2888_v60, %v2848_v9  ;;  %v7058_v48 = vpop.f32.mrb[57].mxu1  ;;  %7539 = vpow2.f32 %v6533_v27 }
 0xd0c   :  { %v2851_v25 = vpop.f32.mrb[58].mxu1  ;;  %v6528_v48 = vld [vmem:[%s10090_s5 + $0x6] sm:$0x3] }
 0xd0d   :  { %v7059_v49 = vpop.f32.mrb[59].mxu1 }
 0xd0e   :  { %v3025_v63 = vpop.f32.mrb[64].mxu0  ;;  %v2968_v49 = vsub.f32 1.0, %v6528_v48 }
 0xd0f   :  { %v3026_v39 = vadd.f32 %v8792_v58, %v3025_v63  ;;  %v7082_v20 = vpop.f32.mrb[65].mxu0 }
 0xd10   :  { %v3028_v21 = vpop.f32.mrb[66].mxu0 }
 0xd11   :  { %3039 = vrot.lane.b32.xlu1 %v3026_v39, %s8010_s30  ;;  %v7083_v41 = vpop.f32.mrb[67].mxu0 }
 0xd12   :  { %v2936_v42 = vpop.f32.mrb[60].mxu1 }
 0xd13   :  { %v2937_v22 = vadd.f32 %v8792_v58, %v2936_v42  ;;  %v7074_v61 = vpop.f32.mrb[61].mxu1  ;;  %v2894_v58 = vadd.f32 %v8798_v1, %v2889_v18 }
 0xd14   :  { %v2939_v7 = vpop.f32.mrb[62].mxu1 }
 0xd15   :  { %2950 = vrot.lane.b32.xlu0 %v2937_v22, %s8010_s30  ;;  %v7075_v53 = vpop.f32.mrb[63].mxu1  ;;  %v3031_v8 = vadd.f32 %v3026_v39, %v2894_v58  ;;  %v7540_v16 = vpop.eup %7539  ;;  %v2942_v31 = vadd.f32 %v2937_v22, %v2894_v58 }
 0xd16   :  { %v2630_v35 = vadd.f32 1.0, %v7540_v16 }
 0xd17   :  { %v6539_v33 = vmul.f32 -1.442695, %v3031_v8  ;;  %v6537_v28 = vmul.f32 -1.442695, %v2942_v31 }
 0xd19   :  { %2429 = vrot.lane.b32.xlu0 %v2416_v26, %s8010_s30  ;;  %7541 = vpow2.f32 %v6539_v33  ;;  %v6545_v26 = vld [vmem:[%s10087_s1 + $0x8] sm:$0x3] }
 0xd1a   :  { %7543 = vrcp.f32 %v2630_v35 }
 0xd1b   :  { %7545 = vpow2.f32 %v6537_v28 }
 0xd1c   :  { %7547 = vpow2.f32 %v6526_v19 }
 0xd23   :  { %v7542_v1 = vpop.eup %7541 }
 0xd24   :  { %v7544_v57 = vpop.eup %7543  ;;  %v3035_v43 = vadd.f32 1.0, %v7542_v1 }
 0xd25   :  { %v7546_v46 = vpop.eup %7545  ;;  %v2644_v27 = vsub.f32 1.0, %v7544_v57  ;;  %v2650_v8 = vmul.f32 %v7544_v57, %v8802_v10 }
 0xd26   :  { %7549 = vrcp.f32 %v3035_v43  ;;  %v2946_v55 = vadd.f32 1.0, %v7546_v46  ;;  %v7548_v6 = vpop.eup %7547 }
 0xd27   :  { %v2425_v2 = vadd.f32 1.0, %v7548_v6 }
 0xd28   :  { %7551 = vrcp.f32 %v2946_v55 }
 0xd29   :  { %7553 = vrcp.f32 %v2425_v2 }
 0xd30   :  { %v7550_v50 = vpop.eup %7549 }
 0xd31   :  { %v3049_v19 = vsub.f32 1.0, %v7550_v50 }
 0xd32   :  { %v7552_v59 = vpop.eup %7551 }
 0xd33   :  { %v9016_v9 = vpop.eup %7553  ;;  %v2960_v46 = vsub.f32 1.0, %v7552_v59  ;;  %v2966_v55 = vmul.f32 %v7552_v59, %v8865_v36 }
 0xd73   :  { %v2635_v4 = vpop.permute.xlu1 %2634 }
 0xd74   :  { %v2637_v40 = vmul.f32 %v7544_v57, %v2635_v4 }
 0xd76   :  { %2639 = vrot.lane.b32.xlu1 %v2637_v40, %s8010_s30  ;;  %v3055_v40 = vmul.f32 %v7550_v50, %v8861_v11 }
 0xd83   :  { %v3040_v44 = vpop.permute.xlu1 %3039 }
 0xd84   :  { %v3042_v60 = vmul.f32 %v7550_v50, %v3040_v44 }
 0xd86   :  { %3044 = vrot.lane.b32.xlu1 %v3042_v60, %s8010_s30 }
 0xd87   :  { %v2951_v12 = vpop.permute.xlu0 %2950 }
 0xd88   :  { %v2953_v14 = vmul.f32 %v7552_v59, %v2951_v12 }
 0xd8a   :  { %2955 = vrot.lane.b32.xlu0 %v2953_v14, %s8010_s30 }
 0xd8b   :  { %v2430_v18 = vpop.permute.xlu0 %2429 }
 0xd8c   :  { %v2432_v25 = vmul.f32 %v9016_v9, %v2430_v18 }
 0xd8e   :  { %2434 = vrot.lane.b32.xlu0 %v2432_v25, %s8010_s30 }
 0xd92   :  { %2971 = vperm.xlu0 %7419, %v2968_v49  }
 0xd96   :  { %7422 = vset.pattern.permute.xlu0 %v8017_v5 }
 0xd97   :  { %3058 = vperm.xlu0 %7422, %v2968_v49  }
 0xde8   :  { %v2640_v63 = vpop.permute.xlu1 %2639 }
 0xde9   :  { %v2642_v39 = vadd.f32 %v2640_v63, %v2578_v29 }
 0xdeb   :  { %7555 = vtanh.f32 %v2642_v39  ;;  %v2439_v39 = vsub.f32 1.0, %v9016_v9 }
 0xdf5   :  { %v7556_v20 = vpop.eup %7555 }
 0xdf6   :  { %2646 = vrot.lane.b32.xlu1 %v7556_v20, %s8020_s17 }
 0xdf8   :  { %v3045_v21 = vpop.permute.xlu1 %3044 }
 0xdf9   :  { %v3047_v41 = vadd.f32 %v3045_v21, %v2894_v58 }
 0xdfa   :  { %2977 = vperm.xlu1 %7421, %v6528_v48  }
 0xdfb   :  { %7557 = vtanh.f32 %v3047_v41 }
 0xdfc   :  { %v2956_v42 = vpop.permute.xlu0 %2955 }
 0xdfd   :  { %v2958_v22 = vadd.f32 %v2956_v42, %v2894_v58 }
 0xdfe   :  { %7423 = vset.pattern.permute.xlu1 %v8017_v5 }
 0xdff   :  { %7559 = vtanh.f32 %v2958_v22  ;;  %3063 = vperm.xlu1 %7423, %v6528_v48  }
 0xe00   :  { %v2435_v61 = vpop.permute.xlu0 %2434 }
 0xe01   :  { %v2437_v7 = vadd.f32 %v2435_v61, %v2369_v37 }
 0xe03   :  { %7424 = vset.pattern.permute.xlu1 %v8015_v0  ;;  %7561 = vtanh.f32 %v2437_v7 }
 0xe05   :  { %v7558_v53 = vpop.eup %7557 }
 0xe06   :  { %3051 = vrot.lane.b32.xlu0 %v7558_v53, %s8020_s17 }
 0xe09   :  { %v7560_v29 = vpop.eup %7559 }
 0xe0a   :  { %3225 = vperm.xlu0 %7422, %v6545_v26   ;;  %2962 = vrot.lane.b32.xlu1 %v7560_v29, %s8020_s17 }
 0xe0d   :  { %v7562_v30 = vpop.eup %7561 }
 0xe0e   :  { %3220 = vperm.xlu1 %7424, %v6545_v26   ;;  %7425 = vset.pattern.permute.xlu0 %v8015_v0  ;;  %v9078_v26 = vld [vmem:[%s10063_s4] sm:$0xff]  }
 0xe11   :  { %v2972_v35 = vpop.permute.xlu0 %2971 }
 0xe12   :  { %2441 = vrot.lane.b32.xlu1 %v7562_v30, %s8020_s17  ;;  %v2974_v60 = vmul.f32 %v2972_v35, %v8865_v36  ;;  %v9087_v30 = vld [vmem:[%s10063_s4 + $0x8] sm:$0xff]  }
 0xe16   :  { %v3059_v37 = vpop.permute.xlu0 %3058 }
 0xe17   :  { %v3061_v2 = vmul.f32 %v3059_v37, %v8861_v11  ;;  %v9114_v37 = vld [vmem:[%s10088_s7 + $0x8] sm:$0xff]  }
 0xe68   :  { %v2647_v58 = vpop.permute.xlu1 %2646 }
 0xe69   :  { %v2649_v16 = vmul.f32 %v2647_v58, %v2644_v27 }
 0xe6b   :  { %v9035_v33 = vadd.f32 %v2650_v8, %v2649_v16  ;;  %v9096_v8 = vld [vmem:[%s10088_s7] sm:$0xff]  }
 0xe6c   :  { %v9099_v16 = vld [vmem:[#allocation4] sm:$0xff]  }
 0xe6d   :  { %v3196_v31 = vmul.f32 %v9035_v33, %v8373_v62  ;;  %v3322_v42 = vpack.c.bf16 %v9035_v33, %v9035_v33 }
 0xe6f   :  { %3198 = vrot.lane.b32.xlu0 %v3196_v31, %s8020_s17  ;;  %v6543_v31 = vld [vmem:[%s10089_s29 + $0x8] sm:$0x3] }
 0xe70   :  { %v3230_v35 = vpack.c.bf16 %v6543_v31, %v6543_v31 }
 0xe78   :  { %v3052_v28 = vpop.permute.xlu0 %3051 }
 0xe79   :  { %v2978_v38 = vpop.permute.xlu1 %2977  ;;  %v3054_v1 = vmul.f32 %v3052_v28, %v3049_v19  ;;  %v9128_v28 = vld [vmem:[#allocation9] sm:$0xff]   ;;  %v9136_v19 = vld [vmem:[#allocation9 + $0x8] sm:$0xff]  }
 0xe7b   :  { %v3056_v43 = vadd.f32 %v3055_v40, %v3054_v1  ;;  %v3395_v40 = vld [vmem:[#allocation3] sm:$0x3] }
 0xe7e   :  { %v3064_v4 = vpop.permute.xlu1 %3063 }
 0xe7f   :  { %v3066_v57 = vmul.f32 %v3064_v4, %v3056_v43  ;;  %v3396_v4 = vld [vmem:[#allocation3 + $0x2] sm:$0x3]  ;;  %v3397_v43 = vld [vmem:[#allocation3 + $0x4] sm:$0x3] }
 0xe81   :  { %v9044_v12 = vadd.f32 %v3066_v57, %v3061_v2  ;;  %v3413_v57 = vsel %vm151_vm3, %v3397_v43, -inf }
 0xe82   :  { %v2963_v10 = vpop.permute.xlu1 %2962 }
 0xe83   :  { %v2965_v6 = vmul.f32 %v2963_v10, %v2960_v46  ;;  %v3068_v25 = vmul.f32 %v9044_v12, %v8839_v23  ;;  %v3412_v46 = vsel %vm151_vm3, %v3396_v4, -inf  ;;  %v3411_v10 = vsel %vm151_vm3, %v3395_v40, -inf }
 0xe85   :  { %v2967_v44 = vadd.f32 %v2966_v55, %v2965_v6  ;;  %v3418_v6 = vmax.f32 %v3412_v46, %v8471_v56 }
 0xe87   :  { %v2980_v14 = vmul.f32 %v2978_v38, %v2967_v44  ;;  %v9117_v38 = vld [vmem:[#allocation4 + $0x8] sm:$0xff]   ;;  %v3416_v44 = vmax.f32 %v3411_v10, %v8471_v56 }
 0xe89   :  { %v9046_v18 = vadd.f32 %v2980_v14, %v2974_v60  ;;  %v9048_v48 = vpop.permute.xlu0 %3225  ;;  %v3420_v60 = vmax.f32 %v3413_v57, %v8471_v56 }
 0xe8a   :  { %v3228_v11 = vmul.f32 %v9048_v48, %v9044_v12 }
 0xe8b   :  { %v2982_v50 = vmul.f32 %v9046_v18, %v8863_v34  ;;  %v2445_v34 = vmul.f32 %v9016_v9, %v8883_v47 }
 0xe8d   :  { %v9054_v59 = vpop.permute.xlu1 %3220  ;;  %v3069_v49 = vadd.f32 %v3068_v25, %v2982_v50  ;;  %v3423_v50 = vmax.f32 %v3416_v44, %v3418_v6 }
 0xe8e   :  { %v3223_v36 = vmul.f32 %v9054_v59, %v9046_v18 }
 0xe8f   :  { %v3070_v63 = vpack.c.bf16 %v3069_v49, %v3069_v49 }
 0xe90   :  { %v3229_v20 = vadd.f32 %v3228_v11, %v3223_v36 }
 0xe91   :  { %v2442_v21 = vpop.permute.xlu1 %2441  ;;  %3072 = vrot.lane.b32.xlu1 %v3070_v63, %s8020_s17 }
 0xe92   :  { %v2444_v23 = vmul.f32 %v2442_v21, %v2439_v39  ;;  %v3231_v41 = vpack.c.bf16 %v3229_v20, %v3229_v20 }
 0xe94   :  { %v9066_v22 = vadd.f32 %v2445_v34, %v2444_v23  ;;  %3233 = vrot.lane.b32.xlu0 %v3231_v41, %s8020_s17 }
 0xe95   :  { %3324 = vrot.lane.b32.xlu1 %v3322_v42, %s8020_s17 }
 0xe96   :  { %v3117_v61 = vpack.c.bf16 %v9066_v22, %v9066_v22 }
 0xe99   :  { %3119 = vrot.lane.b32.xlu1 %v3117_v61, %s8020_s17 }
 0xee1   :  { %v3199_v7 = vpop.permute.xlu0 %3198 }
 0xee2   :  { %v3201_v53 = vsel %vm142_vm2, %v3199_v7, 0.0 }
 0xee3   :  { %3202 = vadd.xlane.f32.xlu0 %v3201_v53 }
 0xf03   :  { %v3073_v9 = vpop.permute.xlu1 %3072 }
 0xf04   :  { %7089 = vmatmul.mubr.msk.bf16.vlgmr.msra.gmra.mrb[64].mxu1 %vm228_vm0, %v3073_v9 }
 0xf05   :  { %7101 = vmatpush3.bf16.msra.mxu1 %v9078_v26  ;;  %7104 = vmatprep.mubr.msk.bf16.mxu1 %vm8018_vm1, %v8016_v3 }
 0xf06   :  { %7102 = vmatprep.subr.bf16.mxu1 %v8016_v3  ;;  %v3234_v27 = vpop.permute.xlu0 %3233 }
 0xf07   :  { %v3325_v29 = vpop.permute.xlu1 %3324 }
 0xf09   :  { %7103 = vmatpush3.bf16.msra.mxu1 %v9087_v30 }
 0xf0a   :  { %7116 = vmatprep.subr.bf16.mxu1 %v8016_v3 }
 0xf0b   :  { %v3120_v58 = vpop.permute.xlu1 %3119 }
 0xf0c   :  { %7097 = vmatmul.mubr.msk.bf16.vlgmr.msra.gmra.mrb[68].mxu0 %vm228_vm0, %v3120_v58  ;;  %7105 = vmatmul.mubr.msk.bf16.vlgmr.msra.gmra.mrb[68].mxu1 %vm228_vm0, %v3234_v27 }
 0xf0d   :  { %7109 = vmatpush3.bf16.msra.mxu0 %v9096_v8  ;;  %7117 = vmatpush3.bf16.msra.mxu1 %v9099_v16 }
 0xf0e   :  { %7110 = vmatprep.subr.bf16.mxu0 %v8016_v3  ;;  %7118 = vmatprep.subr.bf16.mxu1 %v8016_v3 }
 0xf0f   :  { %7112 = vmatprep.mubr.msk.bf16.mxu0 %vm8018_vm1, %v8016_v3  ;;  %7120 = vmatprep.mubr.msk.bf16.mxu1 %vm8018_vm1, %v8016_v3 }
 0xf11   :  { %7111 = vmatpush3.bf16.msra.mxu0 %v9114_v37  ;;  %7119 = vmatpush3.bf16.msra.mxu1 %v9117_v38 }
 0xf12   :  { %7132 = vmatprep.subr.bf16.mxu1 %v8016_v3  ;;  %7124 = vmatprep.subr.bf16.mxu0 %v8016_v3 }
 0xf14   :  { %7113 = vmatmul.mubr.msk.bf16.vlgmr.msra.gmra.mrb[72].mxu0 %vm228_vm0, %v3230_v35  ;;  %7121 = vmatmul.mubr.msk.bf16.vlgmr.msra.gmra.mrb[72].mxu1 %vm228_vm0, %v3325_v29 }
 0xf15   :  { %7133 = vmatpush3.bf16.msra.mxu1 %v8928_v15  ;;  %7136 = vmatprep.mubr.msk.bf16.mxu1 %vm8018_vm1, %v8016_v3  ;;  %v9141_v15 = vld [vmem:[#allocation10] sm:$0xff]  }
 0xf16   :  { %7134 = vmatprep.subr.bf16.mxu1 %v8016_v3  ;;  %7125 = vmatpush3.bf16.msra.mxu0 %v9128_v28 }
 0xf17   :  { %7126 = vmatprep.subr.bf16.mxu0 %v8016_v3  ;;  %7128 = vmatprep.mubr.msk.bf16.mxu0 %vm8018_vm1, %v8016_v3 }
 0xf19   :  { %7135 = vmatpush3.bf16.msra.mxu1 %v8941_v52  ;;  %v9147_v52 = vld [vmem:[#allocation10 + $0x8] sm:$0xff]  }
 0xf1a   :  { %7148 = vmatprep.subr.bf16.mxu1 %v8016_v3  ;;  %7127 = vmatpush3.bf16.msra.mxu0 %v9136_v19 }
 0xf1b   :  { %7140 = vmatprep.subr.bf16.mxu0 %v8016_v3 }
 0xf1c   :  { %7137 = vmatmul.mubr.msk.bf16.vlgmr.msra.gmra.mrb[76].mxu1 %vm228_vm0, %v3230_v35 }
 0xf1d   :  { %7149 = vmatpush3.bf16.msra.mxu1 %v9141_v15  ;;  %7152 = vmatprep.mubr.msk.bf16.mxu1 %vm8018_vm1, %v8016_v3 }
 0xf1e   :  { %7150 = vmatprep.subr.bf16.mxu1 %v8016_v3 }
 0xf21   :  { %7151 = vmatpush3.bf16.msra.mxu1 %v9147_v52 }
 0xf22   :  { %7164 = vmatprep.subr.bf16.mxu1 %v8016_v3 }
 0xf70   :  { %v3203_v1 = vpop.xlane.xlu0 %3202 }
 0xf71   :  { %3205 = vst.msk [vmem:[#allocation3 + $0x6] sm:$0x3] %vm151_vm3, %v3203_v1 }
 0xf78   :  { %v3398_v55 = vld [vmem:[#allocation3 + $0x6] sm:$0x3] }
 0xf79   :  { %v3414_v2 = vsel %vm151_vm3, %v3398_v55, -inf }
 0xf7a   :  { %v3422_v14 = vmax.f32 %v3414_v2, %v8471_v56 }
 0xf7c   :  { %v3424_v25 = vmax.f32 %v3420_v60, %v3422_v14 }
 0xf7e   :  { %v3425_v49 = vmax.f32 %v3423_v50, %v3424_v25  ;;  %v3638_v50 = vpack.c.bf16 %v9046_v18, %v9046_v18  ;;  %v3727_v25 = vpack.c.bf16 %v9044_v12, %v9044_v12 }
 0xf80   :  { %v3426_v11 = vsub.f32 %v3395_v40, %v3425_v49  ;;  %v3427_v36 = vsub.f32 %v3396_v4, %v3425_v49  ;;  %v3428_v63 = vsub.f32 %v3397_v43, %v3425_v49  ;;  %v3429_v39 = vsub.f32 %v3398_v55, %v3425_v49 }
 0xf81   :  { %v3430_v20 = vsub.f32 -1e+30, %v3425_v49 }
 0xf82   :  { %v3434_v21 = vmul.f32 1.442695, %v3426_v11  ;;  %v3436_v34 = vmul.f32 1.442695, %v3427_v36  ;;  %v3438_v23 = vmul.f32 1.442695, %v3428_v63 }
 0xf83   :  { %v3440_v41 = vmul.f32 1.442695, %v3429_v39  ;;  %v3442_v42 = vmul.f32 1.442695, %v3430_v20 }
 0xf84   :  { %7563 = vpow2.f32 %v3434_v21 }
 0xf85   :  { %7565 = vpow2.f32 %v3436_v34 }
 0xf86   :  { %7567 = vpow2.f32 %v3438_v23 }
 0xf87   :  { %7569 = vpow2.f32 %v3440_v41 }
 0xf88   :  { %7571 = vpow2.f32 %v3442_v42 }
 0xf8e   :  { %v7564_v61 = vpop.eup %7563 }
 0xf8f   :  { %v7566_v7 = vpop.eup %7565  ;;  %v3450_v53 = vsel %vm151_vm3, %v7564_v61, 0.0 }
 0xf90   :  { %v7568_v9 = vpop.eup %7567  ;;  %v3451_v29 = vsel %vm151_vm3, %v7566_v7, 0.0 }
 0xf91   :  { %v7570_v27 = vpop.eup %7569  ;;  %v3452_v58 = vadd.f32 %v3451_v29, %v3450_v53  ;;  %v3453_v31 = vsel %vm151_vm3, %v7568_v9, 0.0  ;;  %v9175_v29 = vld [vmem:[#allocation7] ss:$0 sm:$0xff] }
 0xf92   :  { %v7572_v35 = vpop.eup %7571  ;;  %v3455_v4 = vsel %vm151_vm3, %v7570_v27, 0.0 }
 0xf93   :  { %v3454_v1 = vadd.f32 %v3453_v31, %v3452_v58  ;;  %v3457_v43 = vsel %vm151_vm3, %v7572_v35, 0.0 }
 0xf95   :  { %v3456_v40 = vadd.f32 %v3455_v4, %v3454_v1 }
 0xf97   :  { %v3458_v46 = vadd.f32 %v3457_v43, %v3456_v40 }
 0xf99   :  { %v3460_v10 = vadd.f32 %v3458_v46, %v3457_v43 }
 0xf9b   :  { %v3462_v57 = vadd.f32 %v3460_v10, %v3457_v43 }
 0xf9d   :  { %v3464_v55 = vadd.f32 %v3462_v57, %v3457_v43 }
 0xf9f   :  { %7573 = vrcp.f32 %v3464_v55  ;;  %v9187_v55 = vld [vmem:[%s10065_s6] ss:$0 sm:$0xff] }
 0xfa9   :  { %v7574_v6 = vpop.eup %7573 }
 0xfaa   :  { %v3466_v2 = vmul.f32 %v7574_v6, %v7564_v61  ;;  %v3467_v44 = vmul.f32 %v7574_v6, %v7566_v7  ;;  %v3468_v60 = vmul.f32 %v7574_v6, %v7568_v9  ;;  %v3469_v14 = vmul.f32 %v7574_v6, %v7570_v27 }
 0xfac   :  { %3492 = vperm.xlu1 %7424, %v3466_v2   ;;  %v3483_v2 = vld [vmem:[#allocation2 + $0x2] sm:$0x3] }
 0xfb0   :  { %3497 = vperm.xlu1 %7424, %v3467_v44  }
 0xfb4   :  { %3502 = vperm.xlu1 %7424, %v3468_v60  }
 0xfb8   :  { %3191 = vrot.lane.b32.xlu1 %v9035_v33, %s8020_s17 }
 0xfbc   :  { %3507 = vperm.xlu1 %7424, %v3469_v14   ;;  %v3482_v14 = vld [vmem:[#allocation2] sm:$0x3] }
 0xfc0   :  { %3640 = vrot.lane.b32.xlu1 %v3638_v50, %s8020_s17  ;;  %v3484_v50 = vld [vmem:[#allocation2 + $0x4] sm:$0x3] }
 0xfc4   :  { %3729 = vrot.lane.b32.xlu1 %v3727_v25, %s8020_s17 }
 0xfd7   :  { %v9173_v49 = vpop.f32.mrb[64].mxu1 }
 0xfd8   :  { %v7090_v11 = vpop.f32.mrb[65].mxu1 }
 0xfd9   :  { %v3114_v36 = vpop.f32.mrb[66].mxu1 }
 0xfda   :  { %v7091_v63 = vpop.f32.mrb[67].mxu1  ;;  %v3486_v36 = vld [vmem:[#allocation2 + $0x8] sm:$0x3] }
 0xfdf   :  { %v3158_v39 = vpop.f32.mrb[68].mxu0  ;;  %v3272_v20 = vpop.f32.mrb[68].mxu1 }
 0xfe0   :  { %v7098_v21 = vpop.f32.mrb[69].mxu0  ;;  %v7106_v34 = vpop.f32.mrb[69].mxu1  ;;  %v9180_v43 = vadd.f32 %v9001_v51, %v3158_v39 }
 0xfe1   :  { %v3161_v23 = vpop.f32.mrb[70].mxu0  ;;  %v3275_v41 = vpop.f32.mrb[70].mxu1  ;;  %v3487_v21 = vld [vmem:[#allocation2 + $0xa] sm:$0x3] }
 0xfe2   :  { %v7099_v42 = vpop.f32.mrb[71].mxu0  ;;  %v7107_v61 = vpop.f32.mrb[71].mxu1  ;;  %v3534_v41 = vmul.f32 0.0, %v3486_v36 }
 0xfe7   :  { %v3315_v7 = vpop.f32.mrb[72].mxu0  ;;  %v3363_v53 = vpop.f32.mrb[72].mxu1 }
 0xfe8   :  { %v3316_v9 = vadd.f32 %v3315_v7, %v3272_v20  ;;  %v3364_v27 = vadd.f32 %v9175_v29, %v3363_v53  ;;  %v7122_v58 = vpop.f32.mrb[73].mxu1  ;;  %v7114_v31 = vpop.f32.mrb[73].mxu0  ;;  %v3488_v7 = vld [vmem:[#allocation2 + $0xc] sm:$0x3] }
 0xfe9   :  { %v3366_v35 = vpop.f32.mrb[74].mxu1  ;;  %v3318_v1 = vpop.f32.mrb[74].mxu0  ;;  %v3489_v31 = vld [vmem:[#allocation2 + $0xe] sm:$0x3] }
 0xfea   :  { %3377 = vrot.lane.b32.xlu0 %v3364_v27, %s8010_s30  ;;  %v7123_v4 = vpop.f32.mrb[75].mxu1  ;;  %v7115_v40 = vpop.f32.mrb[75].mxu0  ;;  %v9190_v6 = vadd.f32 %v9187_v55, %v3316_v9  ;;  %v3535_v9 = vmul.f32 0.0, %v3487_v21  ;;  %v3536_v35 = vmul.f32 0.0, %v3488_v7  ;;  %v3545_v1 = vsel %vm142_vm2, %v3534_v41, 0.0 }
 0xfec   :  { %v3369_v51 = vadd.f32 %v3364_v27, %v9190_v6 }
 0xfee   :  { %3172 = vrot.lane.b32.xlu0 %v9180_v43, %s8010_s30  ;;  %v6549_v20 = vmul.f32 -1.442695, %v3369_v51 }
 0xff0   :  { %7575 = vpow2.f32 %v6549_v20 }
0x102b   :  { %v3493_v46 = vpop.permute.xlu1 %3492 }
0x102c   :  { %v3530_v25 = vmul.f32 %v3493_v46, %v3482_v14 }
0x102e   :  { %v3538_v34 = vsel %vm142_vm2, %v3530_v25, 0.0 }
0x102f   :  { %v3498_v10 = vpop.permute.xlu1 %3497 }
0x1030   :  { %v3531_v60 = vmul.f32 %v3498_v10, %v3483_v2  ;;  %v3547_v10 = vsel %vm142_vm2, %v3535_v9, 0.0 }
0x1032   :  { %v3539_v39 = vsel %vm142_vm2, %v3531_v60, 0.0 }
0x1033   :  { %v3503_v57 = vpop.permute.xlu1 %3502  ;;  %v3540_v42 = vadd.f32 %v3539_v39, %v3538_v34  ;;  %v3631_v39 = vpop.f32.mrb[76].mxu1 }
0x1034   :  { %v3532_v11 = vmul.f32 %v3503_v57, %v3484_v50  ;;  %v3537_v57 = vmul.f32 0.0, %v3489_v31  ;;  %v7576_v50 = vpop.eup %7575  ;;  %v7138_v20 = vpop.f32.mrb[77].mxu1 }
0x1035   :  { %v3373_v36 = vadd.f32 1.0, %v7576_v50  ;;  %v3634_v21 = vpop.f32.mrb[78].mxu1  ;;  %v9241_v50 = vld [vmem:[#allocation12] ss:$0 sm:$0xff] }
0x1036   :  { %v3541_v23 = vsel %vm142_vm2, %v3532_v11, 0.0  ;;  %v3551_v51 = vsel %vm142_vm2, %v3537_v57, 0.0  ;;  %v7139_v34 = vpop.f32.mrb[79].mxu1 }
0x1037   :  { %v3192_v44 = vpop.permute.xlu1 %3191  ;;  %v3542_v58 = vadd.f32 %v3541_v23, %v3540_v42  ;;  %7577 = vrcp.f32 %v3373_v36 }
0x1038   :  { %3195 = vst.msk [vmem:[#allocation2 + $0x6] sm:$0x3] %vm142_vm2, %v3192_v44  ;;  %v3549_v44 = vsel %vm142_vm2, %v3536_v35, 0.0 }
0x103b   :  { %v3508_v63 = vpop.permute.xlu1 %3507 }
0x103f   :  { %v3485_v61 = vld [vmem:[#allocation2 + $0x6] sm:$0x3]  ;;  %v3641_v53 = vpop.permute.xlu1 %3640 }
0x1040   :  { %v3533_v27 = vmul.f32 %v3508_v63, %v3485_v61 }
0x1042   :  { %v3543_v4 = vsel %vm142_vm2, %v3533_v27, 0.0 }
0x1043   :  { %v3544_v40 = vadd.f32 %v3543_v4, %v3542_v58  ;;  %v3730_v46 = vpop.permute.xlu1 %3729 }
0x1044   :  { %7153 = vmatmul.mubr.msk.bf16.vlgmr.msra.gmra.mrb[80].mxu1 %vm228_vm0, %v3730_v46 }
0x1045   :  { %v3546_v2 = vadd.f32 %v3545_v1, %v3544_v40  ;;  %7165 = vmatpush3.bf16.msra.mxu1 %v8964_v17  ;;  %7168 = vmatprep.mubr.msk.bf16.mxu1 %vm8018_vm1, %v8016_v3  ;;  %v7578_v17 = vpop.eup %7577  ;;  %v9229_v1 = vld [vmem:[%s10071_s12] ss:$0 sm:$0xff] }
0x1046   :  { %7166 = vmatprep.subr.bf16.mxu1 %v8016_v3  ;;  %v3387_v57 = vsub.f32 1.0, %v7578_v17 }
0x1047   :  { %v3548_v60 = vadd.f32 %v3547_v10, %v3546_v2 }
0x1049   :  { %v3550_v14 = vadd.f32 %v3549_v44, %v3548_v60  ;;  %7167 = vmatpush3.bf16.msra.mxu1 %v8981_v13  ;;  %v3393_v44 = vmul.f32 %v7578_v17, %v9035_v33 }
0x104a   :  { %7180 = vmatprep.subr.bf16.mxu1 %v8016_v3 }
0x104b   :  { %v3552_v25 = vadd.f32 %v3551_v51, %v3550_v14 }
0x104d   :  { %v3553_v11 = vpack.c.bf16 %v3552_v25, %v3552_v25 }
0x104f   :  { %7129 = vmatmul.mubr.msk.bf16.vlgmr.msra.gmra.mrb[76].mxu0 %vm228_vm0, %v3553_v11 }
0x1050   :  { %7141 = vmatpush3.bf16.msra.mxu0 %v9141_v15  ;;  %7144 = vmatprep.mubr.msk.bf16.mxu0 %vm8018_vm1, %v8016_v3 }
0x1051   :  { %7142 = vmatprep.subr.bf16.mxu0 %v8016_v3 }
0x1054   :  { %7143 = vmatpush3.bf16.msra.mxu0 %v9147_v52 }
0x1055   :  { %7156 = vmatprep.subr.bf16.mxu0 %v8016_v3 }
0x1057   :  { %7145 = vmatmul.mubr.msk.bf16.vlgmr.msra.gmra.mrb[80].mxu0 %vm228_vm0, %v3641_v53 }
0x1058   :  { %7157 = vmatpush3.bf16.msra.mxu0 %v8975_v54  ;;  %7160 = vmatprep.mubr.msk.bf16.mxu0 %vm8018_vm1, %v8016_v3 }
0x1059   :  { %7158 = vmatprep.subr.bf16.mxu0 %v8016_v3 }
0x105c   :  { %v3378_v13 = vpop.permute.xlu0 %3377  ;;  %7159 = vmatpush3.bf16.msra.mxu0 %v8988_v24 }
0x105d   :  { %v3380_v63 = vmul.f32 %v7578_v17, %v3378_v13  ;;  %7172 = vmatprep.subr.bf16.mxu0 %v8016_v3 }
0x105f   :  { %3382 = vrot.lane.b32.xlu1 %v3380_v63, %s8010_s30  ;;  %v3112_v63 = vadd.f32 %v9010_v45, %v9173_v49 }
0x1061   :  { %v3164_v33 = vadd.f32 %v9180_v43, %v3112_v63 }
0x10d1   :  { %v3383_v23 = vpop.permute.xlu1 %3382 }
0x10d2   :  { %v3385_v54 = vadd.f32 %v3383_v23, %v9190_v6 }
0x10d4   :  { %7579 = vtanh.f32 %v3385_v54 }
0x10de   :  { %v7580_v41 = vpop.eup %7579 }
0x10df   :  { %3389 = vrot.lane.b32.xlu1 %v7580_v41, %s8020_s17 }
0x1117   :  { %v3768_v42 = vpop.f32.mrb[80].mxu1 }
0x1118   :  { %v7154_v61 = vpop.f32.mrb[81].mxu1  ;;  %v3769_v10 = vadd.f32 %v9229_v1, %v3768_v42 }
0x1119   :  { %v3771_v7 = vpop.f32.mrb[82].mxu1 }
0x111a   :  { %v7155_v24 = vpop.f32.mrb[83].mxu1 }
0x111b   :  { %v3173_v24 = vpop.permute.xlu0 %3172 }
0x1122   :  { %v3591_v53 = vpop.f32.mrb[76].mxu0 }
0x1123   :  { %v3632_v9 = vadd.f32 %v3631_v39, %v3591_v53  ;;  %v7130_v27 = vpop.f32.mrb[77].mxu0  ;;  %v6542_v39 = vmul.f32 -1.442695, %v3164_v33  ;;  %v4138_v33 = vld [vmem:[#allocation3] sm:$0x3] }
0x1124   :  { %v3594_v58 = vpop.f32.mrb[78].mxu0 }
0x1125   :  { %v7131_v31 = vpop.f32.mrb[79].mxu0  ;;  %v3637_v25 = vadd.f32 %v9241_v50, %v3632_v9  ;;  %v6544_v9 = vld [vmem:[%s10090_s5 + $0x8] sm:$0x3] }
0x1126   :  { %v3711_v58 = vsub.f32 1.0, %v6544_v9 }
0x1127   :  { %v3774_v36 = vadd.f32 %v3769_v10, %v3637_v25 }
0x1129   :  { %v6555_v17 = vmul.f32 -1.442695, %v3774_v36  ;;  %v4139_v36 = vld [vmem:[#allocation3 + $0x2] sm:$0x3] }
0x112a   :  { %v3679_v35 = vpop.f32.mrb[80].mxu0 }
0x112b   :  { %v3680_v6 = vadd.f32 %v9229_v1, %v3679_v35  ;;  %v7146_v4 = vpop.f32.mrb[81].mxu0 }
0x112c   :  { %v3682_v40 = vpop.f32.mrb[82].mxu0 }
0x112d   :  { %v7147_v46 = vpop.f32.mrb[83].mxu0  ;;  %3693 = vrot.lane.b32.xlu1 %v3680_v6, %s8010_s30  ;;  %v3685_v11 = vadd.f32 %v3680_v6, %v3637_v25  ;;  %v6561_v6 = vld [vmem:[%s10087_s1 + $0xa] sm:$0x3] }
0x112f   :  { %v6553_v13 = vmul.f32 -1.442695, %v3685_v11 }
0x1131   :  { %3782 = vrot.lane.b32.xlu1 %v3769_v10, %s8010_s30  ;;  %7581 = vpow2.f32 %v6553_v13  ;;  %v4140_v13 = vld [vmem:[#allocation3 + $0x4] sm:$0x3] }
0x1132   :  { %7583 = vpow2.f32 %v6555_v17  ;;  %v4155_v17 = vsel %vm151_vm3, %v4139_v36, -inf }
0x1133   :  { %7585 = vpow2.f32 %v6542_v39  ;;  %v4156_v39 = vsel %vm151_vm3, %v4140_v13, -inf }
0x113b   :  { %v7582_v20 = vpop.eup %7581 }
0x113c   :  { %v3689_v21 = vadd.f32 1.0, %v7582_v20  ;;  %v7584_v34 = vpop.eup %7583 }
0x113d   :  { %v3778_v23 = vadd.f32 1.0, %v7584_v34  ;;  %v7586_v54 = vpop.eup %7585  ;;  %v4154_v34 = vsel %vm151_vm3, %v4138_v33, -inf }
0x113e   :  { %7587 = vrcp.f32 %v3689_v21  ;;  %v3168_v41 = vadd.f32 1.0, %v7586_v54 }
0x113f   :  { %7589 = vrcp.f32 %v3778_v23 }
0x1140   :  { %7591 = vrcp.f32 %v3168_v41  ;;  %v4161_v41 = vmax.f32 %v4155_v17, %v8471_v56 }
0x1148   :  { %v9247_v42 = vpop.eup %7587 }
0x1149   :  { %v9251_v49 = vpop.eup %7589 }
0x114a   :  { %v9255_v53 = vpop.eup %7591 }
0x114b   :  { %v3175_v27 = vmul.f32 %v9255_v53, %v3173_v24 }
0x1151   :  { %v3390_v2 = vpop.permute.xlu1 %3389 }
0x1152   :  { %v3392_v60 = vmul.f32 %v3390_v2, %v3387_v57 }
0x1154   :  { %v9236_v51 = vadd.f32 %v3393_v44, %v3392_v60 }
0x1156   :  { %v3939_v14 = vmul.f32 %v9236_v51, %v8373_v62 }
0x1158   :  { %3941 = vrot.lane.b32.xlu1 %v3939_v14, %s8020_s17 }
0x119f   :  { %v3694_v61 = vpop.permute.xlu1 %3693 }
0x11a0   :  { %v3696_v45 = vmul.f32 %v9247_v42, %v3694_v61  ;;  %v4163_v61 = vmax.f32 %v4156_v39, %v8471_v56 }
0x11a2   :  { %3698 = vrot.lane.b32.xlu1 %v3696_v45, %s8010_s30 }
0x11a3   :  { %v3783_v43 = vpop.permute.xlu1 %3782 }
0x11a4   :  { %v3785_v7 = vmul.f32 %v9251_v49, %v3783_v43 }
0x11a6   :  { %3787 = vrot.lane.b32.xlu0 %v3785_v7, %s8010_s30 }
0x11aa   :  { %3177 = vrot.lane.b32.xlu0 %v3175_v27, %s8010_s30 }
0x11ae   :  { %3714 = vperm.xlu0 %7425, %v3711_v58  }
0x11b2   :  { %3720 = vperm.xlu0 %7425, %v6544_v9  }
0x11b6   :  { %7426 = vset.pattern.permute.xlu0 %v8017_v5 }
0x11b7   :  { %3801 = vperm.xlu0 %7426, %v3711_v58  }
0x11bb   :  { %3806 = vperm.xlu0 %7426, %v6544_v9  }
0x11ca   :  { %v3942_v31 = vpop.permute.xlu1 %3941 }
0x11cb   :  { %v3944_v35 = vsel %vm142_vm2, %v3942_v31, 0.0 }
0x11cc   :  { %3945 = vadd.xlane.f32.xlu1 %v3944_v35 }
0x11dd   :  { %3963 = vperm.xlu1 %7424, %v6561_v6  }
0x1214   :  { %v3699_v4 = vpop.permute.xlu1 %3698 }
0x1215   :  { %v3701_v40 = vadd.f32 %v3699_v4, %v3637_v25 }
0x1217   :  { %7593 = vtanh.f32 %v3701_v40 }
0x1218   :  { %v3788_v46 = vpop.permute.xlu0 %3787 }
0x1219   :  { %v3790_v10 = vadd.f32 %v3788_v46, %v3637_v25  ;;  %v4141_v25 = vld [vmem:[#allocation3 + $0x6] sm:$0x3] }
0x121b   :  { %7595 = vtanh.f32 %v3790_v10 }
0x121c   :  { %v3178_v57 = vpop.permute.xlu0 %3177 }
0x121d   :  { %v3180_v2 = vadd.f32 %v3178_v57, %v3112_v63  ;;  %v4157_v63 = vsel %vm151_vm3, %v4141_v25, -inf }
0x121e   :  { %v4165_v21 = vmax.f32 %v4157_v63, %v8471_v56 }
0x121f   :  { %7597 = vtanh.f32 %v3180_v2 }
0x1220   :  { %v4167_v43 = vmax.f32 %v4163_v61, %v4165_v21 }
0x1221   :  { %v7594_v44 = vpop.eup %7593 }
0x1222   :  { %3705 = vrot.lane.b32.xlu0 %v7594_v44, %s8020_s17 }
0x1225   :  { %v7596_v60 = vpop.eup %7595 }
0x1226   :  { %3794 = vrot.lane.b32.xlu0 %v7596_v60, %s8020_s17 }
0x1229   :  { %v7598_v14 = vpop.eup %7597 }
0x122a   :  { %3968 = vperm.xlu0 %7426, %v6561_v6  }
0x122e   :  { %3184 = vrot.lane.b32.xlu0 %v7598_v14, %s8020_s17 }
0x122f   :  { %7427 = vset.pattern.permute.xlu0 %v8015_v0 }
0x1259   :  { %v3946_v11 = vpop.xlane.xlu1 %3945 }
0x125a   :  { %3948 = vst.msk [vmem:[#allocation3 + $0x8] sm:$0x3] %vm151_vm3, %v3946_v11 }
0x1261   :  { %v4142_v20 = vld [vmem:[#allocation3 + $0x8] sm:$0x3] }
0x1262   :  { %v4158_v23 = vsel %vm151_vm3, %v4142_v20, -inf }
0x1263   :  { %v4159_v54 = vmax.f32 %v4154_v34, %v4158_v23  ;;  %v3715_v34 = vpop.permute.xlu0 %3714 }
0x1265   :  { %v4166_v45 = vmax.f32 %v4159_v54, %v4161_v41 }
0x1267   :  { %v4168_v7 = vmax.f32 %v4166_v45, %v4167_v43  ;;  %v3721_v45 = vpop.permute.xlu0 %3720 }
0x1269   :  { %v4169_v24 = vsub.f32 %v4138_v33, %v4168_v7  ;;  %v4170_v9 = vsub.f32 %v4139_v36, %v4168_v7  ;;  %v4171_v27 = vsub.f32 %v4140_v13, %v4168_v7  ;;  %v4172_v58 = vsub.f32 %v4141_v25, %v4168_v7 }
0x126a   :  { %v4173_v31 = vsub.f32 %v4142_v20, %v4168_v7  ;;  %v4174_v40 = vsub.f32 -1e+30, %v4168_v7 }
0x126b   :  { %v4177_v35 = vmul.f32 1.442695, %v4169_v24  ;;  %v4179_v6 = vmul.f32 1.442695, %v4170_v9  ;;  %v4181_v4 = vmul.f32 1.442695, %v4171_v27  ;;  %v3802_v7 = vpop.permute.xlu0 %3801 }
0x126c   :  { %v4183_v46 = vmul.f32 1.442695, %v4172_v58  ;;  %v4185_v10 = vmul.f32 1.442695, %v4173_v31  ;;  %v4187_v57 = vmul.f32 1.442695, %v4174_v40 }
0x126d   :  { %7599 = vpow2.f32 %v4177_v35  ;;  %v3703_v27 = vsub.f32 1.0, %v9247_v42  ;;  %v3709_v35 = vmul.f32 %v9247_v42, %v9046_v18  ;;  %v3792_v40 = vsub.f32 1.0, %v9251_v49 }
0x126e   :  { %7601 = vpow2.f32 %v4179_v6 }
0x126f   :  { %7603 = vpow2.f32 %v4181_v4  ;;  %v3807_v24 = vpop.permute.xlu0 %3806 }
0x1270   :  { %7605 = vpow2.f32 %v4183_v46 }
0x1271   :  { %7607 = vpow2.f32 %v4185_v10 }
0x1272   :  { %7609 = vpow2.f32 %v4187_v57 }
0x1277   :  { %v7600_v2 = vpop.eup %7599 }
0x1278   :  { %v7602_v44 = vpop.eup %7601  ;;  %v4193_v60 = vsel %vm151_vm3, %v7600_v2, 0.0 }
0x1279   :  { %v7604_v14 = vpop.eup %7603  ;;  %v4194_v11 = vsel %vm151_vm3, %v7602_v44, 0.0 }
0x127a   :  { %v7606_v25 = vpop.eup %7605  ;;  %v4195_v36 = vadd.f32 %v4194_v11, %v4193_v60  ;;  %v4196_v13 = vsel %vm151_vm3, %v7604_v14, 0.0  ;;  %v3798_v60 = vmul.f32 %v9251_v49, %v9044_v12 }
0x127b   :  { %v7608_v63 = vpop.eup %7607  ;;  %v4198_v17 = vsel %vm151_vm3, %v7606_v25, 0.0 }
0x127c   :  { %v4197_v33 = vadd.f32 %v4196_v13, %v4195_v36  ;;  %v7610_v39 = vpop.eup %7609  ;;  %v4200_v21 = vsel %vm151_vm3, %v7608_v63, 0.0  ;;  %v3717_v36 = vmul.f32 %v3715_v34, %v9046_v18  ;;  %v3804_v13 = vmul.f32 %v3802_v7, %v9044_v12 }
0x127d   :  { %v4202_v54 = vsel %vm151_vm3, %v7610_v39, 0.0 }
0x127e   :  { %v4199_v20 = vadd.f32 %v4198_v17, %v4197_v33 }
0x1280   :  { %v4201_v23 = vadd.f32 %v4200_v21, %v4199_v20  ;;  %v3182_v21 = vsub.f32 1.0, %v9255_v53 }
0x1282   :  { %v4203_v41 = vadd.f32 %v4202_v54, %v4201_v23 }
0x1284   :  { %v4205_v61 = vadd.f32 %v4203_v41, %v4202_v54  ;;  %v9310_v41 = vpop.permute.xlu1 %3963 }
0x1286   :  { %v4207_v43 = vadd.f32 %v4205_v61, %v4202_v54 }
0x1288   :  { %7611 = vrcp.f32 %v4207_v43 }
0x1292   :  { %v7612_v9 = vpop.eup %7611 }
0x1293   :  { %v4210_v58 = vmul.f32 %v7612_v9, %v7602_v44  ;;  %v4211_v46 = vmul.f32 %v7612_v9, %v7604_v14  ;;  %v4209_v12 = vmul.f32 %v7612_v9, %v7600_v2  ;;  %v4212_v54 = vmul.f32 %v7612_v9, %v7606_v25 }
0x1294   :  { %v3706_v31 = vpop.permute.xlu0 %3705  ;;  %v4213_v43 = vmul.f32 %v7612_v9, %v7608_v63 }
0x1295   :  { %v3708_v6 = vmul.f32 %v3706_v31, %v3703_v27  ;;  %4240 = vperm.xlu1 %7424, %v4210_v58  }
0x1297   :  { %v3710_v4 = vadd.f32 %v3709_v35, %v3708_v6  ;;  %v4226_v6 = vld [vmem:[#allocation2 + $0x2] sm:$0x3] }
0x1298   :  { %v3795_v10 = vpop.permute.xlu0 %3794 }
0x1299   :  { %v3723_v57 = vmul.f32 %v3721_v45, %v3710_v4  ;;  %v3797_v11 = vmul.f32 %v3795_v10, %v3792_v40  ;;  %4245 = vperm.xlu1 %7424, %v4211_v46   ;;  %v4227_v40 = vld [vmem:[#allocation2 + $0x4] sm:$0x3] }
0x129b   :  { %v3799_v44 = vadd.f32 %v3798_v60, %v3797_v11  ;;  %v9294_v33 = vadd.f32 %v3723_v57, %v3717_v36 }
0x129d   :  { %v3809_v42 = vmul.f32 %v3807_v24, %v3799_v44  ;;  %3934 = vrot.lane.b32.xlu1 %v9236_v51, %s8020_s17  ;;  %v3725_v14 = vmul.f32 %v9294_v33, %v9054_v59  ;;  %v3966_v61 = vmul.f32 %v9310_v41, %v9294_v33  ;;  %v4065_v24 = vpack.c.bf16 %v9236_v51, %v9236_v51  ;;  %v4228_v44 = vld [vmem:[#allocation2 + $0x6] sm:$0x3] }
0x129f   :  { %v9298_v17 = vadd.f32 %v3809_v42, %v3804_v13  ;;  %v4230_v42 = vld [vmem:[#allocation2 + $0xa] sm:$0x3] }
0x12a1   :  { %v3811_v49 = vmul.f32 %v9298_v17, %v9048_v48  ;;  %v3188_v48 = vmul.f32 %v9255_v53, %v9066_v22  ;;  %v4381_v53 = vpack.c.bf16 %v9294_v33, %v9294_v33  ;;  %v4470_v63 = vpack.c.bf16 %v9298_v17, %v9298_v17 }
0x12a3   :  { %v3812_v39 = vadd.f32 %v3811_v49, %v3725_v14 }
0x12a5   :  { %v3813_v20 = vpack.c.bf16 %v3812_v39, %v3812_v39 }
0x12a7   :  { %3815 = vrot.lane.b32.xlu0 %v3813_v20, %s8020_s17  ;;  %v4231_v20 = vld [vmem:[#allocation2 + $0xc] sm:$0x3] }
0x12a9   :  { %v9305_v18 = vpop.permute.xlu0 %3968 }
0x12aa   :  { %v3971_v34 = vmul.f32 %v9305_v18, %v9298_v17 }
0x12ab   :  { %4235 = vperm.xlu0 %7427, %v4209_v12   ;;  %v4278_v12 = vmul.f32 0.0, %v4230_v42 }
0x12ac   :  { %v3972_v2 = vadd.f32 %v3971_v34, %v3966_v61  ;;  %v4232_v34 = vld [vmem:[#allocation2 + $0xe] sm:$0x3] }
0x12ad   :  { %v3185_v23 = vpop.permute.xlu0 %3184  ;;  %v4280_v61 = vmul.f32 0.0, %v4232_v34 }
0x12ae   :  { %v3187_v59 = vmul.f32 %v3185_v23, %v3182_v21  ;;  %v3974_v25 = vpack.c.bf16 %v3972_v2, %v3972_v2  ;;  %v4290_v2 = vsel %vm142_vm2, %v4278_v12, 0.0 }
0x12af   :  { %4250 = vperm.xlu0 %7427, %v4212_v54   ;;  %v4279_v54 = vmul.f32 0.0, %v4231_v20 }
0x12b0   :  { %v9316_v45 = vadd.f32 %v3188_v48, %v3187_v59 }
0x12b2   :  { %v3860_v7 = vpack.c.bf16 %v9316_v45, %v9316_v45 }
0x12b3   :  { %4255 = vperm.xlu0 %7427, %v4213_v43  }
0x12b4   :  { %3862 = vrot.lane.b32.xlu1 %v3860_v7, %s8020_s17 }
0x12b7   :  { %3976 = vrot.lane.b32.xlu0 %v3974_v25, %s8020_s17  ;;  %v4292_v25 = vsel %vm142_vm2, %v4279_v54, 0.0 }
0x12b8   :  { %4067 = vrot.lane.b32.xlu1 %v4065_v24, %s8020_s17 }
0x12bb   :  { %4383 = vrot.lane.b32.xlu0 %v4381_v53, %s8020_s17 }
0x12bc   :  { %4472 = vrot.lane.b32.xlu1 %v4470_v63, %s8020_s17 }
0x1314   :  { %v4241_v9 = vpop.permute.xlu1 %4240 }
0x1315   :  { %v4274_v4 = vmul.f32 %v4241_v9, %v4226_v6  ;;  %v9420_v6 = vld [vmem:[#allocation13] sm:$0xff]  }
0x1318   :  { %v4246_v27 = vpop.permute.xlu1 %4245 }
0x1319   :  { %v3816_v58 = vpop.permute.xlu0 %3815  ;;  %v4275_v10 = vmul.f32 %v4246_v27, %v4227_v40 }
0x131a   :  { %7161 = vmatmul.mubr.msk.bf16.vlgmr.msra.gmra.mrb[84].mxu0 %vm228_vm0, %v3816_v58 }
0x131b   :  { %7173 = vmatpush3.bf16.msra.mxu0 %v9078_v26  ;;  %7176 = vmatprep.mubr.msk.bf16.mxu0 %vm8018_vm1, %v8016_v3  ;;  %v6559_v26 = vld [vmem:[%s10089_s29 + $0xa] sm:$0x3]  ;;  %v4284_v14 = vsel %vm142_vm2, %v4275_v10, 0.0 }
0x131c   :  { %v3935_v31 = vpop.permute.xlu1 %3934  ;;  %7174 = vmatprep.subr.bf16.mxu0 %v8016_v3  ;;  %v3973_v60 = vpack.c.bf16 %v6559_v26, %v6559_v26 }
0x131d   :  { %3938 = vst.msk [vmem:[#allocation2 + $0x8] sm:$0x3] %vm142_vm2, %v3935_v31  ;;  %v9404_v31 = vld [vmem:[%s10072_s13] sm:$0xff]  }
0x131f   :  { %7175 = vmatpush3.bf16.msra.mxu0 %v9087_v30  ;;  %v4225_v30 = vld [vmem:[#allocation2] sm:$0x3] }
0x1320   :  { %7188 = vmatprep.subr.bf16.mxu0 %v8016_v3 }
0x1324   :  { %v4229_v21 = vld [vmem:[#allocation2 + $0x8] sm:$0x3] }
0x1326   :  { %v3863_v35 = vpop.permute.xlu1 %3862 }
0x1327   :  { %7169 = vmatmul.mubr.msk.bf16.vlgmr.msra.gmra.mrb[84].mxu1 %vm228_vm0, %v3863_v35  ;;  %v9415_v35 = vld [vmem:[%s10072_s13 + $0x8] sm:$0xff]  }
0x1328   :  { %7181 = vmatpush3.bf16.msra.mxu1 %v9096_v8  ;;  %7184 = vmatprep.mubr.msk.bf16.mxu1 %vm8018_vm1, %v8016_v3  ;;  %v4282_v8 = vsel %vm142_vm2, %v4274_v4, 0.0 }
0x1329   :  { %7182 = vmatprep.subr.bf16.mxu1 %v8016_v3 }
0x132a   :  { %v4236_v46 = vpop.permute.xlu0 %4235  ;;  %v4068_v9 = vpop.permute.xlu1 %4067 }
0x132b   :  { %v4273_v57 = vmul.f32 %v4236_v46, %v4225_v30 }
0x132c   :  { %7183 = vmatpush3.bf16.msra.mxu1 %v9114_v37 }
0x132d   :  { %v4281_v11 = vsel %vm142_vm2, %v4273_v57, 0.0  ;;  %7196 = vmatprep.subr.bf16.mxu1 %v8016_v3 }
0x132e   :  { %v4283_v36 = vadd.f32 %v4282_v8, %v4281_v11  ;;  %v4251_v13 = vpop.permute.xlu0 %4250 }
0x132f   :  { %v4276_v49 = vmul.f32 %v4251_v13, %v4228_v44  ;;  %7185 = vmatmul.mubr.msk.bf16.vlgmr.msra.gmra.mrb[88].mxu1 %vm228_vm0, %v3973_v60 }
0x1330   :  { %v4285_v39 = vadd.f32 %v4284_v14, %v4283_v36  ;;  %7197 = vmatpush3.bf16.msra.mxu1 %v9128_v28  ;;  %7200 = vmatprep.mubr.msk.bf16.mxu1 %vm8018_vm1, %v8016_v3 }
0x1331   :  { %v4286_v37 = vsel %vm142_vm2, %v4276_v49, 0.0  ;;  %7198 = vmatprep.subr.bf16.mxu1 %v8016_v3 }
0x1332   :  { %v4256_v23 = vpop.permute.xlu0 %4255  ;;  %v4287_v59 = vadd.f32 %v4286_v37, %v4285_v39 }
0x1333   :  { %v4277_v48 = vmul.f32 %v4256_v23, %v4229_v21 }
0x1334   :  { %7199 = vmatpush3.bf16.msra.mxu1 %v9136_v19  ;;  %v4294_v19 = vsel %vm142_vm2, %v4280_v61, 0.0 }
0x1335   :  { %v4288_v28 = vsel %vm142_vm2, %v4277_v48, 0.0  ;;  %7212 = vmatprep.subr.bf16.mxu1 %v8016_v3 }
0x1336   :  { %v4289_v43 = vadd.f32 %v4288_v28, %v4287_v59  ;;  %v3977_v7 = vpop.permute.xlu0 %3976 }
0x1337   :  { %7177 = vmatmul.mubr.msk.bf16.vlgmr.msra.gmra.mrb[88].mxu0 %vm228_vm0, %v3977_v7 }
0x1338   :  { %v4291_v24 = vadd.f32 %v4290_v2, %v4289_v43  ;;  %7189 = vmatpush3.bf16.msra.mxu0 %v9099_v16  ;;  %7192 = vmatprep.mubr.msk.bf16.mxu0 %vm8018_vm1, %v8016_v3  ;;  %v9376_v16 = vld [vmem:[%s10067_s8] sm:$0xff]  }
0x1339   :  { %7190 = vmatprep.subr.bf16.mxu0 %v8016_v3 }
0x133a   :  { %v4293_v53 = vadd.f32 %v4292_v25, %v4291_v24  ;;  %v4384_v58 = vpop.permute.xlu0 %4383 }
0x133c   :  { %v4295_v63 = vadd.f32 %v4294_v19, %v4293_v53  ;;  %7191 = vmatpush3.bf16.msra.mxu0 %v9117_v38  ;;  %v9389_v38 = vld [vmem:[%s10067_s8 + $0x8] sm:$0xff]  }
0x133d   :  { %7204 = vmatprep.subr.bf16.mxu0 %v8016_v3 }
0x133e   :  { %v4296_v27 = vpack.c.bf16 %v4295_v63, %v4295_v63  ;;  %v9437_v63 = vld [vmem:[%s10075_s16] ss:$0 sm:$0xff] }
0x133f   :  { %7193 = vmatmul.mubr.msk.bf16.vlgmr.msra.gmra.mrb[92].mxu0 %vm228_vm0, %v4068_v9 }
0x1340   :  { %7201 = vmatmul.mubr.msk.bf16.vlgmr.msra.gmra.mrb[92].mxu1 %vm228_vm0, %v4296_v27  ;;  %7205 = vmatpush3.bf16.msra.mxu0 %v9376_v16 }
0x1341   :  { %7213 = vmatpush3.bf16.msra.mxu1 %v9141_v15  ;;  %7206 = vmatprep.subr.bf16.mxu0 %v8016_v3 }
0x1342   :  { %7214 = vmatprep.subr.bf16.mxu1 %v8016_v3  ;;  %7208 = vmatprep.mubr.msk.bf16.mxu0 %vm8018_vm1, %v8016_v3 }
0x1343   :  { %7216 = vmatprep.mubr.msk.bf16.mxu1 %vm8018_vm1, %v8016_v3 }
0x1344   :  { %7207 = vmatpush3.bf16.msra.mxu0 %v9389_v38 }
0x1345   :  { %7215 = vmatpush3.bf16.msra.mxu1 %v9147_v52  ;;  %7220 = vmatprep.subr.bf16.mxu0 %v8016_v3 }
0x1346   :  { %7228 = vmatprep.subr.bf16.mxu1 %v8016_v3 }
0x1347   :  { %7209 = vmatmul.mubr.msk.bf16.vlgmr.msra.gmra.mrb[96].mxu0 %vm228_vm0, %v3973_v60 }
0x1348   :  { %7217 = vmatmul.mubr.msk.bf16.vlgmr.msra.gmra.mrb[96].mxu1 %vm228_vm0, %v4384_v58  ;;  %7221 = vmatpush3.bf16.msra.mxu0 %v9141_v15  ;;  %v4473_v15 = vpop.permute.xlu1 %4472 }
0x1349   :  { %7222 = vmatprep.subr.bf16.mxu0 %v8016_v3  ;;  %7224 = vmatprep.mubr.msk.bf16.mxu0 %vm8018_vm1, %v8016_v3 }
0x134a   :  { %7229 = vmatpush3.bf16.msra.mxu1 %v9404_v31  ;;  %7232 = vmatprep.mubr.msk.bf16.mxu1 %vm8018_vm1, %v8016_v3 }
0x134b   :  { %7230 = vmatprep.subr.bf16.mxu1 %v8016_v3 }
0x134c   :  { %7223 = vmatpush3.bf16.msra.mxu0 %v9147_v52  ;;  %v9426_v52 = vld [vmem:[#allocation13 + $0x8] sm:$0xff]  }
0x134d   :  { %7236 = vmatprep.subr.bf16.mxu0 %v8016_v3 }
0x134e   :  { %7231 = vmatpush3.bf16.msra.mxu1 %v9415_v35 }
0x134f   :  { %7225 = vmatmul.mubr.msk.bf16.vlgmr.msra.gmra.mrb[100].mxu0 %vm228_vm0, %v4473_v15  ;;  %7244 = vmatprep.subr.bf16.mxu1 %v8016_v3 }
0x1350   :  { %7237 = vmatpush3.bf16.msra.mxu0 %v9420_v6  ;;  %7240 = vmatprep.mubr.msk.bf16.mxu0 %vm8018_vm1, %v8016_v3 }
0x1351   :  { %7238 = vmatprep.subr.bf16.mxu0 %v8016_v3 }
0x1354   :  { %7239 = vmatpush3.bf16.msra.mxu0 %v9426_v52 }
0x1355   :  { %7252 = vmatprep.subr.bf16.mxu0 %v8016_v3 }
0x13ed   :  { %v3854_v26 = vpop.f32.mrb[84].mxu0 }
0x13ee   :  { %v7162_v4 = vpop.f32.mrb[85].mxu0 }
0x13ef   :  { %v3857_v40 = vpop.f32.mrb[86].mxu0 }
0x13f0   :  { %v7163_v30 = vpop.f32.mrb[87].mxu0 }
0x13fa   :  { %v3901_v46 = vpop.f32.mrb[84].mxu1 }
0x13fb   :  { %v7170_v10 = vpop.f32.mrb[85].mxu1  ;;  %v3902_v9 = vadd.f32 %v9437_v63, %v3901_v46  ;;  %v9448_v46 = vld [vmem:[%s10074_s15] ss:$0 sm:$0xff] }
0x13fc   :  { %v3904_v57 = vpop.f32.mrb[86].mxu1 }
0x13fd   :  { %v7171_v60 = vpop.f32.mrb[87].mxu1 }
0x1402   :  { %v4058_v8 = vpop.f32.mrb[88].mxu1 }
0x1403   :  { %v7186_v11 = vpop.f32.mrb[89].mxu1 }
0x1404   :  { %v4061_v36 = vpop.f32.mrb[90].mxu1 }
0x1405   :  { %v7187_v44 = vpop.f32.mrb[91].mxu1 }
0x140a   :  { %v4015_v13 = vpop.f32.mrb[88].mxu0 }
0x140b   :  { %v4059_v42 = vadd.f32 %v4058_v8, %v4015_v13  ;;  %v7178_v14 = vpop.f32.mrb[89].mxu0 }
0x140c   :  { %v4018_v49 = vpop.f32.mrb[90].mxu0 }
0x140d   :  { %v7179_v39 = vpop.f32.mrb[91].mxu0  ;;  %v4064_v30 = vadd.f32 %v9187_v55, %v4059_v42 }
0x1412   :  { %v4106_v20 = vpop.f32.mrb[92].mxu0 }
0x1413   :  { %v4107_v37 = vadd.f32 %v9175_v29, %v4106_v20  ;;  %v7194_v12 = vpop.f32.mrb[93].mxu0  ;;  %v4334_v21 = vpop.f32.mrb[92].mxu1 }
0x1414   :  { %v4109_v34 = vpop.f32.mrb[94].mxu0  ;;  %v7202_v23 = vpop.f32.mrb[93].mxu1 }
0x1415   :  { %4120 = vrot.lane.b32.xlu0 %v4107_v37, %s8010_s30  ;;  %v7195_v54 = vpop.f32.mrb[95].mxu0  ;;  %v4337_v48 = vpop.f32.mrb[94].mxu1  ;;  %v4112_v10 = vadd.f32 %v4107_v37, %v4064_v30 }
0x1416   :  { %v7203_v59 = vpop.f32.mrb[95].mxu1 }
0x1417   :  { %v6565_v57 = vmul.f32 -1.442695, %v4112_v10 }
0x1419   :  { %7613 = vpow2.f32 %v6565_v57 }
0x141a   :  { %v4374_v61 = vpop.f32.mrb[96].mxu0 }
0x141b   :  { %v4375_v2 = vadd.f32 %v4374_v61, %v4334_v21  ;;  %v4422_v28 = vpop.f32.mrb[96].mxu1  ;;  %v7210_v43 = vpop.f32.mrb[97].mxu0 }
0x141c   :  { %v4423_v7 = vadd.f32 %v9229_v1, %v4422_v28  ;;  %v7218_v25 = vpop.f32.mrb[97].mxu1  ;;  %v4377_v24 = vpop.f32.mrb[98].mxu0 }
0x141d   :  { %v4425_v19 = vpop.f32.mrb[98].mxu1  ;;  %v7211_v53 = vpop.f32.mrb[99].mxu0  ;;  %v4380_v60 = vadd.f32 %v9241_v50, %v4375_v2  ;;  %v6560_v2 = vld [vmem:[%s10090_s5 + $0xa] sm:$0x3] }
0x141e   :  { %4436 = vrot.lane.b32.xlu1 %v4423_v7, %s8010_s30  ;;  %v7219_v29 = vpop.f32.mrb[99].mxu1  ;;  %v4454_v25 = vsub.f32 1.0, %v6560_v2 }
0x141f   :  { %v4428_v8 = vadd.f32 %v4423_v7, %v4380_v60 }
0x1421   :  { %v6569_v36 = vmul.f32 -1.442695, %v4428_v8 }
0x1422   :  { %v4511_v27 = vpop.f32.mrb[100].mxu0  ;;  %3915 = vrot.lane.b32.xlu1 %v3902_v9, %s8010_s30 }
0x1423   :  { %v4512_v58 = vadd.f32 %v9229_v1, %v4511_v27  ;;  %v7226_v15 = vpop.f32.mrb[101].mxu0  ;;  %v3855_v1 = vadd.f32 %v9448_v46, %v3854_v26  ;;  %7615 = vpow2.f32 %v6569_v36  ;;  %v7614_v14 = vpop.eup %7613 }
0x1424   :  { %v4514_v4 = vpop.f32.mrb[102].mxu0  ;;  %v4116_v42 = vadd.f32 1.0, %v7614_v14 }
0x1425   :  { %4525 = vrot.lane.b32.xlu0 %v4512_v58, %s8010_s30  ;;  %v7227_v40 = vpop.f32.mrb[103].mxu0  ;;  %v3907_v11 = vadd.f32 %v3902_v9, %v3855_v1  ;;  %v4517_v44 = vadd.f32 %v4512_v58, %v4380_v60 }
0x1427   :  { %v6558_v13 = vmul.f32 -1.442695, %v3907_v11  ;;  %v6571_v55 = vmul.f32 -1.442695, %v4517_v44 }
0x1429   :  { %7617 = vpow2.f32 %v6558_v13 }
0x142a   :  { %7619 = vpow2.f32 %v6571_v55 }
0x142b   :  { %7621 = vrcp.f32 %v4116_v42 }
0x142d   :  { %v7616_v50 = vpop.eup %7615 }
0x142e   :  { %v4432_v49 = vadd.f32 1.0, %v7616_v50 }
0x1430   :  { %7623 = vrcp.f32 %v4432_v49 }
0x1433   :  { %v7618_v39 = vpop.eup %7617 }
0x1434   :  { %v7620_v20 = vpop.eup %7619  ;;  %v3911_v37 = vadd.f32 1.0, %v7618_v39 }
0x1435   :  { %v7622_v12 = vpop.eup %7621  ;;  %v4521_v34 = vadd.f32 1.0, %v7620_v20 }
0x1436   :  { %7625 = vrcp.f32 %v3911_v37  ;;  %v4130_v8 = vsub.f32 1.0, %v7622_v12  ;;  %v4136_v36 = vmul.f32 %v7622_v12, %v9236_v51 }
0x1437   :  { %7627 = vrcp.f32 %v4521_v34 }
0x143a   :  { %v7624_v23 = vpop.eup %7623 }
0x143b   :  { %v4446_v50 = vsub.f32 1.0, %v7624_v23  ;;  %v4452_v20 = vmul.f32 %v7624_v23, %v9294_v33 }
0x1440   :  { %v9453_v59 = vpop.eup %7625 }
0x1441   :  { %v7628_v43 = vpop.eup %7627 }
0x1442   :  { %v4535_v39 = vsub.f32 1.0, %v7628_v43 }
0x1487   :  { %v4121_v21 = vpop.permute.xlu0 %4120 }
0x1488   :  { %v4123_v26 = vmul.f32 %v7622_v12, %v4121_v21  ;;  %v4541_v12 = vmul.f32 %v7628_v43, %v9298_v17 }
0x148a   :  { %4125 = vrot.lane.b32.xlu0 %v4123_v26, %s8010_s30 }
0x1490   :  { %v4437_v54 = vpop.permute.xlu1 %4436 }
0x1491   :  { %v4439_v48 = vmul.f32 %v7624_v23, %v4437_v54 }
0x1493   :  { %4441 = vrot.lane.b32.xlu1 %v4439_v48, %s8010_s30 }
0x1494   :  { %v3916_v61 = vpop.permute.xlu1 %3915 }
0x1495   :  { %v3918_v28 = vmul.f32 %v9453_v59, %v3916_v61 }
0x1497   :  { %v4526_v7 = vpop.permute.xlu0 %4525  ;;  %3920 = vrot.lane.b32.xlu1 %v3918_v28, %s8010_s30 }
0x1498   :  { %v4528_v24 = vmul.f32 %v7628_v43, %v4526_v7 }
0x149a   :  { %4530 = vrot.lane.b32.xlu0 %v4528_v24, %s8010_s30 }
0x149b   :  { %4457 = vperm.xlu1 %7424, %v4454_v25  }
0x149f   :  { %7428 = vset.pattern.permute.xlu1 %v8017_v5 }
0x14a0   :  { %4544 = vperm.xlu1 %7428, %v4454_v25  }
0x14fc   :  { %v4126_v19 = vpop.permute.xlu0 %4125 }
0x14fd   :  { %v4128_v53 = vadd.f32 %v4126_v19, %v4064_v30  ;;  %v6577_v30 = vld [vmem:[%s10087_s1 + $0xc] sm:$0x3] }
0x14ff   :  { %7629 = vtanh.f32 %v4128_v53 }
0x1505   :  { %v4442_v29 = vpop.permute.xlu1 %4441 }
0x1506   :  { %v4444_v9 = vadd.f32 %v4442_v29, %v4380_v60 }
0x1508   :  { %7631 = vtanh.f32 %v4444_v9 }
0x1509   :  { %v7630_v27 = vpop.eup %7629  ;;  %v3921_v4 = vpop.permute.xlu1 %3920 }
0x150a   :  { %4132 = vrot.lane.b32.xlu0 %v7630_v27, %s8020_s17  ;;  %v3923_v10 = vadd.f32 %v3921_v4, %v3855_v1 }
0x150c   :  { %v4531_v58 = vpop.permute.xlu0 %4530 }
0x150d   :  { %v4533_v15 = vadd.f32 %v4531_v58, %v4380_v60 }
0x150e   :  { %4463 = vperm.xlu0 %7427, %v6560_v2  }
0x150f   :  { %7633 = vtanh.f32 %v4533_v15  ;;  %v3931_v15 = vmul.f32 %v9453_v59, %v9316_v45 }
0x1510   :  { %7635 = vtanh.f32 %v3923_v10 }
0x1512   :  { %v7632_v40 = vpop.eup %7631  ;;  %7429 = vset.pattern.permute.xlu0 %v8017_v5 }
0x1513   :  { %4549 = vperm.xlu0 %7429, %v6560_v2   ;;  %4448 = vrot.lane.b32.xlu1 %v7632_v40, %s8020_s17 }
0x1517   :  { %7430 = vset.pattern.permute.xlu0 %v8015_v0 }
0x1518   :  { %4706 = vperm.xlu0 %7430, %v6577_v30  }
0x1519   :  { %v7634_v57 = vpop.eup %7633 }
0x151a   :  { %4537 = vrot.lane.b32.xlu1 %v7634_v57, %s8020_s17  ;;  %v7636_v60 = vpop.eup %7635  ;;  %v4458_v1 = vpop.permute.xlu1 %4457 }
0x151b   :  { %v4460_v54 = vmul.f32 %v4458_v1, %v9294_v33  ;;  %v9529_v1 = vld [vmem:[%s10063_s4 + $0x8] sm:$0xff]  }
0x151c   :  { %7432 = vset.pattern.permute.xlu0 %v8017_v5 }
0x151e   :  { %4711 = vperm.xlu1 %7428, %v6577_v30  }
0x151f   :  { %v4545_v55 = vpop.permute.xlu1 %4544 }
0x1520   :  { %v4547_v2 = vmul.f32 %v4545_v55, %v9298_v17  ;;  %v9544_v55 = vld [vmem:[%s10088_s7] sm:$0xff]  }
0x1522   :  { %3927 = vrot.lane.b32.xlu1 %v7636_v60, %s8020_s17 }
0x1523   :  { %7431 = vset.pattern.permute.xlu1 %v8015_v0 }
0x157c   :  { %v4133_v11 = vpop.permute.xlu0 %4132 }
0x157d   :  { %v4135_v44 = vmul.f32 %v4133_v11, %v4130_v8  ;;  %v9520_v8 = vld [vmem:[%s10063_s4] sm:$0xff]  }
0x157f   :  { %v9474_v13 = vadd.f32 %v4136_v36, %v4135_v44  ;;  %v9534_v44 = vld [vmem:[#allocation4] sm:$0xff]  }
0x1581   :  { %v4682_v14 = vmul.f32 %v9474_v13, %v8373_v62 }
0x1583   :  { %4684 = vrot.lane.b32.xlu0 %v4682_v14, %s8020_s17 }
0x1585   :  { %v4449_v42 = vpop.permute.xlu1 %4448 }
0x1586   :  { %v4451_v49 = vmul.f32 %v4449_v42, %v4446_v50  ;;  %v6575_v42 = vld [vmem:[%s10089_s29 + $0xc] sm:$0x3] }
0x1587   :  { %v9552_v50 = vld [vmem:[#allocation4 + $0x8] sm:$0xff]  }
0x1588   :  { %v4453_v34 = vadd.f32 %v4452_v20, %v4451_v49  ;;  %v4716_v49 = vpack.c.bf16 %v6575_v42, %v6575_v42  ;;  %v9570_v20 = vld [vmem:[#allocation9] sm:$0xff]  }
0x158c   :  { %v4538_v37 = vpop.permute.xlu1 %4537 }
0x158d   :  { %v4540_v21 = vmul.f32 %v4538_v37, %v4535_v39  ;;  %v4464_v26 = vpop.permute.xlu0 %4463  ;;  %v9560_v39 = vld [vmem:[%s10088_s7 + $0x8] sm:$0xff]  }
0x158e   :  { %v4466_v51 = vmul.f32 %v4464_v26, %v4453_v34  ;;  %v9582_v37 = vld [vmem:[#allocation10] sm:$0xff]   ;;  %v4884_v26 = vld [vmem:[#allocation3 + $0x6] sm:$0x3]  ;;  %v4883_v34 = vld [vmem:[#allocation3 + $0x4] sm:$0x3] }
0x158f   :  { %v4542_v48 = vadd.f32 %v4541_v12, %v4540_v21  ;;  %v4900_v12 = vsel %vm151_vm3, %v4884_v26, -inf }
0x1590   :  { %v9483_v28 = vadd.f32 %v4466_v51, %v4460_v54  ;;  %v4885_v51 = vld [vmem:[#allocation3 + $0x8] sm:$0x3]  ;;  %v4881_v54 = vld [vmem:[#allocation3] sm:$0x3] }
0x1592   :  { %v4550_v61 = vpop.permute.xlu0 %4549  ;;  %v4468_v23 = vmul.f32 %v9483_v28, %v9310_v41  ;;  %v4808_v41 = vpack.c.bf16 %v9474_v13, %v9474_v13  ;;  %v5124_v60 = vpack.c.bf16 %v9483_v28, %v9483_v28 }
0x1593   :  { %v4552_v7 = vmul.f32 %v4550_v61, %v4542_v48  ;;  %v4882_v48 = vld [vmem:[#allocation3 + $0x2] sm:$0x3]  ;;  %v4899_v61 = vsel %vm151_vm3, %v4883_v34, -inf }
0x1595   :  { %v9485_v25 = vadd.f32 %v4552_v7, %v4547_v2  ;;  %v4901_v2 = vsel %vm151_vm3, %v4885_v51, -inf }
0x1597   :  { %v4554_v24 = vmul.f32 %v9485_v25, %v9305_v18  ;;  %v9491_v53 = vpop.permute.xlu0 %4706  ;;  %v3925_v18 = vsub.f32 1.0, %v9453_v59 }
0x1598   :  { %v4709_v17 = vmul.f32 %v9491_v53, %v9483_v28 }
0x1599   :  { %v4555_v19 = vadd.f32 %v4554_v24, %v4468_v23  ;;  %v4908_v23 = vmax.f32 %v4900_v12, %v8471_v56  ;;  %v4897_v24 = vsel %vm151_vm3, %v4881_v54, -inf }
0x159b   :  { %v4556_v43 = vpack.c.bf16 %v4555_v19, %v4555_v19  ;;  %v4898_v19 = vsel %vm151_vm3, %v4882_v48, -inf }
0x159d   :  { %4558 = vrot.lane.b32.xlu1 %v4556_v43, %s8020_s17  ;;  %v9494_v33 = vpop.permute.xlu1 %4711 }
0x159e   :  { %v4714_v29 = vmul.f32 %v9494_v33, %v9485_v25 }
0x15a0   :  { %v4715_v9 = vadd.f32 %v4714_v29, %v4709_v17  ;;  %v4902_v17 = vmax.f32 %v4897_v24, %v4901_v2 }
0x15a1   :  { %4810 = vrot.lane.b32.xlu1 %v4808_v41, %s8020_s17  ;;  %v3928_v27 = vpop.permute.xlu1 %3927  ;;  %v4906_v41 = vmax.f32 %v4899_v61, %v8471_v56 }
0x15a2   :  { %v4717_v58 = vpack.c.bf16 %v4715_v9, %v4715_v9  ;;  %v3930_v4 = vmul.f32 %v3928_v27, %v3925_v18 }
0x15a3   :  { %v4910_v18 = vmax.f32 %v4906_v41, %v4908_v23 }
0x15a4   :  { %v9506_v40 = vadd.f32 %v3931_v15, %v3930_v4  ;;  %4719 = vrot.lane.b32.xlu0 %v4717_v58, %s8020_s17 }
0x15a6   :  { %v4603_v10 = vpack.c.bf16 %v9506_v40, %v9506_v40 }
0x15a8   :  { %4605 = vrot.lane.b32.xlu1 %v4603_v10, %s8020_s17 }
0x15f5   :  { %v4685_v30 = vpop.permute.xlu0 %4684 }
0x15f6   :  { %v4687_v57 = vsel %vm142_vm2, %v4685_v30, 0.0 }
0x15f7   :  { %4688 = vadd.xlane.f32.xlu0 %v4687_v57 }
0x160d   :  { %5126 = vrot.lane.b32.xlu0 %v5124_v60, %s8020_s17 }
0x160f   :  { %v4559_v59 = vpop.permute.xlu1 %4558 }
0x1610   :  { %7233 = vmatmul.mubr.msk.bf16.vlgmr.msra.gmra.mrb[100].mxu1 %vm228_vm0, %v4559_v59 }
0x1611   :  { %7245 = vmatpush3.bf16.msra.mxu1 %v9520_v8  ;;  %7248 = vmatprep.mubr.msk.bf16.mxu1 %vm8018_vm1, %v8016_v3 }
0x1612   :  { %7246 = vmatprep.subr.bf16.mxu1 %v8016_v3 }
0x1613   :  { %v4811_v11 = vpop.permute.xlu1 %4810 }
0x1615   :  { %7247 = vmatpush3.bf16.msra.mxu1 %v9529_v1 }
0x1616   :  { %v4720_v36 = vpop.permute.xlu0 %4719  ;;  %7260 = vmatprep.subr.bf16.mxu1 %v8016_v3 }
0x1618   :  { %7249 = vmatmul.mubr.msk.bf16.vlgmr.msra.gmra.mrb[104].mxu1 %vm228_vm0, %v4720_v36 }
0x1619   :  { %7261 = vmatpush3.bf16.msra.mxu1 %v9534_v44  ;;  %7264 = vmatprep.mubr.msk.bf16.mxu1 %vm8018_vm1, %v8016_v3 }
0x161a   :  { %v4606_v14 = vpop.permute.xlu1 %4605  ;;  %7262 = vmatprep.subr.bf16.mxu1 %v8016_v3 }
0x161b   :  { %7241 = vmatmul.mubr.msk.bf16.vlgmr.msra.gmra.mrb[104].mxu0 %vm228_vm0, %v4606_v14 }
0x161c   :  { %7253 = vmatpush3.bf16.msra.mxu0 %v9544_v55  ;;  %7256 = vmatprep.mubr.msk.bf16.mxu0 %vm8018_vm1, %v8016_v3 }
0x161d   :  { %7263 = vmatpush3.bf16.msra.mxu1 %v9552_v50  ;;  %7254 = vmatprep.subr.bf16.mxu0 %v8016_v3 }
0x161e   :  { %7276 = vmatprep.subr.bf16.mxu1 %v8016_v3 }
0x1620   :  { %7255 = vmatpush3.bf16.msra.mxu0 %v9560_v39  ;;  %7265 = vmatmul.mubr.msk.bf16.vlgmr.msra.gmra.mrb[108].mxu1 %vm228_vm0, %v4811_v11 }
0x1621   :  { %7277 = vmatpush3.bf16.msra.mxu1 %v9376_v16  ;;  %7280 = vmatprep.mubr.msk.bf16.mxu1 %vm8018_vm1, %v8016_v3  ;;  %v9579_v16 = vld [vmem:[#allocation9 + $0x8] sm:$0xff]  }
0x1622   :  { %7278 = vmatprep.subr.bf16.mxu1 %v8016_v3  ;;  %7268 = vmatprep.subr.bf16.mxu0 %v8016_v3 }
0x1623   :  { %7257 = vmatmul.mubr.msk.bf16.vlgmr.msra.gmra.mrb[108].mxu0 %vm228_vm0, %v4716_v49 }
0x1624   :  { %7269 = vmatpush3.bf16.msra.mxu0 %v9570_v20  ;;  %7272 = vmatprep.mubr.msk.bf16.mxu0 %vm8018_vm1, %v8016_v3 }
0x1625   :  { %7279 = vmatpush3.bf16.msra.mxu1 %v9389_v38  ;;  %7270 = vmatprep.subr.bf16.mxu0 %v8016_v3  ;;  %v9589_v38 = vld [vmem:[#allocation10 + $0x8] sm:$0xff]  }
0x1626   :  { %7292 = vmatprep.subr.bf16.mxu1 %v8016_v3 }
0x1628   :  { %7281 = vmatmul.mubr.msk.bf16.vlgmr.msra.gmra.mrb[112].mxu1 %vm228_vm0, %v4716_v49  ;;  %7271 = vmatpush3.bf16.msra.mxu0 %v9579_v16 }
0x1629   :  { %7293 = vmatpush3.bf16.msra.mxu1 %v9582_v37  ;;  %7296 = vmatprep.mubr.msk.bf16.mxu1 %vm8018_vm1, %v8016_v3 }
0x162a   :  { %7294 = vmatprep.subr.bf16.mxu1 %v8016_v3  ;;  %7284 = vmatprep.subr.bf16.mxu0 %v8016_v3 }
0x162d   :  { %7295 = vmatpush3.bf16.msra.mxu1 %v9589_v38 }
0x162e   :  { %7308 = vmatprep.subr.bf16.mxu1 %v8016_v3 }
0x1684   :  { %v4689_v21 = vpop.xlane.xlu0 %4688 }
0x1685   :  { %4691 = vst.msk [vmem:[#allocation3 + $0xa] sm:$0x3] %vm151_vm3, %v4689_v21 }
0x168c   :  { %v4886_v7 = vld [vmem:[#allocation3 + $0xa] sm:$0x3] }
0x168d   :  { %v4903_v43 = vsel %vm151_vm3, %v4886_v7, -inf }
0x168e   :  { %v4904_v29 = vmax.f32 %v4898_v19, %v4903_v43 }
0x1690   :  { %v4909_v9 = vmax.f32 %v4902_v17, %v4904_v29 }
0x1692   :  { %v4911_v27 = vmax.f32 %v4909_v9, %v4910_v18 }
0x1694   :  { %v4912_v58 = vsub.f32 %v4881_v54, %v4911_v27  ;;  %v4913_v15 = vsub.f32 %v4882_v48, %v4911_v27  ;;  %v4914_v4 = vsub.f32 %v4883_v34, %v4911_v27  ;;  %v4915_v10 = vsub.f32 %v4884_v26, %v4911_v27 }
0x1695   :  { %v4916_v30 = vsub.f32 %v4885_v51, %v4911_v27  ;;  %v4917_v11 = vsub.f32 %v4886_v7, %v4911_v27  ;;  %v4918_v14 = vsub.f32 -1e+30, %v4911_v27 }
0x1696   :  { %v4920_v57 = vmul.f32 1.442695, %v4912_v58  ;;  %v4922_v60 = vmul.f32 1.442695, %v4913_v15  ;;  %v4924_v59 = vmul.f32 1.442695, %v4914_v4 }
0x1697   :  { %v4926_v36 = vmul.f32 1.442695, %v4915_v10  ;;  %v4928_v42 = vmul.f32 1.442695, %v4916_v30  ;;  %v4930_v49 = vmul.f32 1.442695, %v4917_v11 }
0x1698   :  { %7637 = vpow2.f32 %v4920_v57  ;;  %v4932_v21 = vmul.f32 1.442695, %v4918_v14 }
0x1699   :  { %7639 = vpow2.f32 %v4922_v60 }
0x169a   :  { %7641 = vpow2.f32 %v4924_v59 }
0x169b   :  { %7643 = vpow2.f32 %v4926_v36  ;;  %v5213_v36 = vpack.c.bf16 %v9485_v25, %v9485_v25 }
0x169c   :  { %7645 = vpow2.f32 %v4928_v42 }
0x169d   :  { %7647 = vpow2.f32 %v4930_v49 }
0x169e   :  { %7649 = vpow2.f32 %v4932_v21 }
0x16a2   :  { %v7638_v12 = vpop.eup %7637 }
0x16a3   :  { %v7640_v34 = vpop.eup %7639  ;;  %v4936_v26 = vsel %vm151_vm3, %v7638_v12, 0.0 }
0x16a4   :  { %v7642_v51 = vpop.eup %7641  ;;  %v4937_v54 = vsel %vm151_vm3, %v7640_v34, 0.0 }
0x16a5   :  { %v7644_v48 = vpop.eup %7643  ;;  %v4938_v61 = vadd.f32 %v4937_v54, %v4936_v26  ;;  %v4939_v2 = vsel %vm151_vm3, %v7642_v51, 0.0 }
0x16a6   :  { %v7646_v7 = vpop.eup %7645  ;;  %v4941_v24 = vsel %vm151_vm3, %v7644_v48, 0.0 }
0x16a7   :  { %v4940_v23 = vadd.f32 %v4939_v2, %v4938_v61  ;;  %v7648_v19 = vpop.eup %7647  ;;  %v4943_v17 = vsel %vm151_vm3, %v7646_v7, 0.0 }
0x16a8   :  { %v7650_v29 = vpop.eup %7649  ;;  %v4945_v9 = vsel %vm151_vm3, %v7648_v19, 0.0 }
0x16a9   :  { %v4942_v43 = vadd.f32 %v4941_v24, %v4940_v23  ;;  %v4947_v27 = vsel %vm151_vm3, %v7650_v29, 0.0  ;;  %v9619_v23 = vld [vmem:[#allocation7] ss:$0 sm:$0xff] }
0x16ab   :  { %v4944_v41 = vadd.f32 %v4943_v17, %v4942_v43 }
0x16ad   :  { %v4946_v18 = vadd.f32 %v4945_v9, %v4944_v41 }
0x16af   :  { %v4948_v58 = vadd.f32 %v4947_v27, %v4946_v18 }
0x16b1   :  { %v4950_v15 = vadd.f32 %v4948_v58, %v4947_v27 }
0x16b3   :  { %7651 = vrcp.f32 %v4950_v15  ;;  %v9626_v15 = vld [vmem:[%s10065_s6] ss:$0 sm:$0xff] }
0x16bd   :  { %v7652_v4 = vpop.eup %7651 }
0x16be   :  { %v4952_v10 = vmul.f32 %v7652_v4, %v7638_v12  ;;  %v4953_v30 = vmul.f32 %v7652_v4, %v7640_v34  ;;  %v4954_v57 = vmul.f32 %v7652_v4, %v7642_v51  ;;  %v4955_v60 = vmul.f32 %v7652_v4, %v7644_v48 }
0x16bf   :  { %v4956_v59 = vmul.f32 %v7652_v4, %v7646_v7  ;;  %v4957_v11 = vmul.f32 %v7652_v4, %v7648_v19 }
0x16c0   :  { %4978 = vperm.xlu1 %7431, %v4952_v10  }
0x16c4   :  { %4983 = vperm.xlu1 %7431, %v4953_v30  }
0x16c8   :  { %4988 = vperm.xlu1 %7431, %v4954_v57  }
0x16cc   :  { %4993 = vperm.xlu1 %7431, %v4955_v60  }
0x16d0   :  { %4998 = vperm.xlu1 %7431, %v4956_v59  }
0x16d4   :  { %4677 = vrot.lane.b32.xlu1 %v9474_v13, %s8020_s17 }
0x16d8   :  { %5003 = vperm.xlu1 %7431, %v4957_v11   ;;  %v4969_v11 = vld [vmem:[#allocation2 + $0x2] sm:$0x3] }
0x16dc   :  { %5215 = vrot.lane.b32.xlu1 %v5213_v36, %s8020_s17 }
0x16dd   :  { %7434 = vset.pattern.permute.xlu1 %v8017_v5 }
0x16e3   :  { %v9615_v14 = vpop.f32.mrb[100].mxu1 }
0x16e4   :  { %v7234_v42 = vpop.f32.mrb[101].mxu1 }
0x16e5   :  { %v4600_v49 = vpop.f32.mrb[102].mxu1 }
0x16e6   :  { %v7235_v21 = vpop.f32.mrb[103].mxu1  ;;  %v4968_v49 = vld [vmem:[#allocation2] sm:$0x3] }
0x16e7   :  { %v4970_v21 = vld [vmem:[#allocation2 + $0x4] sm:$0x3] }
0x16eb   :  { %v4758_v12 = vpop.f32.mrb[104].mxu1 }
0x16ec   :  { %v7250_v34 = vpop.f32.mrb[105].mxu1 }
0x16ed   :  { %v4761_v26 = vpop.f32.mrb[106].mxu1 }
0x16ee   :  { %v9617_v51 = vpop.f32.mrb[104].mxu0  ;;  %v7251_v54 = vpop.f32.mrb[107].mxu1  ;;  %v4971_v26 = vld [vmem:[#allocation2 + $0x6] sm:$0x3] }
0x16ef   :  { %v7242_v48 = vpop.f32.mrb[105].mxu0 }
0x16f0   :  { %v4647_v61 = vpop.f32.mrb[106].mxu0 }
0x16f1   :  { %v7243_v2 = vpop.f32.mrb[107].mxu0 }
0x16f2   :  { %v4972_v2 = vld [vmem:[#allocation2 + $0x8] sm:$0x3] }
0x16f3   :  { %v4849_v7 = vpop.f32.mrb[108].mxu1 }
0x16f4   :  { %v4850_v24 = vadd.f32 %v9619_v23, %v4849_v7  ;;  %v7266_v19 = vpop.f32.mrb[109].mxu1 }
0x16f5   :  { %v4852_v43 = vpop.f32.mrb[110].mxu1 }
0x16f6   :  { %v4801_v17 = vpop.f32.mrb[108].mxu0  ;;  %4863 = vrot.lane.b32.xlu1 %v4850_v24, %s8010_s30  ;;  %v7267_v29 = vpop.f32.mrb[111].mxu1 }
0x16f7   :  { %v4802_v41 = vadd.f32 %v4801_v17, %v4758_v12  ;;  %v7258_v9 = vpop.f32.mrb[109].mxu0  ;;  %v4974_v29 = vld [vmem:[#allocation2 + $0xc] sm:$0x3] }
0x16f8   :  { %v4804_v18 = vpop.f32.mrb[110].mxu0 }
0x16f9   :  { %v7259_v27 = vpop.f32.mrb[111].mxu0  ;;  %v9629_v4 = vadd.f32 %v9626_v15, %v4802_v41 }
0x16fa   :  { %v4975_v27 = vld [vmem:[#allocation2 + $0xe] sm:$0x3] }
0x16fb   :  { %v4855_v30 = vadd.f32 %v4850_v24, %v9629_v4 }
0x16fd   :  { %v6581_v60 = vmul.f32 -1.442695, %v4855_v30  ;;  %v5022_v30 = vmul.f32 0.0, %v4974_v29 }
0x16ff   :  { %7653 = vpow2.f32 %v6581_v60 }
0x1709   :  { %v7654_v43 = vpop.eup %7653 }
0x173f   :  { %v4979_v58 = vpop.permute.xlu1 %4978 }
0x1740   :  { %v5016_v12 = vmul.f32 %v4979_v58, %v4968_v49  ;;  %v4859_v58 = vadd.f32 1.0, %v7654_v43  ;;  %v5035_v49 = vsel %vm142_vm2, %v5022_v30, 0.0 }
0x1742   :  { %v5024_v7 = vsel %vm142_vm2, %v5016_v12, 0.0  ;;  %7655 = vrcp.f32 %v4859_v58 }
0x1743   :  { %v4984_v10 = vpop.permute.xlu1 %4983 }
0x1744   :  { %v5017_v42 = vmul.f32 %v4984_v10, %v4969_v11  ;;  %v5023_v11 = vmul.f32 0.0, %v4975_v27 }
0x1746   :  { %v5025_v48 = vsel %vm142_vm2, %v5017_v42, 0.0 }
0x1747   :  { %v4989_v57 = vpop.permute.xlu1 %4988  ;;  %v5026_v17 = vadd.f32 %v5025_v48, %v5024_v7  ;;  %v5117_v7 = vpop.f32.mrb[112].mxu1 }
0x1748   :  { %v5018_v34 = vmul.f32 %v4989_v57, %v4970_v21 }
0x174a   :  { %v5027_v24 = vsel %vm142_vm2, %v5018_v34, 0.0  ;;  %v5037_v34 = vsel %vm142_vm2, %v5023_v11, 0.0 }
0x174b   :  { %v4994_v59 = vpop.permute.xlu1 %4993  ;;  %v5028_v18 = vadd.f32 %v5027_v24, %v5026_v17 }
0x174c   :  { %v5019_v61 = vmul.f32 %v4994_v59, %v4971_v26  ;;  %v7656_v48 = vpop.eup %7655 }
0x174e   :  { %v5029_v9 = vsel %vm142_vm2, %v5019_v61, 0.0 }
0x174f   :  { %v4999_v36 = vpop.permute.xlu1 %4998  ;;  %v5030_v57 = vadd.f32 %v5029_v9, %v5028_v18 }
0x1750   :  { %v5020_v19 = vmul.f32 %v4999_v36, %v4972_v2 }
0x1752   :  { %v5031_v10 = vsel %vm142_vm2, %v5020_v19, 0.0  ;;  %v5127_v19 = vpop.permute.xlu0 %5126 }
0x1753   :  { %v4678_v54 = vpop.permute.xlu1 %4677  ;;  %v5032_v36 = vadd.f32 %v5031_v10, %v5030_v57 }
0x1754   :  { %4681 = vst.msk [vmem:[#allocation2 + $0xa] sm:$0x3] %vm142_vm2, %v4678_v54 }
0x1757   :  { %v5004_v41 = vpop.permute.xlu1 %5003 }
0x175b   :  { %v4973_v60 = vld [vmem:[#allocation2 + $0xa] sm:$0x3]  ;;  %v5216_v59 = vpop.permute.xlu1 %5215 }
0x175c   :  { %v5021_v42 = vmul.f32 %v5004_v41, %v4973_v60  ;;  %7297 = vmatmul.mubr.msk.bf16.vlgmr.msra.gmra.mrb[116].mxu1 %vm228_vm0, %v5216_v59 }
0x175d   :  { %7309 = vmatpush3.bf16.msra.mxu1 %v9420_v6  ;;  %7312 = vmatprep.mubr.msk.bf16.mxu1 %vm8018_vm1, %v8016_v3 }
0x175e   :  { %v5033_v21 = vsel %vm142_vm2, %v5021_v42, 0.0  ;;  %7310 = vmatprep.subr.bf16.mxu1 %v8016_v3 }
0x175f   :  { %v5034_v12 = vadd.f32 %v5033_v21, %v5032_v36 }
0x1761   :  { %v5036_v26 = vadd.f32 %v5035_v49, %v5034_v12  ;;  %7311 = vmatpush3.bf16.msra.mxu1 %v9426_v52  ;;  %v7282_v52 = vpop.f32.mrb[113].mxu1  ;;  %v4873_v12 = vsub.f32 1.0, %v7656_v48 }
0x1762   :  { %7324 = vmatprep.subr.bf16.mxu1 %v8016_v3  ;;  %v5120_v24 = vpop.f32.mrb[114].mxu1 }
0x1763   :  { %v5038_v54 = vadd.f32 %v5037_v34, %v5036_v26  ;;  %v7283_v43 = vpop.f32.mrb[115].mxu1  ;;  %v4879_v26 = vmul.f32 %v7656_v48, %v9474_v13 }
0x1765   :  { %v5039_v6 = vpack.c.bf16 %v5038_v54, %v5038_v54 }
0x1767   :  { %7273 = vmatmul.mubr.msk.bf16.vlgmr.msra.gmra.mrb[112].mxu0 %vm228_vm0, %v5039_v6  ;;  %v9683_v6 = vld [vmem:[#allocation12] ss:$0 sm:$0xff] }
0x1768   :  { %7285 = vmatpush3.bf16.msra.mxu0 %v9582_v37  ;;  %v4864_v61 = vpop.permute.xlu1 %4863  ;;  %7288 = vmatprep.mubr.msk.bf16.mxu0 %vm8018_vm1, %v8016_v3 }
0x1769   :  { %v4866_v2 = vmul.f32 %v7656_v48, %v4864_v61  ;;  %7286 = vmatprep.subr.bf16.mxu0 %v8016_v3 }
0x176b   :  { %4868 = vrot.lane.b32.xlu1 %v4866_v2, %s8010_s30 }
0x176c   :  { %7287 = vmatpush3.bf16.msra.mxu0 %v9589_v38 }
0x176d   :  { %7300 = vmatprep.subr.bf16.mxu0 %v8016_v3 }
0x176f   :  { %7289 = vmatmul.mubr.msk.bf16.vlgmr.msra.gmra.mrb[116].mxu0 %vm228_vm0, %v5127_v19 }
0x1770   :  { %7301 = vmatpush3.bf16.msra.mxu0 %v9404_v31  ;;  %7304 = vmatprep.mubr.msk.bf16.mxu0 %vm8018_vm1, %v8016_v3  ;;  %v9668_v31 = vld [vmem:[%s10071_s12] ss:$0 sm:$0xff] }
0x1771   :  { %7302 = vmatprep.subr.bf16.mxu0 %v8016_v3 }
0x1774   :  { %7303 = vmatpush3.bf16.msra.mxu0 %v9415_v35 }
0x1775   :  { %7316 = vmatprep.subr.bf16.mxu0 %v8016_v3 }
0x17dd   :  { %v4869_v17 = vpop.permute.xlu1 %4868 }
0x17de   :  { %v4871_v29 = vadd.f32 %v4869_v17, %v9629_v4  ;;  %v4645_v4 = vadd.f32 %v9437_v63, %v9617_v51 }
0x17e0   :  { %7657 = vtanh.f32 %v4871_v29 }
0x17ea   :  { %v7658_v41 = vpop.eup %7657 }
0x17eb   :  { %4875 = vrot.lane.b32.xlu1 %v7658_v41, %s8020_s17 }
0x182f   :  { %v5254_v9 = vpop.f32.mrb[116].mxu1 }
0x1830   :  { %v5255_v18 = vadd.f32 %v9668_v31, %v5254_v9  ;;  %v7298_v27 = vpop.f32.mrb[117].mxu1 }
0x1831   :  { %v5257_v58 = vpop.f32.mrb[118].mxu1 }
0x1832   :  { %5268 = vrot.lane.b32.xlu0 %v5255_v18, %s8010_s30  ;;  %v7299_v35 = vpop.f32.mrb[119].mxu1 }
0x1833   :  { %v6576_v35 = vld [vmem:[%s10090_s5 + $0xc] sm:$0x3] }
0x1836   :  { %4658 = vrot.lane.b32.xlu0 %v4645_v4, %s8010_s30 }
0x183a   :  { %v5077_v10 = vpop.f32.mrb[112].mxu0 }
0x183b   :  { %v5118_v30 = vadd.f32 %v5117_v7, %v5077_v10  ;;  %v7274_v57 = vpop.f32.mrb[113].mxu0  ;;  %v4598_v7 = vadd.f32 %v9448_v46, %v9615_v14 }
0x183c   :  { %v5080_v60 = vpop.f32.mrb[114].mxu0 }
0x183d   :  { %v7275_v59 = vpop.f32.mrb[115].mxu0  ;;  %v5123_v61 = vadd.f32 %v9683_v6, %v5118_v30  ;;  %v4650_v52 = vadd.f32 %v4645_v4, %v4598_v7  ;;  %v5197_v30 = vsub.f32 1.0, %v6576_v35 }
0x183f   :  { %v5260_v2 = vadd.f32 %v5255_v18, %v5123_v61  ;;  %v6574_v19 = vmul.f32 -1.442695, %v4650_v52 }
0x1841   :  { %v6587_v24 = vmul.f32 -1.442695, %v5260_v2 }
0x1842   :  { %v5165_v11 = vpop.f32.mrb[116].mxu0 }
0x1843   :  { %v5166_v42 = vadd.f32 %v9668_v31, %v5165_v11  ;;  %v7290_v36 = vpop.f32.mrb[117].mxu0  ;;  %7659 = vpow2.f32 %v6587_v24 }
0x1844   :  { %v5168_v49 = vpop.f32.mrb[118].mxu0  ;;  %7661 = vpow2.f32 %v6574_v19  ;;  %v6593_v36 = vld [vmem:[%s10087_s1 + $0xe] sm:$0x3]  ;;  %v5625_v19 = vld [vmem:[#allocation3 + $0x2] sm:$0x3] }
0x1845   :  { %v7291_v21 = vpop.f32.mrb[119].mxu0  ;;  %5179 = vrot.lane.b32.xlu1 %v5166_v42, %s8010_s30  ;;  %v5171_v48 = vadd.f32 %v5166_v42, %v5123_v61 }
0x1847   :  { %v6585_v29 = vmul.f32 -1.442695, %v5171_v48 }
0x184d   :  { %v7660_v13 = vpop.eup %7659 }
0x184e   :  { %v5264_v43 = vadd.f32 1.0, %v7660_v13  ;;  %v7662_v17 = vpop.eup %7661  ;;  %v5628_v13 = vld [vmem:[#allocation3 + $0x8] sm:$0x3] }
0x184f   :  { %v4654_v41 = vadd.f32 1.0, %v7662_v17  ;;  %v5626_v17 = vld [vmem:[#allocation3 + $0x4] sm:$0x3] }
0x1850   :  { %7663 = vrcp.f32 %v5264_v43  ;;  %v5624_v43 = vld [vmem:[#allocation3] sm:$0x3] }
0x1851   :  { %7665 = vpow2.f32 %v6585_v29  ;;  %v5641_v29 = vsel %vm151_vm3, %v5625_v19, -inf }
0x1852   :  { %7667 = vrcp.f32 %v4654_v41 }
0x185a   :  { %v9688_v9 = vpop.eup %7663 }
0x185b   :  { %v7666_v46 = vpop.eup %7665 }
0x185c   :  { %v9692_v14 = vpop.eup %7667  ;;  %v5175_v4 = vadd.f32 1.0, %v7666_v46 }
0x185d   :  { %v4876_v34 = vpop.permute.xlu1 %4875 }
0x185e   :  { %v4878_v63 = vmul.f32 %v4876_v34, %v4873_v12  ;;  %7669 = vrcp.f32 %v5175_v4 }
0x1860   :  { %v9678_v51 = vadd.f32 %v4879_v26, %v4878_v63 }
0x1862   :  { %v5425_v54 = vmul.f32 %v9678_v51, %v8373_v62 }
0x1864   :  { %5427 = vrot.lane.b32.xlu1 %v5425_v54, %s8020_s17 }
0x1868   :  { %v9699_v57 = vpop.eup %7669 }
0x18a4   :  { %v5269_v18 = vpop.permute.xlu0 %5268 }
0x18a5   :  { %v5271_v27 = vmul.f32 %v9688_v9, %v5269_v18  ;;  %v5644_v18 = vsel %vm151_vm3, %v5628_v13, -inf }
0x18a7   :  { %5273 = vrot.lane.b32.xlu0 %v5271_v27, %s8010_s30 }
0x18a8   :  { %v4659_v58 = vpop.permute.xlu0 %4658 }
0x18a9   :  { %v4661_v10 = vmul.f32 %v9692_v14, %v4659_v58  ;;  %v5640_v58 = vsel %vm151_vm3, %v5624_v43, -inf }
0x18ab   :  { %4663 = vrot.lane.b32.xlu0 %v4661_v10, %s8010_s30  ;;  %v5645_v10 = vmax.f32 %v5640_v58, %v5644_v18 }
0x18af   :  { %5287 = vperm.xlu0 %7432, %v5197_v30  }
0x18b3   :  { %5292 = vperm.xlu0 %7432, %v6576_v35  }
0x18b7   :  { %v5180_v60 = vpop.permute.xlu1 %5179  ;;  %7433 = vset.pattern.permute.xlu0 %v8015_v0 }
0x18b8   :  { %v5182_v59 = vmul.f32 %v9699_v57, %v5180_v60  ;;  %5200 = vperm.xlu0 %7433, %v5197_v30  }
0x18ba   :  { %5184 = vrot.lane.b32.xlu1 %v5182_v59, %s8010_s30 }
0x18bc   :  { %5206 = vperm.xlu0 %7433, %v6576_v35   ;;  %v5642_v35 = vsel %vm151_vm3, %v5626_v17, -inf }
0x18d6   :  { %v5428_v11 = vpop.permute.xlu1 %5427 }
0x18d7   :  { %v5430_v42 = vsel %vm142_vm2, %v5428_v11, 0.0 }
0x18de   :  { %5431 = vadd.xlane.f32.xlu1 %v5430_v42 }
0x18ef   :  { %5454 = vperm.xlu1 %7434, %v6593_v36  }
0x18f3   :  { %7435 = vset.pattern.permute.xlu1 %v8015_v0 }
0x1919   :  { %v5274_v49 = vpop.permute.xlu0 %5273 }
0x191a   :  { %v5276_v34 = vadd.f32 %v5274_v49, %v5123_v61 }
0x191d   :  { %v4664_v26 = vpop.permute.xlu0 %4663 }
0x191e   :  { %v4666_v63 = vadd.f32 %v4664_v26, %v4598_v7  ;;  %v5627_v7 = vld [vmem:[#allocation3 + $0x6] sm:$0x3] }
0x191f   :  { %v5643_v41 = vsel %vm151_vm3, %v5627_v7, -inf }
0x1920   :  { %v5651_v60 = vmax.f32 %v5643_v41, %v8471_v56 }
0x192c   :  { %v5185_v21 = vpop.permute.xlu1 %5184 }
0x192d   :  { %v5187_v12 = vadd.f32 %v5185_v21, %v5123_v61  ;;  %v5629_v61 = vld [vmem:[#allocation3 + $0xa] sm:$0x3] }
0x192e   :  { %v5646_v48 = vsel %vm151_vm3, %v5629_v61, -inf }
0x192f   :  { %7671 = vtanh.f32 %v5187_v12  ;;  %v5647_v46 = vmax.f32 %v5641_v29, %v5646_v48 }
0x1930   :  { %7673 = vtanh.f32 %v5276_v34 }
0x1931   :  { %7675 = vtanh.f32 %v4666_v63  ;;  %v5652_v59 = vmax.f32 %v5645_v10, %v5647_v46 }
0x1939   :  { %v7672_v54 = vpop.eup %7671 }
0x193a   :  { %5191 = vrot.lane.b32.xlu0 %v7672_v54, %s8020_s17  ;;  %v7674_v2 = vpop.eup %7673 }
0x193b   :  { %v7676_v52 = vpop.eup %7675 }
0x193e   :  { %5280 = vrot.lane.b32.xlu0 %v7674_v2, %s8020_s17 }
0x1942   :  { %5449 = vperm.xlu0 %7433, %v6593_v36  }
0x1946   :  { %4670 = vrot.lane.b32.xlu0 %v7676_v52, %s8020_s17 }
0x194a   :  { %5420 = vrot.lane.b32.xlu0 %v9678_v51, %s8020_s17 }
0x196b   :  { %v5432_v24 = vpop.xlane.xlu1 %5431 }
0x196c   :  { %5434 = vst.msk [vmem:[#allocation3 + $0xc] sm:$0x3] %vm151_vm3, %v5432_v24 }
0x1973   :  { %v5630_v27 = vld [vmem:[#allocation3 + $0xc] sm:$0x3] }
0x1974   :  { %v5648_v4 = vsel %vm151_vm3, %v5630_v27, -inf }
0x1975   :  { %v5649_v30 = vmax.f32 %v5642_v35, %v5648_v4 }
0x1977   :  { %v5653_v11 = vmax.f32 %v5649_v30, %v5651_v60 }
0x1979   :  { %v5654_v42 = vmax.f32 %v5652_v59, %v5653_v11 }
0x197b   :  { %v5655_v36 = vsub.f32 %v5624_v43, %v5654_v42  ;;  %v5656_v49 = vsub.f32 %v5625_v19, %v5654_v42  ;;  %v5657_v21 = vsub.f32 %v5626_v17, %v5654_v42  ;;  %v5658_v12 = vsub.f32 %v5627_v7, %v5654_v42 }
0x197c   :  { %v5659_v34 = vsub.f32 %v5628_v13, %v5654_v42  ;;  %v5660_v2 = vsub.f32 %v5629_v61, %v5654_v42  ;;  %v5661_v24 = vsub.f32 %v5630_v27, %v5654_v42  ;;  %v5662_v29 = vsub.f32 -1e+30, %v5654_v42 }
0x197d   :  { %v5663_v26 = vmul.f32 1.442695, %v5655_v36  ;;  %v5665_v63 = vmul.f32 1.442695, %v5656_v49  ;;  %v5667_v54 = vmul.f32 1.442695, %v5657_v21 }
0x197e   :  { %v5669_v52 = vmul.f32 1.442695, %v5658_v12  ;;  %v5671_v48 = vmul.f32 1.442695, %v5659_v34  ;;  %v5673_v56 = vmul.f32 1.442695, %v5660_v2  ;;  %v5288_v12 = vpop.permute.xlu0 %5287 }
0x197f   :  { %7677 = vpow2.f32 %v5663_v26  ;;  %v5675_v41 = vmul.f32 1.442695, %v5661_v24  ;;  %v5677_v19 = vmul.f32 1.442695, %v5662_v29 }
0x1980   :  { %7679 = vpow2.f32 %v5665_v63 }
0x1981   :  { %7681 = vpow2.f32 %v5667_v54 }
0x1982   :  { %7683 = vpow2.f32 %v5669_v52  ;;  %v5293_v54 = vpop.permute.xlu0 %5292 }
0x1983   :  { %7685 = vpow2.f32 %v5671_v48 }
0x1984   :  { %7687 = vpow2.f32 %v5673_v56  ;;  %v5189_v56 = vsub.f32 1.0, %v9699_v57 }
0x1985   :  { %7689 = vpow2.f32 %v5675_v41 }
0x1986   :  { %7691 = vpow2.f32 %v5677_v19  ;;  %v5201_v2 = vpop.permute.xlu0 %5200  ;;  %v5195_v19 = vmul.f32 %v9699_v57, %v9483_v28 }
0x1989   :  { %v7678_v7 = vpop.eup %7677 }
0x198a   :  { %v7680_v13 = vpop.eup %7679  ;;  %v5679_v43 = vsel %vm151_vm3, %v7678_v7, 0.0  ;;  %v5207_v48 = vpop.permute.xlu0 %5206 }
0x198b   :  { %v7682_v61 = vpop.eup %7681  ;;  %v5680_v17 = vsel %vm151_vm3, %v7680_v13, 0.0 }
0x198c   :  { %v9725_v18 = vpop.eup %7683  ;;  %v5681_v27 = vadd.f32 %v5680_v17, %v5679_v43  ;;  %v5682_v46 = vsel %vm151_vm3, %v7682_v61, 0.0 }
0x198d   :  { %v7686_v58 = vpop.eup %7685  ;;  %v5684_v4 = vsel %vm151_vm3, %v9725_v18, 0.0 }
0x198e   :  { %v5683_v35 = vadd.f32 %v5682_v46, %v5681_v27  ;;  %v9730_v10 = vpop.eup %7687  ;;  %v5686_v60 = vsel %vm151_vm3, %v7686_v58, 0.0  ;;  %v5278_v46 = vsub.f32 1.0, %v9688_v9 }
0x198f   :  { %v9733_v59 = vpop.eup %7689  ;;  %v5688_v42 = vsel %vm151_vm3, %v9730_v10, 0.0 }
0x1990   :  { %v5685_v30 = vadd.f32 %v5684_v4, %v5683_v35  ;;  %v7692_v36 = vpop.eup %7691  ;;  %v5690_v21 = vsel %vm151_vm3, %v9733_v59, 0.0 }
0x1991   :  { %v5692_v26 = vsel %vm151_vm3, %v7692_v36, 0.0 }
0x1992   :  { %v5687_v11 = vadd.f32 %v5686_v60, %v5685_v30  ;;  %v5203_v60 = vmul.f32 %v5201_v2, %v9483_v28 }
0x1994   :  { %v5689_v49 = vadd.f32 %v5688_v42, %v5687_v11  ;;  %v5290_v42 = vmul.f32 %v5288_v12, %v9485_v25 }
0x1996   :  { %v5691_v34 = vadd.f32 %v5690_v21, %v5689_v49 }
0x1998   :  { %v5693_v63 = vadd.f32 %v5692_v26, %v5691_v34 }
0x199a   :  { %7693 = vrcp.f32 %v5693_v63 }
0x19a4   :  { %v7694_v52 = vpop.eup %7693 }
0x19a5   :  { %v5695_v24 = vmul.f32 %v7694_v52, %v7678_v7  ;;  %v5696_v29 = vmul.f32 %v7694_v52, %v7680_v13  ;;  %v5697_v17 = vmul.f32 %v7694_v52, %v7682_v61  ;;  %v5284_v7 = vmul.f32 %v9688_v9, %v9485_v25 }
0x19a6   :  { %v5699_v13 = vmul.f32 %v7694_v52, %v7686_v58  ;;  %v9756_v58 = vpop.permute.xlu1 %5454 }
0x19a7   :  { %5721 = vperm.xlu0 %7433, %v5695_v24  }
0x19ab   :  { %5726 = vperm.xlu0 %7433, %v5696_v29  }
0x19ac   :  { %v5192_v41 = vpop.permute.xlu0 %5191 }
0x19ad   :  { %v5194_v43 = vmul.f32 %v5192_v41, %v5189_v56  ;;  %v5551_v56 = vpack.c.bf16 %v9678_v51, %v9678_v51  ;;  %v5698_v41 = vmul.f32 %v7694_v52, %v9725_v18 }
0x19af   :  { %v5196_v27 = vadd.f32 %v5195_v19, %v5194_v43  ;;  %5731 = vperm.xlu0 %7433, %v5697_v17   ;;  %v5700_v19 = vmul.f32 %v7694_v52, %v9730_v10  ;;  %v5701_v43 = vmul.f32 %v7694_v52, %v9733_v59 }
0x19b0   :  { %v5281_v35 = vpop.permute.xlu0 %5280 }
0x19b1   :  { %v5209_v4 = vmul.f32 %v5207_v48, %v5196_v27  ;;  %v5283_v30 = vmul.f32 %v5281_v35, %v5278_v46 }
0x19b3   :  { %v5285_v11 = vadd.f32 %v5284_v7, %v5283_v30  ;;  %5741 = vperm.xlu0 %7433, %v5699_v13   ;;  %v9748_v57 = vadd.f32 %v5209_v4, %v5203_v60  ;;  %v5711_v7 = vld [vmem:[#allocation2] sm:$0x3]  ;;  %v5713_v30 = vld [vmem:[#allocation2 + $0x4] sm:$0x3] }
0x19b5   :  { %v5295_v61 = vmul.f32 %v5293_v54, %v5285_v11  ;;  %v5211_v49 = vmul.f32 %v9748_v57, %v9491_v53  ;;  %v4668_v53 = vsub.f32 1.0, %v9692_v14  ;;  %v5867_v17 = vpack.c.bf16 %v9748_v57, %v9748_v57 }
0x19b7   :  { %v9750_v36 = vadd.f32 %v5295_v61, %v5290_v42 }
0x19b9   :  { %v5297_v21 = vmul.f32 %v9750_v36, %v9494_v33  ;;  %v5457_v25 = vmul.f32 %v9756_v58, %v9750_v36  ;;  %v4674_v33 = vmul.f32 %v9692_v14, %v9506_v40  ;;  %v5956_v14 = vpack.c.bf16 %v9750_v36, %v9750_v36 }
0x19bb   :  { %v5298_v9 = vadd.f32 %v5297_v21, %v5211_v49  ;;  %v5715_v49 = vld [vmem:[#allocation2 + $0x8] sm:$0x3]  ;;  %v5714_v21 = vld [vmem:[#allocation2 + $0x6] sm:$0x3] }
0x19bd   :  { %v5299_v34 = vpack.c.bf16 %v5298_v9, %v5298_v9 }
0x19bf   :  { %5301 = vrot.lane.b32.xlu1 %v5299_v34, %s8020_s17 }
0x19c1   :  { %v9759_v28 = vpop.permute.xlu0 %5449 }
0x19c2   :  { %v5452_v12 = vmul.f32 %v9759_v28, %v9748_v57 }
0x19c4   :  { %v5458_v26 = vadd.f32 %v5457_v25, %v5452_v12 }
0x19c5   :  { %v4671_v63 = vpop.permute.xlu0 %4670 }
0x19c6   :  { %v5460_v54 = vpack.c.bf16 %v5458_v26, %v5458_v26  ;;  %v4673_v2 = vmul.f32 %v4671_v63, %v4668_v53  ;;  %v5716_v63 = vld [vmem:[#allocation2 + $0xa] sm:$0x3] }
0x19c8   :  { %v9768_v24 = vadd.f32 %v4674_v33, %v4673_v2  ;;  %5462 = vrot.lane.b32.xlu0 %v5460_v54, %s8020_s17  ;;  %v5718_v33 = vld [vmem:[#allocation2 + $0xe] sm:$0x3] }
0x19c9   :  { %v5421_v48 = vpop.permute.xlu0 %5420 }
0x19ca   :  { %v5346_v29 = vpack.c.bf16 %v9768_v24, %v9768_v24  ;;  %5424 = vst.msk [vmem:[#allocation2 + $0xc] sm:$0x3] %vm142_vm2, %v5421_v48 }
0x19cc   :  { %5553 = vrot.lane.b32.xlu0 %v5551_v56, %s8020_s17  ;;  %5348 = vrot.lane.b32.xlu1 %v5346_v29, %s8020_s17  ;;  %v7813_v29 = vld [vmem:[#allocation13] sm:$0xff]  }
0x19d0   :  { %5958 = vrot.lane.b32.xlu0 %v5956_v14, %s8020_s17  ;;  %5736 = vperm.xlu1 %7435, %v5698_v41   ;;  %v5766_v41 = vmul.f32 0.0, %v5718_v33 }
0x19d4   :  { %5746 = vperm.xlu1 %7435, %v5700_v19  }
0x19d8   :  { %5751 = vperm.xlu1 %7435, %v5701_v43   ;;  %v5717_v43 = vld [vmem:[#allocation2 + $0xc] sm:$0x3] }
0x19dc   :  { %5869 = vrot.lane.b32.xlu1 %v5867_v17, %s8020_s17 }
0x1a26   :  { %v5722_v27 = vpop.permute.xlu0 %5721 }
0x1a27   :  { %v5759_v13 = vmul.f32 %v5722_v27, %v5711_v7  ;;  %v7814_v27 = vld [vmem:[#allocation13 + $0x8] sm:$0xff]  }
0x1a2a   :  { %v5727_v46 = vpop.permute.xlu0 %5726 }
0x1a2e   :  { %v5732_v35 = vpop.permute.xlu0 %5731 }
0x1a2f   :  { %v5761_v60 = vmul.f32 %v5732_v35, %v5713_v30  ;;  %v5780_v35 = vsel %vm142_vm2, %v5766_v41, 0.0 }
0x1a31   :  { %v5302_v4 = vpop.permute.xlu1 %5301  ;;  %v5770_v42 = vsel %vm142_vm2, %v5761_v60, 0.0  ;;  %v9868_v60 = vld [vmem:[%s10075_s16] ss:$0 sm:$0xff] }
0x1a32   :  { %7305 = vmatmul.mubr.msk.bf16.vlgmr.msra.gmra.mrb[120].mxu0 %vm228_vm0, %v5302_v4  ;;  %v5742_v18 = vpop.permute.xlu0 %5741 }
0x1a33   :  { %7317 = vmatpush3.bf16.msra.mxu0 %v9520_v8  ;;  %7320 = vmatprep.mubr.msk.bf16.mxu0 %vm8018_vm1, %v8016_v3  ;;  %v5763_v34 = vmul.f32 %v5742_v18, %v5715_v49 }
0x1a34   :  { %7318 = vmatprep.subr.bf16.mxu0 %v8016_v3 }
0x1a35   :  { %v5774_v2 = vsel %vm142_vm2, %v5763_v34, 0.0 }
0x1a37   :  { %7319 = vmatpush3.bf16.msra.mxu0 %v9529_v1  ;;  %v6591_v1 = vld [vmem:[%s10089_s29 + $0xe] sm:$0x3] }
0x1a38   :  { %7332 = vmatprep.subr.bf16.mxu0 %v8016_v3  ;;  %v5459_v59 = vpack.c.bf16 %v6591_v1, %v6591_v1 }
0x1a3a   :  { %v5463_v10 = vpop.permute.xlu0 %5462 }
0x1a3b   :  { %7321 = vmatmul.mubr.msk.bf16.vlgmr.msra.gmra.mrb[124].mxu0 %vm228_vm0, %v5463_v10 }
0x1a3c   :  { %7333 = vmatpush3.bf16.msra.mxu0 %v9534_v44  ;;  %7336 = vmatprep.mubr.msk.bf16.mxu0 %vm8018_vm1, %v8016_v3 }
0x1a3d   :  { %7334 = vmatprep.subr.bf16.mxu0 %v8016_v3 }
0x1a3e   :  { %v5349_v8 = vpop.permute.xlu1 %5348  ;;  %v5554_v44 = vpop.permute.xlu0 %5553 }
0x1a3f   :  { %7313 = vmatmul.mubr.msk.bf16.vlgmr.msra.gmra.mrb[120].mxu1 %vm228_vm0, %v5349_v8 }
0x1a40   :  { %7325 = vmatpush3.bf16.msra.mxu1 %v9544_v55  ;;  %7335 = vmatpush3.bf16.msra.mxu0 %v9552_v50  ;;  %v7811_v55 = vld [vmem:[%s10067_s8] sm:$0xff]  }
0x1a41   :  { %7326 = vmatprep.subr.bf16.mxu1 %v8016_v3  ;;  %7348 = vmatprep.subr.bf16.mxu0 %v8016_v3  ;;  %v5712_v50 = vld [vmem:[#allocation2 + $0x2] sm:$0x3] }
0x1a42   :  { %7328 = vmatprep.mubr.msk.bf16.mxu1 %vm8018_vm1, %v8016_v3  ;;  %v5760_v52 = vmul.f32 %v5727_v46, %v5712_v50  ;;  %v5959_v26 = vpop.permute.xlu0 %5958 }
0x1a43   :  { %7337 = vmatmul.mubr.msk.bf16.vlgmr.msra.gmra.mrb[128].mxu0 %vm228_vm0, %v5554_v44  ;;  %v7815_v44 = vld [vmem:[%s10072_s13] sm:$0xff]  }
0x1a44   :  { %7327 = vmatpush3.bf16.msra.mxu1 %v9560_v39  ;;  %7349 = vmatpush3.bf16.msra.mxu0 %v7811_v55  ;;  %v7812_v39 = vld [vmem:[%s10067_s8 + $0x8] sm:$0xff]   ;;  %v5768_v11 = vsel %vm142_vm2, %v5760_v52, 0.0 }
0x1a45   :  { %7350 = vmatprep.subr.bf16.mxu0 %v8016_v3  ;;  %7352 = vmatprep.mubr.msk.bf16.mxu0 %vm8018_vm1, %v8016_v3 }
0x1a46   :  { %7340 = vmatprep.subr.bf16.mxu1 %v8016_v3 }
0x1a47   :  { %7329 = vmatmul.mubr.msk.bf16.vlgmr.msra.gmra.mrb[124].mxu1 %vm228_vm0, %v5459_v59 }
0x1a48   :  { %7351 = vmatpush3.bf16.msra.mxu0 %v7812_v39  ;;  %7341 = vmatpush3.bf16.msra.mxu1 %v9570_v20  ;;  %v5767_v20 = vsel %vm142_vm2, %v5759_v13, 0.0 }
0x1a49   :  { %7364 = vmatprep.subr.bf16.mxu0 %v8016_v3  ;;  %7342 = vmatprep.subr.bf16.mxu1 %v8016_v3  ;;  %v5769_v61 = vadd.f32 %v5768_v11, %v5767_v20 }
0x1a4a   :  { %7344 = vmatprep.mubr.msk.bf16.mxu1 %vm8018_vm1, %v8016_v3 }
0x1a4b   :  { %7353 = vmatmul.mubr.msk.bf16.vlgmr.msra.gmra.mrb[132].mxu0 %vm228_vm0, %v5459_v59  ;;  %v5771_v12 = vadd.f32 %v5770_v42, %v5769_v61 }
0x1a4c   :  { %7365 = vmatpush3.bf16.msra.mxu0 %v9582_v37  ;;  %7368 = vmatprep.mubr.msk.bf16.mxu0 %vm8018_vm1, %v8016_v3 }
0x1a4d   :  { %7366 = vmatprep.subr.bf16.mxu0 %v8016_v3  ;;  %7343 = vmatpush3.bf16.msra.mxu1 %v9579_v16 }
0x1a4e   :  { %7356 = vmatprep.subr.bf16.mxu1 %v8016_v3 }
0x1a4f   :  { %v5737_v9 = vpop.permute.xlu1 %5736 }
0x1a50   :  { %v5762_v25 = vmul.f32 %v5737_v9, %v5714_v21  ;;  %7367 = vmatpush3.bf16.msra.mxu0 %v9589_v38 }
0x1a51   :  { %7380 = vmatprep.subr.bf16.mxu0 %v8016_v3 }
0x1a52   :  { %v5772_v16 = vsel %vm142_vm2, %v5762_v25, 0.0 }
0x1a53   :  { %v5773_v53 = vadd.f32 %v5772_v16, %v5771_v12  ;;  %v5747_v54 = vpop.permute.xlu1 %5746  ;;  %7369 = vmatmul.mubr.msk.bf16.vlgmr.msra.gmra.mrb[136].mxu0 %vm228_vm0, %v5959_v26 }
0x1a54   :  { %v5764_v48 = vmul.f32 %v5747_v54, %v5716_v63  ;;  %7381 = vmatpush3.bf16.msra.mxu0 %v7813_v29  ;;  %7384 = vmatprep.mubr.msk.bf16.mxu0 %vm8018_vm1, %v8016_v3 }
0x1a55   :  { %v5775_v56 = vadd.f32 %v5774_v2, %v5773_v53  ;;  %7382 = vmatprep.subr.bf16.mxu0 %v8016_v3 }
0x1a56   :  { %v5776_v14 = vsel %vm142_vm2, %v5764_v48, 0.0 }
0x1a57   :  { %v5752_v19 = vpop.permute.xlu1 %5751  ;;  %v5777_v46 = vadd.f32 %v5776_v14, %v5775_v56 }
0x1a58   :  { %v5765_v17 = vmul.f32 %v5752_v19, %v5717_v43  ;;  %7383 = vmatpush3.bf16.msra.mxu0 %v7814_v27 }
0x1a5a   :  { %v5778_v4 = vsel %vm142_vm2, %v5765_v17, 0.0 }
0x1a5b   :  { %v5779_v18 = vadd.f32 %v5778_v4, %v5777_v46  ;;  %v5870_v1 = vpop.permute.xlu1 %5869 }
0x1a5d   :  { %v5781_v10 = vadd.f32 %v5780_v35, %v5779_v18 }
0x1a5f   :  { %v5782_v8 = vpack.c.bf16 %v5781_v10, %v5781_v10 }
0x1a61   :  { %7345 = vmatmul.mubr.msk.bf16.vlgmr.msra.gmra.mrb[128].mxu1 %vm228_vm0, %v5782_v8  ;;  %v9883_v8 = vld [vmem:[%s10074_s15] ss:$0 sm:$0xff] }
0x1a62   :  { %7357 = vmatpush3.bf16.msra.mxu1 %v9582_v37  ;;  %7360 = vmatprep.mubr.msk.bf16.mxu1 %vm8018_vm1, %v8016_v3  ;;  %v7816_v37 = vld [vmem:[%s10072_s13 + $0x8] sm:$0xff]  }
0x1a63   :  { %7358 = vmatprep.subr.bf16.mxu1 %v8016_v3 }
0x1a66   :  { %7359 = vmatpush3.bf16.msra.mxu1 %v9589_v38 }
0x1a67   :  { %7372 = vmatprep.subr.bf16.mxu1 %v8016_v3 }
0x1a69   :  { %7361 = vmatmul.mubr.msk.bf16.vlgmr.msra.gmra.mrb[132].mxu1 %vm228_vm0, %v5870_v1 }
0x1a6a   :  { %7373 = vmatpush3.bf16.msra.mxu1 %v7815_v44  ;;  %7376 = vmatprep.mubr.msk.bf16.mxu1 %vm8018_vm1, %v8016_v3 }
0x1a6b   :  { %7374 = vmatprep.subr.bf16.mxu1 %v8016_v3 }
0x1a6e   :  { %7375 = vmatpush3.bf16.msra.mxu1 %v7816_v37 }
0x1b05   :  { %v5340_v38 = vpop.f32.mrb[120].mxu0 }
0x1b06   :  { %v7306_v59 = vpop.f32.mrb[121].mxu0  ;;  %v5341_v1 = vadd.f32 %v9883_v8, %v5340_v38 }
0x1b07   :  { %v5343_v55 = vpop.f32.mrb[122].mxu0 }
0x1b08   :  { %v7307_v50 = vpop.f32.mrb[123].mxu0 }
0x1b0e   :  { %v5501_v52 = vpop.f32.mrb[124].mxu0 }
0x1b0f   :  { %v7322_v39 = vpop.f32.mrb[125].mxu0 }
0x1b10   :  { %v5504_v7 = vpop.f32.mrb[126].mxu0 }
0x1b11   :  { %v7323_v30 = vpop.f32.mrb[127].mxu0 }
0x1b12   :  { %v5387_v13 = vpop.f32.mrb[120].mxu1 }
0x1b13   :  { %v5388_v3 = vadd.f32 %v9868_v60, %v5387_v13  ;;  %v7314_v11 = vpop.f32.mrb[121].mxu1 }
0x1b14   :  { %v5390_v20 = vpop.f32.mrb[122].mxu1 }
0x1b15   :  { %5401 = vrot.lane.b32.xlu1 %v5388_v3, %s8010_s30  ;;  %v7315_v42 = vpop.f32.mrb[123].mxu1  ;;  %v5393_v44 = vadd.f32 %v5388_v3, %v5341_v1 }
0x1b16   :  { %v9872_v61 = vpop.f32.mrb[128].mxu0 }
0x1b17   :  { %v7338_v49 = vpop.f32.mrb[129].mxu0  ;;  %v6590_v37 = vmul.f32 -1.442695, %v5393_v44 }
0x1b18   :  { %v5595_v21 = vpop.f32.mrb[130].mxu0 }
0x1b19   :  { %v7339_v9 = vpop.f32.mrb[131].mxu0  ;;  %7695 = vpow2.f32 %v6590_v37 }
0x1b1a   :  { %v5544_v34 = vpop.f32.mrb[124].mxu1 }
0x1b1b   :  { %v9874_v25 = vadd.f32 %v5544_v34, %v5501_v52  ;;  %v7330_v12 = vpop.f32.mrb[125].mxu1 }
0x1b1c   :  { %v5547_v26 = vpop.f32.mrb[126].mxu1 }
0x1b1d   :  { %v7331_v16 = vpop.f32.mrb[127].mxu1  ;;  %v6592_v26 = vld [vmem:[%s10090_s5 + $0xe] sm:$0x3] }
0x1b1e   :  { %v5860_v53 = vpop.f32.mrb[132].mxu0  ;;  %v5593_v16 = vadd.f32 %v9619_v23, %v9872_v61 }
0x1b1f   :  { %v7354_v63 = vpop.f32.mrb[133].mxu0 }
0x1b20   :  { %v5863_v54 = vpop.f32.mrb[134].mxu0 }
0x1b21   :  { %v7355_v33 = vpop.f32.mrb[135].mxu0 }
0x1b22   :  { %v5550_v33 = vadd.f32 %v9626_v15, %v9874_v25 }
0x1b23   :  { %v7696_v55 = vpop.eup %7695 }
0x1b26   :  { %v5997_v2 = vpop.f32.mrb[136].mxu0 }
0x1b27   :  { %v5998_v48 = vadd.f32 %v9668_v31, %v5997_v2  ;;  %v7370_v29 = vpop.f32.mrb[137].mxu0  ;;  %v5598_v2 = vadd.f32 %v5593_v16, %v5550_v33 }
0x1b28   :  { %v6000_v56 = vpop.f32.mrb[138].mxu0 }
0x1b29   :  { %v7371_v14 = vpop.f32.mrb[139].mxu0  ;;  %6011 = vrot.lane.b32.xlu1 %v5998_v48, %s8010_s30  ;;  %v6597_v29 = vmul.f32 -1.442695, %v5598_v2 }
0x1b34   :  { %v5820_v41 = vpop.f32.mrb[128].mxu1 }
0x1b35   :  { %v5861_v19 = vadd.f32 %v5860_v53, %v5820_v41  ;;  %v7346_v43 = vpop.f32.mrb[129].mxu1  ;;  %v5940_v53 = vsub.f32 1.0, %v6592_v26 }
0x1b36   :  { %v5823_v17 = vpop.f32.mrb[130].mxu1 }
0x1b37   :  { %v7347_v27 = vpop.f32.mrb[131].mxu1  ;;  %v5866_v59 = vadd.f32 %v9683_v6, %v5861_v19 }
0x1b39   :  { %v6003_v50 = vadd.f32 %v5998_v48, %v5866_v59 }
0x1b3b   :  { %v6603_v52 = vmul.f32 -1.442695, %v6003_v50 }
0x1b3c   :  { %v5908_v46 = vpop.f32.mrb[132].mxu1 }
0x1b3d   :  { %v5909_v35 = vadd.f32 %v9668_v31, %v5908_v46  ;;  %v7362_v4 = vpop.f32.mrb[133].mxu1  ;;  %v5397_v31 = vadd.f32 1.0, %v7696_v55 }
0x1b3e   :  { %v5911_v18 = vpop.f32.mrb[134].mxu1 }
0x1b3f   :  { %5922 = vrot.lane.b32.xlu0 %v5909_v35, %s8010_s30  ;;  %v7363_v10 = vpop.f32.mrb[135].mxu1  ;;  %7697 = vrcp.f32 %v5397_v31  ;;  %v5914_v20 = vadd.f32 %v5909_v35, %v5866_v59 }
0x1b40   :  { %7699 = vpow2.f32 %v6603_v52 }
0x1b41   :  { %v6601_v38 = vmul.f32 -1.442695, %v5914_v20 }
0x1b49   :  { %v7698_v39 = vpop.eup %7697 }
0x1b4a   :  { %v7700_v13 = vpop.eup %7699  ;;  %v5417_v46 = vmul.f32 %v7698_v39, %v9768_v24 }
0x1b4b   :  { %v6007_v11 = vadd.f32 1.0, %v7700_v13 }
0x1b4d   :  { %7701 = vrcp.f32 %v6007_v11 }
0x1b4e   :  { %7703 = vpow2.f32 %v6601_v38 }
0x1b57   :  { %v9888_v3 = vpop.eup %7701 }
0x1b58   :  { %v7704_v49 = vpop.eup %7703  ;;  %v6027_v20 = vmul.f32 %v9888_v3, %v9750_v36 }
0x1b59   :  { %v5918_v21 = vadd.f32 1.0, %v7704_v49 }
0x1b5b   :  { %7705 = vrcp.f32 %v5918_v21 }
0x1b65   :  { %v7706_v9 = vpop.eup %7705 }
0x1b66   :  { %v5932_v50 = vsub.f32 1.0, %v7706_v9  ;;  %v5938_v52 = vmul.f32 %v7706_v9, %v9748_v57 }
0x1b87   :  { %v5402_v7 = vpop.permute.xlu1 %5401 }
0x1b88   :  { %v5404_v30 = vmul.f32 %v7698_v39, %v5402_v7 }
0x1b8a   :  { %5406 = vrot.lane.b32.xlu0 %v5404_v30, %s8010_s30  ;;  %v6021_v30 = vsub.f32 1.0, %v9888_v3 }
0x1b9b   :  { %v6012_v6 = vpop.permute.xlu1 %6011 }
0x1b9c   :  { %v6014_v42 = vmul.f32 %v9888_v3, %v6012_v6 }
0x1b9e   :  { %6016 = vrot.lane.b32.xlu0 %v6014_v42, %s8010_s30 }
0x1bb1   :  { %v5923_v34 = vpop.permute.xlu0 %5922 }
0x1bb2   :  { %v5925_v12 = vmul.f32 %v7706_v9, %v5923_v34 }
0x1bb4   :  { %5927 = vrot.lane.b32.xlu1 %v5925_v12, %s8010_s30 }
0x1bb8   :  { %5606 = vrot.lane.b32.xlu1 %v5593_v16, %s8010_s30 }
0x1bbc   :  { %5943 = vperm.xlu1 %7435, %v5940_v53  }
0x1bc0   :  { %7436 = vset.pattern.permute.xlu1 %v8017_v5 }
0x1bc1   :  { %6030 = vperm.xlu1 %7436, %v5940_v53  }
0x1bfc   :  { %v5407_v63 = vpop.permute.xlu0 %5406 }
0x1bfd   :  { %v5409_v54 = vadd.f32 %v5407_v63, %v5341_v1 }
0x1bff   :  { %7707 = vtanh.f32 %v5409_v54 }
0x1c00   :  { %7709 = vpow2.f32 %v6597_v29  ;;  %v6185_v29 = vld [vmem:[#allocation3 + $0x2] sm:$0x3] }
0x1c09   :  { %v7708_v48 = vpop.eup %7707 }
0x1c0a   :  { %5413 = vrot.lane.b32.xlu0 %v7708_v48, %s8020_s17  ;;  %v7710_v23 = vpop.eup %7709 }
0x1c0b   :  { %v5602_v61 = vadd.f32 1.0, %v7710_v23  ;;  %v6186_v23 = vld [vmem:[#allocation3 + $0x4] sm:$0x3] }
0x1c0d   :  { %7711 = vrcp.f32 %v5602_v61  ;;  %v6187_v61 = vld [vmem:[#allocation3 + $0x6] sm:$0x3] }
0x1c0e   :  { %5949 = vperm.xlu0 %7433, %v6592_v26  }
0x1c10   :  { %v6017_v56 = vpop.permute.xlu0 %6016 }
0x1c11   :  { %v6019_v19 = vadd.f32 %v6017_v56, %v5866_v59  ;;  %v6189_v56 = vld [vmem:[#allocation3 + $0xa] sm:$0x3] }
0x1c12   :  { %7437 = vset.pattern.permute.xlu0 %v8017_v5 }
0x1c13   :  { %6035 = vperm.xlu0 %7437, %v6592_v26  }
0x1c17   :  { %7438 = vset.pattern.permute.xlu0 %v8015_v0  ;;  %v7712_v15 = vpop.eup %7711  ;;  %v5411_v0 = vsub.f32 1.0, %v7698_v39 }
0x1c26   :  { %v5928_v14 = vpop.permute.xlu1 %5927 }
0x1c27   :  { %v5930_v41 = vadd.f32 %v5928_v14, %v5866_v59  ;;  %v6190_v14 = vld [vmem:[#allocation3 + $0xc] sm:$0x3] }
0x1c29   :  { %7713 = vtanh.f32 %v5930_v41 }
0x1c2a   :  { %v5607_v25 = vpop.permute.xlu1 %5606  ;;  %7715 = vtanh.f32 %v6019_v19 }
0x1c2b   :  { %v5609_v43 = vmul.f32 %v7712_v15, %v5607_v25 }
0x1c2d   :  { %5611 = vrot.lane.b32.xlu0 %v5609_v43, %s8010_s30 }
0x1c33   :  { %v7714_v17 = vpop.eup %7713 }
0x1c34   :  { %5934 = vrot.lane.b32.xlu1 %v7714_v17, %s8020_s17  ;;  %v7716_v5 = vpop.eup %7715 }
0x1c38   :  { %6023 = vrot.lane.b32.xlu1 %v7716_v5, %s8020_s17 }
0x1c3b   :  { %v5944_v44 = vpop.permute.xlu1 %5943 }
0x1c3c   :  { %v5946_v42 = vmul.f32 %v5944_v44, %v9748_v57  ;;  %v5616_v57 = vsub.f32 1.0, %v7712_v15 }
0x1c40   :  { %v6031_v55 = vpop.permute.xlu1 %6030 }
0x1c41   :  { %v6033_v21 = vmul.f32 %v6031_v55, %v9750_v36 }
0x1c7c   :  { %v5414_v27 = vpop.permute.xlu0 %5413 }
0x1c7d   :  { %v5416_v35 = vmul.f32 %v5414_v27, %v5411_v0 }
0x1c7f   :  { %v9909_v4 = vadd.f32 %v5417_v46, %v5416_v35 }
0x1c81   :  { %v6089_v18 = vpack.c.bf16 %v9909_v4, %v9909_v4 }
0x1c83   :  { %6091 = vrot.lane.b32.xlu1 %v6089_v18, %s8020_s17 }
0x1c8d   :  { %v5950_v10 = vpop.permute.xlu0 %5949 }
0x1c92   :  { %v6036_v1 = vpop.permute.xlu0 %6035 }
0x1c9f   :  { %v5612_v37 = vpop.permute.xlu0 %5611 }
0x1ca0   :  { %v5614_v59 = vadd.f32 %v5612_v37, %v5550_v33  ;;  %v5622_v33 = vmul.f32 %v7712_v15, %v9678_v51  ;;  %v6188_v51 = vld [vmem:[#allocation3 + $0x8] sm:$0x3] }
0x1ca2   :  { %7717 = vtanh.f32 %v5614_v59  ;;  %v6224_v59 = vlaneseq }
0x1ca4   :  { %v9936_v55 = vand.u32 127, %v6224_v59 }
0x1ca6   :  { %v5935_v31 = vpop.permute.xlu1 %5934  ;;  %vm6309_vm12 = vcmp.lt.s32.totalorder %v9936_v55, 2  ;;  %vm6308_vm13 = vcmp.lt.s32.totalorder %v9936_v55, 1  ;;  %vm6310_vm15 = vcmp.lt.s32.totalorder %v9936_v55, 3  ;;  %vm6312_vm1 = vcmp.lt.s32.totalorder %v9936_v55, 5 }
0x1ca7   :  { %v5937_v39 = vmul.f32 %v5935_v31, %v5932_v50  ;;  %v6227_v50 = vshrl.u32 %v6224_v59, 7 }
0x1ca9   :  { %v5939_v7 = vadd.f32 %v5938_v52, %v5937_v39  ;;  %v6228_v52 = vsub.s32 %v9936_v55, %v6227_v50 }
0x1caa   :  { %v6024_v13 = vpop.permute.xlu1 %6023 }
0x1cab   :  { %v5952_v11 = vmul.f32 %v5950_v10, %v5939_v7  ;;  %v6026_v38 = vmul.f32 %v6024_v13, %v6021_v30 }
0x1cac   :  { %v7718_v6 = vpop.eup %7717 }
0x1cad   :  { %v6028_v49 = vadd.f32 %v6027_v20, %v6026_v38  ;;  %5618 = vrot.lane.b32.xlu1 %v7718_v6, %s8020_s17  ;;  %v5953_v34 = vadd.f32 %v5952_v11, %v5946_v42 }
0x1caf   :  { %v6038_v9 = vmul.f32 %v6036_v1, %v6028_v49  ;;  %v5954_v26 = vmul.f32 %v5953_v34, %v9759_v28 }
0x1cb1   :  { %v6039_v12 = vadd.f32 %v6038_v9, %v6033_v21 }
0x1cb3   :  { %v6040_v16 = vmul.f32 %v6039_v12, %v9756_v58  ;;  %v6184_v58 = vld [vmem:[#allocation3] sm:$0x3] }
0x1cb5   :  { %v6041_v53 = vadd.f32 %v6040_v16, %v5954_v26 }
0x1cb7   :  { %v6042_v63 = vpack.c.bf16 %v6041_v53, %v6041_v53 }
0x1cb9   :  { %6044 = vrot.lane.b32.xlu0 %v6042_v63, %s8020_s17 }
0x1cf5   :  { %v6092_v3 = vpop.permute.xlu1 %6091 }
0x1cf6   :  { %7385 = vmatmul.mubr.msk.bf16.vlgmr.msra.gmra.mrb[140].mxu0 %vm228_vm0, %v6092_v3 }
0x1d1f   :  { %v5619_v54 = vpop.permute.xlu1 %5618 }
0x1d20   :  { %v5621_v2 = vmul.f32 %v5619_v54, %v5616_v57 }
0x1d22   :  { %v9926_v36 = vadd.f32 %v5622_v33, %v5621_v2 }
0x1d24   :  { %v6168_v48 = vmul.f32 %v9926_v36, %v8373_v62 }
0x1d26   :  { %6170 = vrot.lane.b32.xlu0 %v6168_v48, %s8020_s17 }
0x1d2a   :  { %6201 = vperm.xlu0 %7438, %v6184_v58  }
0x1d2b   :  { %v6045_v28 = vpop.permute.xlu0 %6044 }
0x1d2c   :  { %7377 = vmatmul.mubr.msk.bf16.vlgmr.msra.gmra.mrb[136].mxu1 %vm228_vm0, %v6045_v28  ;;  %vm6311_vm0 = vcmp.lt.s32.totalorder %v9936_v55, 4 }
0x1d2e   :  { %6204 = vperm.xlu0 %7438, %v6185_v29  }
0x1d32   :  { %6207 = vperm.xlu0 %7438, %v6186_v23  }
0x1d36   :  { %6210 = vperm.xlu0 %7438, %v6187_v61  }
0x1d3a   :  { %6213 = vperm.xlu0 %7438, %v6188_v51  }
0x1d3e   :  { %6216 = vperm.xlu0 %7438, %v6189_v56  }
0x1d42   :  { %6219 = vperm.xlu0 %7438, %v6190_v14  }
0x1d98   :  { %v6171_v62 = vpop.permute.xlu0 %6170 }
0x1d99   :  { %v6173_v41 = vsel %vm142_vm2, %v6171_v62, 0.0 }
0x1d9a   :  { %6174 = vadd.xlane.f32.xlu1 %v6173_v41 }
0x1da9   :  { %v6202_v10 = vpop.permute.xlu0 %6201 }
0x1daa   :  { %v6229_v30 = vrot.slane %v6202_v10, %v6228_v52 }
0x1dad   :  { %v6205_v1 = vpop.permute.xlu0 %6204 }
0x1dae   :  { %v6233_v39 = vrot.slane %v6205_v1, %v6228_v52 }
0x1db0   :  { %v6259_v38 = vsel %vm6258_vm4, %v6233_v39, %v6229_v30  ;;  %vm6314_vm4 = vcmp.lt.s32.totalorder %v9936_v55, 7 }
0x1db1   :  { %v6208_v44 = vpop.permute.xlu0 %6207 }
0x1db2   :  { %v6237_v7 = vrot.slane %v6208_v44, %v6228_v52 }
0x1db4   :  { %v6261_v42 = vsel %vm6260_vm5, %v6237_v7, %v6259_v38 }
0x1db5   :  { %v6211_v37 = vpop.permute.xlu0 %6210 }
0x1db6   :  { %v6241_v13 = vrot.slane %v6211_v37, %v6228_v52 }
0x1db8   :  { %v6263_v21 = vsel %vm6262_vm6, %v6241_v13, %v6261_v42 }
0x1dc9   :  { %v6130_v19 = vpop.f32.mrb[140].mxu0 }
0x1dca   :  { %v6131_v15 = vadd.f32 %v9868_v60, %v6130_v19  ;;  %v7386_v25 = vpop.f32.mrb[141].mxu0  ;;  %v6214_v60 = vpop.permute.xlu0 %6213 }
0x1dcb   :  { %v6133_v43 = vpop.f32.mrb[142].mxu0  ;;  %v6245_v20 = vrot.slane %v6214_v60, %v6228_v52 }
0x1dcc   :  { %v7387_v17 = vpop.f32.mrb[143].mxu0  ;;  %6144 = vrot.lane.b32.xlu1 %v6131_v15, %s8010_s30 }
0x1dcd   :  { %v6265_v34 = vsel %vm6264_vm7, %v6245_v20, %v6263_v21 }
0x1dce   :  { %v6217_v31 = vpop.permute.xlu0 %6216 }
0x1dcf   :  { %v6249_v6 = vrot.slane %v6217_v31, %v6228_v52 }
0x1dd1   :  { %v6267_v12 = vsel %vm6266_vm8, %v6249_v6, %v6265_v34 }
0x1dd2   :  { %v6220_v11 = vpop.permute.xlu0 %6219 }
0x1dd3   :  { %v6253_v49 = vrot.slane %v6220_v11, %v6228_v52 }
0x1dd5   :  { %v6269_v16 = vsel %vm6268_vm9, %v6253_v49, %v6267_v12 }
0x1dff   :  { %v6083_v5 = vpop.f32.mrb[136].mxu1 }
0x1e00   :  { %v7378_v0 = vpop.f32.mrb[137].mxu1  ;;  %v9940_v63 = vadd.f32 %v9883_v8, %v6083_v5 }
0x1e01   :  { %v6086_v27 = vpop.f32.mrb[138].mxu1 }
0x1e02   :  { %v7379_v46 = vpop.f32.mrb[139].mxu1  ;;  %v6136_v3 = vadd.f32 %v6131_v15, %v9940_v63 }
0x1e04   :  { %v6606_v8 = vmul.f32 -1.442695, %v6136_v3 }
0x1e06   :  { %7719 = vpow2.f32 %v6606_v8 }
0x1e10   :  { %v7720_v62 = vpop.eup %7719 }
0x1e11   :  { %v6140_v19 = vadd.f32 1.0, %v7720_v62 }
0x1e13   :  { %7721 = vrcp.f32 %v6140_v19 }
0x1e1d   :  { %v9967_v25 = vpop.eup %7721 }
0x1e27   :  { %v6175_v35 = vpop.xlane.xlu1 %6174 }
0x1e28   :  { %6177 = vst.msk [vmem:[#allocation3 + $0xe] sm:$0x3] %vm151_vm3, %v6175_v35  ;;  %vm6313_vm3 = vcmp.lt.s32.totalorder %v9936_v55, 6 }
0x1e2f   :  { %v6191_v18 = vld [vmem:[#allocation3 + $0xe] sm:$0x3] }
0x1e30   :  { %6222 = vperm.xlu0 %7438, %v6191_v18  }
0x1e3e   :  { %v6145_v15 = vpop.permute.xlu1 %6144 }
0x1e3f   :  { %v6147_v43 = vmul.f32 %v9967_v25, %v6145_v15 }
0x1eaf   :  { %v6223_v9 = vpop.permute.xlu0 %6222 }
0x1eb0   :  { %v6257_v26 = vrot.slane %v6223_v9, %v6228_v52 }
0x1eb2   :  { %v6271_v53 = vsel %vm6270_vm10, %v6257_v26, %v6269_v16 }
0x1eb3   :  { %6273 = vxpose.xlu0.b32.start.end [1/1] (short) (narrow) %v6271_v53, 8 }
0x1f33   :  { %v6289_v57 = vpop.trf.xlu0 }
0x1f34   :  { %v6306_v54 = vsel %vm6305_vm11, %v6289_v57, -1e+30 }
0x1f35   :  { %v6317_v33 = vsel %vm6309_vm12, %v6306_v54, -1e+30  ;;  %v6316_v2 = vsel %vm6308_vm13, %v6306_v54, -1e+30  ;;  %v6318_v28 = vsel %vm6310_vm15, %v6306_v54, -1e+30 }
0x1f36   :  { %v6330_v48 = vsel %vm6323_vm14, %v6317_v33, -inf  ;;  %v6327_v58 = vsel %vm6323_vm14, %v6316_v2, -inf  ;;  %v6333_v29 = vsel %vm6323_vm14, %v6318_v28, -inf  ;;  %v6319_v23 = vsel %vm6311_vm0, %v6306_v54, -1e+30 }
0x1f37   :  { %6331 = vmax.xlane.f32.xlu0 %v6330_v48  ;;  %6328 = vmax.xlane.f32.xlu1 %v6327_v58  ;;  %v6336_v61 = vsel %vm6323_vm14, %v6319_v23, -inf  ;;  %v6320_v51 = vsel %vm6312_vm1, %v6306_v54, -1e+30  ;;  %v6321_v14 = vsel %vm6313_vm3, %v6306_v54, -1e+30 }
0x1f38   :  { %v6339_v56 = vsel %vm6323_vm14, %v6320_v51, -inf  ;;  %v6342_v41 = vsel %vm6323_vm14, %v6321_v14, -inf  ;;  %v6322_v17 = vsel %vm6314_vm4, %v6306_v54, -1e+30 }
0x1f39   :  { %v6345_v5 = vsel %vm6323_vm14, %v6322_v17, -inf }
0x1f3b   :  { %6334 = vmax.xlane.f32.xlu1 %v6333_v29 }
0x1f3f   :  { %6337 = vmax.xlane.f32.xlu1 %v6336_v61 }
0x1f43   :  { %6340 = vmax.xlane.f32.xlu1 %v6339_v56 }
0x1f47   :  { %6343 = vmax.xlane.f32.xlu1 %v6342_v41 }
0x1f58   :  { %6149 = vrot.lane.b32.xlu1 %v6147_v43, %s8010_s30  ;;  %s8022_s30 = smov [#allocation16]  }
0x1f7c   :  { %6346 = vmax.xlane.f32.xlu1 %v6345_v5 }
0x1fc4   :  { %v6332_v0 = vpop.xlane.xlu0 %6331  ;;  %v6329_v27 = vpop.xlane.xlu1 %6328 }
0x1fc5   :  { %v6350_v46 = vsub.f32 %v6317_v33, %v6332_v0  ;;  %v6349_v35 = vsub.f32 %v6316_v2, %v6329_v27 }
0x1fc7   :  { %v6358_v18 = vmul.f32 1.442695, %v6349_v35  ;;  %v6360_v10 = vmul.f32 1.442695, %v6350_v46 }
0x1fc8   :  { %v6335_v1 = vpop.xlane.xlu1 %6334 }
0x1fc9   :  { %v6351_v44 = vsub.f32 %v6318_v28, %v6335_v1  ;;  %7723 = vpow2.f32 %v6358_v18 }
0x1fca   :  { %7725 = vpow2.f32 %v6360_v10 }
0x1fcb   :  { %v6362_v37 = vmul.f32 1.442695, %v6351_v44 }
0x1fcc   :  { %v6338_v59 = vpop.xlane.xlu1 %6337 }
0x1fcd   :  { %v6352_v60 = vsub.f32 %v6319_v23, %v6338_v59  ;;  %7727 = vpow2.f32 %v6362_v37 }
0x1fcf   :  { %v6364_v50 = vmul.f32 1.442695, %v6352_v60 }
0x1fd0   :  { %v6341_v31 = vpop.xlane.xlu1 %6340 }
0x1fd1   :  { %v6353_v52 = vsub.f32 %v6320_v51, %v6341_v31  ;;  %7729 = vpow2.f32 %v6364_v50 }
0x1fd3   :  { %v7724_v39 = vpop.eup %7723  ;;  %v6366_v7 = vmul.f32 1.442695, %v6353_v52 }
0x1fd4   :  { %v6344_v30 = vpop.xlane.xlu1 %6343  ;;  %v6375_v13 = vsel %vm6323_vm14, %v7724_v39, 0.0  ;;  %v7726_v11 = vpop.eup %7725 }
0x1fd5   :  { %6376 = vadd.xlane.f32.xlu0 %v6375_v13  ;;  %7731 = vpow2.f32 %v6366_v7  ;;  %v6378_v6 = vsel %vm6323_vm14, %v7726_v11, 0.0  ;;  %v6354_v16 = vsub.f32 %v6321_v14, %v6344_v30 }
0x1fd7   :  { %v7728_v42 = vpop.eup %7727  ;;  %v6368_v53 = vmul.f32 1.442695, %v6354_v16 }
0x1fd8   :  { %v6150_v20 = vpop.permute.xlu1 %6149  ;;  %v6381_v49 = vsel %vm6323_vm14, %v7728_v42, 0.0 }
0x1fd9   :  { %v6152_v38 = vadd.f32 %v6150_v20, %v9940_v63  ;;  %6379 = vadd.xlane.f32.xlu0 %v6378_v6 }
0x1fdb   :  { %7733 = vtanh.f32 %v6152_v38  ;;  %v7730_v21 = vpop.eup %7729 }
0x1fdc   :  { %v6384_v34 = vsel %vm6323_vm14, %v7730_v21, 0.0  ;;  %7735 = vpow2.f32 %v6368_v53 }
0x1fdd   :  { %6382 = vadd.xlane.f32.xlu0 %v6381_v49 }
0x1fdf   :  { %v7732_v9 = vpop.eup %7731 }
0x1fe0   :  { %v6387_v26 = vsel %vm6323_vm14, %v7732_v9, 0.0 }
0x1fe1   :  { %6385 = vadd.xlane.f32.xlu0 %v6384_v34 }
0x1fe5   :  { %v7734_v12 = vpop.eup %7733  ;;  %6388 = vadd.xlane.f32.xlu0 %v6387_v26 }
0x1fe6   :  { %6156 = vrot.lane.b32.xlu1 %v7734_v12, %s8020_s17  ;;  %v7736_v63 = vpop.eup %7735 }
0x1fe7   :  { %v6390_v57 = vsel %vm6323_vm14, %v7736_v63, 0.0 }
0x2009   :  { %v6347_v3 = vpop.xlane.xlu1 %6346 }
0x200a   :  { %v6355_v54 = vsub.f32 %v6322_v17, %v6347_v3  ;;  %6391 = vadd.xlane.f32.xlu1 %v6390_v57 }
0x200c   :  { %v6370_v33 = vmul.f32 1.442695, %v6355_v54 }
0x200e   :  { %7737 = vpow2.f32 %v6370_v33 }
0x2018   :  { %v9983_v2 = vpop.eup %7737 }
0x2019   :  { %v6393_v8 = vsel %vm6323_vm14, %v9983_v2, 0.0 }
0x201a   :  { %6394 = vadd.xlane.f32.xlu0 %v6393_v8 }
0x201b   :  { %3207 = vrot.lane.b32.xlu1 %v9316_v45, %s8020_s17  ;;  %v6154_v45 = vsub.f32 1.0, %v9967_v25 }
0x201f   :  { %6163 = vrot.lane.b32.xlu1 %v9926_v36, %s8020_s17 }
0x2030   :  { %979 = vrot.lane.b32.xlu0 %v8637_v32, %s8020_s17  ;;  %v6160_v32 = vmul.f32 %v9967_v25, %v9909_v4 }
0x2034   :  { %1721 = vrot.lane.b32.xlu0 %v8883_v47, %s8020_s17 }
0x2038   :  { %2464 = vrot.lane.b32.xlu0 %v9066_v22, %s8020_s17 }
0x203c   :  { %3950 = vrot.lane.b32.xlu0 %v9506_v40, %s8020_s17 }
0x2040   :  { %4693 = vrot.lane.b32.xlu0 %v9768_v24, %s8020_s17 }
0x2044   :  { %5436 = vrot.lane.b32.xlu0 %v9909_v4, %s8020_s17 }
0x2058   :  { %v6157_v36 = vpop.permute.xlu1 %6156 }
0x2059   :  { %v6159_v48 = vmul.f32 %v6157_v36, %v6154_v45 }
0x205b   :  { %v6161_v47 = vadd.f32 %v6160_v32, %v6159_v48 }
0x205d   :  { %6179 = vrot.lane.b32.xlu0 %v6161_v47, %s8020_s17  ;;  %s6445_s17 = sshll.u32 %s8022_s30, 4  ;;  %s6446_s17 = int_to_ptr.vmem [resolvable:$true] %s6445_s17 }
0x205e   :  { %s7951_s5 = scalar_lea.vmem %s6446_s17, 256  ;;  %p7956_p7 = scmp.lt.s32.totalorder %s6446_s17, %s6446_s17 }
0x205f   :  { %p7952_p6 = scmp.ne.s32.totalorder %s6446_s17, %s7951_s5  ;;  %p7957_p8 = scmp.lt.s32.totalorder %s7951_s5, %s7951_s5 }
0x2061   :  { %p7958_p9 = por %p7957_p8, %p7956_p7 }
0x2062   :  { %v6377_v22 = vpop.xlane.xlu0 %6376 }
0x2063   :  { %7739 = vrcp.f32 %v6377_v22  ;;  %p7959_p10 = pnand %p7958_p9, %p7952_p6 }
0x2066   :  { %v6380_v58 = vpop.xlane.xlu0 %6379 }
0x2067   :  { %7741 = vrcp.f32 %v6380_v58 }
0x206a   :  { %v6383_v40 = vpop.xlane.xlu0 %6382 }
0x206b   :  { %7743 = vrcp.f32 %v6383_v40 }
0x206d   :  { %v7740_v24 = vpop.eup %7739 }
0x206e   :  { %v6399_v28 = vmul.f32 %v7740_v24, %v7724_v39  ;;  %v6386_v29 = vpop.xlane.xlu0 %6385 }
0x206f   :  { %7745 = vrcp.f32 %v6386_v29 }
0x2070   :  { %v6413_v23 = vsel %vm6308_vm13, %v6399_v28, 0.0 }
0x2071   :  { %v7742_v61 = vpop.eup %7741  ;;  %6421 = vst [vmem:[#allocation16 + $0x2] sm:$0x3] %v6413_v23 }
0x2072   :  { %v6401_v4 = vmul.f32 %v7742_v61, %v7726_v11  ;;  %v6389_v51 = vpop.xlane.xlu0 %6388 }
0x2073   :  { %7747 = vrcp.f32 %v6389_v51 }
0x2074   :  { %v6414_v56 = vsel %vm6309_vm12, %v6401_v4, 0.0 }
0x2075   :  { %v7744_v14 = vpop.eup %7743  ;;  %6422 = vst [vmem:[#allocation16 + $0x4] sm:$0x3] %v6414_v56 }
0x2076   :  { %v6403_v62 = vmul.f32 %v7744_v14, %v7728_v42 }
0x2078   :  { %v6415_v41 = vsel %vm6310_vm15, %v6403_v62, 0.0 }
0x2079   :  { %v7746_v19 = vpop.eup %7745  ;;  %6423 = vst [vmem:[#allocation16 + $0x6] sm:$0x3] %v6415_v41 }
0x207a   :  { %v6405_v15 = vmul.f32 %v7746_v19, %v7730_v21 }
0x207c   :  { %v6416_v25 = vsel %vm6311_vm0, %v6405_v15, 0.0 }
0x207d   :  { %v7748_v43 = vpop.eup %7747  ;;  %6424 = vst [vmem:[#allocation16 + $0x8] sm:$0x3] %v6416_v25 }
0x207e   :  { %v6407_v17 = vmul.f32 %v7748_v43, %v7732_v9 }
0x2080   :  { %v6417_v5 = vsel %vm6312_vm1, %v6407_v17, 0.0 }
0x2081   :  { %6425 = vst [vmem:[#allocation16 + $0xa] sm:$0x3] %v6417_v5 }
0x2097   :  { %v6392_v0 = vpop.xlane.xlu1 %6391 }
0x2098   :  { %7749 = vrcp.f32 %v6392_v0 }
0x209b   :  { %v3208_v27 = vpop.permute.xlu1 %3207 }
0x209c   :  { %3211 = vst.msk [vmem:[#allocation15 + $0x6] sm:$0x3] %vm142_vm2, %v3208_v27 }
0x209f   :  { %v6164_v46 = vpop.permute.xlu1 %6163 }
0x20a0   :  { %6167 = vst.msk [vmem:[#allocation2 + $0xe] sm:$0x3] %vm142_vm2, %v6164_v46 }
0x20a2   :  { %v7750_v35 = vpop.eup %7749 }
0x20a3   :  { %v6409_v18 = vmul.f32 %v7750_v35, %v7736_v63 }
0x20a5   :  { %v6418_v10 = vsel %vm6313_vm3, %v6409_v18, 0.0 }
0x20a6   :  { %6426 = vst [vmem:[#allocation16 + $0xc] sm:$0x3] %v6418_v10 }
0x20a7   :  { %v6395_v1 = vpop.xlane.xlu0 %6394 }
0x20a8   :  { %7751 = vrcp.f32 %v6395_v1 }
0x20ab   :  { %v980_v44 = vpop.permute.xlu0 %979 }
0x20ac   :  { %982 = vst.msk [vmem:[#allocation15] sm:$0x3] %vm142_vm2, %v980_v44 }
0x20af   :  { %v1722_v37 = vpop.permute.xlu0 %1721 }
0x20b0   :  { %1725 = vst.msk [vmem:[#allocation15 + $0x2] sm:$0x3] %vm142_vm2, %v1722_v37 }
0x20b2   :  { %v7752_v59 = vpop.eup %7751 }
0x20b3   :  { %v6411_v60 = vmul.f32 %v7752_v59, %v9983_v2  ;;  %v2465_v50 = vpop.permute.xlu0 %2464 }
0x20b4   :  { %2468 = vst.msk [vmem:[#allocation15 + $0x4] sm:$0x3] %vm142_vm2, %v2465_v50 }
0x20b5   :  { %v6419_v31 = vsel %vm6314_vm4, %v6411_v60, 0.0 }
0x20b6   :  { %6427 = vst [vmem:[#allocation16 + $0xe] sm:$0x3] %v6419_v31 }
0x20b7   :  { %v3951_v52 = vpop.permute.xlu0 %3950 }
0x20b8   :  { %7962 = shalt.err (!%p7959_p10)
}
0x20b9   :  { %s7963_s27 = scalar_lea.hbm %s10078_s19, 256 }
0x20ba   :  { %p7964_p11 = scmp.ne.s32.totalorder %s10078_s19, %s7963_s27  ;;  %p7967_p12 = scmp.lt.u32.totalorder %s7963_s27, %s10078_s19 }
0x20bc   :  { %p7969_p13 = pnand %p7967_p12, %p7964_p11 }
0x20be   :  { %7972 = shalt.err (!%p7969_p13)
}
0x20bf   :  { %s8023_s22 = smov 2   ;;  %3954 = vst.msk [vmem:[#allocation15 + $0x8] sm:$0x3] %vm142_vm2, %v3951_v52  ;;  %v4694_v55 = vpop.permute.xlu0 %4693  ;;  %s8024_s9 = smov [#allocation15]  }
0x20c0   :  { %6451 = dma.vmem_to_hbm [thread:$0]  %s6446_s17, 256, %s10078_s19, [#allocation17], %s8019_s14, %s8019_s14, %s8023_s22   ;;  %4697 = vst.msk [vmem:[#allocation15 + $0xa] sm:$0x3] %vm142_vm2, %v4694_v55 }
0x20c1   :  { %s6433_s2 = sshll.u32 %s8024_s9, 4  ;;  %s6434_s2 = int_to_ptr.vmem [resolvable:$true] %s6433_s2 }
0x20c2   :  { %s7973_s23 = scalar_lea.vmem %s6434_s2, 256  ;;  %p7978_p1 = scmp.lt.s32.totalorder %s6434_s2, %s6434_s2 }
0x20c3   :  { %v5437_v39 = vpop.permute.xlu0 %5436  ;;  %p7974_p0 = scmp.ne.s32.totalorder %s6434_s2, %s7973_s23  ;;  %p7979_p2 = scmp.lt.s32.totalorder %s7973_s23, %s7973_s23 }
0x20c4   :  { %5440 = vst.msk [vmem:[#allocation15 + $0xc] sm:$0x3] %vm142_vm2, %v5437_v39 }
0x20c5   :  { %p7980_p3 = por %p7979_p2, %p7978_p1 }
0x20c7   :  { %p7981_p4 = pnand %p7980_p3, %p7974_p0 }
0x20cf   :  { %v6180_v7 = vpop.permute.xlu0 %6179 }
0x20d0   :  { %6183 = vst.msk [vmem:[#allocation15 + $0xe] sm:$0x3] %vm142_vm2, %v6180_v7 }
0x20d1   :  { %7984 = shalt.err (!%p7981_p4)
}
0x20d2   :  { %s7985_s20 = scalar_lea.hbm %s10077_s18, 256 }
0x20d3   :  { %p7986_p5 = scmp.ne.s32.totalorder %s10077_s18, %s7985_s20  ;;  %p7989_p6 = scmp.lt.u32.totalorder %s7985_s20, %s10077_s18 }
0x20d5   :  { %p7991_p7 = pnand %p7989_p6, %p7986_p5 }
0x20d7   :  { %7994 = shalt.err (!%p7991_p7)
}
0x20d8   :  { %6439 = dma.vmem_to_hbm [thread:$0]  %s6434_s2, 256, %s10077_s18, [#allocation6], %s8019_s14, %s8019_s14, %s8023_s22  }
0x20d9   :  { %8003 = dma.done.wait [#allocation6], 256  }
0x20da   :  { %8004 = vsyncadd [#allocation6], 4294967040 }
0x20db   :  { %8005 = dma.done.wait [#allocation17], 256  }
0x20dc   :  { %8006 = vsyncadd [#allocation17], 4294967040 }
0x20dd   :  { %6458 = vsyncpa [#allocation5], 1 }
0x20de   :  { %6459 = vsyncpa [#allocation8], 1 }
0x20df   :  { %6460 = vsyncpa [#allocation11], 1 }
0x20e0   :  { %6461 = vsyncpa [#allocation14], 1 }
0x20e1   :  { %6462 = vsyncpa [#allocation6], 1 }
0x20e2   :  { %6463 = vsyncpa [#allocation17], 1 }

</bundles_post_ra>
